<compile_context>
chip_gen: v7x
topology: tpu7x:2x2x1
jax: 0.10.0
libtpu: 0.0.40
codegen_flags: <defaults>
</compile_context>

<pallas_src>
import math

import jax
import jax.numpy as jnp
import numpy as np
from jax.experimental import pallas as pl
from jax.experimental.pallas import tpu as pltpu

# ----- hyper-parameters (PyTorch module defaults) -----------------------------
N_TRACK = 10
N_WAYPOINTS = 3
D_MODEL = 64
NUM_LAYERS = 2
NHEAD = 4
HEAD_DIM = D_MODEL // NHEAD
D_FF = 2048                     # nn.TransformerDecoderLayer default dim_feedforward
LN_EPS = 1e-5
SEQ_MEM = 2 * N_TRACK           # concatenated left + right track points
NEG_INF = -1e30


def _round_up(x, m):
    return (x + m - 1) // m * m


# ----- Pallas kernel -----------------------------------------------------------
def planner_kernel(track_ref, qe_ref, self_bias_ref, cross_bias_ref,
                   in_w_ref, in_b_ref,
                   sa_qkv_w_ref, sa_qkv_b_ref, sa_out_w_ref, sa_out_b_ref,
                   ca_q_w_ref, ca_q_b_ref, ca_kv_w_ref, ca_kv_b_ref,
                   ca_out_w_ref, ca_out_b_ref,
                   ff1_w_ref, ff1_b_ref, ff2_w_ref, ff2_b_ref,
                   ng_ref, nb_ref, fc_w_ref, fc_b_ref, out_ref):
    scale = 1.0 / math.sqrt(HEAD_DIM)

    def layer_norm(x, g, b):
        mu = jnp.mean(x, axis=-1, keepdims=True)
        var = jnp.mean(jnp.square(x - mu), axis=-1, keepdims=True)
        return (x - mu) * jax.lax.rsqrt(var + LN_EPS) * g + b

    def mha_core(q_all, k_all, v_all, bias, out_w, out_b):
        # q_all: (Rq, 64), k_all/v_all: (Rk, 64), bias: (Rq, Rk) block-diag mask.
        head_outs = []
        for h in range(NHEAD):
            sl = slice(h * HEAD_DIM, (h + 1) * HEAD_DIM)
            qh = q_all[:, sl]
            kh = k_all[:, sl]
            vh = v_all[:, sl]
            s = jax.lax.dot_general(qh, kh, (((1,), (1,)), ((), ())),
                                    preferred_element_type=jnp.float32) * scale
            s = s + bias                                      # mask cross-sample pairs
            m = jnp.max(s, axis=-1, keepdims=True)
            p = jnp.exp(s - m)
            denom = jnp.sum(p, axis=-1, keepdims=True)
            ah = jnp.dot(p, vh, preferred_element_type=jnp.float32) / denom
            head_outs.append(ah)
        cat = jnp.concatenate(head_outs, axis=-1)             # (Rq, 64)
        return jnp.dot(cat, out_w, preferred_element_type=jnp.float32) + out_b

    # ----- input projection (K=2 -> VPU broadcast ops, keep MXU free) -----------
    track = track_ref[...]                                    # (TB*SEQ_MEM, 2)
    in_w = in_w_ref[...]                                      # (2, D)
    mem = (track[:, 0:1] * in_w[0:1, :] +
           track[:, 1:2] * in_w[1:2, :] + in_b_ref[...])      # (TB*SEQ_MEM, D)

    # learned waypoint queries, already tiled per-sample by the wrapper
    tgt = qe_ref[...]                                         # (TB*N_WAYPOINTS, D)

    self_bias = self_bias_ref[...]                            # (Rq, Rq)
    cross_bias = cross_bias_ref[...]                          # (Rq, Rk)

    for l in range(NUM_LAYERS):
        ng = ng_ref[l]                                        # (3, D)
        nb = nb_ref[l]                                        # (3, D)

        # --- self attention block (post-norm) ---
        qkv = jnp.dot(tgt, sa_qkv_w_ref[l],
                      preferred_element_type=jnp.float32) + sa_qkv_b_ref[l:l + 1]
        sa = mha_core(qkv[:, 0:D_MODEL], qkv[:, D_MODEL:2 * D_MODEL],
                      qkv[:, 2 * D_MODEL:3 * D_MODEL], self_bias,
                      sa_out_w_ref[l], sa_out_b_ref[l:l + 1])
        tgt = layer_norm(tgt + sa, ng[0:1], nb[0:1])

        # --- cross attention block ---
        q = jnp.dot(tgt, ca_q_w_ref[l],
                    preferred_element_type=jnp.float32) + ca_q_b_ref[l:l + 1]
        kv = jnp.dot(mem, ca_kv_w_ref[l],
                     preferred_element_type=jnp.float32) + ca_kv_b_ref[l:l + 1]
        ca = mha_core(q, kv[:, 0:D_MODEL], kv[:, D_MODEL:2 * D_MODEL], cross_bias,
                      ca_out_w_ref[l], ca_out_b_ref[l:l + 1])
        tgt = layer_norm(tgt + ca, ng[1:2], nb[1:2])

        # --- feed forward block (ReLU) ---
        h1 = jnp.maximum(
            jnp.dot(tgt, ff1_w_ref[l],
                    preferred_element_type=jnp.float32) + ff1_b_ref[l:l + 1], 0.0)
        ff = jnp.dot(h1, ff2_w_ref[l],
                     preferred_element_type=jnp.float32) + ff2_b_ref[l:l + 1]
        tgt = layer_norm(tgt + ff, ng[2:3], nb[2:3])

    # output projection -> flat (TB*N_WAYPOINTS, 2) store
    out_ref[...] = jnp.dot(tgt, fc_w_ref[...],
                           preferred_element_type=jnp.float32) + fc_b_ref[...]


PARAM_ORDER = ["in_w", "in_b",
               "sa_qkv_w", "sa_qkv_b", "sa_out_w", "sa_out_b",
               "ca_q_w", "ca_q_b", "ca_kv_w", "ca_kv_b", "ca_out_w", "ca_out_b",
               "ff1_w", "ff1_b", "ff2_w", "ff2_b",
               "norm_g", "norm_b", "fc_w", "fc_b"]


def transformer_planner_forward(track_left, track_right, params, batch_tile=None):
    B = track_left.shape[0]
    if batch_tile is None:
        # TB*N_WAYPOINTS rows per matmul; 64 -> 192 rows (raise to 128 on v6e/v7x
        # for even better MXU fill, VMEM budget allows it).
        batch_tile = min(64, _round_up(max(B, 1), 8))
    batch_tile = _round_up(batch_tile, 8)          # keep (TB*3, *) sublane-aligned
    B_pad = _round_up(B, batch_tile)

    track = jnp.concatenate([track_left, track_right], axis=1)   # (B, SEQ_MEM, 2)
    if B_pad != B:
        track = jnp.pad(track, ((0, B_pad - B), (0, 0), (0, 0)))
    track_flat = track.reshape(B_pad * SEQ_MEM, 2).astype(jnp.float32)

    # queries tiled per-sample once on the host side (shared across batch tiles)
    qe_tiled = jnp.tile(params["q_embed"], (batch_tile, 1))      # (TB*3, D)

    # block-diagonal additive masks keeping attention within each sample
    q_ids = jnp.repeat(jnp.arange(batch_tile, dtype=jnp.int32), N_WAYPOINTS)
    kv_ids = jnp.repeat(jnp.arange(batch_tile, dtype=jnp.int32), SEQ_MEM)
    self_bias = jnp.where(q_ids[:, None] == q_ids[None, :],
                          0.0, NEG_INF).astype(jnp.float32)      # (TB*3, TB*3)
    cross_bias = jnp.where(q_ids[:, None] == kv_ids[None, :],
                           0.0, NEG_INF).astype(jnp.float32)     # (TB*3, TB*20)

    rq = batch_tile * N_WAYPOINTS

    def _const_spec(shape):
        zeros = (0,) * len(shape)
        return pl.BlockSpec(shape, lambda b, _z=zeros: _z)

    in_specs = [
        pl.BlockSpec((batch_tile * SEQ_MEM, 2), lambda b: (b, 0)),
        _const_spec((rq, D_MODEL)),
        _const_spec(self_bias.shape),
        _const_spec(cross_bias.shape),
    ]
    args = [track_flat, qe_tiled, self_bias, cross_bias]
    for name in PARAM_ORDER:
        p = params[name]
        in_specs.append(_const_spec(p.shape))
        args.append(p)

    out_flat = pl.pallas_call(
        planner_kernel,
        out_shape=jax.ShapeDtypeStruct((B_pad * N_WAYPOINTS, 2), jnp.float32),
        grid_spec=pltpu.PrefetchScalarGridSpec(
            num_scalar_prefetch=0,
            grid=(B_pad // batch_tile,),
            in_specs=in_specs,
            out_specs=pl.BlockSpec((batch_tile * N_WAYPOINTS, 2), lambda b: (b, 0)),
        ),
        compiler_params=pltpu.CompilerParams(
            dimension_semantics=("parallel",),       # batch tiles are independent
            vmem_limit_bytes=32 * 1024 * 1024,       # actual footprint is well below
        ),
    )(*args)

    return out_flat.reshape(B_pad, N_WAYPOINTS, 2)[:B]


# ----- deterministic synthetic parameters --------------------------------------
def init_params(key):
    ks = jax.random.split(key, 21)

    def w(k, shape, scale=0.1):
        return (scale * jax.random.normal(k, shape)).astype(jnp.float32)

    return {
        "in_w": w(ks[0], (2, D_MODEL)),
        "in_b": w(ks[1], (1, D_MODEL), 0.02),
        "q_embed": w(ks[2], (N_WAYPOINTS, D_MODEL), 1.0),
        # fused attention projections (heads packed along the output dim,
        # identical math to PyTorch's in_proj_weight, just pre-transposed)
        "sa_qkv_w": w(ks[3], (NUM_LAYERS, D_MODEL, 3 * D_MODEL)),
        "sa_qkv_b": w(ks[4], (NUM_LAYERS, 3 * D_MODEL), 0.02),
        "sa_out_w": w(ks[5], (NUM_LAYERS, D_MODEL, D_MODEL)),
        "sa_out_b": w(ks[6], (NUM_LAYERS, D_MODEL), 0.02),
        "ca_q_w": w(ks[7], (NUM_LAYERS, D_MODEL, D_MODEL)),
        "ca_q_b": w(ks[8], (NUM_LAYERS, D_MODEL), 0.02),
        "ca_kv_w": w(ks[9], (NUM_LAYERS, D_MODEL, 2 * D_MODEL)),
        "ca_kv_b": w(ks[10], (NUM_LAYERS, 2 * D_MODEL), 0.02),
        "ca_out_w": w(ks[11], (NUM_LAYERS, D_MODEL, D_MODEL)),
        "ca_out_b": w(ks[12], (NUM_LAYERS, D_MODEL), 0.02),
        # feed-forward
        "ff1_w": w(ks[13], (NUM_LAYERS, D_MODEL, D_FF)),
        "ff1_b": w(ks[14], (NUM_LAYERS, D_FF), 0.02),
        "ff2_w": w(ks[15], (NUM_LAYERS, D_FF, D_MODEL), 0.05),
        "ff2_b": w(ks[16], (NUM_LAYERS, D_MODEL), 0.02),
        # norm1 / norm2 / norm3 per layer
        "norm_g": (1.0 + w(ks[17], (NUM_LAYERS, 3, D_MODEL), 0.05)).astype(jnp.float32),
        "norm_b": w(ks[18], (NUM_LAYERS, 3, D_MODEL), 0.02),
        "fc_w": w(ks[19], (D_MODEL, 2)),
        "fc_b": w(ks[20], (1, 2), 0.02),
    }


# ----- pure-JAX reference (same math, no Pallas) --------------------------------
def _ref_single(track, p):
    def layer_norm(x, g, b):
        mu = jnp.mean(x, axis=-1, keepdims=True)
        var = jnp.mean(jnp.square(x - mu), axis=-1, keepdims=True)
        return (x - mu) * jax.lax.rsqrt(var + LN_EPS) * g + b

    def mha(q_all, k_all, v_all, out_w, out_b):
        scale = 1.0 / math.sqrt(HEAD_DIM)
        outs = []
        for h in range(NHEAD):
            sl = slice(h * HEAD_DIM, (h + 1) * HEAD_DIM)
            qh, kh, vh = q_all[:, sl], k_all[:, sl], v_all[:, sl]
            s = (qh @ kh.T) * scale
            m = jnp.max(s, axis=-1, keepdims=True)
            pr = jnp.exp(s - m)
            outs.append((pr @ vh) / jnp.sum(pr, axis=-1, keepdims=True))
        return jnp.concatenate(outs, axis=-1) @ out_w + out_b

    mem = track @ p["in_w"] + p["in_b"]
    tgt = p["q_embed"]
    for l in range(NUM_LAYERS):
        ng, nb = p["norm_g"][l], p["norm_b"][l]
        qkv = tgt @ p["sa_qkv_w"][l] + p["sa_qkv_b"][l]
        sa = mha(qkv[:, 0:D_MODEL], qkv[:, D_MODEL:2 * D_MODEL],
                 qkv[:, 2 * D_MODEL:3 * D_MODEL],
                 p["sa_out_w"][l], p["sa_out_b"][l])
        tgt = layer_norm(tgt + sa, ng[0:1], nb[0:1])
        q = tgt @ p["ca_q_w"][l] + p["ca_q_b"][l]
        kv = mem @ p["ca_kv_w"][l] + p["ca_kv_b"][l]
        ca = mha(q, kv[:, 0:D_MODEL], kv[:, D_MODEL:2 * D_MODEL],
                 p["ca_out_w"][l], p["ca_out_b"][l])
        tgt = layer_norm(tgt + ca, ng[1:2], nb[1:2])
        h1 = jnp.maximum(tgt @ p["ff1_w"][l] + p["ff1_b"][l], 0.0)
        ff = h1 @ p["ff2_w"][l] + p["ff2_b"][l]
        tgt = layer_norm(tgt + ff, ng[2:3], nb[2:3])
    return tgt @ p["fc_w"] + p["fc_b"]


def reference_forward(track_left, track_right, params):
    track = jnp.concatenate([track_left, track_right], axis=1)
    return jax.vmap(lambda t: _ref_single(t, params))(track)


# ----- main ---------------------------------------------------------------------
if __name__ == "__main__":
    B = 20
    key = jax.random.PRNGKey(0)
    k_left, k_right, k_params = jax.random.split(key, 3)
    track_left = jax.random.normal(k_left, (B, N_TRACK, 2), jnp.float32)
    track_right = jax.random.normal(k_right, (B, N_TRACK, 2), jnp.float32)
    params = init_params(k_params)

    # small batch tile for the demo (exercises the multi-tile grid + batch padding);
    # production default picks up to 64 samples per grid step.
    out = transformer_planner_forward(track_left, track_right, params, batch_tile=8)
    out = jax.block_until_ready(out)
    assert out.shape == (B, N_WAYPOINTS, 2), out.shape

    ref = jax.block_until_ready(reference_forward(track_left, track_right, params))
    np.testing.assert_allclose(np.asarray(out), np.asarray(ref), rtol=2e-3, atol=2e-3)

    print("KERNEL_OK")
</pallas_src>

<mosaic_0001>
module attributes {stable_mosaic.version = 11 : i64} {
  func.func @planner_kernel(%arg0: i32, %arg1: memref<160x2xf32, #tpu.memory_space<vmem>>, %arg2: memref<24x64xf32, #tpu.memory_space<vmem>>, %arg3: memref<24x24xf32, #tpu.memory_space<vmem>>, %arg4: memref<24x160xf32, #tpu.memory_space<vmem>>, %arg5: memref<2x64xf32, #tpu.memory_space<vmem>>, %arg6: memref<1x64xf32, #tpu.memory_space<vmem>>, %arg7: memref<2x64x192xf32, #tpu.memory_space<vmem>>, %arg8: memref<2x192xf32, #tpu.memory_space<vmem>>, %arg9: memref<2x64x64xf32, #tpu.memory_space<vmem>>, %arg10: memref<2x64xf32, #tpu.memory_space<vmem>>, %arg11: memref<2x64x64xf32, #tpu.memory_space<vmem>>, %arg12: memref<2x64xf32, #tpu.memory_space<vmem>>, %arg13: memref<2x64x128xf32, #tpu.memory_space<vmem>>, %arg14: memref<2x128xf32, #tpu.memory_space<vmem>>, %arg15: memref<2x64x64xf32, #tpu.memory_space<vmem>>, %arg16: memref<2x64xf32, #tpu.memory_space<vmem>>, %arg17: memref<2x64x2048xf32, #tpu.memory_space<vmem>>, %arg18: memref<2x2048xf32, #tpu.memory_space<vmem>>, %arg19: memref<2x2048x64xf32, #tpu.memory_space<vmem>>, %arg20: memref<2x64xf32, #tpu.memory_space<vmem>>, %arg21: memref<2x3x64xf32, #tpu.memory_space<vmem>>, %arg22: memref<2x3x64xf32, #tpu.memory_space<vmem>>, %arg23: memref<64x2xf32, #tpu.memory_space<vmem>>, %arg24: memref<1x2xf32, #tpu.memory_space<vmem>>, %arg25: memref<24x2xf32, #tpu.memory_space<vmem>>) attributes {dimension_semantics = [#tpu.dimension_semantics<parallel>], iteration_bounds = array<i64: 3>, scalar_prefetch = 0 : i64, scratch_operands = 0 : i64, tpu.core_type = #tpu.core_type<tc>, window_params = [{transform_indices = @transform_0, window_bounds = array<i64: 160, 2>}, {pipeline_mode = #tpu.pipeline_mode<synchronous>, transform_indices = @transform_1, window_bounds = array<i64: 24, 64>}, {pipeline_mode = #tpu.pipeline_mode<synchronous>, transform_indices = @transform_2, window_bounds = array<i64: 24, 24>}, {pipeline_mode = #tpu.pipeline_mode<synchronous>, transform_indices = @transform_3, window_bounds = array<i64: 24, 160>}, {pipeline_mode = #tpu.pipeline_mode<synchronous>, transform_indices = @transform_4, window_bounds = array<i64: 2, 64>}, {pipeline_mode = #tpu.pipeline_mode<synchronous>, transform_indices = @transform_5, window_bounds = array<i64: 1, 64>}, {pipeline_mode = #tpu.pipeline_mode<synchronous>, transform_indices = @transform_6, window_bounds = array<i64: 2, 64, 192>}, {pipeline_mode = #tpu.pipeline_mode<synchronous>, transform_indices = @transform_7, window_bounds = array<i64: 2, 192>}, {pipeline_mode = #tpu.pipeline_mode<synchronous>, transform_indices = @transform_8, window_bounds = array<i64: 2, 64, 64>}, {pipeline_mode = #tpu.pipeline_mode<synchronous>, transform_indices = @transform_9, window_bounds = array<i64: 2, 64>}, {pipeline_mode = #tpu.pipeline_mode<synchronous>, transform_indices = @transform_10, window_bounds = array<i64: 2, 64, 64>}, {pipeline_mode = #tpu.pipeline_mode<synchronous>, transform_indices = @transform_11, window_bounds = array<i64: 2, 64>}, {pipeline_mode = #tpu.pipeline_mode<synchronous>, transform_indices = @transform_12, window_bounds = array<i64: 2, 64, 128>}, {pipeline_mode = #tpu.pipeline_mode<synchronous>, transform_indices = @transform_13, window_bounds = array<i64: 2, 128>}, {pipeline_mode = #tpu.pipeline_mode<synchronous>, transform_indices = @transform_14, window_bounds = array<i64: 2, 64, 64>}, {pipeline_mode = #tpu.pipeline_mode<synchronous>, transform_indices = @transform_15, window_bounds = array<i64: 2, 64>}, {pipeline_mode = #tpu.pipeline_mode<synchronous>, transform_indices = @transform_16, window_bounds = array<i64: 2, 64, 2048>}, {pipeline_mode = #tpu.pipeline_mode<synchronous>, transform_indices = @transform_17, window_bounds = array<i64: 2, 2048>}, {pipeline_mode = #tpu.pipeline_mode<synchronous>, transform_indices = @transform_18, window_bounds = array<i64: 2, 2048, 64>}, {pipeline_mode = #tpu.pipeline_mode<synchronous>, transform_indices = @transform_19, window_bounds = array<i64: 2, 64>}, {pipeline_mode = #tpu.pipeline_mode<synchronous>, transform_indices = @transform_20, window_bounds = array<i64: 2, 3, 64>}, {pipeline_mode = #tpu.pipeline_mode<synchronous>, transform_indices = @transform_21, window_bounds = array<i64: 2, 3, 64>}, {pipeline_mode = #tpu.pipeline_mode<synchronous>, transform_indices = @transform_22, window_bounds = array<i64: 64, 2>}, {pipeline_mode = #tpu.pipeline_mode<synchronous>, transform_indices = @transform_23, window_bounds = array<i64: 1, 2>}, {transform_indices = @transform_24, window_bounds = array<i64: 24, 2>}]} {
    %c0 = arith.constant 0 : index
    %c0_0 = arith.constant 0 : index
    %0 = vector.load %arg1[%c0, %c0_0] : memref<160x2xf32, #tpu.memory_space<vmem>>, vector<160x2xf32>
    %c0_1 = arith.constant 0 : index
    %c0_2 = arith.constant 0 : index
    %1 = vector.load %arg5[%c0_1, %c0_2] : memref<2x64xf32, #tpu.memory_space<vmem>>, vector<2x64xf32>
    %2 = vector.extract_strided_slice %0 {offsets = [0, 0], sizes = [160, 1], strides = [1, 1]} : vector<160x2xf32> to vector<160x1xf32>
    %3 = vector.extract_strided_slice %1 {offsets = [0, 0], sizes = [1, 64], strides = [1, 1]} : vector<2x64xf32> to vector<1x64xf32>
    %4 = vector.broadcast %2 : vector<160x1xf32> to vector<160x64xf32>
    %5 = vector.broadcast %3 : vector<1x64xf32> to vector<160x64xf32>
    %6 = arith.mulf %4, %5 : vector<160x64xf32>
    %7 = vector.extract_strided_slice %0 {offsets = [0, 1], sizes = [160, 1], strides = [1, 1]} : vector<160x2xf32> to vector<160x1xf32>
    %8 = vector.extract_strided_slice %1 {offsets = [1, 0], sizes = [1, 64], strides = [1, 1]} : vector<2x64xf32> to vector<1x64xf32>
    %9 = vector.broadcast %7 : vector<160x1xf32> to vector<160x64xf32>
    %10 = vector.broadcast %8 : vector<1x64xf32> to vector<160x64xf32>
    %11 = arith.mulf %9, %10 : vector<160x64xf32>
    %12 = arith.addf %6, %11 : vector<160x64xf32>
    %c0_3 = arith.constant 0 : index
    %c0_4 = arith.constant 0 : index
    %13 = vector.load %arg6[%c0_3, %c0_4] : memref<1x64xf32, #tpu.memory_space<vmem>>, vector<1x64xf32>
    %14 = vector.broadcast %13 : vector<1x64xf32> to vector<160x64xf32>
    %15 = arith.addf %12, %14 : vector<160x64xf32>
    %c0_5 = arith.constant 0 : index
    %c0_6 = arith.constant 0 : index
    %16 = vector.load %arg2[%c0_5, %c0_6] : memref<24x64xf32, #tpu.memory_space<vmem>>, vector<24x64xf32>
    %c0_7 = arith.constant 0 : index
    %c0_8 = arith.constant 0 : index
    %17 = vector.load %arg3[%c0_7, %c0_8] : memref<24x24xf32, #tpu.memory_space<vmem>>, vector<24x24xf32>
    %c0_9 = arith.constant 0 : index
    %c0_10 = arith.constant 0 : index
    %18 = vector.load %arg4[%c0_9, %c0_10] : memref<24x160xf32, #tpu.memory_space<vmem>>, vector<24x160xf32>
    %c0_11 = arith.constant 0 : index
    %c0_12 = arith.constant 0 : index
    %c0_13 = arith.constant 0 : index
    %19 = vector.load %arg21[%c0_11, %c0_12, %c0_13] : memref<2x3x64xf32, #tpu.memory_space<vmem>>, vector<1x3x64xf32>
    %20 = vector.shape_cast %19 : vector<1x3x64xf32> to vector<3x64xf32>
    %c0_14 = arith.constant 0 : index
    %c0_15 = arith.constant 0 : index
    %c0_16 = arith.constant 0 : index
    %21 = vector.load %arg22[%c0_14, %c0_15, %c0_16] : memref<2x3x64xf32, #tpu.memory_space<vmem>>, vector<1x3x64xf32>
    %22 = vector.shape_cast %21 : vector<1x3x64xf32> to vector<3x64xf32>
    %c0_17 = arith.constant 0 : index
    %c0_18 = arith.constant 0 : index
    %c0_19 = arith.constant 0 : index
    %23 = vector.load %arg7[%c0_17, %c0_18, %c0_19] : memref<2x64x192xf32, #tpu.memory_space<vmem>>, vector<1x64x192xf32>
    %24 = vector.shape_cast %23 : vector<1x64x192xf32> to vector<64x192xf32>
    %cst = arith.constant dense<0.000000e+00> : vector<24x192xf32>
    %25 = tpu.matmul %16, %24, %cst {dimension_numbers = #tpu.dot_dimension_numbers<[1], [0], [0], [1], [0, 0, 1, 1], [], []>} : vector<24x64xf32>, vector<64x192xf32>, vector<24x192xf32> -> vector<24x192xf32>
    %c0_20 = arith.constant 0 : index
    %c0_21 = arith.constant 0 : index
    %26 = vector.load %arg8[%c0_20, %c0_21] : memref<2x192xf32, #tpu.memory_space<vmem>>, vector<1x192xf32>
    %27 = vector.broadcast %26 : vector<1x192xf32> to vector<24x192xf32>
    %28 = arith.addf %25, %27 : vector<24x192xf32>
    %29 = vector.extract_strided_slice %28 {offsets = [0, 0], sizes = [24, 64], strides = [1, 1]} : vector<24x192xf32> to vector<24x64xf32>
    %30 = vector.extract_strided_slice %28 {offsets = [0, 64], sizes = [24, 64], strides = [1, 1]} : vector<24x192xf32> to vector<24x64xf32>
    %31 = vector.extract_strided_slice %28 {offsets = [0, 128], sizes = [24, 64], strides = [1, 1]} : vector<24x192xf32> to vector<24x64xf32>
    %c0_22 = arith.constant 0 : index
    %c0_23 = arith.constant 0 : index
    %c0_24 = arith.constant 0 : index
    %32 = vector.load %arg9[%c0_22, %c0_23, %c0_24] : memref<2x64x64xf32, #tpu.memory_space<vmem>>, vector<1x64x64xf32>
    %33 = vector.shape_cast %32 : vector<1x64x64xf32> to vector<64x64xf32>
    %c0_25 = arith.constant 0 : index
    %c0_26 = arith.constant 0 : index
    %34 = vector.load %arg10[%c0_25, %c0_26] : memref<2x64xf32, #tpu.memory_space<vmem>>, vector<1x64xf32>
    %35 = vector.extract_strided_slice %29 {offsets = [0, 0], sizes = [24, 16], strides = [1, 1]} : vector<24x64xf32> to vector<24x16xf32>
    %36 = vector.extract_strided_slice %30 {offsets = [0, 0], sizes = [24, 16], strides = [1, 1]} : vector<24x64xf32> to vector<24x16xf32>
    %37 = vector.extract_strided_slice %31 {offsets = [0, 0], sizes = [24, 16], strides = [1, 1]} : vector<24x64xf32> to vector<24x16xf32>
    %cst_27 = arith.constant dense<0.000000e+00> : vector<24x24xf32>
    %38 = tpu.matmul %35, %36, %cst_27 {dimension_numbers = #tpu.dot_dimension_numbers<[1], [1], [0], [0], [0, 0, 1, 0], [], []>} : vector<24x16xf32>, vector<24x16xf32>, vector<24x24xf32> -> vector<24x24xf32>
    %cst_28 = arith.constant 2.500000e-01 : f32
    %39 = vector.broadcast %cst_28 : f32 to vector<24x24xf32>
    %40 = arith.mulf %38, %39 : vector<24x24xf32>
    %41 = arith.addf %40, %17 : vector<24x24xf32>
    %cst_29 = arith.constant dense<0xFF800000> : vector<24xf32>
    %42 = vector.multi_reduction <maximumf>, %41, %cst_29 [1] : vector<24x24xf32> to vector<24xf32>
    %43 = vector.shape_cast %42 : vector<24xf32> to vector<24x1xf32>
    %44 = vector.broadcast %43 : vector<24x1xf32> to vector<24x24xf32>
    %45 = arith.subf %41, %44 : vector<24x24xf32>
    %46 = math.exp %45 : vector<24x24xf32>
    %cst_30 = arith.constant dense<0.000000e+00> : vector<24xf32>
    %47 = vector.multi_reduction <add>, %46, %cst_30 [1] : vector<24x24xf32> to vector<24xf32>
    %48 = vector.shape_cast %47 : vector<24xf32> to vector<24x1xf32>
    %cst_31 = arith.constant dense<0.000000e+00> : vector<24x16xf32>
    %49 = tpu.matmul %46, %37, %cst_31 {dimension_numbers = #tpu.dot_dimension_numbers<[1], [0], [0], [1], [0, 0, 1, 1], [], []>} : vector<24x24xf32>, vector<24x16xf32>, vector<24x16xf32> -> vector<24x16xf32>
    %50 = vector.broadcast %48 : vector<24x1xf32> to vector<24x16xf32>
    %51 = arith.divf %49, %50 : vector<24x16xf32>
    %52 = vector.extract_strided_slice %29 {offsets = [0, 16], sizes = [24, 16], strides = [1, 1]} : vector<24x64xf32> to vector<24x16xf32>
    %53 = vector.extract_strided_slice %30 {offsets = [0, 16], sizes = [24, 16], strides = [1, 1]} : vector<24x64xf32> to vector<24x16xf32>
    %54 = vector.extract_strided_slice %31 {offsets = [0, 16], sizes = [24, 16], strides = [1, 1]} : vector<24x64xf32> to vector<24x16xf32>
    %cst_32 = arith.constant dense<0.000000e+00> : vector<24x24xf32>
    %55 = tpu.matmul %52, %53, %cst_32 {dimension_numbers = #tpu.dot_dimension_numbers<[1], [1], [0], [0], [0, 0, 1, 0], [], []>} : vector<24x16xf32>, vector<24x16xf32>, vector<24x24xf32> -> vector<24x24xf32>
    %cst_33 = arith.constant 2.500000e-01 : f32
    %56 = vector.broadcast %cst_33 : f32 to vector<24x24xf32>
    %57 = arith.mulf %55, %56 : vector<24x24xf32>
    %58 = arith.addf %57, %17 : vector<24x24xf32>
    %cst_34 = arith.constant dense<0xFF800000> : vector<24xf32>
    %59 = vector.multi_reduction <maximumf>, %58, %cst_34 [1] : vector<24x24xf32> to vector<24xf32>
    %60 = vector.shape_cast %59 : vector<24xf32> to vector<24x1xf32>
    %61 = vector.broadcast %60 : vector<24x1xf32> to vector<24x24xf32>
    %62 = arith.subf %58, %61 : vector<24x24xf32>
    %63 = math.exp %62 : vector<24x24xf32>
    %cst_35 = arith.constant dense<0.000000e+00> : vector<24xf32>
    %64 = vector.multi_reduction <add>, %63, %cst_35 [1] : vector<24x24xf32> to vector<24xf32>
    %65 = vector.shape_cast %64 : vector<24xf32> to vector<24x1xf32>
    %cst_36 = arith.constant dense<0.000000e+00> : vector<24x16xf32>
    %66 = tpu.matmul %63, %54, %cst_36 {dimension_numbers = #tpu.dot_dimension_numbers<[1], [0], [0], [1], [0, 0, 1, 1], [], []>} : vector<24x24xf32>, vector<24x16xf32>, vector<24x16xf32> -> vector<24x16xf32>
    %67 = vector.broadcast %65 : vector<24x1xf32> to vector<24x16xf32>
    %68 = arith.divf %66, %67 : vector<24x16xf32>
    %69 = vector.extract_strided_slice %29 {offsets = [0, 32], sizes = [24, 16], strides = [1, 1]} : vector<24x64xf32> to vector<24x16xf32>
    %70 = vector.extract_strided_slice %30 {offsets = [0, 32], sizes = [24, 16], strides = [1, 1]} : vector<24x64xf32> to vector<24x16xf32>
    %71 = vector.extract_strided_slice %31 {offsets = [0, 32], sizes = [24, 16], strides = [1, 1]} : vector<24x64xf32> to vector<24x16xf32>
    %cst_37 = arith.constant dense<0.000000e+00> : vector<24x24xf32>
    %72 = tpu.matmul %69, %70, %cst_37 {dimension_numbers = #tpu.dot_dimension_numbers<[1], [1], [0], [0], [0, 0, 1, 0], [], []>} : vector<24x16xf32>, vector<24x16xf32>, vector<24x24xf32> -> vector<24x24xf32>
    %cst_38 = arith.constant 2.500000e-01 : f32
    %73 = vector.broadcast %cst_38 : f32 to vector<24x24xf32>
    %74 = arith.mulf %72, %73 : vector<24x24xf32>
    %75 = arith.addf %74, %17 : vector<24x24xf32>
    %cst_39 = arith.constant dense<0xFF800000> : vector<24xf32>
    %76 = vector.multi_reduction <maximumf>, %75, %cst_39 [1] : vector<24x24xf32> to vector<24xf32>
    %77 = vector.shape_cast %76 : vector<24xf32> to vector<24x1xf32>
    %78 = vector.broadcast %77 : vector<24x1xf32> to vector<24x24xf32>
    %79 = arith.subf %75, %78 : vector<24x24xf32>
    %80 = math.exp %79 : vector<24x24xf32>
    %cst_40 = arith.constant dense<0.000000e+00> : vector<24xf32>
    %81 = vector.multi_reduction <add>, %80, %cst_40 [1] : vector<24x24xf32> to vector<24xf32>
    %82 = vector.shape_cast %81 : vector<24xf32> to vector<24x1xf32>
    %cst_41 = arith.constant dense<0.000000e+00> : vector<24x16xf32>
    %83 = tpu.matmul %80, %71, %cst_41 {dimension_numbers = #tpu.dot_dimension_numbers<[1], [0], [0], [1], [0, 0, 1, 1], [], []>} : vector<24x24xf32>, vector<24x16xf32>, vector<24x16xf32> -> vector<24x16xf32>
    %84 = vector.broadcast %82 : vector<24x1xf32> to vector<24x16xf32>
    %85 = arith.divf %83, %84 : vector<24x16xf32>
    %86 = vector.extract_strided_slice %29 {offsets = [0, 48], sizes = [24, 16], strides = [1, 1]} : vector<24x64xf32> to vector<24x16xf32>
    %87 = vector.extract_strided_slice %30 {offsets = [0, 48], sizes = [24, 16], strides = [1, 1]} : vector<24x64xf32> to vector<24x16xf32>
    %88 = vector.extract_strided_slice %31 {offsets = [0, 48], sizes = [24, 16], strides = [1, 1]} : vector<24x64xf32> to vector<24x16xf32>
    %cst_42 = arith.constant dense<0.000000e+00> : vector<24x24xf32>
    %89 = tpu.matmul %86, %87, %cst_42 {dimension_numbers = #tpu.dot_dimension_numbers<[1], [1], [0], [0], [0, 0, 1, 0], [], []>} : vector<24x16xf32>, vector<24x16xf32>, vector<24x24xf32> -> vector<24x24xf32>
    %cst_43 = arith.constant 2.500000e-01 : f32
    %90 = vector.broadcast %cst_43 : f32 to vector<24x24xf32>
    %91 = arith.mulf %89, %90 : vector<24x24xf32>
    %92 = arith.addf %91, %17 : vector<24x24xf32>
    %cst_44 = arith.constant dense<0xFF800000> : vector<24xf32>
    %93 = vector.multi_reduction <maximumf>, %92, %cst_44 [1] : vector<24x24xf32> to vector<24xf32>
    %94 = vector.shape_cast %93 : vector<24xf32> to vector<24x1xf32>
    %95 = vector.broadcast %94 : vector<24x1xf32> to vector<24x24xf32>
    %96 = arith.subf %92, %95 : vector<24x24xf32>
    %97 = math.exp %96 : vector<24x24xf32>
    %cst_45 = arith.constant dense<0.000000e+00> : vector<24xf32>
    %98 = vector.multi_reduction <add>, %97, %cst_45 [1] : vector<24x24xf32> to vector<24xf32>
    %99 = vector.shape_cast %98 : vector<24xf32> to vector<24x1xf32>
    %cst_46 = arith.constant dense<0.000000e+00> : vector<24x16xf32>
    %100 = tpu.matmul %97, %88, %cst_46 {dimension_numbers = #tpu.dot_dimension_numbers<[1], [0], [0], [1], [0, 0, 1, 1], [], []>} : vector<24x24xf32>, vector<24x16xf32>, vector<24x16xf32> -> vector<24x16xf32>
    %101 = vector.broadcast %99 : vector<24x1xf32> to vector<24x16xf32>
    %102 = arith.divf %100, %101 : vector<24x16xf32>
    %103 = tpu.concatenate %51, %68, %85, %102 in 1 : vector<24x16xf32>, vector<24x16xf32>, vector<24x16xf32>, vector<24x16xf32> -> vector<24x64xf32>
    %cst_47 = arith.constant dense<0.000000e+00> : vector<24x64xf32>
    %104 = tpu.matmul %103, %33, %cst_47 {dimension_numbers = #tpu.dot_dimension_numbers<[1], [0], [0], [1], [0, 0, 1, 1], [], []>} : vector<24x64xf32>, vector<64x64xf32>, vector<24x64xf32> -> vector<24x64xf32>
    %105 = vector.broadcast %34 : vector<1x64xf32> to vector<24x64xf32>
    %106 = arith.addf %104, %105 : vector<24x64xf32>
    %107 = arith.addf %16, %106 : vector<24x64xf32>
    %108 = vector.extract_strided_slice %20 {offsets = [0, 0], sizes = [1, 64], strides = [1, 1]} : vector<3x64xf32> to vector<1x64xf32>
    %109 = vector.extract_strided_slice %22 {offsets = [0, 0], sizes = [1, 64], strides = [1, 1]} : vector<3x64xf32> to vector<1x64xf32>
    %cst_48 = arith.constant dense<0.000000e+00> : vector<24xf32>
    %110 = vector.multi_reduction <add>, %107, %cst_48 [1] : vector<24x64xf32> to vector<24xf32>
    %111 = vector.shape_cast %110 : vector<24xf32> to vector<24x1xf32>
    %cst_49 = arith.constant 6.400000e+01 : f32
    %112 = vector.broadcast %cst_49 : f32 to vector<24x1xf32>
    %113 = arith.divf %111, %112 : vector<24x1xf32>
    %114 = vector.broadcast %113 : vector<24x1xf32> to vector<24x64xf32>
    %115 = arith.subf %107, %114 : vector<24x64xf32>
    %116 = arith.mulf %115, %115 : vector<24x64xf32>
    %cst_50 = arith.constant dense<0.000000e+00> : vector<24xf32>
    %117 = vector.multi_reduction <add>, %116, %cst_50 [1] : vector<24x64xf32> to vector<24xf32>
    %118 = vector.shape_cast %117 : vector<24xf32> to vector<24x1xf32>
    %cst_51 = arith.constant 6.400000e+01 : f32
    %119 = vector.broadcast %cst_51 : f32 to vector<24x1xf32>
    %120 = arith.divf %118, %119 : vector<24x1xf32>
    %121 = vector.broadcast %113 : vector<24x1xf32> to vector<24x64xf32>
    %122 = arith.subf %107, %121 : vector<24x64xf32>
    %cst_52 = arith.constant 9.99999974E-6 : f32
    %123 = vector.broadcast %cst_52 : f32 to vector<24x1xf32>
    %124 = arith.addf %120, %123 : vector<24x1xf32>
    %125 = math.rsqrt %124 : vector<24x1xf32>
    %126 = vector.broadcast %125 : vector<24x1xf32> to vector<24x64xf32>
    %127 = arith.mulf %122, %126 : vector<24x64xf32>
    %128 = vector.broadcast %108 : vector<1x64xf32> to vector<24x64xf32>
    %129 = arith.mulf %127, %128 : vector<24x64xf32>
    %130 = vector.broadcast %109 : vector<1x64xf32> to vector<24x64xf32>
    %131 = arith.addf %129, %130 : vector<24x64xf32>
    %c0_53 = arith.constant 0 : index
    %c0_54 = arith.constant 0 : index
    %c0_55 = arith.constant 0 : index
    %132 = vector.load %arg11[%c0_53, %c0_54, %c0_55] : memref<2x64x64xf32, #tpu.memory_space<vmem>>, vector<1x64x64xf32>
    %133 = vector.shape_cast %132 : vector<1x64x64xf32> to vector<64x64xf32>
    %cst_56 = arith.constant dense<0.000000e+00> : vector<24x64xf32>
    %134 = tpu.matmul %131, %133, %cst_56 {dimension_numbers = #tpu.dot_dimension_numbers<[1], [0], [0], [1], [0, 0, 1, 1], [], []>} : vector<24x64xf32>, vector<64x64xf32>, vector<24x64xf32> -> vector<24x64xf32>
    %c0_57 = arith.constant 0 : index
    %c0_58 = arith.constant 0 : index
    %135 = vector.load %arg12[%c0_57, %c0_58] : memref<2x64xf32, #tpu.memory_space<vmem>>, vector<1x64xf32>
    %136 = vector.broadcast %135 : vector<1x64xf32> to vector<24x64xf32>
    %137 = arith.addf %134, %136 : vector<24x64xf32>
    %c0_59 = arith.constant 0 : index
    %c0_60 = arith.constant 0 : index
    %c0_61 = arith.constant 0 : index
    %138 = vector.load %arg13[%c0_59, %c0_60, %c0_61] : memref<2x64x128xf32, #tpu.memory_space<vmem>>, vector<1x64x128xf32>
    %139 = vector.shape_cast %138 : vector<1x64x128xf32> to vector<64x128xf32>
    %cst_62 = arith.constant dense<0.000000e+00> : vector<160x128xf32>
    %140 = tpu.matmul %15, %139, %cst_62 {dimension_numbers = #tpu.dot_dimension_numbers<[1], [0], [0], [1], [0, 0, 1, 1], [], []>} : vector<160x64xf32>, vector<64x128xf32>, vector<160x128xf32> -> vector<160x128xf32>
    %c0_63 = arith.constant 0 : index
    %c0_64 = arith.constant 0 : index
    %141 = vector.load %arg14[%c0_63, %c0_64] : memref<2x128xf32, #tpu.memory_space<vmem>>, vector<1x128xf32>
    %142 = vector.broadcast %141 : vector<1x128xf32> to vector<160x128xf32>
    %143 = arith.addf %140, %142 : vector<160x128xf32>
    %144 = vector.extract_strided_slice %143 {offsets = [0, 0], sizes = [160, 64], strides = [1, 1]} : vector<160x128xf32> to vector<160x64xf32>
    %145 = vector.extract_strided_slice %143 {offsets = [0, 64], sizes = [160, 64], strides = [1, 1]} : vector<160x128xf32> to vector<160x64xf32>
    %c0_65 = arith.constant 0 : index
    %c0_66 = arith.constant 0 : index
    %c0_67 = arith.constant 0 : index
    %146 = vector.load %arg15[%c0_65, %c0_66, %c0_67] : memref<2x64x64xf32, #tpu.memory_space<vmem>>, vector<1x64x64xf32>
    %147 = vector.shape_cast %146 : vector<1x64x64xf32> to vector<64x64xf32>
    %c0_68 = arith.constant 0 : index
    %c0_69 = arith.constant 0 : index
    %148 = vector.load %arg16[%c0_68, %c0_69] : memref<2x64xf32, #tpu.memory_space<vmem>>, vector<1x64xf32>
    %149 = vector.extract_strided_slice %137 {offsets = [0, 0], sizes = [24, 16], strides = [1, 1]} : vector<24x64xf32> to vector<24x16xf32>
    %150 = vector.extract_strided_slice %144 {offsets = [0, 0], sizes = [160, 16], strides = [1, 1]} : vector<160x64xf32> to vector<160x16xf32>
    %151 = vector.extract_strided_slice %145 {offsets = [0, 0], sizes = [160, 16], strides = [1, 1]} : vector<160x64xf32> to vector<160x16xf32>
    %cst_70 = arith.constant dense<0.000000e+00> : vector<24x160xf32>
    %152 = tpu.matmul %149, %150, %cst_70 {dimension_numbers = #tpu.dot_dimension_numbers<[1], [1], [0], [0], [0, 0, 1, 0], [], []>} : vector<24x16xf32>, vector<160x16xf32>, vector<24x160xf32> -> vector<24x160xf32>
    %cst_71 = arith.constant 2.500000e-01 : f32
    %153 = vector.broadcast %cst_71 : f32 to vector<24x160xf32>
    %154 = arith.mulf %152, %153 : vector<24x160xf32>
    %155 = arith.addf %154, %18 : vector<24x160xf32>
    %cst_72 = arith.constant dense<0xFF800000> : vector<24xf32>
    %156 = vector.multi_reduction <maximumf>, %155, %cst_72 [1] : vector<24x160xf32> to vector<24xf32>
    %157 = vector.shape_cast %156 : vector<24xf32> to vector<24x1xf32>
    %158 = vector.broadcast %157 : vector<24x1xf32> to vector<24x160xf32>
    %159 = arith.subf %155, %158 : vector<24x160xf32>
    %160 = math.exp %159 : vector<24x160xf32>
    %cst_73 = arith.constant dense<0.000000e+00> : vector<24xf32>
    %161 = vector.multi_reduction <add>, %160, %cst_73 [1] : vector<24x160xf32> to vector<24xf32>
    %162 = vector.shape_cast %161 : vector<24xf32> to vector<24x1xf32>
    %cst_74 = arith.constant dense<0.000000e+00> : vector<24x16xf32>
    %163 = tpu.matmul %160, %151, %cst_74 {dimension_numbers = #tpu.dot_dimension_numbers<[1], [0], [0], [1], [0, 0, 1, 1], [], []>} : vector<24x160xf32>, vector<160x16xf32>, vector<24x16xf32> -> vector<24x16xf32>
    %164 = vector.broadcast %162 : vector<24x1xf32> to vector<24x16xf32>
    %165 = arith.divf %163, %164 : vector<24x16xf32>
    %166 = vector.extract_strided_slice %137 {offsets = [0, 16], sizes = [24, 16], strides = [1, 1]} : vector<24x64xf32> to vector<24x16xf32>
    %167 = vector.extract_strided_slice %144 {offsets = [0, 16], sizes = [160, 16], strides = [1, 1]} : vector<160x64xf32> to vector<160x16xf32>
    %168 = vector.extract_strided_slice %145 {offsets = [0, 16], sizes = [160, 16], strides = [1, 1]} : vector<160x64xf32> to vector<160x16xf32>
    %cst_75 = arith.constant dense<0.000000e+00> : vector<24x160xf32>
    %169 = tpu.matmul %166, %167, %cst_75 {dimension_numbers = #tpu.dot_dimension_numbers<[1], [1], [0], [0], [0, 0, 1, 0], [], []>} : vector<24x16xf32>, vector<160x16xf32>, vector<24x160xf32> -> vector<24x160xf32>
    %cst_76 = arith.constant 2.500000e-01 : f32
    %170 = vector.broadcast %cst_76 : f32 to vector<24x160xf32>
    %171 = arith.mulf %169, %170 : vector<24x160xf32>
    %172 = arith.addf %171, %18 : vector<24x160xf32>
    %cst_77 = arith.constant dense<0xFF800000> : vector<24xf32>
    %173 = vector.multi_reduction <maximumf>, %172, %cst_77 [1] : vector<24x160xf32> to vector<24xf32>
    %174 = vector.shape_cast %173 : vector<24xf32> to vector<24x1xf32>
    %175 = vector.broadcast %174 : vector<24x1xf32> to vector<24x160xf32>
    %176 = arith.subf %172, %175 : vector<24x160xf32>
    %177 = math.exp %176 : vector<24x160xf32>
    %cst_78 = arith.constant dense<0.000000e+00> : vector<24xf32>
    %178 = vector.multi_reduction <add>, %177, %cst_78 [1] : vector<24x160xf32> to vector<24xf32>
    %179 = vector.shape_cast %178 : vector<24xf32> to vector<24x1xf32>
    %cst_79 = arith.constant dense<0.000000e+00> : vector<24x16xf32>
    %180 = tpu.matmul %177, %168, %cst_79 {dimension_numbers = #tpu.dot_dimension_numbers<[1], [0], [0], [1], [0, 0, 1, 1], [], []>} : vector<24x160xf32>, vector<160x16xf32>, vector<24x16xf32> -> vector<24x16xf32>
    %181 = vector.broadcast %179 : vector<24x1xf32> to vector<24x16xf32>
    %182 = arith.divf %180, %181 : vector<24x16xf32>
    %183 = vector.extract_strided_slice %137 {offsets = [0, 32], sizes = [24, 16], strides = [1, 1]} : vector<24x64xf32> to vector<24x16xf32>
    %184 = vector.extract_strided_slice %144 {offsets = [0, 32], sizes = [160, 16], strides = [1, 1]} : vector<160x64xf32> to vector<160x16xf32>
    %185 = vector.extract_strided_slice %145 {offsets = [0, 32], sizes = [160, 16], strides = [1, 1]} : vector<160x64xf32> to vector<160x16xf32>
    %cst_80 = arith.constant dense<0.000000e+00> : vector<24x160xf32>
    %186 = tpu.matmul %183, %184, %cst_80 {dimension_numbers = #tpu.dot_dimension_numbers<[1], [1], [0], [0], [0, 0, 1, 0], [], []>} : vector<24x16xf32>, vector<160x16xf32>, vector<24x160xf32> -> vector<24x160xf32>
    %cst_81 = arith.constant 2.500000e-01 : f32
    %187 = vector.broadcast %cst_81 : f32 to vector<24x160xf32>
    %188 = arith.mulf %186, %187 : vector<24x160xf32>
    %189 = arith.addf %188, %18 : vector<24x160xf32>
    %cst_82 = arith.constant dense<0xFF800000> : vector<24xf32>
    %190 = vector.multi_reduction <maximumf>, %189, %cst_82 [1] : vector<24x160xf32> to vector<24xf32>
    %191 = vector.shape_cast %190 : vector<24xf32> to vector<24x1xf32>
    %192 = vector.broadcast %191 : vector<24x1xf32> to vector<24x160xf32>
    %193 = arith.subf %189, %192 : vector<24x160xf32>
    %194 = math.exp %193 : vector<24x160xf32>
    %cst_83 = arith.constant dense<0.000000e+00> : vector<24xf32>
    %195 = vector.multi_reduction <add>, %194, %cst_83 [1] : vector<24x160xf32> to vector<24xf32>
    %196 = vector.shape_cast %195 : vector<24xf32> to vector<24x1xf32>
    %cst_84 = arith.constant dense<0.000000e+00> : vector<24x16xf32>
    %197 = tpu.matmul %194, %185, %cst_84 {dimension_numbers = #tpu.dot_dimension_numbers<[1], [0], [0], [1], [0, 0, 1, 1], [], []>} : vector<24x160xf32>, vector<160x16xf32>, vector<24x16xf32> -> vector<24x16xf32>
    %198 = vector.broadcast %196 : vector<24x1xf32> to vector<24x16xf32>
    %199 = arith.divf %197, %198 : vector<24x16xf32>
    %200 = vector.extract_strided_slice %137 {offsets = [0, 48], sizes = [24, 16], strides = [1, 1]} : vector<24x64xf32> to vector<24x16xf32>
    %201 = vector.extract_strided_slice %144 {offsets = [0, 48], sizes = [160, 16], strides = [1, 1]} : vector<160x64xf32> to vector<160x16xf32>
    %202 = vector.extract_strided_slice %145 {offsets = [0, 48], sizes = [160, 16], strides = [1, 1]} : vector<160x64xf32> to vector<160x16xf32>
    %cst_85 = arith.constant dense<0.000000e+00> : vector<24x160xf32>
    %203 = tpu.matmul %200, %201, %cst_85 {dimension_numbers = #tpu.dot_dimension_numbers<[1], [1], [0], [0], [0, 0, 1, 0], [], []>} : vector<24x16xf32>, vector<160x16xf32>, vector<24x160xf32> -> vector<24x160xf32>
    %cst_86 = arith.constant 2.500000e-01 : f32
    %204 = vector.broadcast %cst_86 : f32 to vector<24x160xf32>
    %205 = arith.mulf %203, %204 : vector<24x160xf32>
    %206 = arith.addf %205, %18 : vector<24x160xf32>
    %cst_87 = arith.constant dense<0xFF800000> : vector<24xf32>
    %207 = vector.multi_reduction <maximumf>, %206, %cst_87 [1] : vector<24x160xf32> to vector<24xf32>
    %208 = vector.shape_cast %207 : vector<24xf32> to vector<24x1xf32>
    %209 = vector.broadcast %208 : vector<24x1xf32> to vector<24x160xf32>
    %210 = arith.subf %206, %209 : vector<24x160xf32>
    %211 = math.exp %210 : vector<24x160xf32>
    %cst_88 = arith.constant dense<0.000000e+00> : vector<24xf32>
    %212 = vector.multi_reduction <add>, %211, %cst_88 [1] : vector<24x160xf32> to vector<24xf32>
    %213 = vector.shape_cast %212 : vector<24xf32> to vector<24x1xf32>
    %cst_89 = arith.constant dense<0.000000e+00> : vector<24x16xf32>
    %214 = tpu.matmul %211, %202, %cst_89 {dimension_numbers = #tpu.dot_dimension_numbers<[1], [0], [0], [1], [0, 0, 1, 1], [], []>} : vector<24x160xf32>, vector<160x16xf32>, vector<24x16xf32> -> vector<24x16xf32>
    %215 = vector.broadcast %213 : vector<24x1xf32> to vector<24x16xf32>
    %216 = arith.divf %214, %215 : vector<24x16xf32>
    %217 = tpu.concatenate %165, %182, %199, %216 in 1 : vector<24x16xf32>, vector<24x16xf32>, vector<24x16xf32>, vector<24x16xf32> -> vector<24x64xf32>
    %cst_90 = arith.constant dense<0.000000e+00> : vector<24x64xf32>
    %218 = tpu.matmul %217, %147, %cst_90 {dimension_numbers = #tpu.dot_dimension_numbers<[1], [0], [0], [1], [0, 0, 1, 1], [], []>} : vector<24x64xf32>, vector<64x64xf32>, vector<24x64xf32> -> vector<24x64xf32>
    %219 = vector.broadcast %148 : vector<1x64xf32> to vector<24x64xf32>
    %220 = arith.addf %218, %219 : vector<24x64xf32>
    %221 = arith.addf %131, %220 : vector<24x64xf32>
    %222 = vector.extract_strided_slice %20 {offsets = [1, 0], sizes = [1, 64], strides = [1, 1]} : vector<3x64xf32> to vector<1x64xf32>
    %223 = vector.extract_strided_slice %22 {offsets = [1, 0], sizes = [1, 64], strides = [1, 1]} : vector<3x64xf32> to vector<1x64xf32>
    %cst_91 = arith.constant dense<0.000000e+00> : vector<24xf32>
    %224 = vector.multi_reduction <add>, %221, %cst_91 [1] : vector<24x64xf32> to vector<24xf32>
    %225 = vector.shape_cast %224 : vector<24xf32> to vector<24x1xf32>
    %cst_92 = arith.constant 6.400000e+01 : f32
    %226 = vector.broadcast %cst_92 : f32 to vector<24x1xf32>
    %227 = arith.divf %225, %226 : vector<24x1xf32>
    %228 = vector.broadcast %227 : vector<24x1xf32> to vector<24x64xf32>
    %229 = arith.subf %221, %228 : vector<24x64xf32>
    %230 = arith.mulf %229, %229 : vector<24x64xf32>
    %cst_93 = arith.constant dense<0.000000e+00> : vector<24xf32>
    %231 = vector.multi_reduction <add>, %230, %cst_93 [1] : vector<24x64xf32> to vector<24xf32>
    %232 = vector.shape_cast %231 : vector<24xf32> to vector<24x1xf32>
    %cst_94 = arith.constant 6.400000e+01 : f32
    %233 = vector.broadcast %cst_94 : f32 to vector<24x1xf32>
    %234 = arith.divf %232, %233 : vector<24x1xf32>
    %235 = vector.broadcast %227 : vector<24x1xf32> to vector<24x64xf32>
    %236 = arith.subf %221, %235 : vector<24x64xf32>
    %cst_95 = arith.constant 9.99999974E-6 : f32
    %237 = vector.broadcast %cst_95 : f32 to vector<24x1xf32>
    %238 = arith.addf %234, %237 : vector<24x1xf32>
    %239 = math.rsqrt %238 : vector<24x1xf32>
    %240 = vector.broadcast %239 : vector<24x1xf32> to vector<24x64xf32>
    %241 = arith.mulf %236, %240 : vector<24x64xf32>
    %242 = vector.broadcast %222 : vector<1x64xf32> to vector<24x64xf32>
    %243 = arith.mulf %241, %242 : vector<24x64xf32>
    %244 = vector.broadcast %223 : vector<1x64xf32> to vector<24x64xf32>
    %245 = arith.addf %243, %244 : vector<24x64xf32>
    %c0_96 = arith.constant 0 : index
    %c0_97 = arith.constant 0 : index
    %c0_98 = arith.constant 0 : index
    %246 = vector.load %arg17[%c0_96, %c0_97, %c0_98] : memref<2x64x2048xf32, #tpu.memory_space<vmem>>, vector<1x64x2048xf32>
    %247 = vector.shape_cast %246 : vector<1x64x2048xf32> to vector<64x2048xf32>
    %cst_99 = arith.constant dense<0.000000e+00> : vector<24x2048xf32>
    %248 = tpu.matmul %245, %247, %cst_99 {dimension_numbers = #tpu.dot_dimension_numbers<[1], [0], [0], [1], [0, 0, 1, 1], [], []>} : vector<24x64xf32>, vector<64x2048xf32>, vector<24x2048xf32> -> vector<24x2048xf32>
    %c0_100 = arith.constant 0 : index
    %c0_101 = arith.constant 0 : index
    %249 = vector.load %arg18[%c0_100, %c0_101] : memref<2x2048xf32, #tpu.memory_space<vmem>>, vector<1x2048xf32>
    %250 = vector.broadcast %249 : vector<1x2048xf32> to vector<24x2048xf32>
    %251 = arith.addf %248, %250 : vector<24x2048xf32>
    %cst_102 = arith.constant 0.000000e+00 : f32
    %252 = vector.broadcast %cst_102 : f32 to vector<24x2048xf32>
    %253 = arith.maximumf %251, %252 : vector<24x2048xf32>
    %c0_103 = arith.constant 0 : index
    %c0_104 = arith.constant 0 : index
    %c0_105 = arith.constant 0 : index
    %254 = vector.load %arg19[%c0_103, %c0_104, %c0_105] : memref<2x2048x64xf32, #tpu.memory_space<vmem>>, vector<1x2048x64xf32>
    %255 = vector.shape_cast %254 : vector<1x2048x64xf32> to vector<2048x64xf32>
    %cst_106 = arith.constant dense<0.000000e+00> : vector<24x64xf32>
    %256 = tpu.matmul %253, %255, %cst_106 {dimension_numbers = #tpu.dot_dimension_numbers<[1], [0], [0], [1], [0, 0, 1, 1], [], []>} : vector<24x2048xf32>, vector<2048x64xf32>, vector<24x64xf32> -> vector<24x64xf32>
    %c0_107 = arith.constant 0 : index
    %c0_108 = arith.constant 0 : index
    %257 = vector.load %arg20[%c0_107, %c0_108] : memref<2x64xf32, #tpu.memory_space<vmem>>, vector<1x64xf32>
    %258 = vector.broadcast %257 : vector<1x64xf32> to vector<24x64xf32>
    %259 = arith.addf %256, %258 : vector<24x64xf32>
    %260 = arith.addf %245, %259 : vector<24x64xf32>
    %261 = vector.extract_strided_slice %20 {offsets = [2, 0], sizes = [1, 64], strides = [1, 1]} : vector<3x64xf32> to vector<1x64xf32>
    %262 = vector.extract_strided_slice %22 {offsets = [2, 0], sizes = [1, 64], strides = [1, 1]} : vector<3x64xf32> to vector<1x64xf32>
    %cst_109 = arith.constant dense<0.000000e+00> : vector<24xf32>
    %263 = vector.multi_reduction <add>, %260, %cst_109 [1] : vector<24x64xf32> to vector<24xf32>
    %264 = vector.shape_cast %263 : vector<24xf32> to vector<24x1xf32>
    %cst_110 = arith.constant 6.400000e+01 : f32
    %265 = vector.broadcast %cst_110 : f32 to vector<24x1xf32>
    %266 = arith.divf %264, %265 : vector<24x1xf32>
    %267 = vector.broadcast %266 : vector<24x1xf32> to vector<24x64xf32>
    %268 = arith.subf %260, %267 : vector<24x64xf32>
    %269 = arith.mulf %268, %268 : vector<24x64xf32>
    %cst_111 = arith.constant dense<0.000000e+00> : vector<24xf32>
    %270 = vector.multi_reduction <add>, %269, %cst_111 [1] : vector<24x64xf32> to vector<24xf32>
    %271 = vector.shape_cast %270 : vector<24xf32> to vector<24x1xf32>
    %cst_112 = arith.constant 6.400000e+01 : f32
    %272 = vector.broadcast %cst_112 : f32 to vector<24x1xf32>
    %273 = arith.divf %271, %272 : vector<24x1xf32>
    %274 = vector.broadcast %266 : vector<24x1xf32> to vector<24x64xf32>
    %275 = arith.subf %260, %274 : vector<24x64xf32>
    %cst_113 = arith.constant 9.99999974E-6 : f32
    %276 = vector.broadcast %cst_113 : f32 to vector<24x1xf32>
    %277 = arith.addf %273, %276 : vector<24x1xf32>
    %278 = math.rsqrt %277 : vector<24x1xf32>
    %279 = vector.broadcast %278 : vector<24x1xf32> to vector<24x64xf32>
    %280 = arith.mulf %275, %279 : vector<24x64xf32>
    %281 = vector.broadcast %261 : vector<1x64xf32> to vector<24x64xf32>
    %282 = arith.mulf %280, %281 : vector<24x64xf32>
    %283 = vector.broadcast %262 : vector<1x64xf32> to vector<24x64xf32>
    %284 = arith.addf %282, %283 : vector<24x64xf32>
    %c1 = arith.constant 1 : index
    %c0_114 = arith.constant 0 : index
    %c0_115 = arith.constant 0 : index
    %285 = vector.load %arg21[%c1, %c0_114, %c0_115] : memref<2x3x64xf32, #tpu.memory_space<vmem>>, vector<1x3x64xf32>
    %286 = vector.shape_cast %285 : vector<1x3x64xf32> to vector<3x64xf32>
    %c1_116 = arith.constant 1 : index
    %c0_117 = arith.constant 0 : index
    %c0_118 = arith.constant 0 : index
    %287 = vector.load %arg22[%c1_116, %c0_117, %c0_118] : memref<2x3x64xf32, #tpu.memory_space<vmem>>, vector<1x3x64xf32>
    %288 = vector.shape_cast %287 : vector<1x3x64xf32> to vector<3x64xf32>
    %c1_119 = arith.constant 1 : index
    %c0_120 = arith.constant 0 : index
    %c0_121 = arith.constant 0 : index
    %289 = vector.load %arg7[%c1_119, %c0_120, %c0_121] : memref<2x64x192xf32, #tpu.memory_space<vmem>>, vector<1x64x192xf32>
    %290 = vector.shape_cast %289 : vector<1x64x192xf32> to vector<64x192xf32>
    %cst_122 = arith.constant dense<0.000000e+00> : vector<24x192xf32>
    %291 = tpu.matmul %284, %290, %cst_122 {dimension_numbers = #tpu.dot_dimension_numbers<[1], [0], [0], [1], [0, 0, 1, 1], [], []>} : vector<24x64xf32>, vector<64x192xf32>, vector<24x192xf32> -> vector<24x192xf32>
    %c1_123 = arith.constant 1 : index
    %c0_124 = arith.constant 0 : index
    %292 = vector.load %arg8[%c1_123, %c0_124] : memref<2x192xf32, #tpu.memory_space<vmem>>, vector<1x192xf32>
    %293 = vector.broadcast %292 : vector<1x192xf32> to vector<24x192xf32>
    %294 = arith.addf %291, %293 : vector<24x192xf32>
    %295 = vector.extract_strided_slice %294 {offsets = [0, 0], sizes = [24, 64], strides = [1, 1]} : vector<24x192xf32> to vector<24x64xf32>
    %296 = vector.extract_strided_slice %294 {offsets = [0, 64], sizes = [24, 64], strides = [1, 1]} : vector<24x192xf32> to vector<24x64xf32>
    %297 = vector.extract_strided_slice %294 {offsets = [0, 128], sizes = [24, 64], strides = [1, 1]} : vector<24x192xf32> to vector<24x64xf32>
    %c1_125 = arith.constant 1 : index
    %c0_126 = arith.constant 0 : index
    %c0_127 = arith.constant 0 : index
    %298 = vector.load %arg9[%c1_125, %c0_126, %c0_127] : memref<2x64x64xf32, #tpu.memory_space<vmem>>, vector<1x64x64xf32>
    %299 = vector.shape_cast %298 : vector<1x64x64xf32> to vector<64x64xf32>
    %c1_128 = arith.constant 1 : index
    %c0_129 = arith.constant 0 : index
    %300 = vector.load %arg10[%c1_128, %c0_129] : memref<2x64xf32, #tpu.memory_space<vmem>>, vector<1x64xf32>
    %301 = vector.extract_strided_slice %295 {offsets = [0, 0], sizes = [24, 16], strides = [1, 1]} : vector<24x64xf32> to vector<24x16xf32>
    %302 = vector.extract_strided_slice %296 {offsets = [0, 0], sizes = [24, 16], strides = [1, 1]} : vector<24x64xf32> to vector<24x16xf32>
    %303 = vector.extract_strided_slice %297 {offsets = [0, 0], sizes = [24, 16], strides = [1, 1]} : vector<24x64xf32> to vector<24x16xf32>
    %cst_130 = arith.constant dense<0.000000e+00> : vector<24x24xf32>
    %304 = tpu.matmul %301, %302, %cst_130 {dimension_numbers = #tpu.dot_dimension_numbers<[1], [1], [0], [0], [0, 0, 1, 0], [], []>} : vector<24x16xf32>, vector<24x16xf32>, vector<24x24xf32> -> vector<24x24xf32>
    %cst_131 = arith.constant 2.500000e-01 : f32
    %305 = vector.broadcast %cst_131 : f32 to vector<24x24xf32>
    %306 = arith.mulf %304, %305 : vector<24x24xf32>
    %307 = arith.addf %306, %17 : vector<24x24xf32>
    %cst_132 = arith.constant dense<0xFF800000> : vector<24xf32>
    %308 = vector.multi_reduction <maximumf>, %307, %cst_132 [1] : vector<24x24xf32> to vector<24xf32>
    %309 = vector.shape_cast %308 : vector<24xf32> to vector<24x1xf32>
    %310 = vector.broadcast %309 : vector<24x1xf32> to vector<24x24xf32>
    %311 = arith.subf %307, %310 : vector<24x24xf32>
    %312 = math.exp %311 : vector<24x24xf32>
    %cst_133 = arith.constant dense<0.000000e+00> : vector<24xf32>
    %313 = vector.multi_reduction <add>, %312, %cst_133 [1] : vector<24x24xf32> to vector<24xf32>
    %314 = vector.shape_cast %313 : vector<24xf32> to vector<24x1xf32>
    %cst_134 = arith.constant dense<0.000000e+00> : vector<24x16xf32>
    %315 = tpu.matmul %312, %303, %cst_134 {dimension_numbers = #tpu.dot_dimension_numbers<[1], [0], [0], [1], [0, 0, 1, 1], [], []>} : vector<24x24xf32>, vector<24x16xf32>, vector<24x16xf32> -> vector<24x16xf32>
    %316 = vector.broadcast %314 : vector<24x1xf32> to vector<24x16xf32>
    %317 = arith.divf %315, %316 : vector<24x16xf32>
    %318 = vector.extract_strided_slice %295 {offsets = [0, 16], sizes = [24, 16], strides = [1, 1]} : vector<24x64xf32> to vector<24x16xf32>
    %319 = vector.extract_strided_slice %296 {offsets = [0, 16], sizes = [24, 16], strides = [1, 1]} : vector<24x64xf32> to vector<24x16xf32>
    %320 = vector.extract_strided_slice %297 {offsets = [0, 16], sizes = [24, 16], strides = [1, 1]} : vector<24x64xf32> to vector<24x16xf32>
    %cst_135 = arith.constant dense<0.000000e+00> : vector<24x24xf32>
    %321 = tpu.matmul %318, %319, %cst_135 {dimension_numbers = #tpu.dot_dimension_numbers<[1], [1], [0], [0], [0, 0, 1, 0], [], []>} : vector<24x16xf32>, vector<24x16xf32>, vector<24x24xf32> -> vector<24x24xf32>
    %cst_136 = arith.constant 2.500000e-01 : f32
    %322 = vector.broadcast %cst_136 : f32 to vector<24x24xf32>
    %323 = arith.mulf %321, %322 : vector<24x24xf32>
    %324 = arith.addf %323, %17 : vector<24x24xf32>
    %cst_137 = arith.constant dense<0xFF800000> : vector<24xf32>
    %325 = vector.multi_reduction <maximumf>, %324, %cst_137 [1] : vector<24x24xf32> to vector<24xf32>
    %326 = vector.shape_cast %325 : vector<24xf32> to vector<24x1xf32>
    %327 = vector.broadcast %326 : vector<24x1xf32> to vector<24x24xf32>
    %328 = arith.subf %324, %327 : vector<24x24xf32>
    %329 = math.exp %328 : vector<24x24xf32>
    %cst_138 = arith.constant dense<0.000000e+00> : vector<24xf32>
    %330 = vector.multi_reduction <add>, %329, %cst_138 [1] : vector<24x24xf32> to vector<24xf32>
    %331 = vector.shape_cast %330 : vector<24xf32> to vector<24x1xf32>
    %cst_139 = arith.constant dense<0.000000e+00> : vector<24x16xf32>
    %332 = tpu.matmul %329, %320, %cst_139 {dimension_numbers = #tpu.dot_dimension_numbers<[1], [0], [0], [1], [0, 0, 1, 1], [], []>} : vector<24x24xf32>, vector<24x16xf32>, vector<24x16xf32> -> vector<24x16xf32>
    %333 = vector.broadcast %331 : vector<24x1xf32> to vector<24x16xf32>
    %334 = arith.divf %332, %333 : vector<24x16xf32>
    %335 = vector.extract_strided_slice %295 {offsets = [0, 32], sizes = [24, 16], strides = [1, 1]} : vector<24x64xf32> to vector<24x16xf32>
    %336 = vector.extract_strided_slice %296 {offsets = [0, 32], sizes = [24, 16], strides = [1, 1]} : vector<24x64xf32> to vector<24x16xf32>
    %337 = vector.extract_strided_slice %297 {offsets = [0, 32], sizes = [24, 16], strides = [1, 1]} : vector<24x64xf32> to vector<24x16xf32>
    %cst_140 = arith.constant dense<0.000000e+00> : vector<24x24xf32>
    %338 = tpu.matmul %335, %336, %cst_140 {dimension_numbers = #tpu.dot_dimension_numbers<[1], [1], [0], [0], [0, 0, 1, 0], [], []>} : vector<24x16xf32>, vector<24x16xf32>, vector<24x24xf32> -> vector<24x24xf32>
    %cst_141 = arith.constant 2.500000e-01 : f32
    %339 = vector.broadcast %cst_141 : f32 to vector<24x24xf32>
    %340 = arith.mulf %338, %339 : vector<24x24xf32>
    %341 = arith.addf %340, %17 : vector<24x24xf32>
    %cst_142 = arith.constant dense<0xFF800000> : vector<24xf32>
    %342 = vector.multi_reduction <maximumf>, %341, %cst_142 [1] : vector<24x24xf32> to vector<24xf32>
    %343 = vector.shape_cast %342 : vector<24xf32> to vector<24x1xf32>
    %344 = vector.broadcast %343 : vector<24x1xf32> to vector<24x24xf32>
    %345 = arith.subf %341, %344 : vector<24x24xf32>
    %346 = math.exp %345 : vector<24x24xf32>
    %cst_143 = arith.constant dense<0.000000e+00> : vector<24xf32>
    %347 = vector.multi_reduction <add>, %346, %cst_143 [1] : vector<24x24xf32> to vector<24xf32>
    %348 = vector.shape_cast %347 : vector<24xf32> to vector<24x1xf32>
    %cst_144 = arith.constant dense<0.000000e+00> : vector<24x16xf32>
    %349 = tpu.matmul %346, %337, %cst_144 {dimension_numbers = #tpu.dot_dimension_numbers<[1], [0], [0], [1], [0, 0, 1, 1], [], []>} : vector<24x24xf32>, vector<24x16xf32>, vector<24x16xf32> -> vector<24x16xf32>
    %350 = vector.broadcast %348 : vector<24x1xf32> to vector<24x16xf32>
    %351 = arith.divf %349, %350 : vector<24x16xf32>
    %352 = vector.extract_strided_slice %295 {offsets = [0, 48], sizes = [24, 16], strides = [1, 1]} : vector<24x64xf32> to vector<24x16xf32>
    %353 = vector.extract_strided_slice %296 {offsets = [0, 48], sizes = [24, 16], strides = [1, 1]} : vector<24x64xf32> to vector<24x16xf32>
    %354 = vector.extract_strided_slice %297 {offsets = [0, 48], sizes = [24, 16], strides = [1, 1]} : vector<24x64xf32> to vector<24x16xf32>
    %cst_145 = arith.constant dense<0.000000e+00> : vector<24x24xf32>
    %355 = tpu.matmul %352, %353, %cst_145 {dimension_numbers = #tpu.dot_dimension_numbers<[1], [1], [0], [0], [0, 0, 1, 0], [], []>} : vector<24x16xf32>, vector<24x16xf32>, vector<24x24xf32> -> vector<24x24xf32>
    %cst_146 = arith.constant 2.500000e-01 : f32
    %356 = vector.broadcast %cst_146 : f32 to vector<24x24xf32>
    %357 = arith.mulf %355, %356 : vector<24x24xf32>
    %358 = arith.addf %357, %17 : vector<24x24xf32>
    %cst_147 = arith.constant dense<0xFF800000> : vector<24xf32>
    %359 = vector.multi_reduction <maximumf>, %358, %cst_147 [1] : vector<24x24xf32> to vector<24xf32>
    %360 = vector.shape_cast %359 : vector<24xf32> to vector<24x1xf32>
    %361 = vector.broadcast %360 : vector<24x1xf32> to vector<24x24xf32>
    %362 = arith.subf %358, %361 : vector<24x24xf32>
    %363 = math.exp %362 : vector<24x24xf32>
    %cst_148 = arith.constant dense<0.000000e+00> : vector<24xf32>
    %364 = vector.multi_reduction <add>, %363, %cst_148 [1] : vector<24x24xf32> to vector<24xf32>
    %365 = vector.shape_cast %364 : vector<24xf32> to vector<24x1xf32>
    %cst_149 = arith.constant dense<0.000000e+00> : vector<24x16xf32>
    %366 = tpu.matmul %363, %354, %cst_149 {dimension_numbers = #tpu.dot_dimension_numbers<[1], [0], [0], [1], [0, 0, 1, 1], [], []>} : vector<24x24xf32>, vector<24x16xf32>, vector<24x16xf32> -> vector<24x16xf32>
    %367 = vector.broadcast %365 : vector<24x1xf32> to vector<24x16xf32>
    %368 = arith.divf %366, %367 : vector<24x16xf32>
    %369 = tpu.concatenate %317, %334, %351, %368 in 1 : vector<24x16xf32>, vector<24x16xf32>, vector<24x16xf32>, vector<24x16xf32> -> vector<24x64xf32>
    %cst_150 = arith.constant dense<0.000000e+00> : vector<24x64xf32>
    %370 = tpu.matmul %369, %299, %cst_150 {dimension_numbers = #tpu.dot_dimension_numbers<[1], [0], [0], [1], [0, 0, 1, 1], [], []>} : vector<24x64xf32>, vector<64x64xf32>, vector<24x64xf32> -> vector<24x64xf32>
    %371 = vector.broadcast %300 : vector<1x64xf32> to vector<24x64xf32>
    %372 = arith.addf %370, %371 : vector<24x64xf32>
    %373 = arith.addf %284, %372 : vector<24x64xf32>
    %374 = vector.extract_strided_slice %286 {offsets = [0, 0], sizes = [1, 64], strides = [1, 1]} : vector<3x64xf32> to vector<1x64xf32>
    %375 = vector.extract_strided_slice %288 {offsets = [0, 0], sizes = [1, 64], strides = [1, 1]} : vector<3x64xf32> to vector<1x64xf32>
    %cst_151 = arith.constant dense<0.000000e+00> : vector<24xf32>
    %376 = vector.multi_reduction <add>, %373, %cst_151 [1] : vector<24x64xf32> to vector<24xf32>
    %377 = vector.shape_cast %376 : vector<24xf32> to vector<24x1xf32>
    %cst_152 = arith.constant 6.400000e+01 : f32
    %378 = vector.broadcast %cst_152 : f32 to vector<24x1xf32>
    %379 = arith.divf %377, %378 : vector<24x1xf32>
    %380 = vector.broadcast %379 : vector<24x1xf32> to vector<24x64xf32>
    %381 = arith.subf %373, %380 : vector<24x64xf32>
    %382 = arith.mulf %381, %381 : vector<24x64xf32>
    %cst_153 = arith.constant dense<0.000000e+00> : vector<24xf32>
    %383 = vector.multi_reduction <add>, %382, %cst_153 [1] : vector<24x64xf32> to vector<24xf32>
    %384 = vector.shape_cast %383 : vector<24xf32> to vector<24x1xf32>
    %cst_154 = arith.constant 6.400000e+01 : f32
    %385 = vector.broadcast %cst_154 : f32 to vector<24x1xf32>
    %386 = arith.divf %384, %385 : vector<24x1xf32>
    %387 = vector.broadcast %379 : vector<24x1xf32> to vector<24x64xf32>
    %388 = arith.subf %373, %387 : vector<24x64xf32>
    %cst_155 = arith.constant 9.99999974E-6 : f32
    %389 = vector.broadcast %cst_155 : f32 to vector<24x1xf32>
    %390 = arith.addf %386, %389 : vector<24x1xf32>
    %391 = math.rsqrt %390 : vector<24x1xf32>
    %392 = vector.broadcast %391 : vector<24x1xf32> to vector<24x64xf32>
    %393 = arith.mulf %388, %392 : vector<24x64xf32>
    %394 = vector.broadcast %374 : vector<1x64xf32> to vector<24x64xf32>
    %395 = arith.mulf %393, %394 : vector<24x64xf32>
    %396 = vector.broadcast %375 : vector<1x64xf32> to vector<24x64xf32>
    %397 = arith.addf %395, %396 : vector<24x64xf32>
    %c1_156 = arith.constant 1 : index
    %c0_157 = arith.constant 0 : index
    %c0_158 = arith.constant 0 : index
    %398 = vector.load %arg11[%c1_156, %c0_157, %c0_158] : memref<2x64x64xf32, #tpu.memory_space<vmem>>, vector<1x64x64xf32>
    %399 = vector.shape_cast %398 : vector<1x64x64xf32> to vector<64x64xf32>
    %cst_159 = arith.constant dense<0.000000e+00> : vector<24x64xf32>
    %400 = tpu.matmul %397, %399, %cst_159 {dimension_numbers = #tpu.dot_dimension_numbers<[1], [0], [0], [1], [0, 0, 1, 1], [], []>} : vector<24x64xf32>, vector<64x64xf32>, vector<24x64xf32> -> vector<24x64xf32>
    %c1_160 = arith.constant 1 : index
    %c0_161 = arith.constant 0 : index
    %401 = vector.load %arg12[%c1_160, %c0_161] : memref<2x64xf32, #tpu.memory_space<vmem>>, vector<1x64xf32>
    %402 = vector.broadcast %401 : vector<1x64xf32> to vector<24x64xf32>
    %403 = arith.addf %400, %402 : vector<24x64xf32>
    %c1_162 = arith.constant 1 : index
    %c0_163 = arith.constant 0 : index
    %c0_164 = arith.constant 0 : index
    %404 = vector.load %arg13[%c1_162, %c0_163, %c0_164] : memref<2x64x128xf32, #tpu.memory_space<vmem>>, vector<1x64x128xf32>
    %405 = vector.shape_cast %404 : vector<1x64x128xf32> to vector<64x128xf32>
    %cst_165 = arith.constant dense<0.000000e+00> : vector<160x128xf32>
    %406 = tpu.matmul %15, %405, %cst_165 {dimension_numbers = #tpu.dot_dimension_numbers<[1], [0], [0], [1], [0, 0, 1, 1], [], []>} : vector<160x64xf32>, vector<64x128xf32>, vector<160x128xf32> -> vector<160x128xf32>
    %c1_166 = arith.constant 1 : index
    %c0_167 = arith.constant 0 : index
    %407 = vector.load %arg14[%c1_166, %c0_167] : memref<2x128xf32, #tpu.memory_space<vmem>>, vector<1x128xf32>
    %408 = vector.broadcast %407 : vector<1x128xf32> to vector<160x128xf32>
    %409 = arith.addf %406, %408 : vector<160x128xf32>
    %410 = vector.extract_strided_slice %409 {offsets = [0, 0], sizes = [160, 64], strides = [1, 1]} : vector<160x128xf32> to vector<160x64xf32>
    %411 = vector.extract_strided_slice %409 {offsets = [0, 64], sizes = [160, 64], strides = [1, 1]} : vector<160x128xf32> to vector<160x64xf32>
    %c1_168 = arith.constant 1 : index
    %c0_169 = arith.constant 0 : index
    %c0_170 = arith.constant 0 : index
    %412 = vector.load %arg15[%c1_168, %c0_169, %c0_170] : memref<2x64x64xf32, #tpu.memory_space<vmem>>, vector<1x64x64xf32>
    %413 = vector.shape_cast %412 : vector<1x64x64xf32> to vector<64x64xf32>
    %c1_171 = arith.constant 1 : index
    %c0_172 = arith.constant 0 : index
    %414 = vector.load %arg16[%c1_171, %c0_172] : memref<2x64xf32, #tpu.memory_space<vmem>>, vector<1x64xf32>
    %415 = vector.extract_strided_slice %403 {offsets = [0, 0], sizes = [24, 16], strides = [1, 1]} : vector<24x64xf32> to vector<24x16xf32>
    %416 = vector.extract_strided_slice %410 {offsets = [0, 0], sizes = [160, 16], strides = [1, 1]} : vector<160x64xf32> to vector<160x16xf32>
    %417 = vector.extract_strided_slice %411 {offsets = [0, 0], sizes = [160, 16], strides = [1, 1]} : vector<160x64xf32> to vector<160x16xf32>
    %cst_173 = arith.constant dense<0.000000e+00> : vector<24x160xf32>
    %418 = tpu.matmul %415, %416, %cst_173 {dimension_numbers = #tpu.dot_dimension_numbers<[1], [1], [0], [0], [0, 0, 1, 0], [], []>} : vector<24x16xf32>, vector<160x16xf32>, vector<24x160xf32> -> vector<24x160xf32>
    %cst_174 = arith.constant 2.500000e-01 : f32
    %419 = vector.broadcast %cst_174 : f32 to vector<24x160xf32>
    %420 = arith.mulf %418, %419 : vector<24x160xf32>
    %421 = arith.addf %420, %18 : vector<24x160xf32>
    %cst_175 = arith.constant dense<0xFF800000> : vector<24xf32>
    %422 = vector.multi_reduction <maximumf>, %421, %cst_175 [1] : vector<24x160xf32> to vector<24xf32>
    %423 = vector.shape_cast %422 : vector<24xf32> to vector<24x1xf32>
    %424 = vector.broadcast %423 : vector<24x1xf32> to vector<24x160xf32>
    %425 = arith.subf %421, %424 : vector<24x160xf32>
    %426 = math.exp %425 : vector<24x160xf32>
    %cst_176 = arith.constant dense<0.000000e+00> : vector<24xf32>
    %427 = vector.multi_reduction <add>, %426, %cst_176 [1] : vector<24x160xf32> to vector<24xf32>
    %428 = vector.shape_cast %427 : vector<24xf32> to vector<24x1xf32>
    %cst_177 = arith.constant dense<0.000000e+00> : vector<24x16xf32>
    %429 = tpu.matmul %426, %417, %cst_177 {dimension_numbers = #tpu.dot_dimension_numbers<[1], [0], [0], [1], [0, 0, 1, 1], [], []>} : vector<24x160xf32>, vector<160x16xf32>, vector<24x16xf32> -> vector<24x16xf32>
    %430 = vector.broadcast %428 : vector<24x1xf32> to vector<24x16xf32>
    %431 = arith.divf %429, %430 : vector<24x16xf32>
    %432 = vector.extract_strided_slice %403 {offsets = [0, 16], sizes = [24, 16], strides = [1, 1]} : vector<24x64xf32> to vector<24x16xf32>
    %433 = vector.extract_strided_slice %410 {offsets = [0, 16], sizes = [160, 16], strides = [1, 1]} : vector<160x64xf32> to vector<160x16xf32>
    %434 = vector.extract_strided_slice %411 {offsets = [0, 16], sizes = [160, 16], strides = [1, 1]} : vector<160x64xf32> to vector<160x16xf32>
    %cst_178 = arith.constant dense<0.000000e+00> : vector<24x160xf32>
    %435 = tpu.matmul %432, %433, %cst_178 {dimension_numbers = #tpu.dot_dimension_numbers<[1], [1], [0], [0], [0, 0, 1, 0], [], []>} : vector<24x16xf32>, vector<160x16xf32>, vector<24x160xf32> -> vector<24x160xf32>
    %cst_179 = arith.constant 2.500000e-01 : f32
    %436 = vector.broadcast %cst_179 : f32 to vector<24x160xf32>
    %437 = arith.mulf %435, %436 : vector<24x160xf32>
    %438 = arith.addf %437, %18 : vector<24x160xf32>
    %cst_180 = arith.constant dense<0xFF800000> : vector<24xf32>
    %439 = vector.multi_reduction <maximumf>, %438, %cst_180 [1] : vector<24x160xf32> to vector<24xf32>
    %440 = vector.shape_cast %439 : vector<24xf32> to vector<24x1xf32>
    %441 = vector.broadcast %440 : vector<24x1xf32> to vector<24x160xf32>
    %442 = arith.subf %438, %441 : vector<24x160xf32>
    %443 = math.exp %442 : vector<24x160xf32>
    %cst_181 = arith.constant dense<0.000000e+00> : vector<24xf32>
    %444 = vector.multi_reduction <add>, %443, %cst_181 [1] : vector<24x160xf32> to vector<24xf32>
    %445 = vector.shape_cast %444 : vector<24xf32> to vector<24x1xf32>
    %cst_182 = arith.constant dense<0.000000e+00> : vector<24x16xf32>
    %446 = tpu.matmul %443, %434, %cst_182 {dimension_numbers = #tpu.dot_dimension_numbers<[1], [0], [0], [1], [0, 0, 1, 1], [], []>} : vector<24x160xf32>, vector<160x16xf32>, vector<24x16xf32> -> vector<24x16xf32>
    %447 = vector.broadcast %445 : vector<24x1xf32> to vector<24x16xf32>
    %448 = arith.divf %446, %447 : vector<24x16xf32>
    %449 = vector.extract_strided_slice %403 {offsets = [0, 32], sizes = [24, 16], strides = [1, 1]} : vector<24x64xf32> to vector<24x16xf32>
    %450 = vector.extract_strided_slice %410 {offsets = [0, 32], sizes = [160, 16], strides = [1, 1]} : vector<160x64xf32> to vector<160x16xf32>
    %451 = vector.extract_strided_slice %411 {offsets = [0, 32], sizes = [160, 16], strides = [1, 1]} : vector<160x64xf32> to vector<160x16xf32>
    %cst_183 = arith.constant dense<0.000000e+00> : vector<24x160xf32>
    %452 = tpu.matmul %449, %450, %cst_183 {dimension_numbers = #tpu.dot_dimension_numbers<[1], [1], [0], [0], [0, 0, 1, 0], [], []>} : vector<24x16xf32>, vector<160x16xf32>, vector<24x160xf32> -> vector<24x160xf32>
    %cst_184 = arith.constant 2.500000e-01 : f32
    %453 = vector.broadcast %cst_184 : f32 to vector<24x160xf32>
    %454 = arith.mulf %452, %453 : vector<24x160xf32>
    %455 = arith.addf %454, %18 : vector<24x160xf32>
    %cst_185 = arith.constant dense<0xFF800000> : vector<24xf32>
    %456 = vector.multi_reduction <maximumf>, %455, %cst_185 [1] : vector<24x160xf32> to vector<24xf32>
    %457 = vector.shape_cast %456 : vector<24xf32> to vector<24x1xf32>
    %458 = vector.broadcast %457 : vector<24x1xf32> to vector<24x160xf32>
    %459 = arith.subf %455, %458 : vector<24x160xf32>
    %460 = math.exp %459 : vector<24x160xf32>
    %cst_186 = arith.constant dense<0.000000e+00> : vector<24xf32>
    %461 = vector.multi_reduction <add>, %460, %cst_186 [1] : vector<24x160xf32> to vector<24xf32>
    %462 = vector.shape_cast %461 : vector<24xf32> to vector<24x1xf32>
    %cst_187 = arith.constant dense<0.000000e+00> : vector<24x16xf32>
    %463 = tpu.matmul %460, %451, %cst_187 {dimension_numbers = #tpu.dot_dimension_numbers<[1], [0], [0], [1], [0, 0, 1, 1], [], []>} : vector<24x160xf32>, vector<160x16xf32>, vector<24x16xf32> -> vector<24x16xf32>
    %464 = vector.broadcast %462 : vector<24x1xf32> to vector<24x16xf32>
    %465 = arith.divf %463, %464 : vector<24x16xf32>
    %466 = vector.extract_strided_slice %403 {offsets = [0, 48], sizes = [24, 16], strides = [1, 1]} : vector<24x64xf32> to vector<24x16xf32>
    %467 = vector.extract_strided_slice %410 {offsets = [0, 48], sizes = [160, 16], strides = [1, 1]} : vector<160x64xf32> to vector<160x16xf32>
    %468 = vector.extract_strided_slice %411 {offsets = [0, 48], sizes = [160, 16], strides = [1, 1]} : vector<160x64xf32> to vector<160x16xf32>
    %cst_188 = arith.constant dense<0.000000e+00> : vector<24x160xf32>
    %469 = tpu.matmul %466, %467, %cst_188 {dimension_numbers = #tpu.dot_dimension_numbers<[1], [1], [0], [0], [0, 0, 1, 0], [], []>} : vector<24x16xf32>, vector<160x16xf32>, vector<24x160xf32> -> vector<24x160xf32>
    %cst_189 = arith.constant 2.500000e-01 : f32
    %470 = vector.broadcast %cst_189 : f32 to vector<24x160xf32>
    %471 = arith.mulf %469, %470 : vector<24x160xf32>
    %472 = arith.addf %471, %18 : vector<24x160xf32>
    %cst_190 = arith.constant dense<0xFF800000> : vector<24xf32>
    %473 = vector.multi_reduction <maximumf>, %472, %cst_190 [1] : vector<24x160xf32> to vector<24xf32>
    %474 = vector.shape_cast %473 : vector<24xf32> to vector<24x1xf32>
    %475 = vector.broadcast %474 : vector<24x1xf32> to vector<24x160xf32>
    %476 = arith.subf %472, %475 : vector<24x160xf32>
    %477 = math.exp %476 : vector<24x160xf32>
    %cst_191 = arith.constant dense<0.000000e+00> : vector<24xf32>
    %478 = vector.multi_reduction <add>, %477, %cst_191 [1] : vector<24x160xf32> to vector<24xf32>
    %479 = vector.shape_cast %478 : vector<24xf32> to vector<24x1xf32>
    %cst_192 = arith.constant dense<0.000000e+00> : vector<24x16xf32>
    %480 = tpu.matmul %477, %468, %cst_192 {dimension_numbers = #tpu.dot_dimension_numbers<[1], [0], [0], [1], [0, 0, 1, 1], [], []>} : vector<24x160xf32>, vector<160x16xf32>, vector<24x16xf32> -> vector<24x16xf32>
    %481 = vector.broadcast %479 : vector<24x1xf32> to vector<24x16xf32>
    %482 = arith.divf %480, %481 : vector<24x16xf32>
    %483 = tpu.concatenate %431, %448, %465, %482 in 1 : vector<24x16xf32>, vector<24x16xf32>, vector<24x16xf32>, vector<24x16xf32> -> vector<24x64xf32>
    %cst_193 = arith.constant dense<0.000000e+00> : vector<24x64xf32>
    %484 = tpu.matmul %483, %413, %cst_193 {dimension_numbers = #tpu.dot_dimension_numbers<[1], [0], [0], [1], [0, 0, 1, 1], [], []>} : vector<24x64xf32>, vector<64x64xf32>, vector<24x64xf32> -> vector<24x64xf32>
    %485 = vector.broadcast %414 : vector<1x64xf32> to vector<24x64xf32>
    %486 = arith.addf %484, %485 : vector<24x64xf32>
    %487 = arith.addf %397, %486 : vector<24x64xf32>
    %488 = vector.extract_strided_slice %286 {offsets = [1, 0], sizes = [1, 64], strides = [1, 1]} : vector<3x64xf32> to vector<1x64xf32>
    %489 = vector.extract_strided_slice %288 {offsets = [1, 0], sizes = [1, 64], strides = [1, 1]} : vector<3x64xf32> to vector<1x64xf32>
    %cst_194 = arith.constant dense<0.000000e+00> : vector<24xf32>
    %490 = vector.multi_reduction <add>, %487, %cst_194 [1] : vector<24x64xf32> to vector<24xf32>
    %491 = vector.shape_cast %490 : vector<24xf32> to vector<24x1xf32>
    %cst_195 = arith.constant 6.400000e+01 : f32
    %492 = vector.broadcast %cst_195 : f32 to vector<24x1xf32>
    %493 = arith.divf %491, %492 : vector<24x1xf32>
    %494 = vector.broadcast %493 : vector<24x1xf32> to vector<24x64xf32>
    %495 = arith.subf %487, %494 : vector<24x64xf32>
    %496 = arith.mulf %495, %495 : vector<24x64xf32>
    %cst_196 = arith.constant dense<0.000000e+00> : vector<24xf32>
    %497 = vector.multi_reduction <add>, %496, %cst_196 [1] : vector<24x64xf32> to vector<24xf32>
    %498 = vector.shape_cast %497 : vector<24xf32> to vector<24x1xf32>
    %cst_197 = arith.constant 6.400000e+01 : f32
    %499 = vector.broadcast %cst_197 : f32 to vector<24x1xf32>
    %500 = arith.divf %498, %499 : vector<24x1xf32>
    %501 = vector.broadcast %493 : vector<24x1xf32> to vector<24x64xf32>
    %502 = arith.subf %487, %501 : vector<24x64xf32>
    %cst_198 = arith.constant 9.99999974E-6 : f32
    %503 = vector.broadcast %cst_198 : f32 to vector<24x1xf32>
    %504 = arith.addf %500, %503 : vector<24x1xf32>
    %505 = math.rsqrt %504 : vector<24x1xf32>
    %506 = vector.broadcast %505 : vector<24x1xf32> to vector<24x64xf32>
    %507 = arith.mulf %502, %506 : vector<24x64xf32>
    %508 = vector.broadcast %488 : vector<1x64xf32> to vector<24x64xf32>
    %509 = arith.mulf %507, %508 : vector<24x64xf32>
    %510 = vector.broadcast %489 : vector<1x64xf32> to vector<24x64xf32>
    %511 = arith.addf %509, %510 : vector<24x64xf32>
    %c1_199 = arith.constant 1 : index
    %c0_200 = arith.constant 0 : index
    %c0_201 = arith.constant 0 : index
    %512 = vector.load %arg17[%c1_199, %c0_200, %c0_201] : memref<2x64x2048xf32, #tpu.memory_space<vmem>>, vector<1x64x2048xf32>
    %513 = vector.shape_cast %512 : vector<1x64x2048xf32> to vector<64x2048xf32>
    %cst_202 = arith.constant dense<0.000000e+00> : vector<24x2048xf32>
    %514 = tpu.matmul %511, %513, %cst_202 {dimension_numbers = #tpu.dot_dimension_numbers<[1], [0], [0], [1], [0, 0, 1, 1], [], []>} : vector<24x64xf32>, vector<64x2048xf32>, vector<24x2048xf32> -> vector<24x2048xf32>
    %c1_203 = arith.constant 1 : index
    %c0_204 = arith.constant 0 : index
    %515 = vector.load %arg18[%c1_203, %c0_204] : memref<2x2048xf32, #tpu.memory_space<vmem>>, vector<1x2048xf32>
    %516 = vector.broadcast %515 : vector<1x2048xf32> to vector<24x2048xf32>
    %517 = arith.addf %514, %516 : vector<24x2048xf32>
    %cst_205 = arith.constant 0.000000e+00 : f32
    %518 = vector.broadcast %cst_205 : f32 to vector<24x2048xf32>
    %519 = arith.maximumf %517, %518 : vector<24x2048xf32>
    %c1_206 = arith.constant 1 : index
    %c0_207 = arith.constant 0 : index
    %c0_208 = arith.constant 0 : index
    %520 = vector.load %arg19[%c1_206, %c0_207, %c0_208] : memref<2x2048x64xf32, #tpu.memory_space<vmem>>, vector<1x2048x64xf32>
    %521 = vector.shape_cast %520 : vector<1x2048x64xf32> to vector<2048x64xf32>
    %cst_209 = arith.constant dense<0.000000e+00> : vector<24x64xf32>
    %522 = tpu.matmul %519, %521, %cst_209 {dimension_numbers = #tpu.dot_dimension_numbers<[1], [0], [0], [1], [0, 0, 1, 1], [], []>} : vector<24x2048xf32>, vector<2048x64xf32>, vector<24x64xf32> -> vector<24x64xf32>
    %c1_210 = arith.constant 1 : index
    %c0_211 = arith.constant 0 : index
    %523 = vector.load %arg20[%c1_210, %c0_211] : memref<2x64xf32, #tpu.memory_space<vmem>>, vector<1x64xf32>
    %524 = vector.broadcast %523 : vector<1x64xf32> to vector<24x64xf32>
    %525 = arith.addf %522, %524 : vector<24x64xf32>
    %526 = arith.addf %511, %525 : vector<24x64xf32>
    %527 = vector.extract_strided_slice %286 {offsets = [2, 0], sizes = [1, 64], strides = [1, 1]} : vector<3x64xf32> to vector<1x64xf32>
    %528 = vector.extract_strided_slice %288 {offsets = [2, 0], sizes = [1, 64], strides = [1, 1]} : vector<3x64xf32> to vector<1x64xf32>
    %cst_212 = arith.constant dense<0.000000e+00> : vector<24xf32>
    %529 = vector.multi_reduction <add>, %526, %cst_212 [1] : vector<24x64xf32> to vector<24xf32>
    %530 = vector.shape_cast %529 : vector<24xf32> to vector<24x1xf32>
    %cst_213 = arith.constant 6.400000e+01 : f32
    %531 = vector.broadcast %cst_213 : f32 to vector<24x1xf32>
    %532 = arith.divf %530, %531 : vector<24x1xf32>
    %533 = vector.broadcast %532 : vector<24x1xf32> to vector<24x64xf32>
    %534 = arith.subf %526, %533 : vector<24x64xf32>
    %535 = arith.mulf %534, %534 : vector<24x64xf32>
    %cst_214 = arith.constant dense<0.000000e+00> : vector<24xf32>
    %536 = vector.multi_reduction <add>, %535, %cst_214 [1] : vector<24x64xf32> to vector<24xf32>
    %537 = vector.shape_cast %536 : vector<24xf32> to vector<24x1xf32>
    %cst_215 = arith.constant 6.400000e+01 : f32
    %538 = vector.broadcast %cst_215 : f32 to vector<24x1xf32>
    %539 = arith.divf %537, %538 : vector<24x1xf32>
    %540 = vector.broadcast %532 : vector<24x1xf32> to vector<24x64xf32>
    %541 = arith.subf %526, %540 : vector<24x64xf32>
    %cst_216 = arith.constant 9.99999974E-6 : f32
    %542 = vector.broadcast %cst_216 : f32 to vector<24x1xf32>
    %543 = arith.addf %539, %542 : vector<24x1xf32>
    %544 = math.rsqrt %543 : vector<24x1xf32>
    %545 = vector.broadcast %544 : vector<24x1xf32> to vector<24x64xf32>
    %546 = arith.mulf %541, %545 : vector<24x64xf32>
    %547 = vector.broadcast %527 : vector<1x64xf32> to vector<24x64xf32>
    %548 = arith.mulf %546, %547 : vector<24x64xf32>
    %549 = vector.broadcast %528 : vector<1x64xf32> to vector<24x64xf32>
    %550 = arith.addf %548, %549 : vector<24x64xf32>
    %c0_217 = arith.constant 0 : index
    %c0_218 = arith.constant 0 : index
    %551 = vector.load %arg23[%c0_217, %c0_218] : memref<64x2xf32, #tpu.memory_space<vmem>>, vector<64x2xf32>
    %cst_219 = arith.constant dense<0.000000e+00> : vector<24x2xf32>
    %552 = tpu.matmul %550, %551, %cst_219 {dimension_numbers = #tpu.dot_dimension_numbers<[1], [0], [0], [1], [0, 0, 1, 1], [], []>} : vector<24x64xf32>, vector<64x2xf32>, vector<24x2xf32> -> vector<24x2xf32>
    %c0_220 = arith.constant 0 : index
    %c0_221 = arith.constant 0 : index
    %553 = vector.load %arg24[%c0_220, %c0_221] : memref<1x2xf32, #tpu.memory_space<vmem>>, vector<1x2xf32>
    %554 = vector.broadcast %553 : vector<1x2xf32> to vector<24x2xf32>
    %555 = arith.addf %552, %554 : vector<24x2xf32>
    %c0_222 = arith.constant 0 : index
    %c0_223 = arith.constant 0 : index
    %556 = vector.load %arg25[%c0_222, %c0_223] : memref<24x2xf32, #tpu.memory_space<vmem>>, vector<24x2xf32>
    tpu.vector_store %arg25[%c0_222, %c0_223], %555 {strides = array<i32>} : memref<24x2xf32, #tpu.memory_space<vmem>>, vector<24x2xf32>,
    return
  }
  func.func @transform_0(%arg0: i32) -> (i32, i32) {
    %c0_i32 = arith.constant 0 : i32
    %c0_i32_0 = arith.constant 0 : i32
    return %arg0, %c0_i32 : i32, i32
  }
  func.func @transform_1(%arg0: i32) -> (i32, i32) {
    %c0_i32 = arith.constant 0 : i32
    %c0_i32_0 = arith.constant 0 : i32
    %c0_i32_1 = arith.constant 0 : i32
    return %c0_i32, %c0_i32_0 : i32, i32
  }
  func.func @transform_2(%arg0: i32) -> (i32, i32) {
    %c0_i32 = arith.constant 0 : i32
    %c0_i32_0 = arith.constant 0 : i32
    %c0_i32_1 = arith.constant 0 : i32
    return %c0_i32, %c0_i32_0 : i32, i32
  }
  func.func @transform_3(%arg0: i32) -> (i32, i32) {
    %c0_i32 = arith.constant 0 : i32
    %c0_i32_0 = arith.constant 0 : i32
    %c0_i32_1 = arith.constant 0 : i32
    return %c0_i32, %c0_i32_0 : i32, i32
  }
  func.func @transform_4(%arg0: i32) -> (i32, i32) {
    %c0_i32 = arith.constant 0 : i32
    %c0_i32_0 = arith.constant 0 : i32
    %c0_i32_1 = arith.constant 0 : i32
    return %c0_i32, %c0_i32_0 : i32, i32
  }
  func.func @transform_5(%arg0: i32) -> (i32, i32) {
    %c0_i32 = arith.constant 0 : i32
    %c0_i32_0 = arith.constant 0 : i32
    %c0_i32_1 = arith.constant 0 : i32
    return %c0_i32, %c0_i32_0 : i32, i32
  }
  func.func @transform_6(%arg0: i32) -> (i32, i32, i32) {
    %c0_i32 = arith.constant 0 : i32
    %c0_i32_0 = arith.constant 0 : i32
    %c0_i32_1 = arith.constant 0 : i32
    %c0_i32_2 = arith.constant 0 : i32
    return %c0_i32, %c0_i32_0, %c0_i32_1 : i32, i32, i32
  }
  func.func @transform_7(%arg0: i32) -> (i32, i32) {
    %c0_i32 = arith.constant 0 : i32
    %c0_i32_0 = arith.constant 0 : i32
    %c0_i32_1 = arith.constant 0 : i32
    return %c0_i32, %c0_i32_0 : i32, i32
  }
  func.func @transform_8(%arg0: i32) -> (i32, i32, i32) {
    %c0_i32 = arith.constant 0 : i32
    %c0_i32_0 = arith.constant 0 : i32
    %c0_i32_1 = arith.constant 0 : i32
    %c0_i32_2 = arith.constant 0 : i32
    return %c0_i32, %c0_i32_0, %c0_i32_1 : i32, i32, i32
  }
  func.func @transform_9(%arg0: i32) -> (i32, i32) {
    %c0_i32 = arith.constant 0 : i32
    %c0_i32_0 = arith.constant 0 : i32
    %c0_i32_1 = arith.constant 0 : i32
    return %c0_i32, %c0_i32_0 : i32, i32
  }
  func.func @transform_10(%arg0: i32) -> (i32, i32, i32) {
    %c0_i32 = arith.constant 0 : i32
    %c0_i32_0 = arith.constant 0 : i32
    %c0_i32_1 = arith.constant 0 : i32
    %c0_i32_2 = arith.constant 0 : i32
    return %c0_i32, %c0_i32_0, %c0_i32_1 : i32, i32, i32
  }
  func.func @transform_11(%arg0: i32) -> (i32, i32) {
    %c0_i32 = arith.constant 0 : i32
    %c0_i32_0 = arith.constant 0 : i32
    %c0_i32_1 = arith.constant 0 : i32
    return %c0_i32, %c0_i32_0 : i32, i32
  }
  func.func @transform_12(%arg0: i32) -> (i32, i32, i32) {
    %c0_i32 = arith.constant 0 : i32
    %c0_i32_0 = arith.constant 0 : i32
    %c0_i32_1 = arith.constant 0 : i32
    %c0_i32_2 = arith.constant 0 : i32
    return %c0_i32, %c0_i32_0, %c0_i32_1 : i32, i32, i32
  }
  func.func @transform_13(%arg0: i32) -> (i32, i32) {
    %c0_i32 = arith.constant 0 : i32
    %c0_i32_0 = arith.constant 0 : i32
    %c0_i32_1 = arith.constant 0 : i32
    return %c0_i32, %c0_i32_0 : i32, i32
  }
  func.func @transform_14(%arg0: i32) -> (i32, i32, i32) {
    %c0_i32 = arith.constant 0 : i32
    %c0_i32_0 = arith.constant 0 : i32
    %c0_i32_1 = arith.constant 0 : i32
    %c0_i32_2 = arith.constant 0 : i32
    return %c0_i32, %c0_i32_0, %c0_i32_1 : i32, i32, i32
  }
  func.func @transform_15(%arg0: i32) -> (i32, i32) {
    %c0_i32 = arith.constant 0 : i32
    %c0_i32_0 = arith.constant 0 : i32
    %c0_i32_1 = arith.constant 0 : i32
    return %c0_i32, %c0_i32_0 : i32, i32
  }
  func.func @transform_16(%arg0: i32) -> (i32, i32, i32) {
    %c0_i32 = arith.constant 0 : i32
    %c0_i32_0 = arith.constant 0 : i32
    %c0_i32_1 = arith.constant 0 : i32
    %c0_i32_2 = arith.constant 0 : i32
    return %c0_i32, %c0_i32_0, %c0_i32_1 : i32, i32, i32
  }
  func.func @transform_17(%arg0: i32) -> (i32, i32) {
    %c0_i32 = arith.constant 0 : i32
    %c0_i32_0 = arith.constant 0 : i32
    %c0_i32_1 = arith.constant 0 : i32
    return %c0_i32, %c0_i32_0 : i32, i32
  }
  func.func @transform_18(%arg0: i32) -> (i32, i32, i32) {
    %c0_i32 = arith.constant 0 : i32
    %c0_i32_0 = arith.constant 0 : i32
    %c0_i32_1 = arith.constant 0 : i32
    %c0_i32_2 = arith.constant 0 : i32
    return %c0_i32, %c0_i32_0, %c0_i32_1 : i32, i32, i32
  }
  func.func @transform_19(%arg0: i32) -> (i32, i32) {
    %c0_i32 = arith.constant 0 : i32
    %c0_i32_0 = arith.constant 0 : i32
    %c0_i32_1 = arith.constant 0 : i32
    return %c0_i32, %c0_i32_0 : i32, i32
  }
  func.func @transform_20(%arg0: i32) -> (i32, i32, i32) {
    %c0_i32 = arith.constant 0 : i32
    %c0_i32_0 = arith.constant 0 : i32
    %c0_i32_1 = arith.constant 0 : i32
    %c0_i32_2 = arith.constant 0 : i32
    return %c0_i32, %c0_i32_0, %c0_i32_1 : i32, i32, i32
  }
  func.func @transform_21(%arg0: i32) -> (i32, i32, i32) {
    %c0_i32 = arith.constant 0 : i32
    %c0_i32_0 = arith.constant 0 : i32
    %c0_i32_1 = arith.constant 0 : i32
    %c0_i32_2 = arith.constant 0 : i32
    return %c0_i32, %c0_i32_0, %c0_i32_1 : i32, i32, i32
  }
  func.func @transform_22(%arg0: i32) -> (i32, i32) {
    %c0_i32 = arith.constant 0 : i32
    %c0_i32_0 = arith.constant 0 : i32
    %c0_i32_1 = arith.constant 0 : i32
    return %c0_i32, %c0_i32_0 : i32, i32
  }
  func.func @transform_23(%arg0: i32) -> (i32, i32) {
    %c0_i32 = arith.constant 0 : i32
    %c0_i32_0 = arith.constant 0 : i32
    %c0_i32_1 = arith.constant 0 : i32
    return %c0_i32, %c0_i32_0 : i32, i32
  }
  func.func @transform_24(%arg0: i32) -> (i32, i32) {
    %c0_i32 = arith.constant 0 : i32
    %c0_i32_0 = arith.constant 0 : i32
    return %arg0, %c0_i32 : i32, i32
  }
}

</mosaic_0001>

<bundles_post_ra>
// kernel: tpu_custom_call.1
= control target key start
LH: loop header
LB: loop body
LE: loop exit
PB: predicated region body
PF: predicated region fallthrough
CT: control target
= control target key end

     0   :  { %s22602_s0 = inlined_call_operand.vmem [shape: f32[480,2], index: 0, kind: input, shape index: {}]   ;;  %s22603_s1 = inlined_call_operand.vmem [shape: f32[24,64], index: 1, kind: input, shape index: {}]   ;;  %s22604_s2 = inlined_call_operand.vmem [shape: f32[24,24], index: 2, kind: input, shape index: {}]   ;;  %s22605_s3 = inlined_call_operand.vmem [shape: f32[24,160], index: 3, kind: input, shape index: {}]   ;;  %s22606_s4 = inlined_call_operand.vmem [shape: f32[2,64], index: 4, kind: input, shape index: {}]   ;;  %s22607_s5 = inlined_call_operand.vmem [shape: f32[1,64], index: 5, kind: input, shape index: {}]   ;;  %s22608_s6 = inlined_call_operand.vmem [shape: f32[2,64,192], index: 6, kind: input, shape index: {}]   ;;  %s22609_s7 = inlined_call_operand.vmem [shape: f32[2,192], index: 7, kind: input, shape index: {}]   ;;  %s22610_s8 = inlined_call_operand.vmem [shape: f32[2,64,64], index: 8, kind: input, shape index: {}]   ;;  %s22611_s9 = inlined_call_operand.vmem [shape: f32[2,64], index: 9, kind: input, shape index: {}]   ;;  %s22612_s10 = inlined_call_operand.vmem [shape: f32[2,64,64], index: 10, kind: input, shape index: {}]   ;;  %s22613_s11 = inlined_call_operand.vmem [shape: f32[2,64], index: 11, kind: input, shape index: {}]   ;;  %s22614_s12 = inlined_call_operand.vmem [shape: f32[2,64,128], index: 12, kind: input, shape index: {}]   ;;  %s22615_s13 = inlined_call_operand.vmem [shape: f32[2,128], index: 13, kind: input, shape index: {}]   ;;  %s22616_s14 = inlined_call_operand.vmem [shape: f32[2,64,64], index: 14, kind: input, shape index: {}]   ;;  %s22617_s15 = inlined_call_operand.vmem [shape: f32[2,64], index: 15, kind: input, shape index: {}]   ;;  %s22618_s16 = inlined_call_operand.vmem [shape: f32[2,64,2048], index: 16, kind: input, shape index: {}]   ;;  %s22619_s17 = inlined_call_operand.vmem [shape: f32[2,2048], index: 17, kind: input, shape index: {}]   ;;  %s22620_s18 = inlined_call_operand.vmem [shape: f32[2,2048,64], index: 18, kind: input, shape index: {}]   ;;  %s22621_s19 = inlined_call_operand.vmem [shape: f32[2,64], index: 19, kind: input, shape index: {}]   ;;  %s22622_s20 = inlined_call_operand.vmem [shape: f32[2,3,64], index: 20, kind: input, shape index: {}]   ;;  %s22623_s21 = inlined_call_operand.vmem [shape: f32[2,3,64], index: 21, kind: input, shape index: {}]   ;;  %s22624_s22 = inlined_call_operand.vmem [shape: f32[64,2], index: 22, kind: input, shape index: {}]   ;;  %s22625_s23 = inlined_call_operand.vmem [shape: f32[1,2], index: 23, kind: input, shape index: {}]   ;;  %s22626_s24 = inlined_call_operand.vmem [shape: f32[72,2], index: 24, kind: output, shape index: {}]  }
   0x1   :  { %22679 = sst [smem:[#allocation22_spill]] %s22602_s0 }
   0x2   :  { %22680 = sst [smem:[#allocation23_spill]] %s22603_s1 }
   0x3   :  { %22681 = sst [smem:[#allocation24_spill]] %s22604_s2 }
   0x4   :  { %22682 = sst [smem:[#allocation25_spill]] %s22605_s3 }
   0x5   :  { %22683 = sst [smem:[#allocation26_spill]] %s22606_s4 }
   0x6   :  { %22684 = sst [smem:[#allocation27_spill]] %s22607_s5  ;;  %s16670_s5 = smov 0  }
   0x7   :  { %22685 = sst [smem:[#allocation28_spill]] %s22608_s6 }
   0x8   :  { %22686 = sst [smem:[#allocation29_spill]] %s22609_s7 }
   0x9   :  { %22687 = sst [smem:[#allocation30_spill]] %s22610_s8 }
   0xa   :  { %22688 = sst [smem:[#allocation31_spill]] %s22612_s10 }
   0xb   :  { %22689 = sst [smem:[#allocation32_spill]] %s22613_s11 }
   0xc   :  { %22690 = sst [smem:[#allocation33_spill]] %s22616_s14 }
   0xd   :  { %22691 = sst [smem:[#allocation34_spill]] %s22617_s15 }
   0xe   :  { %22692 = sst [smem:[#allocation35_spill]] %s22618_s16 }
   0xf   :  { %22693 = sst [smem:[#allocation36_spill]] %s22624_s22 }
  0x10   :  { %22694 = sst [smem:[#allocation37_spill]] %s22625_s23 }
  0x11   :  { %22695 = sst [smem:[#allocation38_spill]] %s22626_s24 }
  0x12 LB: > { %22696 = sst [smem:[#allocation2_spill]] %s16531_s5  ;;  %p11628_p0 = scmp.ge.s32.totalorder %s16531_s5, 1  ;;  %s16531_s5 = sphi %s16670_s5, %s34_s5  }
  0x13   : > { %p663_p1 = scmp.lt.s32.totalorder %s16531_s5, 4 }
  0x15   : > { %p664_p2 = pnand %p11628_p0, %p663_p1 }
  0x17   : > { %667 = sbr.rel (%p664_p2) target bundleno = 11032 (0x2b18), region = 116 }
  0x1e   : > { %s22697_s6 = sld [smem:[#allocation28_spill]]  ;;  %v22649_v7 = vmov 0.0   ;;  %s22698_s4 = sld [smem:[#allocation23_spill]]  ;;  %vm1079_vm0 = vcmask 523264   ;;  %v862_v28 = vlaneseq  ;;  %v22652_v33 = vmov 0.0|0.0  }
  0x1f   : > { %1153 = vmatprep.mubr.f32.mxu0 %v22649_v7  ;;  %s22699_s7 = sld [smem:[#allocation29_spill]]  ;;  %13886 = vmatprep.subr.bf16.mxu1 %v22652_v33  ;;  %s22641_s30 = smov 48   ;;  %vm16537_vm1 = vmmov 0   ;;  %vm1190_vm2 = vcmask 130048   ;;  %vm1289_vm4 = vcmask 195584   ;;  %vm2177_vm5 = vcmask 261120  }
  0x20   : > { %v16741_v29 = vshrl.u32 %v862_v28, 7  ;;  %s22633_s3 = smov 64   ;;  %13369 = vmatprep.mubr.msk.f32.mxu1 %vm16537_vm1, %v22649_v7  ;;  %s22639_s25 = smov 112   ;;  %vm16814_vm3 = vmpackc.low %vm1190_vm2, %vm1190_vm2  ;;  %vm2181_vm6 = vcmask 392192   ;;  %vm11564_vm7 = vcmask 15360  }
  0x21   : > { %s22643_s8 = smov 32   ;;  %s22645_s1 = smov 16  }
  0x22   : > { %v16744_v30 = vsub.s32 0, %v16741_v29  ;;  %v16750_v32 = vsub.s32 1, %v16741_v29  ;;  %s22637_s27 = smov 96   ;;  %s22635_s28 = smov 80  }
  0x23   : > { %s22702_s0 = sld [smem:[#allocation24_spill]]  ;;  %s22703_s2 = sld [smem:[#allocation30_spill]] }
  0x24   : > { %v1052_v0 = vld [vmem:[%s22697_s6 + $0x8] sm:$0xff]  ;;  %v1054_v1 = vld [vmem:[%s22697_s6 + $0x18] sm:$0xff]  ;;  %v1051_v2 = vld [vmem:[%s22697_s6] sm:$0xff]  ;;  %s22704_s26 = smov 32   ;;  %s22707_s29 = sld [smem:[#allocation22_spill]] }
  0x25   : > { %v13870_v3 = vpack.c.bf16 %v1054_v1, %v1052_v0  ;;  %v1053_v4 = vld [vmem:[%s22697_s6 + $0x10] sm:$0xff]  ;;  %v1056_v5 = vld [vmem:[%s22697_s6 + $0x28] sm:$0xff]  ;;  %v1058_v6 = vld [vmem:[%s22697_s6 + $0x38] sm:$0xff]  ;;  %s22726_s10 = sld [smem:[#allocation31_spill]]  ;;  %s22733_s11 = sld [smem:[#allocation32_spill]] }
  0x26   : > { %v13872_v8 = vpack.c.bf16 %v1053_v4, %v1051_v2  ;;  %v13874_v9 = vpack.c.bf16 %v1058_v6, %v1056_v5  ;;  %v1055_v10 = vld [vmem:[%s22697_s6 + $0x20] sm:$0xff]  ;;  %v1057_v11 = vld [vmem:[%s22697_s6 + $0x30] sm:$0xff]  ;;  %v1060_v12 = vld [vmem:[%s22697_s6 + $0x48] sm:$0xff]  ;;  %s22734_s22 = smov 112   ;;  %s22739_s23 = smov 80  }
  0x27   : > { %13871 = vmatprep.subr.bf16.mxu0 %v13870_v3  ;;  %v1062_v13 = vld [vmem:[%s22697_s6 + $0x58] sm:$0xff]  ;;  %v13876_v14 = vpack.c.bf16 %v1057_v11, %v1055_v10  ;;  %v1059_v16 = vld [vmem:[%s22697_s6 + $0x40] sm:$0xff]  ;;  %v1061_v17 = vld [vmem:[%s22697_s6 + $0x50] sm:$0xff]  ;;  %s22740_s24 = smov 16   ;;  %s22741_s14 = sld [smem:[#allocation33_spill]] }
  0x28   : > { %13873 = vmatpush1.bf16.msra.mxu0 %v13872_v8  ;;  %v13878_v15 = vpack.c.bf16 %v1062_v13, %v1060_v12  ;;  %v1064_v18 = vld [vmem:[%s22697_s6 + $0x68] sm:$0xff]  ;;  %v1066_v19 = vld [vmem:[%s22697_s6 + $0x78] sm:$0xff]  ;;  %v13880_v20 = vpack.c.bf16 %v1061_v17, %v1059_v16  ;;  %v1063_v22 = vld [vmem:[%s22697_s6 + $0x60] sm:$0xff]  ;;  %s22742_s15 = sld [smem:[#allocation34_spill]]  ;;  %s22743_s16 = sld [smem:[#allocation35_spill]] }
  0x29   : > { %13875 = vmatprep.subr.bf16.mxu0 %v13874_v9  ;;  %v13882_v21 = vpack.c.bf16 %v1066_v19, %v1064_v18  ;;  %v1065_v23 = vld [vmem:[%s22697_s6 + $0x70] sm:$0xff]  ;;  %v1037_v25 = vld [vmem:[%s22698_s4] sm:$0xff]  ;;  %v1038_v26 = vld [vmem:[%s22698_s4 + $0x8] sm:$0xff] }
  0x2a   : > { %v13884_v24 = vpack.c.bf16 %v1065_v23, %v1063_v22  ;;  %v1039_v27 = vld [vmem:[%s22698_s4 + $0x10] sm:$0xff]  ;;  %v1067_v31 = vld [vmem:[%s22699_s7] ss:$2 sm:$0x3] }
  0x2b   : > { %v1072_v35 = vrot.slane %v1067_v31, %v16744_v30  ;;  %v1076_v37 = vrot.slane %v1067_v31, %v16750_v32  ;;  %v1041_v31 = vld [vmem:[%s22702_s0 + $0x8] sm:$0xff] }
  0x2c   : > { %13877 = vmatpush1.bf16.msra.mxu0 %v13876_v14 }
  0x2d   : > { %13879 = vmatprep.subr.bf16.mxu0 %v13878_v15 }
  0x30   : > { %13881 = vmatpush1.bf16.msra.mxu0 %v13880_v20  ;;  %v16883_v20 = vld [vmem:[%s22702_s0] sm:$0xff] }
  0x31   : > { %13883 = vmatprep.subr.bf16.mxu0 %v13882_v21 }
  0x34   : > { %13885 = vmatpush1.bf16.msra.mxu0 %v13884_v24 }
  0x35   : > { %13893 = vmatprep.subr.bf16.mxu0 %v22652_v33 }
  0x37   : > { %11632 = vmatmul.mubr.msk.f32.vlgmr.msra.gmra.mrb[0].mxu0 %vm1079_vm0, %v1037_v25 }
  0x38   : > { %1159 = vmatprep.mubr.f32.mxu0 %v22649_v7 }
  0x3b   : > { %11633 = vmatmul.mubr.msk.f32.gmra.mrb[2].mxu0 %vm1079_vm0, %v1038_v26 }
  0x3c   : > { %1165 = vmatprep.mubr.f32.mxu0 %v22649_v7 }
  0x3f   : > { %11634 = vmatmul.mubr.msk.f32.gmra.mrb[4].mxu0 %vm1079_vm0, %v1039_v27 }
  0x40   : > { %13399 = vmatprep.mubr.msk.f32.mxu0 %vm16537_vm1, %v22649_v7 }
 0x10a   : > { %v1155_v34 = vpop.f32.mrb[0].mxu0 }
 0x10b   : > { %v1157_v36 = vpop.f32.mrb[1].mxu0  ;;  %v16756_v39 = vadd.f32 %v1155_v34, %v1072_v35 }
 0x10c   : > { %v16760_v42 = vadd.f32 %v1157_v36, %v1076_v37 }
 0x10e   : > { %v1161_v38 = vpop.f32.mrb[2].mxu0 }
 0x10f   : > { %v16758_v40 = vadd.f32 %v1161_v38, %v1072_v35  ;;  %v1163_v41 = vpop.f32.mrb[3].mxu0 }
 0x110   : > { %v16762_v43 = vadd.f32 %v1163_v41, %v1076_v37 }
 0x111   : > { %v15427_v44 = vpack.i.bf16 %v16758_v40, %v16756_v39 }
 0x112   : > { %v1167_v45 = vpop.f32.mrb[4].mxu0  ;;  %v16768_v46 = vpack.i.bf16 %v16762_v43, %v16760_v42  ;;  %v13891_v47 = vpack.c.bf16 %v16762_v43, %v16760_v42  ;;  %v1042_v43 = vld [vmem:[%s22702_s0 + $0x10] sm:$0xff] }
 0x113   : > { %15428 = vrot.lane.b32.xlu1 %v15427_v44, %s22641_s30  ;;  %15423 = vrot.lane.b32.xlu0 %v15427_v44, %s22633_s3  ;;  %v16774_v48 = vadd.f32 %v1167_v45, %v1072_v35  ;;  %v1169_v49 = vpop.f32.mrb[5].mxu0 }
 0x114   : > { %v16776_v50 = vadd.f32 %v1169_v49, %v1076_v37 }
 0x117   : > { %1422 = vrot.lane.b32.xlu1 %v16774_v48, %s22641_s30  ;;  %1188 = vrot.lane.b32.xlu0 %v16774_v48, %s22633_s3  ;;  %s22706_s3 = sadd.s32 4294967295, %s16531_s5  }
 0x11b   : > { %1412 = vrot.lane.b32.xlu1 %v16756_v39, %s22639_s25  ;;  %15433 = vrot.lane.b32.xlu0 %v15427_v44, %s22643_s8 }
 0x11f   : > { %1416 = vrot.lane.b32.xlu1 %v16774_v48, %s22639_s25  ;;  %1414 = vrot.lane.b32.xlu0 %v16758_v40, %s22639_s25 }
 0x123   : > { %15438 = vrot.lane.b32.xlu1 %v15427_v44, %s22645_s1  ;;  %1666 = vrot.lane.b32.xlu0 %v16774_v48, %s22643_s8  ;;  %s22708_s8 = sld [smem:[#allocation26_spill]] }
 0x127   : > { %1658 = vrot.lane.b32.xlu1 %v16758_v40, %s22637_s27  ;;  %1656 = vrot.lane.b32.xlu0 %v16756_v39, %s22637_s27 }
 0x12b   : > { %1907 = vrot.lane.b32.xlu1 %v16774_v48, %s22645_s1  ;;  %1660 = vrot.lane.b32.xlu0 %v16774_v48, %s22637_s27 }
 0x12f   : > { %1899 = vrot.lane.b32.xlu1 %v16758_v40, %s22635_s28  ;;  %1897 = vrot.lane.b32.xlu0 %v16756_v39, %s22635_s28 }
 0x133   : > { %15443 = vrot.lane.b32.xlu1 %v16768_v46, %s22639_s25  ;;  %1901 = vrot.lane.b32.xlu0 %v16774_v48, %s22635_s28 }
 0x185   : > { %v15429_v51 = vpop.permute.xlu1 %15428  ;;  %v15424_v52 = vpop.permute.xlu0 %15423 }
 0x186   : > { %v15431_v53 = vunpack.i.h.bf16 %v15429_v51  ;;  %v15430_v54 = vunpack.i.l.bf16 %v15429_v51  ;;  %v15426_v55 = vunpack.i.h.bf16 %v15424_v52  ;;  %v15425_v56 = vunpack.i.l.bf16 %v15424_v52 }
 0x188   : > { %v13894_v58 = vpack.c.bf16 %v15431_v53, %v15430_v54  ;;  %v13887_v59 = vpack.c.bf16 %v15426_v55, %v15425_v56 }
 0x189   : > { %v1423_v60 = vpop.permute.xlu1 %1422  ;;  %v1189_v61 = vpop.permute.xlu0 %1188 }
 0x18a   : > { %13889 = vmatpush3.bf16.xpose.msk.msra.mxu1 %vm16814_vm3, %v13887_v59  ;;  %13896 = vmatpush3.bf16.xpose.msk.msra.mxu0 %vm16814_vm3, %v13894_v58 }
 0x18b   : > { %13397 = vmatprep.subr.mxu0 %v22649_v7  ;;  %13367 = vmatprep.subr.mxu1 %v22649_v7 }
 0x18d   : > { %v1413_v62 = vpop.permute.xlu1 %1412  ;;  %v15434_v63 = vpop.permute.xlu0 %15433 }
 0x18e   : > { %v15436_v0 = vunpack.i.h.bf16 %v15434_v63  ;;  %v15435_v1 = vunpack.i.l.bf16 %v15434_v63 }
 0x190   : > { %v13901_v3 = vpack.c.bf16 %v15436_v0, %v15435_v1 }
 0x191   : > { %v1417_v2 = vpop.permute.xlu1 %1416  ;;  %v1415_v4 = vpop.permute.xlu0 %1414 }
 0x192   : > { %13368 = vmatpush3.xpose.msk.msra.mxu1 %vm1190_vm2, %v1189_v61  ;;  %13398 = vmatpush3.xpose.msk.msra.mxu0 %vm1190_vm2, %v1423_v60 }
 0x193   : > { %13900 = vmatprep.subr.bf16.mxu0 %v22652_v33  ;;  %13890 = vmatprep.subr.bf16.mxu1 %v22652_v33 }
 0x195   : > { %13400 = vmatmul.mubr.msk.f32.vlgmr.msra.gmra.mrb[6].mxu0 %vm1190_vm2, %v1413_v62  ;;  %13370 = vmatmul.mubr.msk.f32.vlgmr.msra.gmra.mrb[0].mxu1 %vm1190_vm2, %v16756_v39  ;;  %v15439_v5 = vpop.permute.xlu1 %15438  ;;  %v1667_v6 = vpop.permute.xlu0 %1666 }
 0x196   : > { %13892 = vmatpush3.bf16.msra.mxu1 %v13891_v47  ;;  %13903 = vmatpush3.bf16.xpose.msk.msra.mxu0 %vm16814_vm3, %v13901_v3  ;;  %v15441_v8 = vunpack.i.h.bf16 %v15439_v5  ;;  %v15440_v9 = vunpack.i.l.bf16 %v15439_v5 }
 0x197   : > { %13372 = vmatprep.mubr.msk.f32.mxu1 %vm16537_vm1, %v22649_v7  ;;  %13402 = vmatprep.mubr.msk.f32.mxu0 %vm16537_vm1, %v22649_v7 }
 0x198   : > { %13382 = vmatprep.subr.mxu1 %v22649_v7  ;;  %13427 = vmatprep.subr.mxu0 %v22649_v7  ;;  %v13908_v10 = vpack.c.bf16 %v15441_v8, %v15440_v9 }
 0x199   : > { %13403 = vmatmul.mubr.msk.f32.gmra.mrb[8].mxu0 %vm1190_vm2, %v1415_v4  ;;  %13373 = vmatmul.mubr.msk.f32.gmra.mrb[2].mxu1 %vm1190_vm2, %v16758_v40  ;;  %v1657_v11 = vpop.permute.xlu0 %1656  ;;  %v1659_v12 = vpop.permute.xlu1 %1658 }
 0x19a   : > { %13383 = vmatpush3.msra.mxu1 %v16776_v50  ;;  %13375 = vmatprep.mubr.msk.f32.mxu1 %vm16537_vm1, %v22649_v7 }
 0x19b   : > { %13405 = vmatprep.mubr.msk.f32.mxu0 %vm16537_vm1, %v22649_v7  ;;  %13897 = vmatprep.subr.bf16.mxu1 %v22652_v33 }
 0x19d   : > { %13406 = vmatmul.mubr.msk.f32.gmra.mrb[10].mxu0 %vm1190_vm2, %v1417_v2  ;;  %13376 = vmatmul.mubr.msk.f32.gmra.mrb[4].mxu1 %vm1190_vm2, %v16774_v48  ;;  %v1661_v13 = vpop.permute.xlu0 %1660  ;;  %v1908_v14 = vpop.permute.xlu1 %1907 }
 0x19e   : > { %13428 = vmatpush3.xpose.msk.msra.mxu0 %vm1190_vm2, %v1667_v6  ;;  %13429 = vmatprep.mubr.msk.f32.mxu0 %vm16537_vm1, %v22649_v7 }
 0x19f   : > { %13907 = vmatprep.subr.bf16.mxu0 %v22652_v33  ;;  %13384 = vmatprep.mubr.msk.f32.mxu1 %vm16537_vm1, %v22649_v7 }
 0x1a1   : > { %13430 = vmatmul.mubr.msk.f32.vlgmr.msra.gmra.mrb[12].mxu0 %vm1190_vm2, %v1657_v11  ;;  %v1898_v15 = vpop.permute.xlu0 %1897  ;;  %v1900_v16 = vpop.permute.xlu1 %1899 }
 0x1a2   : > { %13910 = vmatpush3.bf16.xpose.msk.msra.mxu0 %vm16814_vm3, %v13908_v10  ;;  %13432 = vmatprep.mubr.msk.f32.mxu0 %vm16537_vm1, %v22649_v7 }
 0x1a3   : > { %13457 = vmatprep.subr.mxu0 %v22649_v7 }
 0x1a5   : > { %13433 = vmatmul.mubr.msk.f32.gmra.mrb[14].mxu0 %vm1190_vm2, %v1659_v12  ;;  %v1902_v17 = vpop.permute.xlu0 %1901 }
 0x1a6   : > { %13435 = vmatprep.mubr.msk.f32.mxu0 %vm16537_vm1, %v22649_v7 }
 0x1a9   : > { %13436 = vmatmul.mubr.msk.f32.gmra.mrb[16].mxu0 %vm1190_vm2, %v1661_v13 }
 0x1aa   : > { %13458 = vmatpush3.xpose.msk.msra.mxu0 %vm1190_vm2, %v1908_v14  ;;  %13459 = vmatprep.mubr.msk.f32.mxu0 %vm16537_vm1, %v22649_v7 }
 0x1ab   : > { %13914 = vmatprep.subr.bf16.mxu0 %v22652_v33 }
 0x1ad   : > { %13460 = vmatmul.mubr.msk.f32.vlgmr.msra.gmra.mrb[18].mxu0 %vm1190_vm2, %v1898_v15 }
 0x1ae   : > { %13462 = vmatprep.mubr.msk.f32.mxu0 %vm16537_vm1, %v22649_v7 }
 0x1b1   : > { %13463 = vmatmul.mubr.msk.f32.gmra.mrb[20].mxu0 %vm1190_vm2, %v1900_v16 }
 0x1b2   : > { %13465 = vmatprep.mubr.msk.f32.mxu0 %vm16537_vm1, %v22649_v7 }
 0x1b5   : > { %13466 = vmatmul.mubr.msk.f32.gmra.mrb[22].mxu0 %vm1190_vm2, %v1902_v17 }
 0x1b6   : > { %13499 = vmatprep.mubr.msk.f32.mxu0 %vm16537_vm1, %v22649_v7 }
 0x268   : > { %v1269_v18 = vpop.f32.mrb[0].mxu1  ;;  %v1502_v19 = vpop.f32.mrb[6].mxu0 }
 0x269   : > { %v1283_v21 = vmul.f32 0.25, %v1269_v18  ;;  %v1516_v22 = vmul.f32 0.25, %v1502_v19  ;;  %v13371_v23 = vpop.f32.mrb[1].mxu1  ;;  %v13401_v24 = vpop.f32.mrb[7].mxu0 }
 0x26b   : > { %v16886_v25 = vadd.f32 %v1283_v21, %v16883_v20  ;;  %v16889_v28 = vadd.f32 %v1516_v22, %v16883_v20 }
 0x26c   : > { %v1274_v26 = vpop.f32.mrb[2].mxu1  ;;  %v1507_v27 = vpop.f32.mrb[8].mxu0 }
 0x26d   : > { %v1284_v34 = vmul.f32 0.25, %v1274_v26  ;;  %v1517_v35 = vmul.f32 0.25, %v1507_v27  ;;  %v13374_v36 = vpop.f32.mrb[3].mxu1  ;;  %v13404_v37 = vpop.f32.mrb[9].mxu0  ;;  %v1290_v38 = vsel %vm1289_vm4, %v16886_v25, -inf  ;;  %v1522_v42 = vsel %vm1289_vm4, %v16889_v28, -inf }
 0x26e   : > { %1291 = vmax.xlane.f32.xlu1 %v1290_v38  ;;  %v15444_v26 = vpop.permute.xlu1 %15443 }
 0x26f   : > { %v16896_v39 = vadd.f32 %v1284_v34, %v1041_v31  ;;  %v16905_v51 = vadd.f32 %v1517_v35, %v1041_v31 }
 0x270   : > { %v1279_v40 = vpop.f32.mrb[4].mxu1  ;;  %v1512_v41 = vpop.f32.mrb[10].mxu0 }
 0x271   : > { %v1285_v44 = vmul.f32 0.25, %v1279_v40  ;;  %v1518_v45 = vmul.f32 0.25, %v1512_v41  ;;  %v13377_v47 = vpop.f32.mrb[5].mxu1  ;;  %v13407_v48 = vpop.f32.mrb[11].mxu0  ;;  %v1293_v49 = vsel %vm1289_vm4, %v16896_v39, -inf  ;;  %v1525_v58 = vsel %vm1289_vm4, %v16905_v51, -inf }
 0x272   : > { %1523 = vmax.xlane.f32.xlu1 %v1522_v42  ;;  %1294 = vmax.xlane.f32.xlu0 %v1293_v49  ;;  %v15446_v41 = vunpack.i.h.bf16 %v15444_v26  ;;  %v15445_v42 = vunpack.i.l.bf16 %v15444_v26 }
 0x273   : > { %v16907_v52 = vadd.f32 %v1518_v45, %v1042_v43  ;;  %v16913_v59 = vadd.f32 %v1285_v44, %v1042_v43 }
 0x274   : > { %v1746_v53 = vpop.f32.mrb[12].mxu0 }
 0x275   : > { %v1760_v54 = vmul.f32 0.25, %v1746_v53  ;;  %v13431_v55 = vpop.f32.mrb[13].mxu0  ;;  %v1528_v56 = vsel %vm1289_vm4, %v16907_v52, -inf  ;;  %v1296_v62 = vsel %vm1289_vm4, %v16913_v59, -inf }
 0x276   : > { %1529 = vmax.xlane.f32.xlu1 %v1528_v56  ;;  %1526 = vmax.xlane.f32.xlu0 %v1525_v58 }
 0x277   : > { %v16918_v63 = vadd.f32 %v1760_v54, %v16883_v20 }
 0x278   : > { %v1751_v60 = vpop.f32.mrb[14].mxu0 }
 0x279   : > { %v13434_v61 = vpop.f32.mrb[15].mxu0  ;;  %v1766_v2 = vsel %vm1289_vm4, %v16918_v63, -inf  ;;  %v1761_v10 = vmul.f32 0.25, %v1751_v60 }
 0x27a   : > { %1297 = vmax.xlane.f32.xlu0 %v1296_v62 }
 0x27b   : > { %v16928_v12 = vadd.f32 %v1761_v10, %v1041_v31 }
 0x27c   : > { %v1756_v0 = vpop.f32.mrb[16].mxu0 }
 0x27d   : > { %v13437_v1 = vpop.f32.mrb[17].mxu0  ;;  %v1762_v11 = vmul.f32 0.25, %v1756_v0  ;;  %v1769_v14 = vsel %vm1289_vm4, %v16928_v12, -inf }
 0x27e   : > { %1767 = vmax.xlane.f32.xlu0 %v1766_v2 }
 0x27f   : > { %v16932_v15 = vadd.f32 %v1762_v11, %v1042_v43 }
 0x280   : > { %v1987_v3 = vpop.f32.mrb[18].mxu0 }
 0x281   : > { %v13461_v4 = vpop.f32.mrb[19].mxu0  ;;  %v2001_v13 = vmul.f32 0.25, %v1987_v3  ;;  %v1772_v16 = vsel %vm1289_vm4, %v16932_v15, -inf }
 0x283   : > { %v16937_v17 = vadd.f32 %v2001_v13, %v16883_v20 }
 0x284   : > { %v1992_v5 = vpop.f32.mrb[20].mxu0 }
 0x285   : > { %v13464_v6 = vpop.f32.mrb[21].mxu0  ;;  %v2007_v18 = vsel %vm1289_vm4, %v16937_v17, -inf  ;;  %v2002_v19 = vmul.f32 0.25, %v1992_v5 }
 0x287   : > { %15448 = vrot.lane.b32.xlu1 %v16768_v46, %s22637_s27  ;;  %v16945_v21 = vadd.f32 %v2002_v19, %v1041_v31 }
 0x288   : > { %v1997_v8 = vpop.f32.mrb[22].mxu0 }
 0x289   : > { %v13467_v9 = vpop.f32.mrb[23].mxu0  ;;  %v2003_v22 = vmul.f32 0.25, %v1997_v8  ;;  %v2010_v23 = vsel %vm1289_vm4, %v16945_v21, -inf }
 0x28b   : > { %1797 = vrot.lane.b32.xlu1 %v16776_v50, %s22637_s27  ;;  %v16949_v20 = vadd.f32 %v2003_v22, %v1042_v43  ;;  %s22736_s27 = smov 96  }
 0x28d   : > { %v2013_v24 = vsel %vm1289_vm4, %v16949_v20, -inf }
 0x294   : > { %1556 = vrot.lane.b32.xlu0 %v16776_v50, %s22639_s25  ;;  %s729_s25 = smul.u32 20, %s22706_s3 }
 0x296   : > { %p730_p3 = scmp.lt.s32.totalorder %s729_s25, 59 }
 0x298   : > { %s22779_s25 = smov (!%p730_p3, %s729_s25), 59 }
 0x299   : > { %s11629_s30 = sshll.u32 %s22779_s25, 3  ;;  %s22709_s25 = sld [smem:[#allocation27_spill]] }
 0x29a   : > { %s17080_s3 = scalar_lea.vmem %s22707_s29, %s11629_s30  ;;  %s22727_s30 = smov 64  }
 0x29b   : > { %s22776_s29 = sld [smem:[#allocation38_spill]] }
 0x2af   : > { %1770 = vmax.xlane.f32.xlu1 %v1769_v14 }
 0x2b3   : > { %1773 = vmax.xlane.f32.xlu0 %v1772_v16 }
 0x2b7   : > { %2008 = vmax.xlane.f32.xlu0 %v2007_v18 }
 0x2c0   : > { %15453 = vrot.lane.b32.xlu1 %v16768_v46, %s22635_s28 }
 0x2cd   : > { %2038 = vrot.lane.b32.xlu0 %v16776_v50, %s22635_s28  ;;  %s22705_s28 = smov 48  }
 0x2e4   : > { %2011 = vmax.xlane.f32.xlu1 %v2010_v23 }
 0x2ec   : > { %2014 = vmax.xlane.f32.xlu0 %v2013_v24 }
 0x2fb   : > { %v1292_v27 = vpop.xlane.xlu1 %1291 }
 0x2fc   : > { %v1299_v46 = vsub.f32 %v16886_v25, %v1292_v27  ;;  %v13898_v25 = vpack.c.bf16 %v15446_v41, %v15445_v42 }
 0x2fe   : > { %v1302_v34 = vmul.f32 1.442695, %v1299_v46 }
 0x2ff   : > { %v1524_v50 = vpop.xlane.xlu1 %1523  ;;  %v1295_v35 = vpop.xlane.xlu0 %1294 }
 0x300   : > { %16217 = vpow2.f32 %v1302_v34  ;;  %v1531_v31 = vsub.f32 %v16889_v28, %v1524_v50  ;;  %v1300_v36 = vsub.f32 %v16896_v39, %v1295_v35 }
 0x302   : > { %v1534_v37 = vmul.f32 1.442695, %v1531_v31  ;;  %v1304_v38 = vmul.f32 1.442695, %v1300_v36 }
 0x303   : > { %v1527_v40 = vpop.xlane.xlu0 %1526  ;;  %v1530_v49 = vpop.xlane.xlu1 %1529 }
 0x304   : > { %16219 = vpow2.f32 %v1534_v37  ;;  %v1532_v28 = vsub.f32 %v16905_v51, %v1527_v40 }
 0x305   : > { %16221 = vpow2.f32 %v1304_v38 }
 0x306   : > { %v1536_v51 = vmul.f32 1.442695, %v1532_v28 }
 0x307   : > { %v1298_v43 = vpop.xlane.xlu0 %1297  ;;  %v15449_v60 = vpop.permute.xlu1 %15448 }
 0x308   : > { %v1301_v44 = vsub.f32 %v16913_v59, %v1298_v43  ;;  %v1533_v59 = vsub.f32 %v16907_v52, %v1530_v49  ;;  %v15450_v0 = vunpack.i.l.bf16 %v15449_v60 }
 0x30a   : > { %v16218_v45 = vpop.eup %16217  ;;  %v1306_v47 = vmul.f32 1.442695, %v1301_v44  ;;  %v1538_v61 = vmul.f32 1.442695, %v1533_v59 }
 0x30b   : > { %13385 = vmatmul.mubr.msk.f32.vlgmr.msra.gmra.mrb[6].mxu1 %vm1289_vm4, %v16218_v45  ;;  %v1768_v48 = vpop.xlane.xlu0 %1767  ;;  %v1798_v4 = vpop.permute.xlu1 %1797  ;;  %v1308_v5 = vsel %vm1289_vm4, %v16218_v45, 0.0 }
 0x30c   : > { %16223 = vpow2.f32 %v1306_v47  ;;  %13899 = vmatpush3.bf16.msra.mxu1 %v13898_v25  ;;  %v1775_v39 = vsub.f32 %v16918_v63, %v1768_v48  ;;  %13387 = vmatprep.mubr.msk.f32.mxu1 %vm16537_vm1, %v22649_v7  ;;  %v15451_v63 = vunpack.i.h.bf16 %v15449_v60  ;;  %v1173_v60 = vld [vmem:[%s22703_s2 + $0x8] sm:$0xff] }
 0x30d   : > { %13412 = vmatprep.subr.mxu1 %v22649_v7 }
 0x30e   : > { %v16220_v53 = vpop.eup %16219  ;;  %v1778_v54 = vmul.f32 1.442695, %v1775_v39  ;;  %v13905_v1 = vpack.c.bf16 %v15451_v63, %v15450_v0  ;;  %v1175_v0 = vld [vmem:[%s22703_s2 + $0x18] sm:$0xff] }
 0x30f   : > { %v16963_v55 = vpop.eup %16221  ;;  %v1557_v56 = vpop.permute.xlu0 %1556  ;;  %v1540_v58 = vsel %vm1289_vm4, %v16220_v53, 0.0 }
 0x310   : > { %16225 = vpow2.f32 %v1778_v54  ;;  %13388 = vmatmul.mubr.msk.f32.gmra.mrb[8].mxu1 %vm1289_vm4, %v16963_v55  ;;  %1541 = vadd.xlane.f32.xlu0 %v1540_v58 }
 0x311   : > { %13413 = vmatpush3.msra.mxu1 %v1557_v56  ;;  %13390 = vmatprep.mubr.msk.f32.mxu1 %vm16537_vm1, %v22649_v7  ;;  %16227 = vpow2.f32 %v1536_v51  ;;  %v1172_v51 = vld [vmem:[%s22703_s2] sm:$0xff] }
 0x312   : > { %13904 = vmatprep.subr.bf16.mxu1 %v22652_v33  ;;  %16229 = vpow2.f32 %v1538_v61  ;;  %v1174_v61 = vld [vmem:[%s22703_s2 + $0x10] sm:$0xff]  ;;  %v13915_v63 = vpack.c.bf16 %v1173_v60, %v1172_v51  ;;  %v741_v51 = vld [vmem:[%s17080_s3] sm:$0xff] }
 0x313   : > { %v745_v60 = vld [vmem:[%s17080_s3 + $0x20] sm:$0xff] }
 0x314   : > { %13916 = vmatpush3.bf16.msra.mxu0 %v13915_v63  ;;  %v17087_v63 = vld [vmem:[%s17080_s3 + $0x50] sm:$0xff] }
 0x315   : > { %13917 = vmatprep.subr.bf16.mxu0 %v22652_v33 }
 0x316   : > { %v16972_v62 = vpop.eup %16223 }
 0x317   : > { %13391 = vmatmul.mubr.msk.f32.gmra.mrb[10].mxu1 %vm1289_vm4, %v16972_v62 }
 0x318   : > { %13414 = vmatprep.mubr.msk.f32.mxu1 %vm16537_vm1, %v22649_v7 }
 0x31a   : > { %v16226_v52 = vpop.eup %16225 }
 0x31b   : > { %13415 = vmatmul.mubr.msk.f32.vlgmr.msra.gmra.mrb[12].mxu1 %vm1289_vm4, %v16220_v53  ;;  %v1784_v2 = vsel %vm1289_vm4, %v16226_v52, 0.0  ;;  %v16228_v3 = vpop.eup %16227 }
 0x31c   : > { %13906 = vmatpush3.bf16.msra.mxu1 %v13905_v1  ;;  %1785 = vadd.xlane.f32.xlu1 %v1784_v2  ;;  %v16230_v6 = vpop.eup %16229  ;;  %v1543_v35 = vsel %vm1289_vm4, %v16228_v3, 0.0  ;;  %v13918_v2 = vpack.c.bf16 %v1175_v0, %v1174_v61  ;;  %v16544_v61 = vmov 1   ;;  %v742_v0 = vld [vmem:[%s17080_s3 + $0x8] sm:$0xff] }
 0x31d   : > { %13417 = vmatprep.mubr.msk.f32.mxu1 %vm16537_vm1, %v22649_v7  ;;  %13442 = vmatprep.subr.mxu1 %v22649_v7 }
 0x31e   : > { %13919 = vmatpush3.bf16.msra.mxu0 %v13918_v2  ;;  %v743_v2 = vld [vmem:[%s17080_s3 + $0x10] sm:$0xff] }
 0x31f   : > { %13418 = vmatmul.mubr.msk.f32.gmra.mrb[14].mxu1 %vm1289_vm4, %v16228_v3  ;;  %v1176_v3 = vld [vmem:[%s22703_s2 + $0x20] sm:$0xff]  ;;  %13920 = vmatprep.subr.bf16.mxu0 %v22652_v33 }
 0x320   : > { %13443 = vmatpush3.msra.mxu1 %v1798_v4  ;;  %1309 = vadd.xlane.f32.xlu1 %v1308_v5  ;;  %v1177_v4 = vld [vmem:[%s22703_s2 + $0x28] sm:$0xff] }
 0x321   : > { %13420 = vmatprep.mubr.msk.f32.mxu1 %vm16537_vm1, %v22649_v7  ;;  %13911 = vmatprep.subr.bf16.mxu1 %v22652_v33 }
 0x323   : > { %13421 = vmatmul.mubr.msk.f32.gmra.mrb[16].mxu1 %vm1289_vm4, %v16230_v6 }
 0x324   : > { %13444 = vmatprep.mubr.msk.f32.mxu1 %vm16537_vm1, %v22649_v7 }
 0x327   : > { %13445 = vmatmul.mubr.msk.f32.vlgmr.msra.gmra.mrb[18].mxu1 %vm1289_vm4, %v16226_v52 }
 0x328   : > { %13447 = vmatprep.mubr.msk.f32.mxu1 %vm16537_vm1, %v22649_v7 }
 0x33c   : > { %v1771_v8 = vpop.xlane.xlu1 %1770 }
 0x33d   : > { %v1776_v9 = vsub.f32 %v16928_v12, %v1771_v8  ;;  %v13921_v8 = vpack.c.bf16 %v1177_v4, %v1176_v3  ;;  %v754_v3 = vld [vmem:[%s17080_s3 + $0x68] sm:$0xff]  ;;  %v17102_v4 = vld [vmem:[%s17080_s3 + $0x80] sm:$0xff] }
 0x33f   : > { %v1780_v10 = vmul.f32 1.442695, %v1776_v9  ;;  %v1178_v9 = vld [vmem:[%s22703_s2 + $0x30] sm:$0xff]  ;;  %13922 = vmatpush3.bf16.msra.mxu0 %v13921_v8  ;;  %v746_v8 = vld [vmem:[%s17080_s3 + $0x28] sm:$0xff] }
 0x340   : > { %v15454_v11 = vpop.permute.xlu1 %15453  ;;  %v1774_v13 = vpop.xlane.xlu0 %1773  ;;  %13923 = vmatprep.subr.bf16.mxu0 %v22652_v33 }
 0x341   : > { %16231 = vpow2.f32 %v1780_v10  ;;  %v15456_v14 = vunpack.i.h.bf16 %v15454_v11  ;;  %v15455_v16 = vunpack.i.l.bf16 %v15454_v11  ;;  %v1777_v18 = vsub.f32 %v16932_v15, %v1774_v13  ;;  %v1179_v10 = vld [vmem:[%s22703_s2 + $0x38] sm:$0xff] }
 0x343   : > { %v13912_v19 = vpack.c.bf16 %v15456_v14, %v15455_v16  ;;  %v1782_v22 = vmul.f32 1.442695, %v1777_v18  ;;  %v13924_v18 = vpack.c.bf16 %v1179_v10, %v1178_v9 }
 0x344   : > { %v2009_v23 = vpop.xlane.xlu0 %2008 }
 0x345   : > { %16233 = vpow2.f32 %v1782_v22  ;;  %v2016_v24 = vsub.f32 %v16937_v17, %v2009_v23  ;;  %13913 = vmatpush3.bf16.msra.mxu1 %v13912_v19  ;;  %v1546_v17 = vsel %vm1289_vm4, %v16230_v6, 0.0  ;;  %13925 = vmatpush3.bf16.msra.mxu0 %v13924_v18  ;;  %v1311_v22 = vsel %vm1289_vm4, %v16963_v55, 0.0 }
 0x346   : > { %13472 = vmatprep.subr.mxu1 %v22649_v7 }
 0x347   : > { %v2019_v26 = vmul.f32 1.442695, %v2016_v24 }
 0x348   : > { %v2039_v27 = vpop.permute.xlu0 %2038 }
 0x349   : > { %16235 = vpow2.f32 %v2019_v26  ;;  %13473 = vmatpush3.msra.mxu1 %v2039_v27 }
 0x34a   : > { %13926 = vmatprep.subr.bf16.mxu1 %v22652_v33 }
 0x34b   : > { %v16232_v12 = vpop.eup %16231 }
 0x34c   : > { %13448 = vmatmul.mubr.msk.f32.gmra.mrb[20].mxu1 %vm1289_vm4, %v16232_v12  ;;  %v1787_v15 = vsel %vm1289_vm4, %v16232_v12, 0.0 }
 0x34d   : > { %1788 = vadd.xlane.f32.xlu1 %v1787_v15  ;;  %13450 = vmatprep.mubr.msk.f32.mxu1 %vm16537_vm1, %v22649_v7 }
 0x34f   : > { %v16234_v46 = vpop.eup %16233 }
 0x350   : > { %13451 = vmatmul.mubr.msk.f32.gmra.mrb[22].mxu1 %vm1289_vm4, %v16234_v46  ;;  %v1790_v31 = vsel %vm1289_vm4, %v16234_v46, 0.0 }
 0x351   : > { %1547 = vadd.xlane.f32.xlu1 %v1546_v17  ;;  %13474 = vmatprep.mubr.msk.f32.mxu1 %vm16537_vm1, %v22649_v7 }
 0x353   : > { %v16236_v34 = vpop.eup %16235 }
 0x354   : > { %13475 = vmatmul.mubr.msk.f32.vlgmr.msra.gmra.mrb[24].mxu1 %vm1289_vm4, %v16236_v34  ;;  %v2025_v50 = vsel %vm1289_vm4, %v16236_v34, 0.0 }
 0x355   : > { %2026 = vadd.xlane.f32.xlu0 %v2025_v50  ;;  %13477 = vmatprep.mubr.msk.f32.mxu1 %vm16537_vm1, %v22649_v7 }
 0x359   : > { %1544 = vadd.xlane.f32.xlu0 %v1543_v35 }
 0x35d   : > { %1791 = vadd.xlane.f32.xlu0 %v1790_v31 }
 0x371   : > { %v2012_v36 = vpop.xlane.xlu1 %2011 }
 0x372   : > { %v2017_v37 = vsub.f32 %v16945_v21, %v2012_v36 }
 0x374   : > { %v2021_v38 = vmul.f32 1.442695, %v2017_v37  ;;  %v16543_v37 = vmov 0  }
 0x375   : > { %15457 = vset.pattern.permute.xlu1 %v16543_v37  ;;  %15465 = vset.pattern.permute.xlu0 %v16543_v37 }
 0x376   : > { %16237 = vpow2.f32 %v2021_v38 }
 0x379   : > { %v2015_v40 = vpop.xlane.xlu0 %2014 }
 0x37a   : > { %v2018_v41 = vsub.f32 %v16949_v20, %v2015_v40  ;;  %v1314_v40 = vsel %vm1289_vm4, %v16972_v62, 0.0 }
 0x37c   : > { %v2023_v42 = vmul.f32 1.442695, %v2018_v41 }
 0x37e   : > { %16239 = vpow2.f32 %v2023_v42 }
 0x380   : > { %v16238_v43 = vpop.eup %16237 }
 0x381   : > { %13478 = vmatmul.mubr.msk.f32.gmra.mrb[26].mxu1 %vm1289_vm4, %v16238_v43  ;;  %v2028_v44 = vsel %vm1289_vm4, %v16238_v43, 0.0 }
 0x382   : > { %2029 = vadd.xlane.f32.xlu0 %v2028_v44  ;;  %13480 = vmatprep.mubr.msk.f32.mxu1 %vm16537_vm1, %v22649_v7 }
 0x388   : > { %v16240_v45 = vpop.eup %16239 }
 0x389   : > { %13481 = vmatmul.mubr.msk.f32.gmra.mrb[28].mxu1 %vm1289_vm4, %v16240_v45  ;;  %v2031_v21 = vsel %vm1289_vm4, %v16240_v45, 0.0 }
 0x38a   : > { %2032 = vadd.xlane.f32.xlu1 %v2031_v21  ;;  %13524 = vmatprep.mubr.msk.f32.mxu1 %vm16537_vm1, %v22649_v7 }
 0x39d   : > { %v1542_v47 = vpop.xlane.xlu0 %1541 }
 0x39e   : > { %16241 = vrcp.f32 %v1542_v47 }
 0x3a8   : > { %v16242_v54 = vpop.eup %16241 }
 0x3a9   : > { %v1786_v53 = vpop.xlane.xlu1 %1785 }
 0x3aa   : > { %16243 = vrcp.f32 %v1786_v53 }
 0x3ad   : > { %v17064_v36 = vpop.xlane.xlu1 %1309 }
 0x3b4   : > { %v16244_v11 = vpop.eup %16243 }
 0x3da   : > { %v1789_v38 = vpop.xlane.xlu1 %1788 }
 0x3de   : > { %v17023_v20 = vpop.f32.mrb[6].mxu1  ;;  %v1548_v41 = vpop.xlane.xlu1 %1547 }
 0x3df   : > { %v13386_v25 = vpop.f32.mrb[7].mxu1 }
 0x3e2   : > { %v2027_v19 = vpop.xlane.xlu0 %2026 }
 0x3e3   : > { %v17025_v48 = vpop.f32.mrb[8].mxu1 }
 0x3e4   : > { %v13389_v28 = vpop.f32.mrb[9].mxu1 }
 0x3e6   : > { %v1545_v23 = vpop.xlane.xlu0 %1544 }
 0x3e7   : > { %16245 = vrcp.f32 %v1545_v23  ;;  %v749_v23 = vld [vmem:[%s17080_s3 + $0x40] sm:$0xff] }
 0x3e8   : > { %16247 = vrcp.f32 %v2027_v19 }
 0x3ea   : > { %v17027_v39 = vpop.f32.mrb[10].mxu1  ;;  %v1792_v31 = vpop.xlane.xlu0 %1791 }
 0x3eb   : > { %v13392_v49 = vpop.f32.mrb[11].mxu1 }
 0x3ee   : > { %v1636_v56 = vpop.f32.mrb[12].mxu1 }
 0x3ef   : > { %v1651_v58 = vmul.f32 %v16242_v54, %v1636_v56  ;;  %v13416_v59 = vpop.f32.mrb[13].mxu1 }
 0x3f1   : > { %2141 = vrot.lane.b32.xlu0 %v1651_v58, %s22645_s1  ;;  %v16246_v27 = vpop.eup %16245 }
 0x3f2   : > { %v1641_v52 = vpop.f32.mrb[14].mxu1  ;;  %v16248_v17 = vpop.eup %16247 }
 0x3f3   : > { %v13419_v1 = vpop.f32.mrb[15].mxu1  ;;  %v1653_v15 = vmul.f32 %v16246_v27, %v1641_v52  ;;  %v17093_v52 = vld [vmem:[%s17080_s3 + $0x58] sm:$0xff]  ;;  %v755_v27 = vld [vmem:[%s17080_s3 + $0x70] sm:$0xff] }
 0x3f4   : > { %v753_v1 = vld [vmem:[%s17080_s3 + $0x60] sm:$0xff] }
 0x3f6   : > { %v17049_v5 = vpop.f32.mrb[16].mxu1 }
 0x3f7   : > { %v13422_v6 = vpop.f32.mrb[17].mxu1 }
 0x3f8   : > { %v744_v6 = vld [vmem:[%s17080_s3 + $0x18] sm:$0xff] }
 0x3fa   : > { %v1877_v13 = vpop.f32.mrb[18].mxu1 }
 0x3fb   : > { %v1892_v14 = vmul.f32 %v16244_v11, %v1877_v13  ;;  %v13446_v16 = vpop.f32.mrb[19].mxu1 }
 0x3fd   : > { %2153 = vrot.lane.b32.xlu1 %v1892_v14, %s22704_s26 }
 0x40f   : > { %v2030_v55 = vpop.xlane.xlu0 %2029 }
 0x410   : > { %1312 = vadd.xlane.f32.xlu0 %v1311_v22  ;;  %16249 = vrcp.f32 %v2030_v55  ;;  %v747_v22 = vld [vmem:[%s17080_s3 + $0x30] sm:$0xff]  ;;  %v756_v55 = vld [vmem:[%s17080_s3 + $0x78] sm:$0xff] }
 0x411   : > { %16251 = vrcp.f32 %v1792_v31 }
 0x412   : > { %16253 = vrcp.f32 %v1789_v38 }
 0x413   : > { %16255 = vrcp.f32 %v1548_v41 }
 0x417   : > { %v2033_v21 = vpop.xlane.xlu1 %2032 }
 0x418   : > { %16257 = vrcp.f32 %v2033_v21 }
 0x419   : > { %16259 = vrcp.f32 %v17064_v36 }
 0x41a   : > { %v16250_v42 = vpop.eup %16249 }
 0x41b   : > { %v16252_v25 = vpop.eup %16251 }
 0x41c   : > { %v16254_v62 = vpop.eup %16253 }
 0x41d   : > { %v16256_v54 = vpop.eup %16255 }
 0x41e   : > { %v1655_v56 = vmul.f32 %v16256_v54, %v17049_v5  ;;  %v17106_v5 = vld [vmem:[%s17080_s3 + $0x88] sm:$0xff] }
 0x41f   : > { %v1882_v24 = vpop.f32.mrb[20].mxu1 }
 0x420   : > { %v13449_v26 = vpop.f32.mrb[21].mxu1  ;;  %v1894_v49 = vmul.f32 %v16254_v62, %v1882_v24  ;;  %v750_v24 = vld [vmem:[%s17080_s3 + $0x48] sm:$0xff] }
 0x422   : > { %v16258_v58 = vpop.eup %16257 }
 0x423   : > { %v1887_v12 = vpop.f32.mrb[22].mxu1  ;;  %v16260_v9 = vpop.eup %16259 }
 0x424   : > { %v13452_v46 = vpop.f32.mrb[23].mxu1  ;;  %v1896_v47 = vmul.f32 %v16252_v25, %v1887_v12  ;;  %v1407_v13 = vmul.f32 %v16260_v9, %v17023_v20  ;;  %v748_v20 = vld [vmem:[%s17080_s3 + $0x38] sm:$0xff]  ;;  %v2441_v9 = vld [vmem:[%s22614_s12 + $0x20] sm:$0xff] }
 0x426   : > { %2143 = vrot.lane.b32.xlu0 %v1653_v15, %s22645_s1 }
 0x427   : > { %v2118_v34 = vpop.f32.mrb[24].mxu1 }
 0x428   : > { %v2133_v50 = vmul.f32 %v16248_v17, %v2118_v34  ;;  %v13476_v35 = vpop.f32.mrb[25].mxu1 }
 0x42a   : > { %2165 = vrot.lane.b32.xlu1 %v2133_v50, %s22705_s28 }
 0x44e   : > { %1315 = vadd.xlane.f32.xlu1 %v1314_v40  ;;  %v761_v40 = vld [vmem:[%s22708_s8] sm:$0x3]  ;;  %s22765_s8 = sld [smem:[#allocation32_spill]] }
 0x454   : > { %v2123_v43 = vpop.f32.mrb[26].mxu1 }
 0x455   : > { %v2135_v44 = vmul.f32 %v16250_v42, %v2123_v43  ;;  %v13479_v45 = vpop.f32.mrb[27].mxu1 }
 0x456   : > { %v17157_v45 = vrot.slane %v761_v40, %v16744_v30 }
 0x457   : > { %2167 = vrot.lane.b32.xlu0 %v2135_v44, %s22705_s28 }
 0x45b   : > { %2157 = vrot.lane.b32.xlu0 %v1896_v47, %s22704_s26 }
 0x45c   : > { %v2128_v28 = vpop.f32.mrb[28].mxu1 }
 0x45d   : > { %v13482_v53 = vpop.f32.mrb[29].mxu1  ;;  %v2137_v59 = vmul.f32 %v16258_v58, %v2128_v28 }
 0x45e   : > { %v17171_v53 = vld [vmem:[%s22709_s25] ss:$0 sm:$0xff]  ;;  %s22735_s25 = sld [smem:[#allocation25_spill]] }
 0x45f   : > { %2155 = vrot.lane.b32.xlu1 %v1894_v49, %s22704_s26  ;;  %784 = vperm.xlu0 %15465, %v745_v60  }
 0x463   : > { %2145 = vrot.lane.b32.xlu1 %v1655_v56, %s22645_s1  ;;  %814 = vperm.xlu0 %15465, %v17087_v63   ;;  %v2142_v10 = vpop.permute.xlu0 %2141 }
 0x464   : > { %v2174_v14 = vsel %vm1190_vm2, %v1407_v13, %v2142_v10  ;;  %v2442_v10 = vld [vmem:[%s22614_s12 + $0x28] sm:$0xff] }
 0x465   : > { %v13946_v13 = vpack.c.bf16 %v2442_v10, %v2441_v9 }
 0x467   : > { %2169 = vrot.lane.b32.xlu1 %v2137_v59, %s22705_s28  ;;  %819 = vperm.xlu0 %15465, %v17093_v52   ;;  %v17179_v59 = vld [vmem:[%s17080_s3 + $0x90] sm:$0xff] }
 0x46b   : > { %764 = vperm.xlu1 %15457, %v741_v51   ;;  %824 = vperm.xlu0 %15465, %v753_v1  }
 0x46f   : > { %15458 = vset.pattern.permute.xlu1 %v16544_v61  ;;  %829 = vperm.xlu0 %15465, %v754_v3   ;;  %v2154_v11 = vpop.permute.xlu1 %2153 }
 0x470   : > { %887 = vperm.xlu1 %15458, %v741_v51   ;;  %v2178_v16 = vsel %vm2177_vm5, %v2174_v14, %v2154_v11  ;;  %v2443_v14 = vld [vmem:[%s22614_s12 + $0x30] sm:$0xff] }
 0x473   : > { %844 = vperm.xlu0 %15465, %v17102_v4  }
 0x474   : > { %15459 = vset.pattern.permute.xlu1 %v16543_v37 }
 0x475   : > { %769 = vperm.xlu1 %15459, %v742_v0  }
 0x477   : > { %849 = vperm.xlu0 %15465, %v17106_v5  }
 0x479   : > { %15460 = vset.pattern.permute.xlu1 %v16544_v61 }
 0x47a   : > { %891 = vperm.xlu1 %15460, %v742_v0  }
 0x47e   : > { %15461 = vset.pattern.permute.xlu1 %v16543_v37 }
 0x47f   : > { %774 = vperm.xlu1 %15461, %v743_v2  }
 0x483   : > { %15462 = vset.pattern.permute.xlu1 %v16544_v61 }
 0x484   : > { %895 = vperm.xlu1 %15462, %v743_v2   ;;  %v2437_v2 = vld [vmem:[%s22614_s12] sm:$0xff] }
 0x488   : > { %15463 = vset.pattern.permute.xlu1 %v16543_v37 }
 0x489   : > { %779 = vperm.xlu1 %15463, %v744_v6  }
 0x48d   : > { %15464 = vset.pattern.permute.xlu1 %v16544_v61 }
 0x48e   : > { %899 = vperm.xlu1 %15464, %v744_v6  }
 0x492   : > { %903 = vperm.xlu1 %15464, %v745_v60  }
 0x496   : > { %15466 = vset.pattern.permute.xlu1 %v16543_v37 }
 0x497   : > { %789 = vperm.xlu1 %15466, %v746_v8  }
 0x49b   : > { %15467 = vset.pattern.permute.xlu1 %v16544_v61 }
 0x49c   : > { %v2166_v18 = vpop.permute.xlu1 %2165  ;;  %907 = vperm.xlu1 %15467, %v746_v8  }
 0x49d   : > { %v2182_v19 = vsel %vm2181_vm6, %v2178_v16, %v2166_v18  ;;  %v1313_v26 = vpop.xlane.xlu0 %1312  ;;  %v2444_v16 = vld [vmem:[%s22614_s12 + $0x38] sm:$0xff] }
 0x49e   : > { %13500 = vmatmul.mubr.msk.f32.vlgmr.msra.gmra.mrb[24].mxu0 %vm1079_vm0, %v2182_v19  ;;  %16261 = vrcp.f32 %v1313_v26 }
 0x49f   : > { %13502 = vmatprep.mubr.msk.f32.mxu0 %vm16537_vm1, %v22649_v7 }
 0x4a0   : > { %15468 = vset.pattern.permute.xlu1 %v16543_v37 }
 0x4a1   : > { %794 = vperm.xlu1 %15468, %v747_v22   ;;  %v2144_v17 = vpop.permute.xlu0 %2143 }
 0x4a5   : > { %15469 = vset.pattern.permute.xlu1 %v16544_v61 }
 0x4a6   : > { %911 = vperm.xlu1 %15469, %v747_v22  }
 0x4a8   : > { %v16262_v12 = vpop.eup %16261 }
 0x4a9   : > { %v1409_v15 = vmul.f32 %v16262_v12, %v17025_v48 }
 0x4aa   : > { %15470 = vset.pattern.permute.xlu1 %v16543_v37 }
 0x4ab   : > { %799 = vperm.xlu1 %15470, %v748_v20   ;;  %v2175_v34 = vsel %vm1190_vm2, %v1409_v15, %v2144_v17 }
 0x4af   : > { %15471 = vset.pattern.permute.xlu1 %v16544_v61 }
 0x4b0   : > { %915 = vperm.xlu1 %15471, %v748_v20  }
 0x4b4   : > { %15472 = vset.pattern.permute.xlu1 %v16543_v37 }
 0x4b5   : > { %804 = vperm.xlu1 %15472, %v749_v23  }
 0x4b9   : > { %15473 = vset.pattern.permute.xlu1 %v16544_v61 }
 0x4ba   : > { %919 = vperm.xlu1 %15473, %v749_v23  }
 0x4be   : > { %15474 = vset.pattern.permute.xlu1 %v16543_v37 }
 0x4bf   : > { %809 = vperm.xlu1 %15474, %v750_v24  }
 0x4c3   : > { %15475 = vset.pattern.permute.xlu1 %v16544_v61 }
 0x4c4   : > { %923 = vperm.xlu1 %15475, %v750_v24   ;;  %v13950_v24 = vpack.c.bf16 %v2444_v16, %v2443_v14 }
 0x4c8   : > { %927 = vperm.xlu1 %15475, %v17087_v63  }
 0x4c9   : > { %v2168_v35 = vpop.permute.xlu0 %2167 }
 0x4cc   : > { %931 = vperm.xlu1 %15475, %v17093_v52  }
 0x4cd   : > { %v2158_v43 = vpop.permute.xlu0 %2157 }
 0x4d0   : > { %935 = vperm.xlu1 %15475, %v753_v1  }
 0x4d4   : > { %939 = vperm.xlu1 %15475, %v754_v3   ;;  %v2438_v3 = vld [vmem:[%s22614_s12 + $0x8] sm:$0xff] }
 0x4d5   : > { %v13938_v6 = vpack.c.bf16 %v2438_v3, %v2437_v2 }
 0x4d7   : > { %13939 = vmatprep.subr.bf16.mxu0 %v13938_v6 }
 0x4d8   : > { %15476 = vset.pattern.permute.xlu1 %v16543_v37  ;;  %13941 = vmatpush3.bf16.msra.mxu0 %v13938_v6 }
 0x4d9   : > { %834 = vperm.xlu1 %15476, %v755_v27  }
 0x4db   : > { %v1316_v46 = vpop.xlane.xlu1 %1315 }
 0x4dc   : > { %16263 = vrcp.f32 %v1316_v46 }
 0x4dd   : > { %15477 = vset.pattern.permute.xlu1 %v16544_v61 }
 0x4de   : > { %943 = vperm.xlu1 %15477, %v755_v27   ;;  %v785_v15 = vpop.permute.xlu0 %784 }
 0x4df   : > { %v2156_v50 = vpop.permute.xlu1 %2155 }
 0x4e0   : > { %v2179_v31 = vsel %vm2177_vm5, %v2175_v34, %v2156_v50  ;;  %v870_v34 = vmul.f32 %v17157_v45, %v785_v15 }
 0x4e1   : > { %v2183_v36 = vsel %vm2181_vm6, %v2179_v31, %v2168_v35 }
 0x4e2   : > { %13503 = vmatmul.mubr.msk.f32.gmra.mrb[26].mxu0 %vm1079_vm0, %v2183_v36  ;;  %15478 = vset.pattern.permute.xlu1 %v16543_v37  ;;  %v815_v6 = vpop.permute.xlu0 %814 }
 0x4e3   : > { %v2146_v48 = vpop.permute.xlu1 %2145  ;;  %13505 = vmatprep.mubr.msk.f32.mxu0 %vm16537_vm1, %v22649_v7  ;;  %839 = vperm.xlu1 %15478, %v756_v55  }
 0x4e6   : > { %v16264_v38 = vpop.eup %16263  ;;  %v820_v10 = vpop.permute.xlu0 %819 }
 0x4e7   : > { %v1411_v41 = vmul.f32 %v16264_v38, %v17027_v39  ;;  %v2170_v42 = vpop.permute.xlu1 %2169  ;;  %15479 = vset.pattern.permute.xlu1 %v16544_v61  ;;  %v17164_v39 = vrot.slane %v761_v40, %v16750_v32 }
 0x4e8   : > { %947 = vperm.xlu1 %15479, %v756_v55  }
 0x4e9   : > { %v2176_v44 = vsel %vm1190_vm2, %v1411_v41, %v2146_v48 }
 0x4ea   : > { %v2180_v21 = vsel %vm2177_vm5, %v2176_v44, %v2158_v43 }
 0x4eb   : > { %v2184_v25 = vsel %vm2181_vm6, %v2180_v21, %v2170_v42  ;;  %v765_v47 = vpop.permute.xlu1 %764 }
 0x4ec   : > { %13506 = vmatmul.mubr.msk.f32.gmra.mrb[28].mxu0 %vm1079_vm0, %v2184_v25  ;;  %951 = vperm.xlu1 %15479, %v17102_v4   ;;  %v866_v62 = vmul.f32 %v17157_v45, %v765_v47  ;;  %v2439_v4 = vld [vmem:[%s22614_s12 + $0x10] sm:$0xff] }
 0x4ef   : > { %v888_v28 = vpop.permute.xlu1 %887 }
 0x4f0   : > { %v970_v49 = vmul.f32 %v17164_v39, %v888_v28  ;;  %959 = vperm.xlu1 %15479, %v17179_v59  }
 0x4f2   : > { %v990_v54 = vadd.f32 %v970_v49, %v866_v62 }
 0x4f4   : > { %v17174_v56 = vadd.f32 %v17171_v53, %v990_v54  ;;  %v770_v58 = vpop.permute.xlu1 %769  ;;  %15481 = vset.pattern.permute.xlu1 %v16543_v37  ;;  %v2440_v37 = vld [vmem:[%s22614_s12 + $0x18] sm:$0xff] }
 0x4f5   : > { %v13942_v8 = vpack.c.bf16 %v2440_v37, %v2439_v4  ;;  %v867_v18 = vmul.f32 %v17157_v45, %v770_v58 }
 0x4f6   : > { %13549 = vmatprep.mubr.msk.f32.mxu0 %vm1079_vm0, %v17174_v56 }
 0x4f7   : > { %13943 = vmatprep.subr.bf16.mxu0 %v13942_v8 }
 0x4f8   : > { %13945 = vmatpush3.bf16.msra.mxu0 %v13942_v8 }
 0x4f9   : > { %v892_v51 = vpop.permute.xlu1 %891  ;;  %13947 = vmatprep.subr.bf16.mxu0 %v13946_v13 }
 0x4fa   : > { %v971_v19 = vmul.f32 %v17164_v39, %v892_v51 }
 0x4fc   : > { %v991_v26 = vadd.f32 %v971_v19, %v867_v18  ;;  %13949 = vmatpush3.bf16.msra.mxu0 %v13946_v13  ;;  %v876_v13 = vmul.f32 %v17157_v45, %v815_v6 }
 0x4fd   : > { %13951 = vmatprep.subr.bf16.mxu0 %v13950_v24 }
 0x4fe   : > { %v775_v60 = vpop.permute.xlu1 %774  ;;  %v17216_v35 = vadd.f32 %v17171_v53, %v991_v26 }
 0x4ff   : > { %v868_v22 = vmul.f32 %v17157_v45, %v775_v60 }
 0x500   : > { %13953 = vmatpush3.bf16.msra.mxu0 %v13950_v24 }
 0x501   : > { %13994 = vmatprep.subr.bf16.mxu0 %v22652_v33 }
 0x503   : > { %v896_v63 = vpop.permute.xlu1 %895  ;;  %13550 = vmatmul.mubr.msk.f32.vlgmr.msra.gmra.mrb[30].mxu0 %vm1079_vm0, %v17216_v35 }
 0x504   : > { %v972_v20 = vmul.f32 %v17164_v39, %v896_v63 }
 0x506   : > { %v992_v46 = vadd.f32 %v972_v20, %v868_v22  ;;  %v877_v22 = vmul.f32 %v17157_v45, %v820_v10 }
 0x508   : > { %v780_v0 = vpop.permute.xlu1 %779  ;;  %v17221_v48 = vadd.f32 %v17171_v53, %v992_v46 }
 0x509   : > { %v869_v27 = vmul.f32 %v17157_v45, %v780_v0 }
 0x50a   : > { %13552 = vmatprep.mubr.msk.f32.mxu0 %vm1079_vm0, %v17221_v48 }
 0x50d   : > { %v900_v52 = vpop.permute.xlu1 %899 }
 0x50e   : > { %v973_v12 = vmul.f32 %v17164_v39, %v900_v52 }
 0x510   : > { %v993_v31 = vadd.f32 %v973_v12, %v869_v27 }
 0x511   : > { %v904_v1 = vpop.permute.xlu1 %903 }
 0x512   : > { %v974_v17 = vmul.f32 %v17164_v39, %v904_v1  ;;  %v17226_v41 = vadd.f32 %v17171_v53, %v993_v31 }
 0x514   : > { %v994_v38 = vadd.f32 %v974_v17, %v870_v34  ;;  %22710 = vst [vmem:[#allocation3_spill] sm:$0xff] %v17226_v41  ;;  %13553 = vmatmul.mubr.msk.f32.gmra.mrb[32].mxu0 %vm1079_vm0, %v17226_v41 }
 0x516   : > { %v790_v11 = vpop.permute.xlu1 %789  ;;  %v17232_v21 = vadd.f32 %v17171_v53, %v994_v38 }
 0x517   : > { %v871_v55 = vmul.f32 %v17157_v45, %v790_v11 }
 0x518   : > { %22711 = vst [vmem:[#allocation4_spill] sm:$0xff] %v17232_v21  ;;  %13555 = vmatprep.mubr.msk.f32.mxu0 %vm1079_vm0, %v17232_v21 }
 0x51b   : > { %v908_v23 = vpop.permute.xlu1 %907 }
 0x51c   : > { %v975_v36 = vmul.f32 %v17164_v39, %v908_v23  ;;  %v825_v23 = vpop.permute.xlu0 %824 }
 0x51d   : > { %v878_v12 = vmul.f32 %v17157_v45, %v825_v23 }
 0x51e   : > { %v995_v42 = vadd.f32 %v975_v36, %v871_v55 }
 0x520   : > { %v795_v50 = vpop.permute.xlu1 %794  ;;  %v17237_v47 = vadd.f32 %v17171_v53, %v995_v42  ;;  %v830_v34 = vpop.permute.xlu0 %829 }
 0x521   : > { %v872_v40 = vmul.f32 %v17157_v45, %v795_v50  ;;  %v879_v31 = vmul.f32 %v17157_v45, %v830_v34 }
 0x522   : > { %22712 = vst [vmem:[#allocation5_spill] sm:$0xff] %v17237_v47  ;;  %13556 = vmatmul.mubr.msk.f32.gmra.mrb[34].mxu0 %vm1079_vm0, %v17237_v47 }
 0x525   : > { %v912_v43 = vpop.permute.xlu1 %911 }
 0x526   : > { %v976_v44 = vmul.f32 %v17164_v39, %v912_v43 }
 0x528   : > { %v996_v25 = vadd.f32 %v976_v44, %v872_v40 }
 0x52a   : > { %v17242_v62 = vadd.f32 %v17171_v53, %v996_v25  ;;  %v800_v28 = vpop.permute.xlu1 %799 }
 0x52b   : > { %v873_v49 = vmul.f32 %v17157_v45, %v800_v28 }
 0x52c   : > { %22713 = vst [vmem:[#allocation6_spill] sm:$0xff] %v17242_v62  ;;  %13558 = vmatprep.mubr.msk.f32.mxu0 %vm1079_vm0, %v17242_v62 }
 0x52f   : > { %v916_v54 = vpop.permute.xlu1 %915 }
 0x530   : > { %v977_v58 = vmul.f32 %v17164_v39, %v916_v54 }
 0x532   : > { %v997_v51 = vadd.f32 %v977_v58, %v873_v49 }
 0x534   : > { %v17253_v60 = vadd.f32 %v17171_v53, %v997_v51  ;;  %v805_v63 = vpop.permute.xlu1 %804 }
 0x535   : > { %v874_v0 = vmul.f32 %v17157_v45, %v805_v63 }
 0x536   : > { %22714 = vst [vmem:[#allocation7_spill] sm:$0xff] %v17253_v60  ;;  %13559 = vmatmul.mubr.msk.f32.gmra.mrb[36].mxu0 %vm1079_vm0, %v17253_v60 }
 0x539   : > { %v920_v52 = vpop.permute.xlu1 %919 }
 0x53a   : > { %v978_v1 = vmul.f32 %v17164_v39, %v920_v52  ;;  %v845_v52 = vpop.permute.xlu0 %844 }
 0x53c   : > { %v998_v2 = vadd.f32 %v978_v1, %v874_v0  ;;  %v882_v1 = vmul.f32 %v17157_v45, %v845_v52 }
 0x53e   : > { %v17260_v3 = vadd.f32 %v17171_v53, %v998_v2  ;;  %v810_v4 = vpop.permute.xlu1 %809 }
 0x53f   : > { %v875_v37 = vmul.f32 %v17157_v45, %v810_v4 }
 0x540   : > { %22715 = vst [vmem:[#allocation8_spill] sm:$0xff] %v17260_v3  ;;  %13561 = vmatprep.mubr.msk.f32.mxu0 %vm1079_vm0, %v17260_v3 }
 0x543   : > { %v924_v8 = vpop.permute.xlu1 %923 }
 0x544   : > { %v979_v9 = vmul.f32 %v17164_v39, %v924_v8 }
 0x546   : > { %v999_v11 = vadd.f32 %v979_v9, %v875_v37  ;;  %v11671_v9 = vld [vmem:[%s22611_s9] ss:$0 sm:$0xff] }
 0x547   : > { %v928_v14 = vpop.permute.xlu1 %927 }
 0x548   : > { %v17268_v16 = vadd.f32 %v17171_v53, %v999_v11  ;;  %v980_v18 = vmul.f32 %v17164_v39, %v928_v14 }
 0x54a   : > { %22716 = vst [vmem:[#allocation9_spill] sm:$0xff] %v17268_v16  ;;  %v1000_v19 = vadd.f32 %v980_v18, %v876_v13  ;;  %13562 = vmatmul.mubr.msk.f32.gmra.mrb[38].mxu0 %vm1079_vm0, %v17268_v16  ;;  %v16493_v18 = vld [vmem:[%s22698_s4] sm:$0xff] }
 0x54b   : > { %v932_v20 = vpop.permute.xlu1 %931 }
 0x54c   : > { %v981_v24 = vmul.f32 %v17164_v39, %v932_v20  ;;  %v17276_v26 = vadd.f32 %v17171_v53, %v1000_v19 }
 0x54e   : > { %22717 = vst [vmem:[#allocation10_spill] sm:$0xff] %v17276_v26  ;;  %v1001_v27 = vadd.f32 %v981_v24, %v877_v22  ;;  %13564 = vmatprep.mubr.msk.f32.mxu0 %vm1079_vm0, %v17276_v26 }
 0x54f   : > { %v936_v15 = vpop.permute.xlu1 %935 }
 0x550   : > { %v982_v46 = vmul.f32 %v17164_v39, %v936_v15  ;;  %v17283_v17 = vadd.f32 %v17171_v53, %v1001_v27  ;;  %v16494_v27 = vld [vmem:[%s22698_s4 + $0x8] sm:$0xff] }
 0x552   : > { %22718 = vst [vmem:[#allocation11_spill] sm:$0xff] %v17283_v17  ;;  %v1002_v50 = vadd.f32 %v982_v46, %v878_v12  ;;  %13565 = vmatmul.mubr.msk.f32.gmra.mrb[40].mxu0 %vm1079_vm0, %v17283_v17 }
 0x553   : > { %v940_v55 = vpop.permute.xlu1 %939 }
 0x554   : > { %v983_v36 = vmul.f32 %v17164_v39, %v940_v55  ;;  %v17290_v38 = vadd.f32 %v17171_v53, %v1002_v50  ;;  %v17351_v55 = vld [vmem:[%s22615_s13] ss:$0 sm:$0xff] }
 0x556   : > { %22719 = vst [vmem:[#allocation12_spill] sm:$0xff] %v17290_v38  ;;  %v1003_v40 = vadd.f32 %v983_v36, %v879_v31  ;;  %13567 = vmatprep.mubr.msk.f32.mxu0 %vm1079_vm0, %v17290_v38  ;;  %v17345_v31 = vld [vmem:[%s17080_s3 + $0x98] sm:$0xff] }
 0x558   : > { %v835_v42 = vpop.permute.xlu1 %834  ;;  %v17295_v43 = vadd.f32 %v17171_v53, %v1003_v40 }
 0x559   : > { %v880_v44 = vmul.f32 %v17157_v45, %v835_v42 }
 0x55a   : > { %22720 = vst [vmem:[#allocation13_spill] sm:$0xff] %v17295_v43  ;;  %13568 = vmatmul.mubr.msk.f32.gmra.mrb[42].mxu0 %vm1079_vm0, %v17295_v43 }
 0x55d   : > { %v944_v25 = vpop.permute.xlu1 %943 }
 0x55e   : > { %v984_v28 = vmul.f32 %v17164_v39, %v944_v25 }
 0x560   : > { %v1004_v49 = vadd.f32 %v984_v28, %v880_v44 }
 0x562   : > { %v17302_v54 = vadd.f32 %v17171_v53, %v1004_v49  ;;  %v840_v58 = vpop.permute.xlu1 %839 }
 0x563   : > { %v881_v51 = vmul.f32 %v17157_v45, %v840_v58 }
 0x564   : > { %22721 = vst [vmem:[#allocation14_spill] sm:$0xff] %v17302_v54  ;;  %13570 = vmatprep.mubr.msk.f32.mxu0 %vm1079_vm0, %v17302_v54 }
 0x567   : > { %v948_v63 = vpop.permute.xlu1 %947 }
 0x568   : > { %v985_v0 = vmul.f32 %v17164_v39, %v948_v63  ;;  %v850_v63 = vpop.permute.xlu0 %849 }
 0x56a   : > { %v1005_v2 = vadd.f32 %v985_v0, %v881_v51 }
 0x56b   : > { %v952_v4 = vpop.permute.xlu1 %951 }
 0x56c   : > { %v17310_v6 = vadd.f32 %v17171_v53, %v1005_v2  ;;  %v986_v37 = vmul.f32 %v17164_v39, %v952_v4 }
 0x56e   : > { %22722 = vst [vmem:[#allocation15_spill] sm:$0xff] %v17310_v6  ;;  %v1006_v8 = vadd.f32 %v986_v37, %v882_v1  ;;  %13571 = vmatmul.mubr.msk.f32.gmra.mrb[44].mxu0 %vm1079_vm0, %v17310_v6 }
 0x570   : > { %v17319_v10 = vadd.f32 %v17171_v53, %v1006_v8 }
 0x571   : > { %v2264_v11 = vpop.f32.mrb[24].mxu0 }
 0x572   : > { %22723 = vst [vmem:[#allocation16_spill] sm:$0xff] %v17319_v10  ;;  %v2265_v13 = vadd.f32 %v11671_v9, %v2264_v11  ;;  %v13501_v14 = vpop.f32.mrb[25].mxu0  ;;  %13573 = vmatprep.mubr.msk.f32.mxu0 %vm1079_vm0, %v17319_v10 }
 0x574   : > { %v2278_v19 = vadd.f32 %v16493_v18, %v2265_v13  ;;  %v960_v18 = vpop.permute.xlu1 %959 }
 0x576   : > { %v2281_v22 = vsel %vm1079_vm0, %v2278_v19, 0.0 }
 0x577   : > { %2282 = vadd.xlane.f32.xlu0 %v2281_v22 }
 0x58d   : > { %854 = vperm.xlu0 %15465, %v17179_v59  }
 0x591   : > { %15480 = vset.pattern.permute.xlu0 %v16544_v61  ;;  %v16495_v61 = vld [vmem:[%s22698_s4 + $0x10] sm:$0xff]  ;;  %s22775_s4 = sld [smem:[#allocation37_spill]] }
 0x592   : > { %955 = vperm.xlu0 %15480, %v17106_v5  }
 0x5b5   : > { %v2269_v20 = vpop.f32.mrb[26].mxu0 }
 0x5b6   : > { %v2270_v23 = vadd.f32 %v11671_v9, %v2269_v20  ;;  %v13504_v24 = vpop.f32.mrb[27].mxu0 }
 0x5b8   : > { %v17333_v12 = vadd.f32 %v16494_v27, %v2270_v23  ;;  %v988_v23 = vmul.f32 %v17164_v39, %v960_v18  ;;  %v883_v27 = vmul.f32 %v17157_v45, %v850_v63  ;;  %v2335_v63 = vld [vmem:[%s22726_s10] sm:$0xff] }
 0x5ba   : > { %v2284_v15 = vsel %vm1079_vm0, %v17333_v12, 0.0 }
 0x5bb   : > { %2285 = vadd.xlane.f32.xlu0 %v2284_v15 }
 0x5bf   : > { %v2274_v46 = vpop.f32.mrb[28].mxu0 }
 0x5c0   : > { %v2275_v59 = vadd.f32 %v11671_v9, %v2274_v46  ;;  %v13507_v34 = vpop.f32.mrb[29].mxu0 }
 0x5c2   : > { %v17340_v5 = vadd.f32 %v16495_v61, %v2275_v59 }
 0x5c4   : > { %v2287_v50 = vsel %vm1079_vm0, %v17340_v5, 0.0 }
 0x5c5   : > { %2288 = vadd.xlane.f32.xlu1 %v2287_v50 }
 0x5d6   : > { %859 = vperm.xlu1 %15481, %v17345_v31   ;;  %v13551_v36 = vpop.f32.mrb[30].mxu0 }
 0x5d7   : > { %v17354_v40 = vadd.f32 %v13551_v36, %v17351_v55  ;;  %v2576_v42 = vpop.f32.mrb[31].mxu0 }
 0x5d8   : > { %v17357_v44 = vadd.f32 %v17351_v55, %v2576_v42 }
 0x5da   : > { %v17361_v25 = vpack.i.bf16 %v17354_v40, %v17357_v44  ;;  %v13955_v2 = vpack.c.bf16 %v17354_v40, %v17357_v44 }
 0x5e7   : > { %v13554_v28 = vpop.f32.mrb[32].mxu0 }
 0x5e8   : > { %v17364_v49 = vadd.f32 %v13554_v28, %v17351_v55  ;;  %v2586_v58 = vpop.f32.mrb[33].mxu0 }
 0x5e9   : > { %v17367_v51 = vadd.f32 %v17351_v55, %v2586_v58 }
 0x5eb   : > { %v17371_v52 = vpack.i.bf16 %v17364_v49, %v17367_v51 }
 0x5f5   : > { %v13557_v0 = vpop.f32.mrb[34].mxu0 }
 0x5f6   : > { %v2596_v1 = vpop.f32.mrb[35].mxu0  ;;  %v17385_v59 = vadd.f32 %v13557_v0, %v17351_v55  ;;  %v2336_v0 = vld [vmem:[%s22726_s10 + $0x8] sm:$0xff] }
 0x5f7   : > { %v17388_v34 = vadd.f32 %v17351_v55, %v2596_v1  ;;  %v13927_v1 = vpack.c.bf16 %v2336_v0, %v2335_v63 }
 0x5f9   : > { %v17408_v58 = vpack.i.bf16 %v17385_v59, %v17388_v34  ;;  %13928 = vmatpush3.bf16.msra.mxu1 %v13927_v1 }
 0x5fa   : > { %13929 = vmatprep.subr.bf16.mxu1 %v22652_v33 }
 0x604   : > { %v2283_v4 = vpop.xlane.xlu0 %2282 }
 0x605   : > { %v2291_v37 = vmul.f32 0.015625, %v2283_v4 }
 0x607   : > { %v17375_v8 = vsub.f32 %v2278_v19, %v2291_v37  ;;  %v2337_v37 = vld [vmem:[%s22726_s10 + $0x10] sm:$0xff] }
 0x609   : > { %v2297_v9 = vmul.f32 %v17375_v8, %v17375_v8  ;;  %v13560_v11 = vpop.f32.mrb[36].mxu0 }
 0x60a   : > { %v2606_v13 = vpop.f32.mrb[37].mxu0  ;;  %v17397_v36 = vadd.f32 %v13560_v11, %v17351_v55 }
 0x60b   : > { %v2300_v14 = vsel %vm1079_vm0, %v2297_v9, 0.0  ;;  %v17400_v42 = vadd.f32 %v17351_v55, %v2606_v13  ;;  %v2338_v9 = vld [vmem:[%s22726_s10 + $0x18] sm:$0xff] }
 0x60c   : > { %2301 = vadd.xlane.f32.xlu0 %v2300_v14  ;;  %v855_v22 = vpop.permute.xlu0 %854  ;;  %v13930_v13 = vpack.c.bf16 %v2338_v9, %v2337_v37 }
 0x60d   : > { %v884_v20 = vmul.f32 %v17157_v45, %v855_v22  ;;  %v17421_v4 = vpack.i.bf16 %v17397_v36, %v17400_v42 }
 0x60e   : > { %13931 = vmatpush3.bf16.msra.mxu1 %v13930_v13 }
 0x60f   : > { %v1008_v15 = vadd.f32 %v988_v23, %v884_v20  ;;  %13932 = vmatprep.subr.bf16.mxu1 %v22652_v33  ;;  %v2339_v20 = vld [vmem:[%s22726_s10 + $0x20] sm:$0xff]  ;;  %v2340_v23 = vld [vmem:[%s22726_s10 + $0x28] sm:$0xff] }
 0x611   : > { %v956_v24 = vpop.permute.xlu0 %955  ;;  %v17391_v61 = vadd.f32 %v17171_v53, %v1008_v15  ;;  %v2341_v15 = vld [vmem:[%s22726_s10 + $0x30] sm:$0xff] }
 0x612   : > { %v987_v19 = vmul.f32 %v17164_v39, %v956_v24 }
 0x613   : > { %22724 = vst [vmem:[#allocation17_spill] sm:$0xff] %v17391_v61 }
 0x614   : > { %v1007_v46 = vadd.f32 %v987_v19, %v883_v27  ;;  %v13933_v27 = vpack.c.bf16 %v2340_v23, %v2339_v20  ;;  %v2342_v19 = vld [vmem:[%s22726_s10 + $0x38] sm:$0xff]  ;;  %s22773_s10 = sld [smem:[#allocation2_spill]] }
 0x615   : > { %v13936_v63 = vpack.c.bf16 %v2342_v19, %v2341_v15  ;;  %v13967_v19 = vpack.c.bf16 %v17397_v36, %v17400_v42 }
 0x616   : > { %v17394_v50 = vadd.f32 %v17171_v53, %v1007_v46  ;;  %13934 = vmatpush3.bf16.msra.mxu1 %v13933_v27 }
 0x617   : > { %13935 = vmatprep.subr.bf16.mxu1 %v22652_v33 }
 0x618   : > { %22725 = vst [vmem:[#allocation18_spill] sm:$0xff] %v17394_v50  ;;  %13574 = vmatmul.mubr.msk.f32.gmra.mrb[46].mxu0 %vm1079_vm0, %v17394_v50 }
 0x619   : > { %13576 = vmatprep.mubr.msk.f32.mxu0 %vm1079_vm0, %v17391_v61 }
 0x61a   : > { %13937 = vmatpush3.bf16.msra.mxu1 %v13936_v63  ;;  %s22774_s1 = sadd.s32 4294967295, %s22773_s10  }
 0x61b   : > { %13954 = vmatprep.subr.bf16.mxu1 %v22652_v33  ;;  %s735_s3 = smul.u32 3, %s22774_s1 }
 0x61d   : > { %v13563_v11 = vpop.f32.mrb[38].mxu0  ;;  %p736_p4 = scmp.lt.s32.totalorder %s735_s3, 8 }
 0x61e   : > { %v17430_v14 = vadd.f32 %v13563_v11, %v17351_v55  ;;  %v2616_v18 = vpop.f32.mrb[39].mxu0 }
 0x61f   : > { %v17433_v22 = vadd.f32 %v17351_v55, %v2616_v18  ;;  %s22781_s3 = smov (!%p736_p4, %s735_s3), 8 }
 0x621   : > { %v17444_v24 = vpack.i.bf16 %v17430_v14, %v17433_v22 }
 0x622   : > { %963 = vperm.xlu0 %15480, %v17345_v31  }
 0x625   : > { %v13566_v46 = vpop.f32.mrb[40].mxu0 }
 0x626   : > { %v17457_v1 = vadd.f32 %v13566_v46, %v17351_v55  ;;  %v2626_v31 = vpop.f32.mrb[41].mxu0 }
 0x627   : > { %v17460_v37 = vadd.f32 %v17351_v55, %v2626_v31  ;;  %v13971_v31 = vpack.c.bf16 %v17430_v14, %v17433_v22 }
 0x629   : > { %v17465_v9 = vpack.i.bf16 %v17457_v1, %v17460_v37  ;;  %v22731_v40 = vpack.c.bf16 %v17457_v1, %v17460_v37 }
 0x62d   : > { %v13569_v13 = vpop.f32.mrb[42].mxu0 }
 0x62e   : > { %v17470_v18 = vadd.f32 %v13569_v13, %v17351_v55  ;;  %v2636_v20 = vpop.f32.mrb[43].mxu0 }
 0x62f   : > { %v17473_v23 = vadd.f32 %v17351_v55, %v2636_v20 }
 0x631   : > { %v17477_v27 = vpack.i.bf16 %v17470_v18, %v17473_v23 }
 0x648   : > { %v2286_v46 = vpop.xlane.xlu0 %2285 }
 0x649   : > { %v2292_v63 = vmul.f32 0.015625, %v2286_v46 }
 0x64b   : > { %v17486_v13 = vsub.f32 %v17333_v12, %v2292_v63  ;;  %v13572_v12 = vpop.f32.mrb[44].mxu0 }
 0x64c   : > { %v2646_v14 = vpop.f32.mrb[45].mxu0  ;;  %v2652_v22 = vadd.f32 %v13572_v12, %v17351_v55 }
 0x64d   : > { %v2298_v20 = vmul.f32 %v17486_v13, %v17486_v13 }
 0x64f   : > { %v2303_v11 = vsel %vm1079_vm0, %v2298_v20, 0.0 }
 0x650   : > { %2304 = vadd.xlane.f32.xlu1 %v2303_v11  ;;  %v2647_v11 = vadd.f32 %v17351_v55, %v2646_v14  ;;  %v1049_v14 = vld [vmem:[%s22622_s20] sm:$0x7] }
 0x652   : > { %v2289_v0 = vpop.xlane.xlu1 %2288 }
 0x653   : > { %v2293_v28 = vmul.f32 0.015625, %v2289_v0 }
 0x655   : > { %v17492_v15 = vsub.f32 %v17340_v5, %v2293_v28  ;;  %v13983_v5 = vpack.c.bf16 %v2652_v22, %v2647_v11  ;;  %v17505_v28 = vpack.i.bf16 %v2652_v22, %v2647_v11 }
 0x656   : > { %v860_v20 = vpop.permute.xlu1 %859 }
 0x657   : > { %v2299_v36 = vmul.f32 %v17492_v15, %v17492_v15 }
 0x659   : > { %v2306_v42 = vsel %vm1079_vm0, %v2299_v36, 0.0  ;;  %v885_v36 = vmul.f32 %v17157_v45, %v860_v20 }
 0x65a   : > { %2307 = vadd.xlane.f32.xlu0 %v2306_v42 }
 0x661   : > { %15483 = vrot.lane.b32.xlu1 %v17361_v25, %s22727_s30 }
 0x665   : > { %15493 = vrot.lane.b32.xlu1 %v17408_v58, %s22727_s30 }
 0x669   : > { %15498 = vrot.lane.b32.xlu1 %v17421_v4, %s22727_s30 }
 0x670   : > { %15488 = vrot.lane.b32.xlu0 %v17371_v52, %s22727_s30 }
 0x674   : > { %15503 = vrot.lane.b32.xlu0 %v17444_v24, %s22727_s30 }
 0x678   : > { %15508 = vrot.lane.b32.xlu0 %v17465_v9, %s22727_s30 }
 0x67c   : > { %15513 = vrot.lane.b32.xlu0 %v17477_v27, %s22727_s30 }
 0x680   : > { %15518 = vrot.lane.b32.xlu0 %v17505_v28, %s22727_s30 }
 0x699   : > { %v2302_v0 = vpop.xlane.xlu0 %2301 }
 0x69a   : > { %v2309_v46 = vmul.f32 0.015625, %v2302_v0  ;;  %v1050_v0 = vld [vmem:[%s22623_s21] sm:$0x7] }
 0x69c   : > { %v2312_v63 = vadd.f32 1e-05, %v2309_v46  ;;  %v17529_v46 = vrot.slane %v1049_v14, %v16744_v30 }
 0x69e   : > { %16265 = vrsqrt.f32 %v2312_v63 }
 0x6a1   : > { %v964_v42 = vpop.permute.xlu0 %963 }
 0x6a2   : > { %v989_v12 = vmul.f32 %v17164_v39, %v964_v42  ;;  %v17535_v39 = vrot.slane %v1050_v0, %v16744_v30 }
 0x6a4   : > { %v1009_v22 = vadd.f32 %v989_v12, %v885_v36  ;;  %v22730_v36 = vpack.c.bf16 %v17385_v59, %v17388_v34 }
 0x6a6   : > { %v17523_v11 = vadd.f32 %v17171_v53, %v1009_v22 }
 0x6a8   : > { %22728 = vst [vmem:[#allocation19_spill] sm:$0xff] %v17523_v11  ;;  %v16266_v63 = vpop.eup %16265  ;;  %13577 = vmatmul.mubr.msk.f32.gmra.mrb[48].mxu0 %vm1079_vm0, %v17523_v11 }
 0x6a9   : > { %v2318_v45 = vmul.f32 %v16266_v63, %v17375_v8  ;;  %v22729_v8 = vpack.c.bf16 %v17364_v49, %v17367_v51 }
 0x6ab   : > { %v2325_v20 = vmul.f32 %v17529_v46, %v2318_v45 }
 0x6ad   : > { %v17539_v53 = vadd.f32 %v17535_v39, %v2325_v20 }
 0x6af   : > { %13525 = vmatmul.mubr.msk.f32.vlgmr.msra.gmra.mrb[30].mxu1 %vm1079_vm0, %v17539_v53 }
 0x6b0   : > { %13957 = vmatpush1.bf16.xpose.msk.msra.mxu1 %vm16814_vm3, %v13955_v2  ;;  %13527 = vmatprep.mubr.msk.f32.mxu1 %vm16537_vm1, %v22649_v7  ;;  %v22732_v2 = vpack.c.bf16 %v17470_v18, %v17473_v23 }
 0x6b1   : > { %13958 = vmatprep.subr.bf16.mxu1 %v22652_v33 }
 0x6b8   : > { %13961 = vmatpush1.bf16.xpose.msk.msra.mxu1 %vm16814_vm3, %v22729_v8 }
 0x6b9   : > { %13962 = vmatprep.subr.bf16.mxu1 %v22652_v33 }
 0x6c0   : > { %13965 = vmatpush1.bf16.xpose.msk.msra.mxu1 %vm16814_vm3, %v22730_v36 }
 0x6c1   : > { %13966 = vmatprep.subr.bf16.mxu1 %v22652_v33 }
 0x6c8   : > { %13969 = vmatpush1.bf16.xpose.msk.msra.mxu1 %vm16814_vm3, %v13967_v19 }
 0x6c9   : > { %13970 = vmatprep.subr.bf16.mxu1 %v22652_v33 }
 0x6d0   : > { %13973 = vmatpush1.bf16.xpose.msk.msra.mxu1 %vm16814_vm3, %v13971_v31 }
 0x6d1   : > { %13974 = vmatprep.subr.bf16.mxu1 %v22652_v33 }
 0x6d8   : > { %13977 = vmatpush1.bf16.xpose.msk.msra.mxu1 %vm16814_vm3, %v22731_v40 }
 0x6d9   : > { %13978 = vmatprep.subr.bf16.mxu1 %v22652_v33 }
 0x6dd   : > { %v2305_v44 = vpop.xlane.xlu1 %2304 }
 0x6de   : > { %v2310_v49 = vmul.f32 0.015625, %v2305_v44 }
 0x6e0   : > { %v2313_v51 = vadd.f32 1e-05, %v2310_v49  ;;  %13981 = vmatpush1.bf16.xpose.msk.msra.mxu1 %vm16814_vm3, %v22732_v2 }
 0x6e1   : > { %13982 = vmatprep.subr.bf16.mxu1 %v22652_v33  ;;  %v15484_v59 = vpop.permute.xlu1 %15483 }
 0x6e2   : > { %16267 = vrsqrt.f32 %v2313_v51  ;;  %v15486_v34 = vunpack.i.h.bf16 %v15484_v59  ;;  %v15485_v1 = vunpack.i.l.bf16 %v15484_v59 }
 0x6e4   : > { %v13995_v37 = vpack.c.bf16 %v15486_v34, %v15485_v1 }
 0x6e5   : > { %v15494_v31 = vpop.permute.xlu1 %15493 }
 0x6e6   : > { %13996 = vmatpush1.bf16.msra.mxu0 %v13995_v37  ;;  %v15496_v23 = vunpack.i.h.bf16 %v15494_v31  ;;  %v15495_v12 = vunpack.i.l.bf16 %v15494_v31 }
 0x6e7   : > { %v2308_v19 = vpop.xlane.xlu0 %2307  ;;  %13997 = vmatprep.subr.bf16.mxu0 %v22652_v33 }
 0x6e8   : > { %v2311_v42 = vmul.f32 0.015625, %v2308_v19  ;;  %13985 = vmatpush1.bf16.xpose.msk.msra.mxu1 %vm16814_vm3, %v13983_v5  ;;  %v14001_v49 = vpack.c.bf16 %v15496_v23, %v15495_v12 }
 0x6e9   : > { %13986 = vmatprep.subr.bf16.mxu1 %v22652_v33  ;;  %v15499_v44 = vpop.permute.xlu1 %15498 }
 0x6ea   : > { %v2314_v18 = vadd.f32 1e-05, %v2311_v42  ;;  %v15501_v1 = vunpack.i.h.bf16 %v15499_v44  ;;  %v15500_v37 = vunpack.i.l.bf16 %v15499_v44 }
 0x6eb   : > { %v13575_v14 = vpop.f32.mrb[46].mxu0  ;;  %v15489_v22 = vpop.permute.xlu0 %15488 }
 0x6ec   : > { %v16268_v0 = vpop.eup %16267  ;;  %16269 = vrsqrt.f32 %v2314_v18  ;;  %v2662_v63 = vadd.f32 %v13575_v14, %v17351_v55  ;;  %v2656_v45 = vpop.f32.mrb[47].mxu0  ;;  %v15491_v20 = vunpack.i.h.bf16 %v15489_v22  ;;  %v15490_v8 = vunpack.i.l.bf16 %v15489_v22 }
 0x6ed   : > { %v2657_v36 = vadd.f32 %v17351_v55, %v2656_v45  ;;  %v2319_v40 = vmul.f32 %v16268_v0, %v17486_v13  ;;  %v14004_v31 = vpack.c.bf16 %v15501_v1, %v15500_v37 }
 0x6ee   : > { %v13998_v5 = vpack.c.bf16 %v15491_v20, %v15490_v8 }
 0x6ef   : > { %v13987_v51 = vpack.c.bf16 %v2662_v63, %v2657_v36  ;;  %v17588_v2 = vpack.i.bf16 %v2662_v63, %v2657_v36  ;;  %v2326_v59 = vmul.f32 %v17529_v46, %v2319_v40  ;;  %v15504_v34 = vpop.permute.xlu0 %15503 }
 0x6f0   : > { %13999 = vmatpush1.bf16.msra.mxu0 %v13998_v5  ;;  %v15506_v42 = vunpack.i.h.bf16 %v15504_v34  ;;  %v15505_v18 = vunpack.i.l.bf16 %v15504_v34 }
 0x6f1   : > { %13989 = vmatpush1.bf16.xpose.msk.msra.mxu1 %vm16814_vm3, %v13987_v51  ;;  %15523 = vrot.lane.b32.xlu0 %v17588_v2, %s22727_s30  ;;  %v17596_v13 = vadd.f32 %v17535_v39, %v2326_v59 }
 0x6f2   : > { %14000 = vmatprep.subr.bf16.mxu0 %v22652_v33  ;;  %13990 = vmatprep.subr.bf16.mxu1 %v22652_v33  ;;  %v14007_v14 = vpack.c.bf16 %v15506_v42, %v15505_v18 }
 0x6f3   : > { %13528 = vmatmul.mubr.msk.f32.gmra.mrb[32].mxu1 %vm1079_vm0, %v17596_v13  ;;  %v15509_v19 = vpop.permute.xlu0 %15508 }
 0x6f4   : > { %13530 = vmatprep.mubr.msk.f32.mxu1 %vm16537_vm1, %v22649_v7  ;;  %14002 = vmatpush1.bf16.msra.mxu0 %v14001_v49  ;;  %v15511_v22 = vunpack.i.h.bf16 %v15509_v19  ;;  %v15510_v0 = vunpack.i.l.bf16 %v15509_v19 }
 0x6f5   : > { %14003 = vmatprep.subr.bf16.mxu0 %v22652_v33 }
 0x6f6   : > { %v16270_v23 = vpop.eup %16269  ;;  %v14010_v8 = vpack.c.bf16 %v15511_v22, %v15510_v0 }
 0x6f7   : > { %v2320_v12 = vmul.f32 %v16270_v23, %v17492_v15  ;;  %v15514_v45 = vpop.permute.xlu0 %15513 }
 0x6f8   : > { %14005 = vmatpush1.bf16.msra.mxu0 %v14004_v31  ;;  %v15516_v36 = vunpack.i.h.bf16 %v15514_v45  ;;  %v15515_v40 = vunpack.i.l.bf16 %v15514_v45 }
 0x6f9   : > { %v2327_v63 = vmul.f32 %v17529_v46, %v2320_v12  ;;  %14006 = vmatprep.subr.bf16.mxu0 %v22652_v33  ;;  %v11675_v12 = vld [vmem:[%s22733_s11] ss:$0 sm:$0xff] }
 0x6fa   : > { %v14013_v44 = vpack.c.bf16 %v15516_v36, %v15515_v40 }
 0x6fb   : > { %v17609_v20 = vadd.f32 %v17535_v39, %v2327_v63  ;;  %v15519_v15 = vpop.permute.xlu0 %15518 }
 0x6fc   : > { %14008 = vmatpush1.bf16.msra.mxu0 %v14007_v14  ;;  %v15521_v46 = vunpack.i.h.bf16 %v15519_v15  ;;  %v15520_v5 = vunpack.i.l.bf16 %v15519_v15 }
 0x6fd   : > { %13531 = vmatmul.mubr.msk.f32.gmra.mrb[34].mxu1 %vm1079_vm0, %v17609_v20  ;;  %14009 = vmatprep.subr.bf16.mxu0 %v22652_v33 }
 0x6fe   : > { %2817 = vmatprep.mubr.f32.mxu1 %v22649_v7  ;;  %v14016_v39 = vpack.c.bf16 %v15521_v46, %v15520_v5 }
 0x700   : > { %14011 = vmatpush1.bf16.msra.mxu0 %v14010_v8 }
 0x701   : > { %14012 = vmatprep.subr.bf16.mxu0 %v22652_v33 }
 0x704   : > { %14014 = vmatpush1.bf16.msra.mxu0 %v14013_v44 }
 0x705   : > { %14015 = vmatprep.subr.bf16.mxu0 %v22652_v33 }
 0x708   : > { %14017 = vmatpush1.bf16.msra.mxu0 %v14016_v39 }
 0x709   : > { %14018 = vmatprep.subr.bf16.mxu0 %v22652_v33 }
 0x763   : > { %v15524_v49 = vpop.permute.xlu0 %15523 }
 0x764   : > { %v15526_v51 = vunpack.i.h.bf16 %v15524_v49  ;;  %v15525_v59 = vunpack.i.l.bf16 %v15524_v49  ;;  %v17661_v49 = vld [vmem:[%s22735_s25 + $0x8] sm:$0xff] }
 0x766   : > { %v14019_v34 = vpack.c.bf16 %v15526_v51, %v15525_v59  ;;  %v17666_v59 = vld [vmem:[%s22735_s25] sm:$0xff] }
 0x768   : > { %14020 = vmatpush1.bf16.msra.mxu0 %v14019_v34 }
 0x769   : > { %14021 = vmatprep.subr.bf16.mxu0 %v22652_v33 }
 0x77b   : > { %v13578_v1 = vpop.f32.mrb[48].mxu0 }
 0x77c   : > { %v2672_v37 = vadd.f32 %v13578_v1, %v17351_v55  ;;  %v2666_v19 = vpop.f32.mrb[49].mxu0 }
 0x77d   : > { %v2667_v31 = vadd.f32 %v17351_v55, %v2666_v19 }
 0x77f   : > { %v17621_v42 = vpack.i.bf16 %v2672_v37, %v2667_v31  ;;  %v13991_v18 = vpack.c.bf16 %v2672_v37, %v2667_v31 }
 0x781   : > { %15528 = vrot.lane.b32.xlu0 %v17621_v42, %s22727_s30  ;;  %13993 = vmatpush1.bf16.xpose.msk.msra.mxu1 %vm16814_vm3, %v13991_v18 }
 0x782   : > { %v2423_v23 = vpop.f32.mrb[30].mxu1  ;;  %14064 = vmatprep.subr.bf16.mxu1 %v22652_v33 }
 0x783   : > { %v13526_v14 = vpop.f32.mrb[31].mxu1  ;;  %v17633_v55 = vadd.f32 %v11675_v12, %v2423_v23 }
 0x785   : > { %15533 = vrot.lane.b32.xlu0 %v17361_v25, %s22734_s22 }
 0x788   : > { %11720 = vmatmul.mubr.msk.f32.vlgmr.msra.gmra.mrb[36].mxu1 %vm1190_vm2, %v17633_v55 }
 0x789   : > { %15538 = vrot.lane.b32.xlu0 %v17371_v52, %s22734_s22  ;;  %2823 = vmatprep.mubr.f32.mxu1 %v22649_v7 }
 0x78d   : > { %15543 = vrot.lane.b32.xlu0 %v17408_v58, %s22734_s22 }
 0x791   : > { %15548 = vrot.lane.b32.xlu0 %v17421_v4, %s22734_s22 }
 0x795   : > { %15558 = vrot.lane.b32.xlu0 %v17465_v9, %s22734_s22 }
 0x799   : > { %15563 = vrot.lane.b32.xlu0 %v17477_v27, %s22734_s22 }
 0x7c6   : > { %v2428_v22 = vpop.f32.mrb[32].mxu1 }
 0x7c7   : > { %v17648_v0 = vadd.f32 %v11675_v12, %v2428_v22  ;;  %v13529_v63 = vpop.f32.mrb[33].mxu1  ;;  %v17681_v22 = vld [vmem:[%s22735_s25 + $0x10] sm:$0xff] }
 0x7c9   : > { %11721 = vmatmul.mubr.msk.f32.gmra.mrb[38].mxu1 %vm1190_vm2, %v17648_v0 }
 0x7ca   : > { %2829 = vmatprep.mubr.f32.mxu1 %v22649_v7 }
 0x7d0   : > { %v2433_v45 = vpop.f32.mrb[34].mxu1 }
 0x7d1   : > { %v17653_v8 = vadd.f32 %v11675_v12, %v2433_v45  ;;  %v13532_v36 = vpop.f32.mrb[35].mxu1  ;;  %v17676_v12 = vld [vmem:[%s22735_s25 + $0x18] sm:$0xff] }
 0x7d3   : > { %11722 = vmatmul.mubr.msk.f32.gmra.mrb[40].mxu1 %vm1190_vm2, %v17653_v8 }
 0x7f3   : > { %v15529_v40 = vpop.permute.xlu0 %15528 }
 0x7f4   : > { %v15531_v15 = vunpack.i.h.bf16 %v15529_v40  ;;  %v15530_v44 = vunpack.i.l.bf16 %v15529_v40 }
 0x7f6   : > { %v14022_v46 = vpack.c.bf16 %v15531_v15, %v15530_v44 }
 0x7f8   : > { %14023 = vmatpush1.bf16.msra.mxu0 %v14022_v46 }
 0x7f9   : > { %14024 = vmatprep.subr.bf16.mxu0 %v22652_v33 }
 0x85b   : > { %v2819_v5 = vpop.f32.mrb[36].mxu1 }
 0x85c   : > { %v2836_v39 = vmul.f32 0.25, %v2819_v5  ;;  %v2821_v51 = vpop.f32.mrb[37].mxu1  ;;  %v17695_v5 = vld [vmem:[%s22735_s25 + $0x28] sm:$0xff] }
 0x85d   : > { %v2837_v34 = vmul.f32 0.25, %v2821_v51  ;;  %v17700_v51 = vld [vmem:[%s22735_s25 + $0x20] sm:$0xff] }
 0x85e   : > { %v2842_v37 = vadd.f32 %v2836_v39, %v17666_v59 }
 0x85f   : > { %v2843_v1 = vadd.f32 %v2837_v34, %v17661_v49 }
 0x861   : > { %v2848_v19 = vsel %vm2177_vm5, %v2843_v1, -inf }
 0x862   : > { %v2849_v31 = vmax.f32 %v2842_v37, %v2848_v19 }
 0x864   : > { %2850 = vmax.xlane.f32.xlu1 %v2849_v31 }
 0x875   : > { %15553 = vrot.lane.b32.xlu1 %v17444_v24, %s22734_s22 }
 0x89c   : > { %v2825_v18 = vpop.f32.mrb[38].mxu1 }
 0x89d   : > { %v2838_v23 = vmul.f32 0.25, %v2825_v18  ;;  %v2827_v14 = vpop.f32.mrb[39].mxu1 }
 0x89e   : > { %v2839_v63 = vmul.f32 0.25, %v2827_v14 }
 0x89f   : > { %v17687_v36 = vadd.f32 %v2838_v23, %v17681_v22 }
 0x8a0   : > { %v17684_v45 = vadd.f32 %v2839_v63, %v17676_v12 }
 0x8a2   : > { %v2852_v40 = vsel %vm2177_vm5, %v17684_v45, -inf }
 0x8a3   : > { %v2853_v15 = vmax.f32 %v17687_v36, %v2852_v40 }
 0x8a5   : > { %2854 = vmax.xlane.f32.xlu0 %v2853_v15 }
 0x8a6   : > { %v2831_v44 = vpop.f32.mrb[40].mxu1 }
 0x8a7   : > { %v2840_v46 = vmul.f32 0.25, %v2831_v44  ;;  %v2833_v39 = vpop.f32.mrb[41].mxu1 }
 0x8a8   : > { %v2841_v34 = vmul.f32 0.25, %v2833_v39 }
 0x8a9   : > { %v17706_v31 = vadd.f32 %v2840_v46, %v17700_v51  ;;  %v15534_v46 = vpop.permute.xlu0 %15533 }
 0x8aa   : > { %v17703_v19 = vadd.f32 %v2841_v34, %v17695_v5  ;;  %v15536_v39 = vunpack.i.h.bf16 %v15534_v46  ;;  %v15535_v34 = vunpack.i.l.bf16 %v15534_v46 }
 0x8ac   : > { %v2856_v18 = vsel %vm2177_vm5, %v17703_v19, -inf }
 0x8ad   : > { %v2857_v23 = vmax.f32 %v17706_v31, %v2856_v18 }
 0x8af   : > { %2858 = vmax.xlane.f32.xlu1 %v2857_v23 }
 0x8bb   : > { %15573 = vrot.lane.b32.xlu0 %v17588_v2, %s22734_s22 }
 0x8bf   : > { %15578 = vrot.lane.b32.xlu0 %v17621_v42, %s22734_s22 }
 0x8c0   : > { %15568 = vrot.lane.b32.xlu1 %v17505_v28, %s22734_s22 }
 0x8c3   : > { %3045 = vrot.lane.b32.xlu0 %v17633_v55, %s22734_s22 }
 0x8c4   : > { %3047 = vrot.lane.b32.xlu1 %v17648_v0, %s22734_s22 }
 0x8c7   : > { %3049 = vrot.lane.b32.xlu0 %v17653_v8, %s22734_s22 }
 0x8c8   : > { %15583 = vrot.lane.b32.xlu1 %v17361_v25, %s22705_s28 }
 0x8cb   : > { %15588 = vrot.lane.b32.xlu0 %v17371_v52, %s22705_s28 }
 0x8cc   : > { %15593 = vrot.lane.b32.xlu1 %v17408_v58, %s22705_s28 }
 0x8cf   : > { %15598 = vrot.lane.b32.xlu0 %v17421_v4, %s22705_s28 }
 0x8d0   : > { %15603 = vrot.lane.b32.xlu1 %v17444_v24, %s22705_s28 }
 0x8d4   : > { %15608 = vrot.lane.b32.xlu1 %v17465_v9, %s22705_s28 }
 0x8d8   : > { %15613 = vrot.lane.b32.xlu1 %v17477_v27, %s22705_s28 }
 0x8dc   : > { %15618 = vrot.lane.b32.xlu1 %v17505_v28, %s22705_s28 }
 0x8e0   : > { %15623 = vrot.lane.b32.xlu1 %v17588_v2, %s22705_s28 }
 0x8e4   : > { %15628 = vrot.lane.b32.xlu1 %v17621_v42, %s22705_s28 }
 0x8e8   : > { %15633 = vrot.lane.b32.xlu1 %v17361_v25, %s22736_s27 }
 0x8ec   : > { %15638 = vrot.lane.b32.xlu1 %v17371_v52, %s22736_s27 }
 0x8f0   : > { %15643 = vrot.lane.b32.xlu1 %v17408_v58, %s22736_s27 }
 0x8f1   : > { %v2851_v14 = vpop.xlane.xlu1 %2850 }
 0x8f2   : > { %v2860_v63 = vsub.f32 %v2842_v37, %v2851_v14  ;;  %v2861_v40 = vsub.f32 %v2843_v1, %v2851_v14  ;;  %v14025_v37 = vpack.c.bf16 %v15536_v39, %v15535_v34  ;;  %v15539_v14 = vpop.permute.xlu0 %15538 }
 0x8f4   : > { %v2866_v15 = vmul.f32 1.442695, %v2860_v63  ;;  %v2868_v44 = vmul.f32 1.442695, %v2861_v40  ;;  %15653 = vrot.lane.b32.xlu1 %v17444_v24, %s22736_s27  ;;  %v15541_v40 = vunpack.i.h.bf16 %v15539_v14 }
 0x8f6   : > { %16271 = vpow2.f32 %v2866_v15  ;;  %v15540_v15 = vunpack.i.l.bf16 %v15539_v14  ;;  %v15544_v46 = vpop.permute.xlu0 %15543  ;;  %v15554_v14 = vpop.permute.xlu1 %15553 }
 0x8f7   : > { %16273 = vpow2.f32 %v2868_v44  ;;  %v15546_v39 = vunpack.i.h.bf16 %v15544_v46  ;;  %v15545_v34 = vunpack.i.l.bf16 %v15544_v46 }
 0x8f8   : > { %15658 = vrot.lane.b32.xlu1 %v17465_v9, %s22736_s27  ;;  %v14029_v44 = vpack.c.bf16 %v15541_v40, %v15540_v15  ;;  %v15556_v40 = vunpack.i.h.bf16 %v15554_v14  ;;  %v15555_v15 = vunpack.i.l.bf16 %v15554_v14 }
 0x8fa   : > { %v15549_v7 = vpop.permute.xlu0 %15548 }
 0x8fc   : > { %15663 = vrot.lane.b32.xlu1 %v17477_v27, %s22736_s27 }
 0x8fe   : > { %v15559_v46 = vpop.permute.xlu0 %15558 }
 0x900   : > { %v16272_v18 = vpop.eup %16271 }
 0x901   : > { %v16274_v23 = vpop.eup %16273 }
 0x902   : > { %11723 = vmatprep.mubr.msk.f32.mxu0 %vm2177_vm5, %v16274_v23  ;;  %v2878_v1 = vsel %vm2177_vm5, %v16274_v23, 0.0  ;;  %v14033_v23 = vpack.c.bf16 %v15546_v39, %v15545_v34  ;;  %v15561_v39 = vunpack.i.h.bf16 %v15559_v46  ;;  %v15560_v34 = vunpack.i.l.bf16 %v15559_v46 }
 0x903   : > { %3024 = vmatmul.mubr.f32.vlgmr.msra.gmra.mrb[50].mxu0 %v16272_v18  ;;  %v17757_v63 = vadd.f32 %v16272_v18, %v2878_v1  ;;  %v15551_v18 = vunpack.i.h.bf16 %v15549_v7 }
 0x904   : > { %14027 = vmatpush1.bf16.xpose.msk.msra.mxu0 %vm16814_vm3, %v14025_v37  ;;  %v15550_v37 = vunpack.i.l.bf16 %v15549_v7  ;;  %v15564_v7 = vpop.permute.xlu0 %15563 }
 0x905   : > { %14028 = vmatprep.subr.bf16.mxu0 %v22652_v33 }
 0x906   : > { %v14037_v1 = vpack.c.bf16 %v15551_v18, %v15550_v37  ;;  %v15566_v18 = vunpack.i.h.bf16 %v15564_v7  ;;  %v15565_v37 = vunpack.i.l.bf16 %v15564_v7 }
 0x90c   : > { %14031 = vmatpush1.bf16.xpose.msk.msra.mxu0 %vm16814_vm3, %v14029_v44  ;;  %v14041_v44 = vpack.c.bf16 %v15556_v40, %v15555_v15 }
 0x90d   : > { %14032 = vmatprep.subr.bf16.mxu0 %v22652_v33 }
 0x914   : > { %14035 = vmatpush1.bf16.xpose.msk.msra.mxu0 %vm16814_vm3, %v14033_v23  ;;  %v14045_v23 = vpack.c.bf16 %v15561_v39, %v15560_v34 }
 0x915   : > { %14036 = vmatprep.subr.bf16.mxu0 %v22652_v33 }
 0x91c   : > { %14039 = vmatpush1.bf16.xpose.msk.msra.mxu0 %vm16814_vm3, %v14037_v1  ;;  %v14049_v1 = vpack.c.bf16 %v15566_v18, %v15565_v37 }
 0x91d   : > { %14040 = vmatprep.subr.bf16.mxu0 %v22652_v33 }
 0x924   : > { %14043 = vmatpush1.bf16.xpose.msk.msra.mxu0 %vm16814_vm3, %v14041_v44 }
 0x925   : > { %14044 = vmatprep.subr.bf16.mxu0 %v22652_v33 }
 0x92c   : > { %14047 = vmatpush1.bf16.xpose.msk.msra.mxu0 %vm16814_vm3, %v14045_v23 }
 0x92d   : > { %14048 = vmatprep.subr.bf16.mxu0 %v22652_v33 }
 0x932   : > { %v2855_v14 = vpop.xlane.xlu0 %2854 }
 0x933   : > { %v2862_v40 = vsub.f32 %v17687_v36, %v2855_v14  ;;  %v2863_v15 = vsub.f32 %v17684_v45, %v2855_v14 }
 0x934   : > { %14051 = vmatpush1.bf16.xpose.msk.msra.mxu0 %vm16814_vm3, %v14049_v1 }
 0x935   : > { %v2870_v44 = vmul.f32 1.442695, %v2862_v40  ;;  %v2872_v46 = vmul.f32 1.442695, %v2863_v15  ;;  %14052 = vmatprep.subr.bf16.mxu0 %v22652_v33 }
 0x936   : > { %v15574_v39 = vpop.permute.xlu0 %15573 }
 0x937   : > { %16275 = vpow2.f32 %v2870_v44 }
 0x938   : > { %16277 = vpow2.f32 %v2872_v46 }
 0x93a   : > { %v15579_v34 = vpop.permute.xlu0 %15578 }
 0x93c   : > { %v2859_v23 = vpop.xlane.xlu1 %2858 }
 0x93d   : > { %v2864_v7 = vsub.f32 %v17706_v31, %v2859_v23  ;;  %v2865_v18 = vsub.f32 %v17703_v19, %v2859_v23  ;;  %v22737_v23 = vmov 0.0|0.0  }
 0x93e   : > { %v17784_v37 = vpop.permute.xlu0 %3045 }
 0x93f   : > { %v2874_v36 = vmul.f32 1.442695, %v2864_v7  ;;  %v2876_v45 = vmul.f32 1.442695, %v2865_v18  ;;  %v15576_v7 = vunpack.i.h.bf16 %v15574_v39  ;;  %v15575_v18 = vunpack.i.l.bf16 %v15574_v39 }
 0x940   : > { %v15569_v14 = vpop.permute.xlu1 %15568  ;;  %v15581_v39 = vunpack.i.h.bf16 %v15579_v34 }
 0x941   : > { %v16276_v11 = vpop.eup %16275  ;;  %16279 = vpow2.f32 %v2874_v36  ;;  %v15571_v1 = vunpack.i.h.bf16 %v15569_v14  ;;  %v15570_v40 = vunpack.i.l.bf16 %v15569_v14  ;;  %v14057_v61 = vpack.c.bf16 %v15576_v7, %v15575_v18 }
 0x942   : > { %v16278_v15 = vpop.eup %16277  ;;  %16281 = vpow2.f32 %v2876_v45  ;;  %v17786_v44 = vpop.permute.xlu0 %3049 }
 0x943   : > { %v14053_v33 = vpack.c.bf16 %v15571_v1, %v15570_v40  ;;  %11724 = vmatprep.mubr.msk.f32.mxu0 %vm2177_vm5, %v16278_v15  ;;  %v2882_v31 = vsel %vm2177_vm5, %v16278_v15, 0.0 }
 0x944   : > { %3029 = vmatmul.mubr.f32.gmra.mrb[52].mxu0 %v16276_v11  ;;  %v3048_v19 = vpop.permute.xlu1 %3047  ;;  %v17790_v46 = vadd.f32 %v16276_v11, %v2882_v31  ;;  %v15580_v31 = vunpack.i.l.bf16 %v15579_v34 }
 0x945   : > { %14055 = vmatpush1.bf16.xpose.msk.msra.mxu0 %vm16814_vm3, %v14053_v33 }
 0x946   : > { %14056 = vmatprep.subr.bf16.mxu0 %v22737_v23  ;;  %v15589_v45 = vpop.permute.xlu0 %15588 }
 0x947   : > { %v15591_v15 = vunpack.i.h.bf16 %v15589_v45  ;;  %v15590_v6 = vunpack.i.l.bf16 %v15589_v45 }
 0x948   : > { %v15584_v36 = vpop.permute.xlu1 %15583 }
 0x949   : > { %v15586_v14 = vunpack.i.h.bf16 %v15584_v36  ;;  %v15585_v1 = vunpack.i.l.bf16 %v15584_v36  ;;  %v14068_v7 = vpack.c.bf16 %v15591_v15, %v15590_v6 }
 0x94b   : > { %v16280_v40 = vpop.eup %16279  ;;  %v14065_v50 = vpack.c.bf16 %v15586_v14, %v15585_v1  ;;  %v22738_v14 = vmov 0.0   ;;  %v15599_v1 = vpop.permute.xlu0 %15598 }
 0x94c   : > { %v16282_v10 = vpop.eup %16281  ;;  %v15594_v54 = vpop.permute.xlu1 %15593 }
 0x94d   : > { %11725 = vmatprep.mubr.msk.f32.mxu0 %vm2177_vm5, %v16282_v10  ;;  %14059 = vmatpush1.bf16.xpose.msk.msra.mxu0 %vm16814_vm3, %v14057_v61  ;;  %v2886_v33 = vsel %vm2177_vm5, %v16282_v10, 0.0  ;;  %v15596_v18 = vunpack.i.h.bf16 %v15594_v54  ;;  %v15595_v36 = vunpack.i.l.bf16 %v15594_v54  ;;  %v14061_v61 = vpack.c.bf16 %v15581_v39, %v15580_v31 }
 0x94e   : > { %3034 = vmatmul.mubr.f32.gmra.mrb[54].mxu0 %v16280_v40  ;;  %14066 = vmatpush1.bf16.msra.mxu1 %v14065_v50  ;;  %v17799_v11 = vadd.f32 %v16280_v40, %v2886_v33  ;;  %v15601_v10 = vunpack.i.h.bf16 %v15599_v1  ;;  %v15600_v50 = vunpack.i.l.bf16 %v15599_v1 }
 0x94f   : > { %14067 = vmatprep.subr.bf16.mxu1 %v22737_v23  ;;  %14060 = vmatprep.subr.bf16.mxu0 %v22737_v23  ;;  %v14071_v40 = vpack.c.bf16 %v15596_v18, %v15595_v36 }
 0x950   : > { %v15604_v45 = vpop.permute.xlu1 %15603  ;;  %3201 = vmatprep.mubr.f32.mxu0 %v22738_v14  ;;  %v14074_v54 = vpack.c.bf16 %v15601_v10, %v15600_v50 }
 0x951   : > { %v15606_v6 = vunpack.i.h.bf16 %v15604_v45  ;;  %v15605_v34 = vunpack.i.l.bf16 %v15604_v45 }
 0x952   : > { %14069 = vmatpush1.bf16.msra.mxu1 %v14068_v7 }
 0x953   : > { %14070 = vmatprep.subr.bf16.mxu1 %v22737_v23  ;;  %v14077_v39 = vpack.c.bf16 %v15606_v6, %v15605_v34 }
 0x954   : > { %v15609_v33 = vpop.permute.xlu1 %15608 }
 0x955   : > { %14063 = vmatpush1.bf16.xpose.msk.msra.mxu0 %vm16814_vm3, %v14061_v61  ;;  %v15611_v31 = vunpack.i.h.bf16 %v15609_v33  ;;  %v15610_v7 = vunpack.i.l.bf16 %v15609_v33 }
 0x956   : > { %14072 = vmatpush1.bf16.msra.mxu1 %v14071_v40  ;;  %14134 = vmatprep.subr.bf16.mxu0 %v22737_v23 }
 0x957   : > { %14073 = vmatprep.subr.bf16.mxu1 %v22737_v23  ;;  %v14080_v36 = vpack.c.bf16 %v15611_v31, %v15610_v7 }
 0x958   : > { %v15614_v15 = vpop.permute.xlu1 %15613 }
 0x959   : > { %v15616_v1 = vunpack.i.h.bf16 %v15614_v15  ;;  %v15615_v61 = vunpack.i.l.bf16 %v15614_v15 }
 0x95a   : > { %14075 = vmatpush1.bf16.msra.mxu1 %v14074_v54 }
 0x95b   : > { %14076 = vmatprep.subr.bf16.mxu1 %v22737_v23  ;;  %v14083_v10 = vpack.c.bf16 %v15616_v1, %v15615_v61 }
 0x95c   : > { %11746 = vmatmul.mubr.msk.f32.vlgmr.msra.gmra.mrb[56].mxu0 %vm1190_vm2, %v17784_v37  ;;  %v15619_v18 = vpop.permute.xlu1 %15618 }
 0x95d   : > { %3207 = vmatprep.mubr.f32.mxu0 %v22738_v14  ;;  %v15621_v50 = vunpack.i.h.bf16 %v15619_v18  ;;  %v15620_v37 = vunpack.i.l.bf16 %v15619_v18 }
 0x95e   : > { %14078 = vmatpush1.bf16.msra.mxu1 %v14077_v39 }
 0x95f   : > { %14079 = vmatprep.subr.bf16.mxu1 %v22737_v23  ;;  %v14086_v40 = vpack.c.bf16 %v15621_v50, %v15620_v37 }
 0x960   : > { %11747 = vmatmul.mubr.msk.f32.gmra.mrb[58].mxu0 %vm1190_vm2, %v3048_v19  ;;  %v15624_v45 = vpop.permute.xlu1 %15623 }
 0x961   : > { %3213 = vmatprep.mubr.f32.mxu0 %v22738_v14  ;;  %v15626_v33 = vunpack.i.h.bf16 %v15624_v45  ;;  %v15625_v54 = vunpack.i.l.bf16 %v15624_v45 }
 0x962   : > { %14081 = vmatpush1.bf16.msra.mxu1 %v14080_v36 }
 0x963   : > { %14082 = vmatprep.subr.bf16.mxu1 %v22737_v23  ;;  %v14089_v19 = vpack.c.bf16 %v15626_v33, %v15625_v54 }
 0x964   : > { %11748 = vmatmul.mubr.msk.f32.gmra.mrb[60].mxu0 %vm1190_vm2, %v17786_v44  ;;  %v15629_v6 = vpop.permute.xlu1 %15628 }
 0x965   : > { %v15631_v34 = vunpack.i.h.bf16 %v15629_v6  ;;  %v15630_v15 = vunpack.i.l.bf16 %v15629_v6 }
 0x966   : > { %14084 = vmatpush1.bf16.msra.mxu1 %v14083_v10 }
 0x967   : > { %14085 = vmatprep.subr.bf16.mxu1 %v22737_v23  ;;  %v14092_v39 = vpack.c.bf16 %v15631_v34, %v15630_v15 }
 0x96a   : > { %14087 = vmatpush1.bf16.msra.mxu1 %v14086_v40 }
 0x96b   : > { %14088 = vmatprep.subr.bf16.mxu1 %v22737_v23 }
 0x96e   : > { %14090 = vmatpush1.bf16.msra.mxu1 %v14089_v19 }
 0x96f   : > { %14091 = vmatprep.subr.bf16.mxu1 %v22737_v23 }
 0x972   : > { %14093 = vmatpush1.bf16.msra.mxu1 %v14092_v39 }
 0x973   : > { %14094 = vmatprep.subr.bf16.mxu1 %v22737_v23 }
 0x9d6   : > { %v17823_v44 = vpop.f32.mrb[50].mxu0 }
 0x9d7   : > { %v3027_v31 = vpop.f32.mrb[51].mxu0 }
 0xa17   : > { %v17825_v7 = vpop.f32.mrb[52].mxu0 }
 0xa18   : > { %v3032_v18 = vpop.f32.mrb[53].mxu0 }
 0xa21   : > { %v17827_v36 = vpop.f32.mrb[54].mxu0 }
 0xa22   : > { %v3037_v1 = vpop.f32.mrb[55].mxu0 }
 0xa2f   : > { %v3203_v61 = vpop.f32.mrb[56].mxu0 }
 0xa30   : > { %v3220_v45 = vmul.f32 0.25, %v3203_v61  ;;  %v3205_v10 = vpop.f32.mrb[57].mxu0 }
 0xa31   : > { %v3221_v50 = vmul.f32 0.25, %v3205_v10 }
 0xa32   : > { %v3226_v33 = vadd.f32 %v3220_v45, %v17666_v59 }
 0xa33   : > { %v3227_v37 = vadd.f32 %v3221_v50, %v17661_v49  ;;  %v3209_v40 = vpop.f32.mrb[58].mxu0 }
 0xa34   : > { %v3222_v54 = vmul.f32 0.25, %v3209_v40  ;;  %v3211_v6 = vpop.f32.mrb[59].mxu0 }
 0xa35   : > { %v3232_v19 = vsel %vm2177_vm5, %v3227_v37, -inf  ;;  %v3223_v34 = vmul.f32 0.25, %v3211_v6 }
 0xa36   : > { %v3233_v15 = vmax.f32 %v3226_v33, %v3232_v19  ;;  %v3228_v18 = vadd.f32 %v3222_v54, %v17681_v22 }
 0xa37   : > { %v3229_v39 = vadd.f32 %v3223_v34, %v17676_v12  ;;  %v3215_v31 = vpop.f32.mrb[60].mxu0  ;;  %v15634_v34 = vpop.permute.xlu1 %15633 }
 0xa38   : > { %3234 = vmax.xlane.f32.xlu0 %v3233_v15  ;;  %v3217_v1 = vpop.f32.mrb[61].mxu0  ;;  %v3224_v40 = vmul.f32 0.25, %v3215_v31  ;;  %v15636_v60 = vunpack.i.h.bf16 %v15634_v34  ;;  %v15635_v62 = vunpack.i.l.bf16 %v15634_v34 }
 0xa39   : > { %v3236_v61 = vsel %vm2177_vm5, %v3229_v39, -inf  ;;  %v3225_v45 = vmul.f32 0.25, %v3217_v1 }
 0xa3a   : > { %v3237_v10 = vmax.f32 %v3228_v18, %v3236_v61  ;;  %v17855_v6 = vadd.f32 %v3224_v40, %v17700_v51  ;;  %v14095_v41 = vpack.c.bf16 %v15636_v60, %v15635_v62 }
 0xa3b   : > { %v17850_v50 = vadd.f32 %v3225_v45, %v17695_v5  ;;  %v15639_v15 = vpop.permute.xlu1 %15638 }
 0xa3c   : > { %3238 = vmax.xlane.f32.xlu1 %v3237_v10 }
 0xa3d   : > { %v3240_v54 = vsel %vm2177_vm5, %v17850_v50, -inf }
 0xa3e   : > { %v3241_v19 = vmax.f32 %v17855_v6, %v3240_v54 }
 0xa3f   : > { %v15644_v31 = vpop.permute.xlu1 %15643 }
 0xa43   : > { %v15654_v1 = vpop.permute.xlu1 %15653 }
 0xa47   : > { %v17888_v61 = vpop.permute.xlu1 %15658 }
 0xa4b   : > { %v17892_v10 = vpop.permute.xlu1 %15663 }
 0xa4d   : > { %15673 = vrot.lane.b32.xlu1 %v17588_v2, %s22736_s27 }
 0xa4e   : > { %15648 = vrot.lane.b32.xlu0 %v17421_v4, %s22736_s27 }
 0xa51   : > { %15678 = vrot.lane.b32.xlu1 %v17621_v42, %s22736_s27 }
 0xa55   : > { %3429 = vrot.lane.b32.xlu1 %v17633_v55, %s22736_s27 }
 0xa59   : > { %3433 = vrot.lane.b32.xlu1 %v17653_v8, %s22736_s27 }
 0xa5d   : > { %15688 = vrot.lane.b32.xlu1 %v17371_v52, %s22704_s26 }
 0xa61   : > { %15698 = vrot.lane.b32.xlu1 %v17421_v4, %s22704_s26 }
 0xa6d   : > { %3242 = vmax.xlane.f32.xlu0 %v3241_v19 }
 0xa83   : > { %15668 = vrot.lane.b32.xlu0 %v17505_v28, %s22736_s27 }
 0xa87   : > { %3431 = vrot.lane.b32.xlu0 %v17648_v0, %s22736_s27 }
 0xa8b   : > { %15683 = vrot.lane.b32.xlu0 %v17361_v25, %s22704_s26 }
 0xa8f   : > { %15693 = vrot.lane.b32.xlu0 %v17408_v58, %s22704_s26 }
 0xa93   : > { %15703 = vrot.lane.b32.xlu0 %v17444_v24, %s22704_s26 }
 0xa97   : > { %15708 = vrot.lane.b32.xlu0 %v17465_v9, %s22704_s26 }
 0xa9b   : > { %15713 = vrot.lane.b32.xlu0 %v17477_v27, %s22704_s26 }
 0xa9f   : > { %15718 = vrot.lane.b32.xlu0 %v17505_v28, %s22704_s26 }
 0xaa3   : > { %15723 = vrot.lane.b32.xlu0 %v17588_v2, %s22704_s26 }
 0xaa7   : > { %15728 = vrot.lane.b32.xlu0 %v17621_v42, %s22704_s26 }
 0xaab   : > { %15733 = vrot.lane.b32.xlu0 %v17361_v25, %s22739_s23 }
 0xaaf   : > { %15738 = vrot.lane.b32.xlu0 %v17371_v52, %s22739_s23 }
 0xab3   : > { %15743 = vrot.lane.b32.xlu0 %v17408_v58, %s22739_s23 }
 0xab7   : > { %15748 = vrot.lane.b32.xlu0 %v17421_v4, %s22739_s23 }
 0xabb   : > { %15758 = vrot.lane.b32.xlu0 %v17465_v9, %s22739_s23 }
 0xabf   : > { %15763 = vrot.lane.b32.xlu0 %v17477_v27, %s22739_s23 }
 0xac5   : > { %v3235_v45 = vpop.xlane.xlu0 %3234 }
 0xac6   : > { %v3244_v40 = vsub.f32 %v3226_v33, %v3235_v45  ;;  %v3245_v54 = vsub.f32 %v3227_v37, %v3235_v45 }
 0xac8   : > { %v3250_v19 = vmul.f32 1.442695, %v3244_v40  ;;  %v3252_v43 = vmul.f32 1.442695, %v3245_v54  ;;  %v15655_v40 = vunpack.i.l.bf16 %v15654_v1 }
 0xac9   : > { %v3239_v38 = vpop.xlane.xlu1 %3238 }
 0xaca   : > { %16283 = vpow2.f32 %v3250_v19  ;;  %v3246_v17 = vsub.f32 %v3228_v18, %v3239_v38  ;;  %v3247_v26 = vsub.f32 %v3229_v39, %v3239_v38  ;;  %v15649_v38 = vpop.permute.xlu0 %15648  ;;  %v15661_v19 = vunpack.i.h.bf16 %v17888_v61 }
 0xacb   : > { %16285 = vpow2.f32 %v3252_v43  ;;  %v15651_v43 = vunpack.i.h.bf16 %v15649_v38  ;;  %v15650_v39 = vunpack.i.l.bf16 %v15649_v38 }
 0xacc   : > { %v3254_v16 = vmul.f32 1.442695, %v3246_v17  ;;  %v3256_v3 = vmul.f32 1.442695, %v3247_v26 }
 0xacd   : > { %v14107_v18 = vpack.c.bf16 %v15651_v43, %v15650_v39  ;;  %v17911_v34 = vpop.permute.xlu1 %15673 }
 0xace   : > { %16287 = vpow2.f32 %v3254_v16  ;;  %v15640_v16 = vunpack.i.l.bf16 %v15639_v15 }
 0xacf   : > { %16289 = vpow2.f32 %v3256_v3  ;;  %v15641_v3 = vunpack.i.h.bf16 %v15639_v15  ;;  %v15656_v15 = vunpack.i.h.bf16 %v15654_v1 }
 0xad1   : > { %v14111_v54 = vpack.c.bf16 %v15656_v15, %v15655_v40 }
 0xad4   : > { %v16284_v47 = vpop.eup %16283 }
 0xad5   : > { %v16286_v21 = vpop.eup %16285 }
 0xad6   : > { %11749 = vmatprep.mubr.msk.f32.mxu1 %vm2177_vm5, %v16286_v21  ;;  %v3262_v37 = vsel %vm2177_vm5, %v16286_v21, 0.0  ;;  %v14099_v21 = vpack.c.bf16 %v15641_v3, %v15640_v16 }
 0xad7   : > { %3408 = vmatmul.mubr.f32.vlgmr.msra.gmra.mrb[42].mxu1 %v16284_v47  ;;  %v17896_v33 = vadd.f32 %v16284_v47, %v3262_v37  ;;  %v15646_v47 = vunpack.i.h.bf16 %v15644_v31  ;;  %v15660_v37 = vunpack.i.l.bf16 %v17888_v61  ;;  %v15666_v61 = vunpack.i.h.bf16 %v17892_v10 }
 0xad8   : > { %v16288_v45 = vpop.eup %16287  ;;  %14097 = vmatpush1.bf16.xpose.msk.msra.mxu1 %vm16814_vm3, %v14095_v41  ;;  %v15645_v41 = vunpack.i.l.bf16 %v15644_v31  ;;  %v17916_v31 = vpop.permute.xlu1 %15678 }
 0xad9   : > { %v16290_v17 = vpop.eup %16289  ;;  %14098 = vmatprep.subr.bf16.mxu1 %v22737_v23 }
 0xada   : > { %11750 = vmatprep.mubr.msk.f32.mxu1 %vm2177_vm5, %v16290_v17  ;;  %v3266_v62 = vsel %vm2177_vm5, %v16290_v17, 0.0  ;;  %v14103_v26 = vpack.c.bf16 %v15646_v47, %v15645_v41 }
 0xadb   : > { %3413 = vmatmul.mubr.f32.gmra.mrb[44].mxu1 %v16288_v45  ;;  %v17903_v60 = vadd.f32 %v16288_v45, %v3266_v62 }
 0xadc   : > { %v17923_v45 = vpop.permute.xlu1 %3429 }
 0xae0   : > { %14101 = vmatpush1.bf16.xpose.msk.msra.mxu1 %vm16814_vm3, %v14099_v21  ;;  %v14115_v21 = vpack.c.bf16 %v15661_v19, %v15660_v37  ;;  %v17927_v41 = vpop.permute.xlu1 %3433 }
 0xae1   : > { %14102 = vmatprep.subr.bf16.mxu1 %v22737_v23 }
 0xae4   : > { %v15689_v38 = vpop.permute.xlu1 %15688 }
 0xae5   : > { %v15691_v40 = vunpack.i.h.bf16 %v15689_v38 }
 0xae8   : > { %14105 = vmatpush1.bf16.xpose.msk.msra.mxu1 %vm16814_vm3, %v14103_v26  ;;  %v15665_v26 = vunpack.i.l.bf16 %v17892_v10 }
 0xae9   : > { %14106 = vmatprep.subr.bf16.mxu1 %v22737_v23 }
 0xaf0   : > { %14109 = vmatpush1.bf16.xpose.msk.msra.mxu1 %vm16814_vm3, %v14107_v18 }
 0xaf1   : > { %14110 = vmatprep.subr.bf16.mxu1 %v22737_v23 }
 0xaf8   : > { %14113 = vmatpush1.bf16.xpose.msk.msra.mxu1 %vm16814_vm3, %v14111_v54  ;;  %v15690_v54 = vunpack.i.l.bf16 %v15689_v38 }
 0xaf9   : > { %14114 = vmatprep.subr.bf16.mxu1 %v22737_v23 }
 0xafa   : > { %v3243_v17 = vpop.xlane.xlu0 %3242 }
 0xafb   : > { %v3248_v3 = vsub.f32 %v17855_v6, %v3243_v17  ;;  %v3249_v16 = vsub.f32 %v17850_v50, %v3243_v17  ;;  %v14119_v50 = vpack.c.bf16 %v15666_v61, %v15665_v26  ;;  %v15699_v26 = vpop.permute.xlu1 %15698 }
 0xafd   : > { %v3258_v1 = vmul.f32 1.442695, %v3248_v3  ;;  %v3260_v62 = vmul.f32 1.442695, %v3249_v16 }
 0xafe   : > { %v15669_v47 = vpop.permute.xlu0 %15668 }
 0xaff   : > { %16291 = vpow2.f32 %v3258_v1  ;;  %v15671_v17 = vunpack.i.h.bf16 %v15669_v47  ;;  %v15670_v3 = vunpack.i.l.bf16 %v15669_v47  ;;  %v15701_v47 = vunpack.i.h.bf16 %v15699_v26 }
 0xb00   : > { %16293 = vpow2.f32 %v3260_v62  ;;  %14117 = vmatpush1.bf16.xpose.msk.msra.mxu1 %vm16814_vm3, %v14115_v21  ;;  %v14138_v62 = vpack.c.bf16 %v15691_v40, %v15690_v54 }
 0xb01   : > { %14118 = vmatprep.subr.bf16.mxu1 %v22737_v23 }
 0xb02   : > { %v17934_v6 = vpop.permute.xlu0 %3431 }
 0xb06   : > { %v15684_v43 = vpop.permute.xlu0 %15683 }
 0xb07   : > { %v15686_v39 = vunpack.i.h.bf16 %v15684_v43  ;;  %v15685_v18 = vunpack.i.l.bf16 %v15684_v43  ;;  %v15700_v43 = vunpack.i.l.bf16 %v15699_v26 }
 0xb08   : > { %14121 = vmatpush1.bf16.xpose.msk.msra.mxu1 %vm16814_vm3, %v14119_v50  ;;  %v14123_v50 = vpack.c.bf16 %v15671_v17, %v15670_v3 }
 0xb09   : > { %v16292_v15 = vpop.eup %16291  ;;  %v14135_v19 = vpack.c.bf16 %v15686_v39, %v15685_v18  ;;  %14122 = vmatprep.subr.bf16.mxu1 %v22737_v23  ;;  %v15676_v18 = vunpack.i.h.bf16 %v17911_v34  ;;  %v14144_v54 = vpack.c.bf16 %v15701_v47, %v15700_v43 }
 0xb0a   : > { %v16294_v37 = vpop.eup %16293  ;;  %v15694_v10 = vpop.permute.xlu0 %15693 }
 0xb0b   : > { %11751 = vmatprep.mubr.msk.f32.mxu1 %vm2177_vm5, %v16294_v37  ;;  %14136 = vmatpush1.bf16.msra.mxu0 %v14135_v19  ;;  %v3270_v16 = vsel %vm2177_vm5, %v16294_v37, 0.0  ;;  %v15696_v21 = vunpack.i.h.bf16 %v15694_v10  ;;  %v15695_v61 = vunpack.i.l.bf16 %v15694_v10 }
 0xb0c   : > { %3418 = vmatmul.mubr.f32.gmra.mrb[46].mxu1 %v16292_v15  ;;  %14137 = vmatprep.subr.bf16.mxu0 %v22737_v23  ;;  %v17942_v1 = vadd.f32 %v16292_v15, %v3270_v16  ;;  %v15675_v15 = vunpack.i.l.bf16 %v17911_v34  ;;  %v15681_v34 = vunpack.i.h.bf16 %v17916_v31 }
 0xb0d   : > { %3585 = vmatprep.mubr.f32.mxu1 %v22738_v14  ;;  %v14141_v39 = vpack.c.bf16 %v15696_v21, %v15695_v61  ;;  %v15680_v21 = vunpack.i.l.bf16 %v17916_v31 }
 0xb0e   : > { %v15704_v38 = vpop.permute.xlu0 %15703  ;;  %v14127_v17 = vpack.c.bf16 %v15676_v18, %v15675_v15 }
 0xb0f   : > { %14139 = vmatpush1.bf16.msra.mxu0 %v14138_v62  ;;  %v15706_v19 = vunpack.i.h.bf16 %v15704_v38  ;;  %v15705_v37 = vunpack.i.l.bf16 %v15704_v38  ;;  %v14131_v47 = vpack.c.bf16 %v15681_v34, %v15680_v21 }
 0xb10   : > { %14125 = vmatpush1.bf16.xpose.msk.msra.mxu1 %vm16814_vm3, %v14123_v50  ;;  %14140 = vmatprep.subr.bf16.mxu0 %v22737_v23 }
 0xb11   : > { %14126 = vmatprep.subr.bf16.mxu1 %v22737_v23  ;;  %v14147_v10 = vpack.c.bf16 %v15706_v19, %v15705_v37 }
 0xb12   : > { %v15709_v40 = vpop.permute.xlu0 %15708 }
 0xb13   : > { %14142 = vmatpush1.bf16.msra.mxu0 %v14141_v39  ;;  %v15711_v16 = vunpack.i.h.bf16 %v15709_v40  ;;  %v15710_v62 = vunpack.i.l.bf16 %v15709_v40 }
 0xb14   : > { %14143 = vmatprep.subr.bf16.mxu0 %v22737_v23 }
 0xb15   : > { %v14150_v26 = vpack.c.bf16 %v15711_v16, %v15710_v62 }
 0xb16   : > { %v15714_v3 = vpop.permute.xlu0 %15713 }
 0xb17   : > { %14145 = vmatpush1.bf16.msra.mxu0 %v14144_v54  ;;  %v15716_v50 = vunpack.i.h.bf16 %v15714_v3  ;;  %v15715_v38 = vunpack.i.l.bf16 %v15714_v3 }
 0xb18   : > { %14129 = vmatpush1.bf16.xpose.msk.msra.mxu1 %vm16814_vm3, %v14127_v17  ;;  %14146 = vmatprep.subr.bf16.mxu0 %v22737_v23 }
 0xb19   : > { %14130 = vmatprep.subr.bf16.mxu1 %v22737_v23  ;;  %v14153_v39 = vpack.c.bf16 %v15716_v50, %v15715_v38 }
 0xb1a   : > { %v15719_v61 = vpop.permute.xlu0 %15718 }
 0xb1b   : > { %14148 = vmatpush1.bf16.msra.mxu0 %v14147_v10  ;;  %v15721_v18 = vunpack.i.h.bf16 %v15719_v61  ;;  %v15720_v15 = vunpack.i.l.bf16 %v15719_v61 }
 0xb1c   : > { %14149 = vmatprep.subr.bf16.mxu0 %v22737_v23 }
 0xb1d   : > { %v14156_v31 = vpack.c.bf16 %v15721_v18, %v15720_v15 }
 0xb1e   : > { %v15724_v43 = vpop.permute.xlu0 %15723 }
 0xb1f   : > { %14151 = vmatpush1.bf16.msra.mxu0 %v14150_v26  ;;  %v15726_v40 = vunpack.i.h.bf16 %v15724_v43  ;;  %v15725_v54 = vunpack.i.l.bf16 %v15724_v43 }
 0xb20   : > { %14133 = vmatpush1.bf16.xpose.msk.msra.mxu1 %vm16814_vm3, %v14131_v47  ;;  %14152 = vmatprep.subr.bf16.mxu0 %v22737_v23 }
 0xb21   : > { %14204 = vmatprep.subr.bf16.mxu1 %v22737_v23  ;;  %v14159_v37 = vpack.c.bf16 %v15726_v40, %v15725_v54 }
 0xb22   : > { %v15729_v19 = vpop.permute.xlu0 %15728 }
 0xb23   : > { %14154 = vmatpush1.bf16.msra.mxu0 %v14153_v39  ;;  %v15731_v17 = vunpack.i.h.bf16 %v15729_v19  ;;  %v15730_v3 = vunpack.i.l.bf16 %v15729_v19 }
 0xb24   : > { %14155 = vmatprep.subr.bf16.mxu0 %v22737_v23 }
 0xb25   : > { %v14162_v10 = vpack.c.bf16 %v15731_v17, %v15730_v3 }
 0xb27   : > { %11772 = vmatmul.mubr.msk.f32.vlgmr.msra.gmra.mrb[48].mxu1 %vm1190_vm2, %v17923_v45  ;;  %14157 = vmatpush1.bf16.msra.mxu0 %v14156_v31 }
 0xb28   : > { %3591 = vmatprep.mubr.f32.mxu1 %v22738_v14  ;;  %14158 = vmatprep.subr.bf16.mxu0 %v22737_v23 }
 0xb2b   : > { %11773 = vmatmul.mubr.msk.f32.gmra.mrb[50].mxu1 %vm1190_vm2, %v17934_v6  ;;  %14160 = vmatpush1.bf16.msra.mxu0 %v14159_v37 }
 0xb2c   : > { %3597 = vmatprep.mubr.f32.mxu1 %v22738_v14  ;;  %14161 = vmatprep.subr.bf16.mxu0 %v22737_v23 }
 0xb2f   : > { %11774 = vmatmul.mubr.msk.f32.gmra.mrb[52].mxu1 %vm1190_vm2, %v17927_v41  ;;  %14163 = vmatpush1.bf16.msra.mxu0 %v14162_v10 }
 0xb30   : > { %14164 = vmatprep.subr.bf16.mxu0 %v22737_v23 }
 0xbaa   : > { %v17975_v45 = vpop.f32.mrb[42].mxu1 }
 0xbab   : > { %v3411_v16 = vpop.f32.mrb[43].mxu1 }
 0xbae   : > { %v17977_v62 = vpop.f32.mrb[44].mxu1 }
 0xbaf   : > { %v3416_v34 = vpop.f32.mrb[45].mxu1 }
 0xbdf   : > { %v17979_v21 = vpop.f32.mrb[46].mxu1 }
 0xbe0   : > { %v3421_v6 = vpop.f32.mrb[47].mxu1 }
 0xbfa   : > { %v3587_v61 = vpop.f32.mrb[48].mxu1 }
 0xbfb   : > { %v3604_v26 = vmul.f32 0.25, %v3587_v61  ;;  %v3589_v50 = vpop.f32.mrb[49].mxu1 }
 0xbfc   : > { %v3605_v38 = vmul.f32 0.25, %v3589_v50 }
 0xbfd   : > { %v3610_v41 = vadd.f32 %v3604_v26, %v17666_v59 }
 0xbfe   : > { %v3611_v47 = vadd.f32 %v3605_v38, %v17661_v49  ;;  %v3593_v43 = vpop.f32.mrb[50].mxu1 }
 0xbff   : > { %v3606_v39 = vmul.f32 0.25, %v3593_v43  ;;  %v3595_v18 = vpop.f32.mrb[51].mxu1 }
 0xc00   : > { %v3616_v15 = vsel %vm2177_vm5, %v3611_v47, -inf  ;;  %v3607_v31 = vmul.f32 0.25, %v3595_v18 }
 0xc01   : > { %v3617_v40 = vmax.f32 %v3610_v41, %v3616_v15  ;;  %v3612_v37 = vadd.f32 %v3606_v39, %v17681_v22 }
 0xc02   : > { %v3613_v54 = vadd.f32 %v3607_v31, %v17676_v12  ;;  %v3599_v19 = vpop.f32.mrb[52].mxu1 }
 0xc03   : > { %3618 = vmax.xlane.f32.xlu1 %v3617_v40  ;;  %v3601_v17 = vpop.f32.mrb[53].mxu1  ;;  %v3608_v12 = vmul.f32 0.25, %v3599_v19 }
 0xc04   : > { %v3620_v3 = vsel %vm2177_vm5, %v3613_v54, -inf  ;;  %v3609_v49 = vmul.f32 0.25, %v3601_v17 }
 0xc05   : > { %v3621_v10 = vmax.f32 %v3612_v37, %v3620_v3  ;;  %v18005_v16 = vadd.f32 %v3608_v12, %v17700_v51 }
 0xc06   : > { %v18000_v59 = vadd.f32 %v3609_v49, %v17695_v5 }
 0xc07   : > { %3622 = vmax.xlane.f32.xlu0 %v3621_v10 }
 0xc08   : > { %v3624_v22 = vsel %vm2177_vm5, %v18000_v59, -inf }
 0xc09   : > { %v3625_v34 = vmax.f32 %v18005_v16, %v3624_v22 }
 0xc14   : > { %15753 = vrot.lane.b32.xlu1 %v17444_v24, %s22739_s23 }
 0xc1d   : > { %15773 = vrot.lane.b32.xlu0 %v17588_v2, %s22739_s23 }
 0xc21   : > { %15778 = vrot.lane.b32.xlu0 %v17621_v42, %s22739_s23 }
 0xc25   : > { %3813 = vrot.lane.b32.xlu0 %v17633_v55, %s22739_s23 }
 0xc29   : > { %3817 = vrot.lane.b32.xlu0 %v17653_v8, %s22739_s23 }
 0xc2d   : > { %15788 = vrot.lane.b32.xlu0 %v17371_v52, %s22740_s24 }
 0xc38   : > { %3626 = vmax.xlane.f32.xlu1 %v3625_v34 }
 0xc49   : > { %15768 = vrot.lane.b32.xlu1 %v17505_v28, %s22739_s23 }
 0xc4d   : > { %3815 = vrot.lane.b32.xlu1 %v17648_v0, %s22739_s23 }
 0xc51   : > { %15783 = vrot.lane.b32.xlu1 %v17361_v25, %s22740_s24  ;;  %v15734_v25 = vpop.permute.xlu0 %15733 }
 0xc52   : > { %v15736_v26 = vunpack.i.h.bf16 %v15734_v25  ;;  %v15735_v50 = vunpack.i.l.bf16 %v15734_v25 }
 0xc54   : > { %v14165_v39 = vpack.c.bf16 %v15736_v26, %v15735_v50 }
 0xc55   : > { %15793 = vrot.lane.b32.xlu1 %v17408_v58, %s22740_s24  ;;  %v15739_v52 = vpop.permute.xlu0 %15738 }
 0xc56   : > { %v15741_v31 = vunpack.i.h.bf16 %v15739_v52  ;;  %v15740_v40 = vunpack.i.l.bf16 %v15739_v52 }
 0xc59   : > { %15798 = vrot.lane.b32.xlu1 %v17421_v4, %s22740_s24  ;;  %v15744_v58 = vpop.permute.xlu0 %15743 }
 0xc5a   : > { %v15746_v17 = vunpack.i.h.bf16 %v15744_v58  ;;  %v15745_v3 = vunpack.i.l.bf16 %v15744_v58 }
 0xc5c   : > { %v14173_v10 = vpack.c.bf16 %v15746_v17, %v15745_v3 }
 0xc5d   : > { %15803 = vrot.lane.b32.xlu1 %v17444_v24, %s22740_s24  ;;  %v15749_v55 = vpop.permute.xlu0 %15748 }
 0xc5e   : > { %v15751_v49 = vunpack.i.h.bf16 %v15749_v55  ;;  %v15750_v12 = vunpack.i.l.bf16 %v15749_v55 }
 0xc60   : > { %v14177_v22 = vpack.c.bf16 %v15751_v49, %v15750_v12 }
 0xc61   : > { %15808 = vrot.lane.b32.xlu1 %v17465_v9, %s22740_s24  ;;  %v18028_v4 = vpop.permute.xlu0 %15758 }
 0xc62   : > { %v15761_v55 = vunpack.i.h.bf16 %v18028_v4 }
 0xc65   : > { %15813 = vrot.lane.b32.xlu1 %v17477_v27, %s22740_s24  ;;  %v18030_v0 = vpop.permute.xlu0 %15763 }
 0xc69   : > { %15818 = vrot.lane.b32.xlu1 %v17505_v28, %s22740_s24 }
 0xc6d   : > { %15823 = vrot.lane.b32.xlu1 %v17588_v2, %s22740_s24 }
 0xc90   : > { %v3619_v24 = vpop.xlane.xlu1 %3618 }
 0xc91   : > { %v3628_v8 = vsub.f32 %v3610_v41, %v3619_v24  ;;  %v3629_v9 = vsub.f32 %v3611_v47, %v3619_v24 }
 0xc93   : > { %v3634_v5 = vmul.f32 1.442695, %v3628_v8  ;;  %v3636_v51 = vmul.f32 1.442695, %v3629_v9  ;;  %v15760_v9 = vunpack.i.l.bf16 %v18028_v4  ;;  %v15766_v4 = vunpack.i.h.bf16 %v18030_v0 }
 0xc94   : > { %v3623_v27 = vpop.xlane.xlu0 %3622  ;;  %v15754_v25 = vpop.permute.xlu1 %15753 }
 0xc95   : > { %16295 = vpow2.f32 %v3634_v5  ;;  %v3630_v6 = vsub.f32 %v3612_v37, %v3623_v27  ;;  %v3631_v28 = vsub.f32 %v3613_v54, %v3623_v27  ;;  %v14169_v37 = vpack.c.bf16 %v15741_v31, %v15740_v40 }
 0xc96   : > { %16297 = vpow2.f32 %v3636_v51  ;;  %v15756_v52 = vunpack.i.h.bf16 %v15754_v25  ;;  %v15755_v24 = vunpack.i.l.bf16 %v15754_v25 }
 0xc97   : > { %v3638_v61 = vmul.f32 1.442695, %v3630_v6  ;;  %v3640_v2 = vmul.f32 1.442695, %v3631_v28 }
 0xc98   : > { %v18049_v34 = vpop.permute.xlu0 %15773  ;;  %v14181_v8 = vpack.c.bf16 %v15756_v52, %v15755_v24 }
 0xc99   : > { %16299 = vpow2.f32 %v3638_v61 }
 0xc9a   : > { %16301 = vpow2.f32 %v3640_v2  ;;  %v14185_v2 = vpack.c.bf16 %v15761_v55, %v15760_v9 }
 0xc9c   : > { %v18054_v58 = vpop.permute.xlu0 %15778 }
 0xc9f   : > { %v16296_v38 = vpop.eup %16295 }
 0xca0   : > { %v16298_v43 = vpop.eup %16297  ;;  %v18061_v5 = vpop.permute.xlu0 %3813 }
 0xca1   : > { %11775 = vmatprep.mubr.msk.f32.mxu0 %vm2177_vm5, %v16298_v43  ;;  %v3646_v47 = vsel %vm2177_vm5, %v16298_v43, 0.0 }
 0xca2   : > { %3792 = vmatmul.mubr.f32.vlgmr.msra.gmra.mrb[62].mxu0 %v16296_v38  ;;  %v18034_v41 = vadd.f32 %v16296_v38, %v3646_v47  ;;  %v15765_v38 = vunpack.i.l.bf16 %v18030_v0 }
 0xca3   : > { %v16300_v18 = vpop.eup %16299  ;;  %14167 = vmatpush1.bf16.xpose.msk.msra.mxu0 %vm16814_vm3, %v14165_v39 }
 0xca4   : > { %v16302_v15 = vpop.eup %16301  ;;  %14168 = vmatprep.subr.bf16.mxu0 %v22737_v23  ;;  %v18065_v50 = vpop.permute.xlu0 %3817 }
 0xca5   : > { %11776 = vmatprep.mubr.msk.f32.mxu0 %vm2177_vm5, %v16302_v15  ;;  %v3650_v54 = vsel %vm2177_vm5, %v16302_v15, 0.0 }
 0xca6   : > { %3797 = vmatmul.mubr.f32.gmra.mrb[64].mxu0 %v16300_v18  ;;  %v18041_v19 = vadd.f32 %v16300_v18, %v3650_v54 }
 0xca8   : > { %v15789_v43 = vpop.permute.xlu0 %15788 }
 0xca9   : > { %v15791_v31 = vunpack.i.h.bf16 %v15789_v43  ;;  %v15790_v40 = vunpack.i.l.bf16 %v15789_v43 }
 0xcab   : > { %14171 = vmatpush1.bf16.xpose.msk.msra.mxu0 %vm16814_vm3, %v14169_v37  ;;  %v14208_v12 = vpack.c.bf16 %v15791_v31, %v15790_v40 }
 0xcac   : > { %14172 = vmatprep.subr.bf16.mxu0 %v22737_v23 }
 0xcb3   : > { %14175 = vmatpush1.bf16.xpose.msk.msra.mxu0 %vm16814_vm3, %v14173_v10 }
 0xcb4   : > { %14176 = vmatprep.subr.bf16.mxu0 %v22737_v23 }
 0xcbb   : > { %14179 = vmatpush1.bf16.xpose.msk.msra.mxu0 %vm16814_vm3, %v14177_v22 }
 0xcbc   : > { %14180 = vmatprep.subr.bf16.mxu0 %v22737_v23 }
 0xcc3   : > { %14183 = vmatpush1.bf16.xpose.msk.msra.mxu0 %vm16814_vm3, %v14181_v8 }
 0xcc4   : > { %14184 = vmatprep.subr.bf16.mxu0 %v22737_v23 }
 0xcc5   : > { %v3627_v51 = vpop.xlane.xlu1 %3626 }
 0xcc6   : > { %v3632_v27 = vsub.f32 %v18005_v16, %v3627_v51  ;;  %v3633_v6 = vsub.f32 %v18000_v59, %v3627_v51  ;;  %v14189_v59 = vpack.c.bf16 %v15766_v4, %v15765_v38  ;;  %v15776_v51 = vunpack.i.h.bf16 %v18049_v34 }
 0xcc8   : > { %v3642_v28 = vmul.f32 1.442695, %v3632_v27  ;;  %v3644_v61 = vmul.f32 1.442695, %v3633_v6  ;;  %v15775_v27 = vunpack.i.l.bf16 %v18049_v34  ;;  %v15781_v34 = vunpack.i.h.bf16 %v18054_v58 }
 0xcc9   : > { %v15769_v26 = vpop.permute.xlu1 %15768 }
 0xcca   : > { %16303 = vpow2.f32 %v3642_v28  ;;  %v15771_v17 = vunpack.i.h.bf16 %v15769_v26  ;;  %v15770_v3 = vunpack.i.l.bf16 %v15769_v26  ;;  %v14197_v26 = vpack.c.bf16 %v15776_v51, %v15775_v27 }
 0xccb   : > { %16305 = vpow2.f32 %v3644_v61  ;;  %14187 = vmatpush1.bf16.xpose.msk.msra.mxu0 %vm16814_vm3, %v14185_v2 }
 0xccc   : > { %14188 = vmatprep.subr.bf16.mxu0 %v22737_v23  ;;  %v14193_v52 = vpack.c.bf16 %v15771_v17, %v15770_v3 }
 0xccd   : > { %v18072_v16 = vpop.permute.xlu1 %3815 }
 0xcd1   : > { %v15784_v39 = vpop.permute.xlu1 %15783 }
 0xcd2   : > { %v15786_v47 = vunpack.i.h.bf16 %v15784_v39  ;;  %v15785_v18 = vunpack.i.l.bf16 %v15784_v39  ;;  %v15780_v39 = vunpack.i.l.bf16 %v18054_v58 }
 0xcd3   : > { %14191 = vmatpush1.bf16.xpose.msk.msra.mxu0 %vm16814_vm3, %v14189_v59 }
 0xcd4   : > { %v16304_v15 = vpop.eup %16303  ;;  %v14205_v54 = vpack.c.bf16 %v15786_v47, %v15785_v18  ;;  %14192 = vmatprep.subr.bf16.mxu0 %v22737_v23  ;;  %v14201_v40 = vpack.c.bf16 %v15781_v34, %v15780_v39  ;;  %v16498_v34 = vld [vmem:[%s22735_s25 + $0x18] sm:$0xff] }
 0xcd5   : > { %v16306_v37 = vpop.eup %16305  ;;  %v15794_v0 = vpop.permute.xlu1 %15793 }
 0xcd6   : > { %11777 = vmatprep.mubr.msk.f32.mxu0 %vm2177_vm5, %v16306_v37  ;;  %14206 = vmatpush1.bf16.msra.mxu1 %v14205_v54  ;;  %v3654_v10 = vsel %vm2177_vm5, %v16306_v37, 0.0  ;;  %v15796_v22 = vunpack.i.h.bf16 %v15794_v0  ;;  %v15795_v25 = vunpack.i.l.bf16 %v15794_v0 }
 0xcd7   : > { %3802 = vmatmul.mubr.f32.gmra.mrb[66].mxu0 %v16304_v15  ;;  %14207 = vmatprep.subr.bf16.mxu1 %v22737_v23  ;;  %v18080_v49 = vadd.f32 %v16304_v15, %v3654_v10 }
 0xcd8   : > { %3969 = vmatprep.mubr.f32.mxu0 %v22738_v14  ;;  %v14211_v8 = vpack.c.bf16 %v15796_v22, %v15795_v25 }
 0xcd9   : > { %v15799_v24 = vpop.permute.xlu1 %15798 }
 0xcda   : > { %14209 = vmatpush1.bf16.msra.mxu1 %v14208_v12  ;;  %v15801_v55 = vunpack.i.h.bf16 %v15799_v24  ;;  %v15800_v9 = vunpack.i.l.bf16 %v15799_v24 }
 0xcdb   : > { %14195 = vmatpush1.bf16.xpose.msk.msra.mxu0 %vm16814_vm3, %v14193_v52  ;;  %14210 = vmatprep.subr.bf16.mxu1 %v22737_v23 }
 0xcdc   : > { %14196 = vmatprep.subr.bf16.mxu0 %v22737_v23  ;;  %v14214_v28 = vpack.c.bf16 %v15801_v55, %v15800_v9 }
 0xcdd   : > { %v15804_v6 = vpop.permute.xlu1 %15803 }
 0xcde   : > { %14212 = vmatpush1.bf16.msra.mxu1 %v14211_v8  ;;  %v15806_v61 = vunpack.i.h.bf16 %v15804_v6  ;;  %v15805_v2 = vunpack.i.l.bf16 %v15804_v6  ;;  %v16496_v6 = vld [vmem:[%s22735_s25 + $0x8] sm:$0xff] }
 0xcdf   : > { %14213 = vmatprep.subr.bf16.mxu1 %v22737_v23 }
 0xce0   : > { %v14217_v38 = vpack.c.bf16 %v15806_v61, %v15805_v2  ;;  %v16497_v61 = vld [vmem:[%s22735_s25] sm:$0xff] }
 0xce1   : > { %v15809_v4 = vpop.permute.xlu1 %15808 }
 0xce2   : > { %14215 = vmatpush1.bf16.msra.mxu1 %v14214_v28  ;;  %v15811_v59 = vunpack.i.h.bf16 %v15809_v4  ;;  %v15810_v43 = vunpack.i.l.bf16 %v15809_v4 }
 0xce3   : > { %14199 = vmatpush1.bf16.xpose.msk.msra.mxu0 %vm16814_vm3, %v14197_v26  ;;  %14216 = vmatprep.subr.bf16.mxu1 %v22737_v23 }
 0xce4   : > { %14200 = vmatprep.subr.bf16.mxu0 %v22737_v23  ;;  %v14220_v18 = vpack.c.bf16 %v15811_v59, %v15810_v43 }
 0xce5   : > { %v15814_v47 = vpop.permute.xlu1 %15813 }
 0xce6   : > { %14218 = vmatpush1.bf16.msra.mxu1 %v14217_v38  ;;  %v15816_v15 = vunpack.i.h.bf16 %v15814_v47  ;;  %v15815_v31 = vunpack.i.l.bf16 %v15814_v47 }
 0xce7   : > { %14219 = vmatprep.subr.bf16.mxu1 %v22737_v23 }
 0xce8   : > { %v14223_v37 = vpack.c.bf16 %v15816_v15, %v15815_v31 }
 0xce9   : > { %v15819_v54 = vpop.permute.xlu1 %15818 }
 0xcea   : > { %14221 = vmatpush1.bf16.msra.mxu1 %v14220_v18  ;;  %v15821_v17 = vunpack.i.h.bf16 %v15819_v54  ;;  %v15820_v3 = vunpack.i.l.bf16 %v15819_v54  ;;  %v16499_v18 = vld [vmem:[%s22735_s25 + $0x10] sm:$0xff] }
 0xceb   : > { %14203 = vmatpush1.bf16.xpose.msk.msra.mxu0 %vm16814_vm3, %v14201_v40  ;;  %14222 = vmatprep.subr.bf16.mxu1 %v22737_v23 }
 0xcec   : > { %v14226_v58 = vpack.c.bf16 %v15821_v17, %v15820_v3  ;;  %v16500_v17 = vld [vmem:[%s22735_s25 + $0x28] sm:$0xff] }
 0xced   : > { %v15824_v0 = vpop.permute.xlu1 %15823 }
 0xcee   : > { %14224 = vmatpush1.bf16.msra.mxu1 %v14223_v37  ;;  %v15826_v10 = vunpack.i.h.bf16 %v15824_v0  ;;  %v15825_v12 = vunpack.i.l.bf16 %v15824_v0 }
 0xcef   : > { %14225 = vmatprep.subr.bf16.mxu1 %v22737_v23 }
 0xcf0   : > { %v14229_v22 = vpack.c.bf16 %v15826_v10, %v15825_v12  ;;  %v16501_v10 = vld [vmem:[%s22735_s25 + $0x20] sm:$0xff]  ;;  %s22763_s25 = sld [smem:[#allocation31_spill]] }
 0xcf2   : > { %11798 = vmatmul.mubr.msk.f32.vlgmr.msra.gmra.mrb[68].mxu0 %vm1190_vm2, %v18061_v5  ;;  %14227 = vmatpush1.bf16.msra.mxu1 %v14226_v58 }
 0xcf3   : > { %3975 = vmatprep.mubr.f32.mxu0 %v22738_v14  ;;  %14228 = vmatprep.subr.bf16.mxu1 %v22737_v23 }
 0xcf6   : > { %11799 = vmatmul.mubr.msk.f32.gmra.mrb[70].mxu0 %vm1190_vm2, %v18072_v16  ;;  %14230 = vmatpush1.bf16.msra.mxu1 %v14229_v22 }
 0xcf7   : > { %3981 = vmatprep.mubr.f32.mxu0 %v22738_v14  ;;  %14231 = vmatprep.subr.bf16.mxu1 %v22737_v23 }
 0xcfa   : > { %11800 = vmatmul.mubr.msk.f32.gmra.mrb[72].mxu0 %vm1190_vm2, %v18065_v50 }
 0xcfb   : > { %4677 = vmatprep.mubr.f32.mxu0 %v22738_v14 }
 0xd75   : > { %v18112_v5 = vpop.f32.mrb[62].mxu0 }
 0xd76   : > { %v3795_v25 = vpop.f32.mrb[63].mxu0 }
 0xd79   : > { %v18114_v52 = vpop.f32.mrb[64].mxu0 }
 0xd7a   : > { %v3800_v24 = vpop.f32.mrb[65].mxu0 }
 0xdaa   : > { %v18116_v8 = vpop.f32.mrb[66].mxu0 }
 0xdab   : > { %v3805_v55 = vpop.f32.mrb[67].mxu0 }
 0xdc5   : > { %v3971_v16 = vpop.f32.mrb[68].mxu0 }
 0xdc6   : > { %v3988_v9 = vmul.f32 0.25, %v3971_v16  ;;  %v3973_v51 = vpop.f32.mrb[69].mxu0 }
 0xdc7   : > { %v3989_v27 = vmul.f32 0.25, %v3973_v51 }
 0xdc8   : > { %v3994_v2 = vadd.f32 %v16497_v61, %v3988_v9 }
 0xdc9   : > { %v3995_v50 = vadd.f32 %v16496_v6, %v3989_v27  ;;  %v3977_v28 = vpop.f32.mrb[70].mxu0 }
 0xdca   : > { %v3990_v26 = vmul.f32 0.25, %v3977_v28  ;;  %v3979_v4 = vpop.f32.mrb[71].mxu0 }
 0xdcb   : > { %v4000_v38 = vsel %vm2177_vm5, %v3995_v50, -inf  ;;  %v3991_v59 = vmul.f32 0.25, %v3979_v4 }
 0xdcc   : > { %v4001_v43 = vmax.f32 %v3994_v2, %v4000_v38  ;;  %v3996_v15 = vadd.f32 %v16499_v18, %v3990_v26 }
 0xdcd   : > { %v3997_v39 = vadd.f32 %v16498_v34, %v3991_v59  ;;  %v3983_v47 = vpop.f32.mrb[72].mxu0 }
 0xdce   : > { %4002 = vmax.xlane.f32.xlu0 %v4001_v43  ;;  %v3985_v31 = vpop.f32.mrb[73].mxu0  ;;  %v3992_v0 = vmul.f32 0.25, %v3983_v47 }
 0xdcf   : > { %v4004_v40 = vsel %vm2177_vm5, %v3997_v39, -inf  ;;  %v3993_v37 = vmul.f32 0.25, %v3985_v31 }
 0xdd0   : > { %v4005_v54 = vmax.f32 %v3996_v15, %v4004_v40  ;;  %v3998_v12 = vadd.f32 %v16501_v10, %v3992_v0  ;;  %v2675_v0 = vld [vmem:[%s22741_s14] sm:$0xff]  ;;  %v2678_v10 = vld [vmem:[%s22741_s14 + $0x18] sm:$0xff] }
 0xdd1   : > { %v3999_v3 = vadd.f32 %v16500_v17, %v3993_v37 }
 0xdd2   : > { %4006 = vmax.xlane.f32.xlu1 %v4005_v54 }
 0xdd3   : > { %v4008_v58 = vsel %vm2177_vm5, %v3999_v3, -inf }
 0xdd6   : > { %3264 = vadd.xlane.f32.xlu1 %v17896_v33  ;;  %v4009_v33 = vmax.f32 %v3998_v12, %v4008_v58  ;;  %v2676_v58 = vld [vmem:[%s22741_s14 + $0x8] sm:$0xff] }
 0xdda   : > { %3648 = vadd.xlane.f32.xlu1 %v18034_v41 }
 0xde4   : > { %15828 = vrot.lane.b32.xlu0 %v17621_v42, %s22740_s24 }
 0xe03   : > { %4010 = vmax.xlane.f32.xlu0 %v4009_v33  ;;  %v2680_v33 = vld [vmem:[%s22741_s14 + $0x28] sm:$0xff] }
 0xe07   : > { %3272 = vadd.xlane.f32.xlu0 %v17942_v1 }
 0xe5b   : > { %v4003_v41 = vpop.xlane.xlu0 %4002 }
 0xe5c   : > { %v4012_v42 = vsub.f32 %v3994_v2, %v4003_v41  ;;  %v4013_v22 = vsub.f32 %v3995_v50, %v4003_v41 }
 0xe5e   : > { %v4018_v25 = vmul.f32 1.442695, %v4012_v42  ;;  %v4020_v24 = vmul.f32 1.442695, %v4013_v22  ;;  %v2681_v42 = vld [vmem:[%s22741_s14 + $0x30] sm:$0xff]  ;;  %v2682_v22 = vld [vmem:[%s22741_s14 + $0x38] sm:$0xff] }
 0xe5f   : > { %v15829_v55 = vpop.permute.xlu0 %15828  ;;  %v4007_v16 = vpop.xlane.xlu1 %4006 }
 0xe60   : > { %16307 = vpow2.f32 %v4018_v25  ;;  %v15831_v9 = vunpack.i.h.bf16 %v15829_v55  ;;  %v15830_v51 = vunpack.i.l.bf16 %v15829_v55  ;;  %v4014_v27 = vsub.f32 %v3996_v15, %v4007_v16 }
 0xe61   : > { %16309 = vpow2.f32 %v4020_v24  ;;  %v4015_v6 = vsub.f32 %v3997_v39, %v4007_v16  ;;  %v14244_v25 = vpack.c.bf16 %v2682_v22, %v2681_v42 }
 0xe62   : > { %v14232_v28 = vpack.c.bf16 %v15831_v9, %v15830_v51  ;;  %v4022_v61 = vmul.f32 1.442695, %v4014_v27 }
 0xe63   : > { %v4024_v26 = vmul.f32 1.442695, %v4015_v6  ;;  %v3265_v39 = vpop.xlane.xlu1 %3264 }
 0xe64   : > { %16311 = vpow2.f32 %v4022_v61  ;;  %14233 = vmatpush1.bf16.msra.mxu1 %v14232_v28 }
 0xe65   : > { %16313 = vpow2.f32 %v4024_v26  ;;  %14234 = vmatprep.subr.bf16.mxu1 %v22737_v23 }
 0xe66   : > { %16315 = vrcp.f32 %v3265_v39 }
 0xe6a   : > { %v16308_v1 = vpop.eup %16307 }
 0xe6b   : > { %v16310_v50 = vpop.eup %16309 }
 0xe6c   : > { %11801 = vmatprep.mubr.msk.f32.mxu1 %vm2177_vm5, %v16310_v50  ;;  %v4030_v2 = vsel %vm2177_vm5, %v16310_v50, 0.0 }
 0xe6d   : > { %4176 = vmatmul.mubr.f32.vlgmr.msra.gmra.mrb[54].mxu1 %v16308_v1  ;;  %v4031_v4 = vadd.f32 %v16308_v1, %v4030_v2 }
 0xe6e   : > { %v16312_v38 = vpop.eup %16311 }
 0xe6f   : > { %v16314_v59 = vpop.eup %16313  ;;  %4032 = vadd.xlane.f32.xlu1 %v4031_v4 }
 0xe70   : > { %11802 = vmatprep.mubr.msk.f32.mxu1 %vm2177_vm5, %v16314_v59  ;;  %v4034_v43 = vsel %vm2177_vm5, %v16314_v59, 0.0  ;;  %v16316_v47 = vpop.eup %16315 }
 0xe71   : > { %4181 = vmatmul.mubr.f32.gmra.mrb[56].mxu1 %v16312_v38  ;;  %v4035_v34 = vadd.f32 %v16312_v38, %v4034_v43  ;;  %v3424_v40 = vmul.f32 %v16316_v47, %v17975_v45  ;;  %v3649_v45 = vpop.xlane.xlu1 %3648 }
 0xe73   : > { %3268 = vadd.xlane.f32.xlu1 %v17903_v60 }
 0xe77   : > { %3652 = vadd.xlane.f32.xlu1 %v18041_v19 }
 0xe7b   : > { %4036 = vadd.xlane.f32.xlu1 %v4035_v34 }
 0xe7f   : > { %3656 = vadd.xlane.f32.xlu1 %v18080_v49 }
 0xe83   : > { %2880 = vadd.xlane.f32.xlu1 %v17757_v63 }
 0xe90   : > { %v4011_v18 = vpop.xlane.xlu0 %4010 }
 0xe91   : > { %v4016_v15 = vsub.f32 %v3998_v12, %v4011_v18  ;;  %v4017_v31 = vsub.f32 %v3999_v3, %v4011_v18  ;;  %v2679_v12 = vld [vmem:[%s22741_s14 + $0x20] sm:$0xff] }
 0xe92   : > { %v14241_v41 = vpack.c.bf16 %v2680_v33, %v2679_v12 }
 0xe93   : > { %v4026_v54 = vmul.f32 1.442695, %v4016_v15  ;;  %v4028_v60 = vmul.f32 1.442695, %v4017_v31 }
 0xe94   : > { %4200 = vrot.lane.b32.xlu1 %v3424_v40, %s22740_s24  ;;  %v3273_v27 = vpop.xlane.xlu0 %3272 }
 0xe95   : > { %16317 = vpow2.f32 %v4026_v54 }
 0xe96   : > { %16319 = vpow2.f32 %v4028_v60 }
 0xe97   : > { %16321 = vrcp.f32 %v3649_v45 }
 0xe9f   : > { %v16318_v19 = vpop.eup %16317 }
 0xea0   : > { %v16320_v37 = vpop.eup %16319 }
 0xea1   : > { %11803 = vmatprep.mubr.msk.f32.mxu1 %vm2177_vm5, %v16320_v37  ;;  %v4038_v49 = vsel %vm2177_vm5, %v16320_v37, 0.0  ;;  %v16322_v17 = vpop.eup %16321 }
 0xea2   : > { %4186 = vmatmul.mubr.f32.gmra.mrb[58].mxu1 %v16318_v19  ;;  %v4039_v63 = vadd.f32 %v16318_v19, %v4038_v49  ;;  %v3808_v3 = vmul.f32 %v16322_v17, %v18112_v5 }
 0xea3   : > { %13595 = vmatprep.mubr.msk.f32.mxu1 %vm16537_vm1, %v22738_v14 }
 0xea4   : > { %4040 = vadd.xlane.f32.xlu0 %v4039_v63 }
 0xea8   : > { %2884 = vadd.xlane.f32.xlu0 %v17790_v46  ;;  %v2677_v46 = vld [vmem:[%s22741_s14 + $0x10] sm:$0xff]  ;;  %s22766_s14 = sld [smem:[#allocation25_spill]] }
 0xea9   : > { %v14238_v5 = vpack.c.bf16 %v2678_v10, %v2677_v46 }
 0xeac   : > { %2888 = vadd.xlane.f32.xlu0 %v17799_v11  ;;  %v14235_v11 = vpack.c.bf16 %v2676_v58, %v2675_v0 }
 0xeae   : > { %14236 = vmatpush3.bf16.msra.mxu1 %v14235_v11 }
 0xeaf   : > { %14237 = vmatprep.subr.bf16.mxu1 %v22737_v23 }
 0xeb2   : > { %14239 = vmatpush3.bf16.msra.mxu1 %v14238_v5 }
 0xeb3   : > { %14240 = vmatprep.subr.bf16.mxu1 %v22737_v23 }
 0xeb6   : > { %14242 = vmatpush3.bf16.msra.mxu1 %v14241_v41 }
 0xeb7   : > { %14243 = vmatprep.subr.bf16.mxu1 %v22737_v23 }
 0xeba   : > { %14245 = vmatpush3.bf16.msra.mxu1 %v14244_v25 }
 0xec2   : > { %4212 = vrot.lane.b32.xlu0 %v3808_v3, %s22704_s26 }
 0xefc   : > { %v4033_v24 = vpop.xlane.xlu1 %4032 }
 0xefd   : > { %16323 = vrcp.f32 %v4033_v24 }
 0xf00   : > { %v3269_v55 = vpop.xlane.xlu1 %3268 }
 0xf01   : > { %16325 = vrcp.f32 %v3269_v55 }
 0xf04   : > { %v3653_v16 = vpop.xlane.xlu1 %3652 }
 0xf07   : > { %v16324_v6 = vpop.eup %16323 }
 0xf08   : > { %v4037_v9 = vpop.xlane.xlu1 %4036 }
 0xf09   : > { %16327 = vrcp.f32 %v4037_v9  ;;  %v11804_v9 = vld [vmem:[%s22742_s15] ss:$0 sm:$0xff]  ;;  %s22772_s15 = sld [smem:[#allocation36_spill]] }
 0xf0a   : > { %16329 = vrcp.f32 %v3653_v16 }
 0xf0b   : > { %v16326_v1 = vpop.eup %16325 }
 0xf0c   : > { %v3657_v51 = vpop.xlane.xlu1 %3656  ;;  %v3426_v43 = vmul.f32 %v16326_v1, %v17977_v62 }
 0xf0d   : > { %16331 = vrcp.f32 %v3657_v51 }
 0xf0e   : > { %16333 = vrcp.f32 %v3273_v27 }
 0xf13   : > { %v16328_v50 = vpop.eup %16327 }
 0xf14   : > { %v16330_v4 = vpop.eup %16329 }
 0xf15   : > { %v3810_v39 = vmul.f32 %v16330_v4, %v18114_v52  ;;  %v2881_v52 = vpop.xlane.xlu1 %2880 }
 0xf17   : > { %v16332_v34 = vpop.eup %16331 }
 0xf18   : > { %v3812_v47 = vmul.f32 %v16332_v34, %v18116_v8  ;;  %v16334_v18 = vpop.eup %16333 }
 0xf19   : > { %v3428_v15 = vmul.f32 %v16334_v18, %v17979_v21  ;;  %v4201_v63 = vpop.permute.xlu1 %4200 }
 0xf31   : > { %v4041_v31 = vpop.xlane.xlu0 %4040 }
 0xf32   : > { %16335 = vrcp.f32 %v4041_v31 }
 0xf33   : > { %16337 = vrcp.f32 %v2881_v52  ;;  %v4394_v52 = vld [vmem:[%s22743_s16 + $0x18] sm:$0xff] }
 0xf35   : > { %v2885_v8 = vpop.xlane.xlu0 %2884 }
 0xf36   : > { %16339 = vrcp.f32 %v2885_v8 }
 0xf39   : > { %v2889_v19 = vpop.xlane.xlu0 %2888 }
 0xf3a   : > { %16341 = vrcp.f32 %v2889_v19  ;;  %v4410_v19 = vld [vmem:[%s22743_s16 + $0x98] sm:$0xff] }
 0xf3c   : > { %v16336_v62 = vpop.eup %16335 }
 0xf3d   : > { %v16338_v37 = vpop.eup %16337  ;;  %v4213_v21 = vpop.permute.xlu0 %4212 }
 0xf3e   : > { %v3040_v49 = vmul.f32 %v16338_v37, %v17823_v44  ;;  %v4391_v37 = vld [vmem:[%s22743_s16] sm:$0xff] }
 0xf40   : > { %v4177_v28 = vpop.f32.mrb[54].mxu1  ;;  %v4233_v45 = vsel %vm1190_vm2, %v3040_v49, %v4201_v63  ;;  %v16340_v58 = vpop.eup %16339  ;;  %v4407_v49 = vld [vmem:[%s22743_s16 + $0x80] sm:$0xff]  ;;  %v14262_v63 = vpack.c.bf16 %v4410_v19, %v4394_v52  ;;  %v4412_v52 = vld [vmem:[%s22743_s16 + $0xa8] sm:$0xff]  ;;  %v4414_v19 = vld [vmem:[%s22743_s16 + $0xb8] sm:$0xff] }
 0xf41   : > { %v4192_v61 = vmul.f32 %v16324_v6, %v4177_v28  ;;  %v4179_v26 = vpop.f32.mrb[55].mxu1  ;;  %v4236_v17 = vsel %vm2177_vm5, %v4233_v45, %v4213_v21  ;;  %v3042_v11 = vmul.f32 %v16340_v58, %v17825_v7  ;;  %v14248_v21 = vpack.c.bf16 %v4407_v49, %v4391_v37  ;;  %v4393_v45 = vld [vmem:[%s22743_s16 + $0x10] sm:$0xff]  ;;  %v4440_v58 = vld [vmem:[%s22743_s16 + $0x188] sm:$0xff] }
 0xf42   : > { %14263 = vmatprep.subr.bf16.mxu1 %v14262_v63 }
 0xf43   : > { %4224 = vrot.lane.b32.xlu1 %v4192_v61, %s22705_s28 }
 0xf44   : > { %v4182_v2 = vpop.f32.mrb[56].mxu1  ;;  %v16342_v41 = vpop.eup %16341 }
 0xf45   : > { %v4194_v38 = vmul.f32 %v16328_v50, %v4182_v2  ;;  %v4184_v59 = vpop.f32.mrb[57].mxu1  ;;  %v3044_v22 = vmul.f32 %v16342_v41, %v17827_v36  ;;  %v4425_v41 = vld [vmem:[%s22743_s16 + $0x110] sm:$0xff] }
 0xf47   : > { %4202 = vrot.lane.b32.xlu1 %v3426_v43, %s22740_s24  ;;  %4226 = vrot.lane.b32.xlu0 %v4194_v38, %s22705_s28 }
 0xf4b   : > { %4214 = vrot.lane.b32.xlu1 %v3810_v39, %s22704_s26  ;;  %4216 = vrot.lane.b32.xlu0 %v3812_v47, %s22704_s26 }
 0xf4f   : > { %4204 = vrot.lane.b32.xlu1 %v3428_v15, %s22740_s24 }
 0xf75   : > { %v4187_v40 = vpop.f32.mrb[58].mxu1 }
 0xf76   : > { %v4196_v54 = vmul.f32 %v16336_v62, %v4187_v40  ;;  %v4189_v60 = vpop.f32.mrb[59].mxu1 }
 0xf77   : > { %v4408_v60 = vld [vmem:[%s22743_s16 + $0x88] sm:$0xff] }
 0xf78   : > { %4228 = vrot.lane.b32.xlu1 %v4196_v54, %s22705_s28  ;;  %v4392_v54 = vld [vmem:[%s22743_s16 + $0x8] sm:$0xff] }
 0xf79   : > { %v14246_v8 = vpack.c.bf16 %v4408_v60, %v4392_v54  ;;  %v4396_v60 = vld [vmem:[%s22743_s16 + $0x28] sm:$0xff] }
 0xf7b   : > { %14247 = vmatprep.subr.bf16.mxu0 %v14246_v8  ;;  %v4398_v8 = vld [vmem:[%s22743_s16 + $0x38] sm:$0xff] }
 0xf7c   : > { %14249 = vmatpush1.bf16.msra.mxu0 %v14248_v21  ;;  %v14294_v37 = vpack.c.bf16 %v4414_v19, %v4398_v8  ;;  %v4507_v19 = vld [vmem:[%s22743_s16 + $0x3a0] sm:$0xff] }
 0xfb5   : > { %v4225_v3 = vpop.permute.xlu1 %4224 }
 0xfb6   : > { %v4239_v0 = vsel %vm2181_vm6, %v4236_v17, %v4225_v3  ;;  %v4409_v17 = vld [vmem:[%s22743_s16 + $0x90] sm:$0xff] }
 0xfb7   : > { %13596 = vmatmul.mubr.msk.f32.vlgmr.msra.gmra.mrb[60].mxu1 %vm1079_vm0, %v4239_v0  ;;  %v14264_v3 = vpack.c.bf16 %v4409_v17, %v4393_v45  ;;  %v4424_v0 = vld [vmem:[%s22743_s16 + $0x108] sm:$0xff] }
 0xfb8   : > { %13598 = vmatprep.mubr.msk.f32.mxu1 %vm16537_vm1, %v22738_v14 }
 0xfb9   : > { %v4203_v46 = vpop.permute.xlu1 %4202  ;;  %v4227_v5 = vpop.permute.xlu0 %4226  ;;  %14265 = vmatpush1.bf16.msra.mxu1 %v14264_v3 }
 0xfba   : > { %v4234_v44 = vsel %vm1190_vm2, %v3042_v11, %v4203_v46  ;;  %v4426_v46 = vld [vmem:[%s22743_s16 + $0x118] sm:$0xff]  ;;  %v14250_v11 = vpack.c.bf16 %v4440_v58, %v4424_v0  ;;  %v16502_v0 = vld [vmem:[%s22622_s20] sm:$0x7] }
 0xfbb   : > { %v18361_v58 = vrot.slane %v16502_v0, %v16750_v32  ;;  %v4402_v0 = vld [vmem:[%s22743_s16 + $0x58] sm:$0xff] }
 0xfbc   : > { %14251 = vmatprep.subr.bf16.mxu0 %v14250_v11  ;;  %v16503_v11 = vld [vmem:[%s22623_s21] sm:$0x7] }
 0xfbd   : > { %v4215_v10 = vpop.permute.xlu1 %4214  ;;  %v4217_v25 = vpop.permute.xlu0 %4216 }
 0xfbe   : > { %v4237_v12 = vsel %vm2177_vm5, %v4234_v44, %v4215_v10  ;;  %v4442_v44 = vld [vmem:[%s22743_s16 + $0x198] sm:$0xff]  ;;  %v4423_v10 = vld [vmem:[%s22743_s16 + $0x100] sm:$0xff] }
 0xfbf   : > { %v4240_v33 = vsel %vm2181_vm6, %v4237_v12, %v4227_v5  ;;  %v4439_v5 = vld [vmem:[%s22743_s16 + $0x180] sm:$0xff]  ;;  %v14266_v12 = vpack.c.bf16 %v4442_v44, %v4426_v46  ;;  %v18367_v44 = vrot.slane %v16503_v11, %v16750_v32 }
 0xfc0   : > { %13599 = vmatmul.mubr.msk.f32.gmra.mrb[62].mxu1 %vm1079_vm0, %v4240_v33  ;;  %v14252_v33 = vpack.c.bf16 %v4439_v5, %v4423_v10  ;;  %v4395_v5 = vld [vmem:[%s22743_s16 + $0x20] sm:$0xff] }
 0xfc1   : > { %13601 = vmatprep.mubr.msk.f32.mxu1 %vm16537_vm1, %v22738_v14  ;;  %v4205_v42 = vpop.permute.xlu1 %4204  ;;  %14267 = vmatprep.subr.bf16.mxu1 %v14266_v12  ;;  %v4411_v12 = vld [vmem:[%s22743_s16 + $0xa0] sm:$0xff] }
 0xfc2   : > { %v4235_v7 = vsel %vm1190_vm2, %v3044_v22, %v4205_v42  ;;  %v4441_v42 = vld [vmem:[%s22743_s16 + $0x190] sm:$0xff]  ;;  %14253 = vmatpush1.bf16.msra.mxu0 %v14252_v33 }
 0xfc3   : > { %v4238_v55 = vsel %vm2177_vm5, %v4235_v7, %v4217_v25  ;;  %v14268_v22 = vpack.c.bf16 %v4441_v42, %v4425_v41  ;;  %v4456_v7 = vld [vmem:[%s22743_s16 + $0x208] sm:$0xff]  ;;  %v4397_v33 = vld [vmem:[%s22743_s16 + $0x30] sm:$0xff] }
 0xfc4   : > { %v4472_v25 = vld [vmem:[%s22743_s16 + $0x288] sm:$0xff]  ;;  %v4413_v41 = vld [vmem:[%s22743_s16 + $0xb0] sm:$0xff] }
 0xfc5   : > { %14269 = vmatpush1.bf16.msra.mxu1 %v14268_v22  ;;  %v4444_v22 = vld [vmem:[%s22743_s16 + $0x1a8] sm:$0xff] }
 0xfea   : > { %v4229_v24 = vpop.permute.xlu1 %4228 }
 0xfeb   : > { %v4241_v16 = vsel %vm2181_vm6, %v4238_v55, %v4229_v24  ;;  %v4458_v24 = vld [vmem:[%s22743_s16 + $0x218] sm:$0xff]  ;;  %v14254_v55 = vpack.c.bf16 %v4472_v25, %v4456_v7 }
 0xfec   : > { %13602 = vmatmul.mubr.msk.f32.gmra.mrb[64].mxu1 %vm1079_vm0, %v4241_v16  ;;  %v4474_v16 = vld [vmem:[%s22743_s16 + $0x298] sm:$0xff] }
 0xfed   : > { %4760 = vmatprep.mubr.f32.mxu1 %v22738_v14  ;;  %14255 = vmatprep.subr.bf16.mxu0 %v14254_v55  ;;  %v4430_v7 = vld [vmem:[%s22743_s16 + $0x138] sm:$0xff]  ;;  %v14280_v55 = vpack.c.bf16 %v4411_v12, %v4395_v5 }
 0xfee   : > { %v4446_v25 = vld [vmem:[%s22743_s16 + $0x1b8] sm:$0xff] }
0x108a   : > { %v4321_v51 = vpop.f32.mrb[60].mxu1 }
0x108b   : > { %v4322_v27 = vadd.f32 %v11804_v9, %v4321_v51  ;;  %v13597_v6 = vpop.f32.mrb[61].mxu1  ;;  %v4471_v51 = vld [vmem:[%s22743_s16 + $0x280] sm:$0xff] }
0x108d   : > { %v4335_v36 = vadd.f32 %v4322_v27, %v17539_v53  ;;  %v14270_v27 = vpack.c.bf16 %v4474_v16, %v4458_v24  ;;  %v14296_v16 = vpack.c.bf16 %v4413_v41, %v4397_v33 }
0x108f   : > { %v4338_v28 = vsel %vm1079_vm0, %v4335_v36, 0.0  ;;  %14271 = vmatprep.subr.bf16.mxu1 %v14270_v27 }
0x1090   : > { %4339 = vadd.xlane.f32.xlu0 %v4338_v28  ;;  %v4473_v28 = vld [vmem:[%s22743_s16 + $0x290] sm:$0xff] }
0x1093   : > { %v4326_v61 = vpop.f32.mrb[62].mxu1 }
0x1094   : > { %v4327_v26 = vadd.f32 %v11804_v9, %v4326_v61  ;;  %v13600_v1 = vpop.f32.mrb[63].mxu1 }
0x1095   : > { %v4504_v1 = vld [vmem:[%s22743_s16 + $0x388] sm:$0xff] }
0x1096   : > { %v4336_v50 = vadd.f32 %v4327_v26, %v17596_v13  ;;  %v4488_v26 = vld [vmem:[%s22743_s16 + $0x308] sm:$0xff] }
0x1098   : > { %v4341_v2 = vsel %vm1079_vm0, %v4336_v50, 0.0 }
0x1099   : > { %4342 = vadd.xlane.f32.xlu1 %v4341_v2  ;;  %v14258_v2 = vpack.c.bf16 %v4504_v1, %v4488_v26  ;;  %v4476_v26 = vld [vmem:[%s22743_s16 + $0x2a8] sm:$0xff]  ;;  %v4462_v1 = vld [vmem:[%s22743_s16 + $0x238] sm:$0xff] }
0x10bf   : > { %v4331_v4 = vpop.f32.mrb[64].mxu1 }
0x10c0   : > { %v4332_v38 = vadd.f32 %v11804_v9, %v4331_v4  ;;  %v13603_v59 = vpop.f32.mrb[65].mxu1  ;;  %v4455_v9 = vld [vmem:[%s22743_s16 + $0x200] sm:$0xff]  ;;  %v4506_v4 = vld [vmem:[%s22743_s16 + $0x398] sm:$0xff] }
0x10c1   : > { %v14256_v6 = vpack.c.bf16 %v4471_v51, %v4455_v9  ;;  %v4503_v59 = vld [vmem:[%s22743_s16 + $0x380] sm:$0xff] }
0x10c2   : > { %v18229_v43 = vadd.f32 %v4332_v38, %v17609_v20  ;;  %v4487_v38 = vld [vmem:[%s22743_s16 + $0x300] sm:$0xff] }
0x10c3   : > { %14257 = vmatpush1.bf16.msra.mxu0 %v14256_v6  ;;  %v4427_v9 = vld [vmem:[%s22743_s16 + $0x120] sm:$0xff]  ;;  %v14298_v6 = vpack.c.bf16 %v4446_v25, %v4430_v7 }
0x10c4   : > { %v4344_v53 = vsel %vm1079_vm0, %v18229_v43, 0.0  ;;  %14259 = vmatprep.subr.bf16.mxu0 %v14258_v2  ;;  %v4443_v51 = vld [vmem:[%s22743_s16 + $0x1a0] sm:$0xff] }
0x10c5   : > { %4345 = vadd.xlane.f32.xlu0 %v4344_v53  ;;  %v4399_v25 = vld [vmem:[%s22743_s16 + $0x40] sm:$0xff] }
0x111d   : > { %v4340_v34 = vpop.xlane.xlu0 %4339 }
0x111e   : > { %v4347_v39 = vmul.f32 0.015625, %v4340_v34  ;;  %v14260_v34 = vpack.c.bf16 %v4503_v59, %v4487_v38  ;;  %v4459_v59 = vld [vmem:[%s22743_s16 + $0x220] sm:$0xff] }
0x1120   : > { %v18233_v47 = vsub.f32 %v4335_v36, %v4347_v39  ;;  %v4457_v36 = vld [vmem:[%s22743_s16 + $0x210] sm:$0xff]  ;;  %14261 = vmatpush1.bf16.msra.mxu0 %v14260_v34 }
0x1121   : > { %v14272_v61 = vpack.c.bf16 %v4473_v28, %v4457_v36  ;;  %v4489_v39 = vld [vmem:[%s22743_s16 + $0x310] sm:$0xff] }
0x1122   : > { %v4353_v13 = vmul.f32 %v18233_v47, %v18233_v47  ;;  %v4429_v36 = vld [vmem:[%s22743_s16 + $0x130] sm:$0xff] }
0x1123   : > { %14273 = vmatpush1.bf16.msra.mxu1 %v14272_v61  ;;  %v4445_v28 = vld [vmem:[%s22743_s16 + $0x1b0] sm:$0xff]  ;;  %v4460_v61 = vld [vmem:[%s22743_s16 + $0x228] sm:$0xff] }
0x1124   : > { %v4356_v18 = vsel %vm1079_vm0, %v4353_v13, 0.0  ;;  %v4505_v13 = vld [vmem:[%s22743_s16 + $0x390] sm:$0xff]  ;;  %v14300_v38 = vpack.c.bf16 %v4445_v28, %v4429_v36  ;;  %v14286_v34 = vpack.c.bf16 %v4476_v26, %v4460_v61  ;;  %v4431_v28 = vld [vmem:[%s22743_s16 + $0x140] sm:$0xff] }
0x1125   : > { %4357 = vadd.xlane.f32.xlu0 %v4356_v18  ;;  %v14276_v18 = vpack.c.bf16 %v4505_v13, %v4489_v39  ;;  %v4475_v13 = vld [vmem:[%s22743_s16 + $0x2a0] sm:$0xff]  ;;  %v4433_v26 = vld [vmem:[%s22743_s16 + $0x150] sm:$0xff] }
0x1126   : > { %v4343_v15 = vpop.xlane.xlu1 %4342  ;;  %v4447_v61 = vld [vmem:[%s22743_s16 + $0x1c0] sm:$0xff] }
0x1127   : > { %v4348_v31 = vmul.f32 0.015625, %v4343_v15 }
0x1129   : > { %v18238_v62 = vsub.f32 %v4336_v50, %v4348_v31  ;;  %v4490_v50 = vld [vmem:[%s22743_s16 + $0x318] sm:$0xff] }
0x112a   : > { %v14274_v53 = vpack.c.bf16 %v4506_v4, %v4490_v50  ;;  %v4478_v50 = vld [vmem:[%s22743_s16 + $0x2b8] sm:$0xff]  ;;  %v14284_v4 = vpack.c.bf16 %v4443_v51, %v4427_v9  ;;  %v4401_v9 = vld [vmem:[%s22743_s16 + $0x50] sm:$0xff] }
0x112b   : > { %v4354_v20 = vmul.f32 %v18238_v62, %v18238_v62  ;;  %v14302_v39 = vpack.c.bf16 %v4478_v50, %v4462_v1  ;;  %v4434_v51 = vld [vmem:[%s22743_s16 + $0x158] sm:$0xff]  ;;  %v4449_v1 = vld [vmem:[%s22743_s16 + $0x1d0] sm:$0xff] }
0x112c   : > { %14275 = vmatprep.subr.bf16.mxu1 %v14274_v53 }
0x112d   : > { %v4359_v40 = vsel %vm1079_vm0, %v4354_v20, 0.0  ;;  %14277 = vmatpush1.bf16.msra.mxu1 %v14276_v18  ;;  %v4461_v18 = vld [vmem:[%s22743_s16 + $0x230] sm:$0xff] }
0x112e   : > { %4360 = vadd.xlane.f32.xlu1 %v4359_v40  ;;  %14295 = vmatprep.subr.bf16.mxu1 %v14294_v37 }
0x1152   : > { %v4346_v15 = vpop.xlane.xlu0 %4345 }
0x1153   : > { %v4349_v31 = vmul.f32 0.015625, %v4346_v15  ;;  %v4477_v15 = vld [vmem:[%s22743_s16 + $0x2b0] sm:$0xff] }
0x1154   : > { %v14304_v8 = vpack.c.bf16 %v4477_v15, %v4461_v18  ;;  %v4479_v18 = vld [vmem:[%s22743_s16 + $0x2c0] sm:$0xff]  ;;  %v4465_v15 = vld [vmem:[%s22743_s16 + $0x250] sm:$0xff] }
0x1155   : > { %v18340_v20 = vsub.f32 %v18229_v43, %v4349_v31  ;;  %v14278_v43 = vpack.c.bf16 %v4412_v52, %v4396_v60  ;;  %v4510_v60 = vld [vmem:[%s22743_s16 + $0x3b8] sm:$0xff]  ;;  %v14288_v52 = vpack.c.bf16 %v4475_v13, %v4459_v59  ;;  %v4463_v13 = vld [vmem:[%s22743_s16 + $0x240] sm:$0xff] }
0x1156   : > { %v4466_v59 = vld [vmem:[%s22743_s16 + $0x258] sm:$0xff] }
0x1157   : > { %v4355_v40 = vmul.f32 %v18340_v20, %v18340_v20  ;;  %14279 = vmatprep.subr.bf16.mxu0 %v14278_v43  ;;  %v4491_v43 = vld [vmem:[%s22743_s16 + $0x320] sm:$0xff] }
0x1158   : > { %v14292_v11 = vpack.c.bf16 %v4507_v19, %v4491_v43  ;;  %v14320_v43 = vpack.c.bf16 %v4479_v18, %v4463_v13  ;;  %v4500_v13 = vld [vmem:[%s22743_s16 + $0x368] sm:$0xff] }
0x1159   : > { %v4362_v54 = vsel %vm1079_vm0, %v4355_v40, 0.0  ;;  %v4508_v40 = vld [vmem:[%s22743_s16 + $0x3a8] sm:$0xff] }
0x115a   : > { %4363 = vadd.xlane.f32.xlu0 %v4362_v54  ;;  %v4494_v54 = vld [vmem:[%s22743_s16 + $0x338] sm:$0xff] }
0x11b2   : > { %v4358_v49 = vpop.xlane.xlu0 %4357 }
0x11b3   : > { %v4365_v63 = vmul.f32 0.015625, %v4358_v49  ;;  %v4493_v49 = vld [vmem:[%s22743_s16 + $0x330] sm:$0xff] }
0x11b5   : > { %v4368_v21 = vadd.f32 1e-05, %v4365_v63  ;;  %v4509_v63 = vld [vmem:[%s22743_s16 + $0x3b0] sm:$0xff] }
0x11b7   : > { %16343 = vrsqrt.f32 %v4368_v21  ;;  %v4400_v21 = vld [vmem:[%s22743_s16 + $0x48] sm:$0xff] }
0x11bb   : > { %v4361_v45 = vpop.xlane.xlu1 %4360 }
0x11bc   : > { %v4366_v17 = vmul.f32 0.015625, %v4361_v45 }
0x11be   : > { %v4369_v3 = vadd.f32 1e-05, %v4366_v17  ;;  %v14306_v17 = vpack.c.bf16 %v4510_v60, %v4494_v54  ;;  %v4512_v60 = vld [vmem:[%s22743_s16 + $0x3c8] sm:$0xff] }
0x11c0   : > { %16345 = vrsqrt.f32 %v4369_v3  ;;  %v4416_v3 = vld [vmem:[%s22743_s16 + $0xc8] sm:$0xff] }
0x11c1   : > { %v16344_v46 = vpop.eup %16343  ;;  %v14310_v5 = vpack.c.bf16 %v4416_v3, %v4400_v21  ;;  %v4513_v3 = vld [vmem:[%s22743_s16 + $0x3d0] sm:$0xff] }
0x11c2   : > { %v4374_v10 = vmul.f32 %v16344_v46, %v18233_v47  ;;  %v4428_v47 = vld [vmem:[%s22743_s16 + $0x128] sm:$0xff]  ;;  %v4418_v46 = vld [vmem:[%s22743_s16 + $0xd8] sm:$0xff] }
0x11c3   : > { %v14282_v27 = vpack.c.bf16 %v4444_v22, %v4428_v47  ;;  %v14326_v12 = vpack.c.bf16 %v4418_v46, %v4402_v0  ;;  %v4404_v0 = vld [vmem:[%s22743_s16 + $0x68] sm:$0xff] }
0x11c4   : > { %v4381_v42 = vmul.f32 %v18361_v58, %v4374_v10  ;;  %v14308_v10 = vpack.c.bf16 %v4509_v63, %v4493_v49  ;;  %v4495_v49 = vld [vmem:[%s22743_s16 + $0x340] sm:$0xff]  ;;  %v4420_v46 = vld [vmem:[%s22743_s16 + $0xe8] sm:$0xff] }
0x11c5   : > { %v4511_v63 = vld [vmem:[%s22743_s16 + $0x3c0] sm:$0xff] }
0x11c6   : > { %v18396_v24 = vadd.f32 %v18367_v44, %v4381_v42 }
0x11c8   : > { %11809 = vmatmul.mubr.msk.f32.vlgmr.msra.gmra.mrb[74].mxu0 %vm1079_vm0, %v18396_v24  ;;  %11812 = vmatmul.mubr.msk.f32.vlgmr.msra.gmra.mrb[66].mxu1 %vm1079_vm0, %v18396_v24 }
0x11c9   : > { %4683 = vmatprep.mubr.f32.mxu0 %v22738_v14  ;;  %4766 = vmatprep.mubr.f32.mxu1 %v22738_v14 }
0x11ca   : > { %v16346_v2 = vpop.eup %16345  ;;  %14281 = vmatpush1.bf16.msra.mxu0 %v14280_v55  ;;  %14297 = vmatpush1.bf16.msra.mxu1 %v14296_v16  ;;  %v4415_v16 = vld [vmem:[%s22743_s16 + $0xc0] sm:$0xff] }
0x11cb   : > { %v4375_v53 = vmul.f32 %v16346_v2, %v18238_v62  ;;  %14283 = vmatprep.subr.bf16.mxu0 %v14282_v27  ;;  %14299 = vmatprep.subr.bf16.mxu1 %v14298_v6  ;;  %v4492_v62 = vld [vmem:[%s22743_s16 + $0x328] sm:$0xff]  ;;  %v4450_v27 = vld [vmem:[%s22743_s16 + $0x1d8] sm:$0xff]  ;;  %v14312_v6 = vpack.c.bf16 %v4415_v16, %v4399_v25 }
0x11cc   : > { %v14290_v45 = vpack.c.bf16 %v4508_v40, %v4492_v62  ;;  %v14330_v2 = vpack.c.bf16 %v4450_v27, %v4434_v51  ;;  %v4481_v62 = vld [vmem:[%s22743_s16 + $0x2d0] sm:$0xff]  ;;  %v4436_v25 = vld [vmem:[%s22743_s16 + $0x168] sm:$0xff]  ;;  %v4435_v51 = vld [vmem:[%s22743_s16 + $0x160] sm:$0xff] }
0x11cd   : > { %v4382_v31 = vmul.f32 %v18361_v58, %v4375_v53  ;;  %v4482_v53 = vld [vmem:[%s22743_s16 + $0x2d8] sm:$0xff]  ;;  %v14336_v19 = vpack.c.bf16 %v4481_v62, %v4465_v15  ;;  %v4452_v16 = vld [vmem:[%s22743_s16 + $0x1e8] sm:$0xff]  ;;  %v4451_v27 = vld [vmem:[%s22743_s16 + $0x1e0] sm:$0xff] }
0x11ce   : > { %14285 = vmatpush1.bf16.msra.mxu0 %v14284_v4  ;;  %14301 = vmatpush1.bf16.msra.mxu1 %v14300_v38  ;;  %v4464_v4 = vld [vmem:[%s22743_s16 + $0x248] sm:$0xff]  ;;  %v14334_v54 = vpack.c.bf16 %v4482_v53, %v4466_v59  ;;  %v4467_v59 = vld [vmem:[%s22743_s16 + $0x260] sm:$0xff] }
0x11cf   : > { %v18461_v37 = vadd.f32 %v18367_v44, %v4382_v31  ;;  %14287 = vmatprep.subr.bf16.mxu0 %v14286_v34  ;;  %14303 = vmatprep.subr.bf16.mxu1 %v14302_v39  ;;  %v4480_v38 = vld [vmem:[%s22743_s16 + $0x2c8] sm:$0xff]  ;;  %v14316_v34 = vpack.c.bf16 %v4447_v61, %v4431_v28  ;;  %v14332_v39 = vpack.c.bf16 %v4449_v1, %v4433_v26  ;;  %v4483_v53 = vld [vmem:[%s22743_s16 + $0x2e0] sm:$0xff] }
0x11d0   : > { %v4496_v31 = vld [vmem:[%s22743_s16 + $0x348] sm:$0xff]  ;;  %v14318_v40 = vpack.c.bf16 %v4480_v38, %v4464_v4  ;;  %v14346_v28 = vpack.c.bf16 %v4452_v16, %v4436_v25  ;;  %v14348_v4 = vpack.c.bf16 %v4451_v27, %v4435_v51  ;;  %v5359_v51 = vld [vmem:[%s22620_s18 + $0x110] sm:$0xff]  ;;  %v5360_v27 = vld [vmem:[%s22620_s18 + $0x118] sm:$0xff] }
0x11d1   : > { %11810 = vmatmul.mubr.msk.f32.gmra.mrb[76].mxu0 %vm1079_vm0, %v18461_v37  ;;  %11813 = vmatmul.mubr.msk.f32.gmra.mrb[68].mxu1 %vm1079_vm0, %v18461_v37  ;;  %v14322_v21 = vpack.c.bf16 %v4512_v60, %v4496_v31  ;;  %v4468_v26 = vld [vmem:[%s22743_s16 + $0x268] sm:$0xff]  ;;  %v4502_v31 = vld [vmem:[%s22743_s16 + $0x378] sm:$0xff] }
0x11d2   : > { %14289 = vmatpush1.bf16.msra.mxu0 %v14288_v52  ;;  %14305 = vmatpush1.bf16.msra.mxu1 %v14304_v8  ;;  %v4498_v52 = vld [vmem:[%s22743_s16 + $0x358] sm:$0xff]  ;;  %v4484_v1 = vld [vmem:[%s22743_s16 + $0x2e8] sm:$0xff] }
0x11d3   : > { %4689 = vmatprep.mubr.f32.mxu0 %v22738_v14  ;;  %4772 = vmatprep.mubr.f32.mxu1 %v22738_v14  ;;  %v4514_v8 = vld [vmem:[%s22743_s16 + $0x3d8] sm:$0xff]  ;;  %v14350_v18 = vpack.c.bf16 %v4484_v1, %v4468_v26  ;;  %v4516_v62 = vld [vmem:[%s22743_s16 + $0x3e8] sm:$0xff]  ;;  %v14412_v1 = vpack.c.bf16 %v5360_v27, %v5359_v51  ;;  %v5385_v51 = vld [vmem:[%s22620_s18 + $0x1e0] sm:$0xff] }
0x11d4   : > { %14291 = vmatprep.subr.bf16.mxu0 %v14290_v45  ;;  %14307 = vmatprep.subr.bf16.mxu1 %v14306_v17  ;;  %v14338_v45 = vpack.c.bf16 %v4514_v8, %v4498_v52  ;;  %v4497_v17 = vld [vmem:[%s22743_s16 + $0x350] sm:$0xff]  ;;  %v4499_v52 = vld [vmem:[%s22743_s16 + $0x360] sm:$0xff]  ;;  %v5386_v27 = vld [vmem:[%s22620_s18 + $0x1e8] sm:$0xff] }
0x11d5   : > { %v4515_v8 = vld [vmem:[%s22743_s16 + $0x3e0] sm:$0xff] }
0x11d6   : > { %14293 = vmatpush1.bf16.msra.mxu0 %v14292_v11  ;;  %14309 = vmatpush1.bf16.msra.mxu1 %v14308_v10  ;;  %v4406_v11 = vld [vmem:[%s22743_s16 + $0x78] sm:$0xff] }
0x11d7   : > { %14311 = vmatprep.subr.bf16.mxu0 %v14310_v5  ;;  %14327 = vmatprep.subr.bf16.mxu1 %v14326_v12  ;;  %v4422_v10 = vld [vmem:[%s22743_s16 + $0xf8] sm:$0xff]  ;;  %v14324_v5 = vpack.c.bf16 %v4511_v63, %v4495_v49  ;;  %v14340_v12 = vpack.c.bf16 %v4513_v3, %v4497_v17  ;;  %v4501_v49 = vld [vmem:[%s22743_s16 + $0x370] sm:$0xff]  ;;  %v5373_v17 = vld [vmem:[%s22620_s18 + $0x180] sm:$0xff] }
0x11d8   : > { %v4517_v63 = vld [vmem:[%s22743_s16 + $0x3f0] sm:$0xff]  ;;  %v5374_v3 = vld [vmem:[%s22620_s18 + $0x188] sm:$0xff] }
0x11e7   : > { %v4364_v33 = vpop.xlane.xlu0 %4363 }
0x11e8   : > { %v4367_v41 = vmul.f32 0.015625, %v4364_v33  ;;  %v4403_v33 = vld [vmem:[%s22743_s16 + $0x60] sm:$0xff] }
0x11ea   : > { %v4370_v47 = vadd.f32 1e-05, %v4367_v41  ;;  %v14342_v41 = vpack.c.bf16 %v4420_v46, %v4404_v0  ;;  %v14356_v0 = vpack.c.bf16 %v4515_v8, %v4499_v52  ;;  %v14372_v46 = vpack.c.bf16 %v4517_v63, %v4501_v49  ;;  %v5363_v52 = vld [vmem:[%s22620_s18 + $0x130] sm:$0xff]  ;;  %v5364_v8 = vld [vmem:[%s22620_s18 + $0x138] sm:$0xff]  ;;  %v5381_v49 = vld [vmem:[%s22620_s18 + $0x1c0] sm:$0xff] }
0x11eb   : > { %v5382_v63 = vld [vmem:[%s22620_s18 + $0x1c8] sm:$0xff] }
0x11ec   : > { %16347 = vrsqrt.f32 %v4370_v47  ;;  %v14358_v47 = vpack.c.bf16 %v4422_v10, %v4406_v11  ;;  %v14406_v10 = vpack.c.bf16 %v5374_v3, %v5373_v17  ;;  %v5333_v17 = vld [vmem:[%s22620_s18 + $0x40] sm:$0xff]  ;;  %v5334_v3 = vld [vmem:[%s22620_s18 + $0x48] sm:$0xff] }
0x11f6   : > { %v16348_v42 = vpop.eup %16347 }
0x11f7   : > { %v4376_v22 = vmul.f32 %v16348_v42, %v18340_v20  ;;  %v4417_v20 = vld [vmem:[%s22743_s16 + $0xd0] sm:$0xff]  ;;  %v4419_v42 = vld [vmem:[%s22743_s16 + $0xe0] sm:$0xff] }
0x11f8   : > { %v14328_v36 = vpack.c.bf16 %v4417_v20, %v4401_v9  ;;  %v4438_v9 = vld [vmem:[%s22743_s16 + $0x178] sm:$0xff] }
0x11f9   : > { %v4383_v7 = vmul.f32 %v18361_v58, %v4376_v22  ;;  %v4432_v58 = vld [vmem:[%s22743_s16 + $0x148] sm:$0xff]  ;;  %v4405_v22 = vld [vmem:[%s22743_s16 + $0x70] sm:$0xff]  ;;  %v4454_v20 = vld [vmem:[%s22743_s16 + $0x1f8] sm:$0xff] }
0x11fa   : > { %v14362_v61 = vpack.c.bf16 %v4454_v20, %v4438_v9  ;;  %v5327_v9 = vld [vmem:[%s22620_s18 + $0x10] sm:$0xff]  ;;  %v5328_v20 = vld [vmem:[%s22620_s18 + $0x18] sm:$0xff] }
0x11fb   : > { %v18493_v55 = vadd.f32 %v18367_v44, %v4383_v7  ;;  %v4448_v44 = vld [vmem:[%s22743_s16 + $0x1c8] sm:$0xff]  ;;  %v4421_v7 = vld [vmem:[%s22743_s16 + $0xf0] sm:$0xff]  ;;  %v14380_v26 = vpack.c.bf16 %v5328_v20, %v5327_v9  ;;  %v5368_v20 = vld [vmem:[%s22620_s18 + $0x158] sm:$0xff] }
0x11fc   : > { %v14314_v50 = vpack.c.bf16 %v4448_v44, %v4432_v58  ;;  %v14344_v58 = vpack.c.bf16 %v4419_v42, %v4403_v33  ;;  %v14360_v44 = vpack.c.bf16 %v4421_v7, %v4405_v22  ;;  %v5357_v33 = vld [vmem:[%s22620_s18 + $0x100] sm:$0xff]  ;;  %v5344_v42 = vld [vmem:[%s22620_s18 + $0x98] sm:$0xff]  ;;  %v5375_v22 = vld [vmem:[%s22620_s18 + $0x190] sm:$0xff] }
0x11fd   : > { %11811 = vmatmul.mubr.msk.f32.gmra.mrb[78].mxu0 %vm1079_vm0, %v18493_v55  ;;  %11814 = vmatmul.mubr.msk.f32.gmra.mrb[70].mxu1 %vm1079_vm0, %v18493_v55  ;;  %v5376_v7 = vld [vmem:[%s22620_s18 + $0x198] sm:$0xff]  ;;  %v5367_v9 = vld [vmem:[%s22620_s18 + $0x150] sm:$0xff] }
0x11fe   : > { %4843 = vmatprep.mubr.f32.mxu0 %v22738_v14  ;;  %4926 = vmatprep.mubr.f32.mxu1 %v22738_v14 }
0x1201   : > { %11815 = vmatmul.mubr.msk.f32.vlgmr.msra.gmra.mrb[80].mxu0 %vm1079_vm0, %v18396_v24  ;;  %11818 = vmatmul.mubr.msk.f32.vlgmr.msra.gmra.mrb[72].mxu1 %vm1079_vm0, %v18396_v24 }
0x1202   : > { %14313 = vmatpush1.bf16.msra.mxu0 %v14312_v6  ;;  %14329 = vmatpush1.bf16.msra.mxu1 %v14328_v36  ;;  %v4437_v6 = vld [vmem:[%s22743_s16 + $0x170] sm:$0xff] }
0x1203   : > { %4849 = vmatprep.mubr.f32.mxu0 %v22738_v14  ;;  %4932 = vmatprep.mubr.f32.mxu1 %v22738_v14  ;;  %v4453_v36 = vld [vmem:[%s22743_s16 + $0x1f0] sm:$0xff] }
0x1204   : > { %14315 = vmatprep.subr.bf16.mxu0 %v14314_v50  ;;  %14331 = vmatprep.subr.bf16.mxu1 %v14330_v2  ;;  %v4470_v50 = vld [vmem:[%s22743_s16 + $0x278] sm:$0xff]  ;;  %v14364_v38 = vpack.c.bf16 %v4453_v36, %v4437_v6  ;;  %v5345_v6 = vld [vmem:[%s22620_s18 + $0xa0] sm:$0xff]  ;;  %v5346_v36 = vld [vmem:[%s22620_s18 + $0xa8] sm:$0xff] }
0x1205   : > { %11816 = vmatmul.mubr.msk.f32.gmra.mrb[82].mxu0 %vm1079_vm0, %v18461_v37  ;;  %11819 = vmatmul.mubr.msk.f32.gmra.mrb[74].mxu1 %vm1079_vm0, %v18461_v37  ;;  %v4486_v2 = vld [vmem:[%s22743_s16 + $0x2f8] sm:$0xff] }
0x1206   : > { %14317 = vmatpush1.bf16.msra.mxu0 %v14316_v34  ;;  %14333 = vmatpush1.bf16.msra.mxu1 %v14332_v39  ;;  %v4469_v34 = vld [vmem:[%s22743_s16 + $0x270] sm:$0xff]  ;;  %v14366_v15 = vpack.c.bf16 %v4486_v2, %v4470_v50  ;;  %v5329_v50 = vld [vmem:[%s22620_s18 + $0x20] sm:$0xff]  ;;  %v5330_v2 = vld [vmem:[%s22620_s18 + $0x28] sm:$0xff] }
0x1207   : > { %4855 = vmatprep.mubr.f32.mxu0 %v22738_v14  ;;  %4938 = vmatprep.mubr.f32.mxu1 %v22738_v14  ;;  %v4485_v39 = vld [vmem:[%s22743_s16 + $0x2f0] sm:$0xff] }
0x1208   : > { %14319 = vmatprep.subr.bf16.mxu0 %v14318_v40  ;;  %14335 = vmatprep.subr.bf16.mxu1 %v14334_v54  ;;  %v4518_v40 = vld [vmem:[%s22743_s16 + $0x3f8] sm:$0xff]  ;;  %v14352_v54 = vpack.c.bf16 %v4483_v53, %v4467_v59  ;;  %v14368_v60 = vpack.c.bf16 %v4485_v39, %v4469_v34  ;;  %v5361_v59 = vld [vmem:[%s22620_s18 + $0x120] sm:$0xff]  ;;  %v5362_v53 = vld [vmem:[%s22620_s18 + $0x128] sm:$0xff] }
0x1209   : > { %11817 = vmatmul.mubr.msk.f32.gmra.mrb[84].mxu0 %vm1079_vm0, %v18493_v55  ;;  %11820 = vmatmul.mubr.msk.f32.gmra.mrb[76].mxu1 %vm1079_vm0, %v18493_v55  ;;  %v5347_v34 = vld [vmem:[%s22620_s18 + $0xb0] sm:$0xff]  ;;  %v5348_v39 = vld [vmem:[%s22620_s18 + $0xb8] sm:$0xff] }
0x120a   : > { %14321 = vmatpush1.bf16.msra.mxu0 %v14320_v43  ;;  %14337 = vmatpush1.bf16.msra.mxu1 %v14336_v19  ;;  %v14354_v43 = vpack.c.bf16 %v4516_v62, %v4500_v13  ;;  %v14370_v19 = vpack.c.bf16 %v4518_v40, %v4502_v31  ;;  %v5379_v13 = vld [vmem:[%s22620_s18 + $0x1b0] sm:$0xff]  ;;  %v14416_v62 = vpack.c.bf16 %v5362_v53, %v5361_v59  ;;  %v5332_v40 = vld [vmem:[%s22620_s18 + $0x38] sm:$0xff] }
0x120b   : > { %14323 = vmatprep.subr.bf16.mxu0 %v14322_v21  ;;  %14339 = vmatprep.subr.bf16.mxu1 %v14338_v45  ;;  %v5341_v21 = vld [vmem:[%s22620_s18 + $0x80] sm:$0xff]  ;;  %v5342_v45 = vld [vmem:[%s22620_s18 + $0x88] sm:$0xff]  ;;  %v5331_v31 = vld [vmem:[%s22620_s18 + $0x30] sm:$0xff] }
0x120c   : > { %5009 = vmatprep.mubr.f32.mxu0 %v22738_v14  ;;  %5092 = vmatprep.mubr.f32.mxu1 %v22738_v14  ;;  %v14374_v11 = vpack.c.bf16 %v5342_v45, %v5341_v21  ;;  %v14388_v21 = vpack.c.bf16 %v5332_v40, %v5331_v31  ;;  %v14420_v45 = vpack.c.bf16 %v5364_v8, %v5363_v52  ;;  %v5387_v59 = vld [vmem:[%s22620_s18 + $0x1f0] sm:$0xff]  ;;  %v5388_v53 = vld [vmem:[%s22620_s18 + $0x1f8] sm:$0xff]  ;;  %v5437_v52 = vld [vmem:[%s22620_s18 + $0x380] sm:$0xff] }
0x120d   : > { %v5371_v31 = vld [vmem:[%s22620_s18 + $0x170] sm:$0xff]  ;;  %v5372_v40 = vld [vmem:[%s22620_s18 + $0x178] sm:$0xff]  ;;  %v5438_v8 = vld [vmem:[%s22620_s18 + $0x388] sm:$0xff] }
0x120e   : > { %14325 = vmatpush1.bf16.msra.mxu0 %v14324_v5  ;;  %14341 = vmatpush1.bf16.msra.mxu1 %v14340_v12  ;;  %v5325_v5 = vld [vmem:[%s22620_s18] sm:$0xff]  ;;  %v5326_v12 = vld [vmem:[%s22620_s18 + $0x8] sm:$0xff] }
0x120f   : > { %14343 = vmatprep.subr.bf16.mxu0 %v14342_v41  ;;  %14359 = vmatprep.subr.bf16.mxu1 %v14358_v47  ;;  %v5358_v41 = vld [vmem:[%s22620_s18 + $0x108] sm:$0xff]  ;;  %v5343_v47 = vld [vmem:[%s22620_s18 + $0x90] sm:$0xff]  ;;  %v14376_v25 = vpack.c.bf16 %v5326_v12, %v5325_v5  ;;  %v5352_v12 = vld [vmem:[%s22620_s18 + $0xd8] sm:$0xff] }
0x1210   : > { %v14408_v16 = vpack.c.bf16 %v5358_v41, %v5357_v33  ;;  %v5351_v5 = vld [vmem:[%s22620_s18 + $0xd0] sm:$0xff]  ;;  %v5384_v41 = vld [vmem:[%s22620_s18 + $0x1d8] sm:$0xff] }
0x1211   : > { %11821 = vmatmul.mubr.msk.f32.vlgmr.msra.gmra.mrb[86].mxu0 %vm1079_vm0, %v18396_v24  ;;  %11824 = vmatmul.mubr.msk.f32.vlgmr.msra.gmra.mrb[78].mxu1 %vm1079_vm0, %v18396_v24  ;;  %v5383_v33 = vld [vmem:[%s22620_s18 + $0x1d0] sm:$0xff] }
0x1212   : > { %14345 = vmatpush1.bf16.msra.mxu0 %v14344_v58  ;;  %14361 = vmatpush1.bf16.msra.mxu1 %v14360_v44  ;;  %v14378_v58 = vpack.c.bf16 %v5344_v42, %v5343_v47  ;;  %v14410_v44 = vpack.c.bf16 %v5376_v7, %v5375_v22  ;;  %v14392_v47 = vpack.c.bf16 %v5334_v3, %v5333_v17  ;;  %v5335_v22 = vld [vmem:[%s22620_s18 + $0x50] sm:$0xff]  ;;  %v5336_v7 = vld [vmem:[%s22620_s18 + $0x58] sm:$0xff]  ;;  %v18943_v17 = vsub.s32 3, %v16741_v29 }
0x1213   : > { %5015 = vmatprep.mubr.f32.mxu0 %v22738_v14  ;;  %5098 = vmatprep.mubr.f32.mxu1 %v22738_v14 }
0x1214   : > { %14347 = vmatprep.subr.bf16.mxu0 %v14346_v28  ;;  %14363 = vmatprep.subr.bf16.mxu1 %v14362_v61  ;;  %v5377_v28 = vld [vmem:[%s22620_s18 + $0x1a0] sm:$0xff]  ;;  %v5378_v61 = vld [vmem:[%s22620_s18 + $0x1a8] sm:$0xff] }
0x1215   : > { %11822 = vmatmul.mubr.msk.f32.gmra.mrb[88].mxu0 %vm1079_vm0, %v18461_v37  ;;  %11825 = vmatmul.mubr.msk.f32.gmra.mrb[80].mxu1 %vm1079_vm0, %v18461_v37 }
0x1216   : > { %14349 = vmatpush1.bf16.msra.mxu0 %v14348_v4  ;;  %14365 = vmatpush1.bf16.msra.mxu1 %v14364_v38  ;;  %v14382_v4 = vpack.c.bf16 %v5346_v36, %v5345_v6  ;;  %v14414_v38 = vpack.c.bf16 %v5378_v61, %v5377_v28  ;;  %v14396_v6 = vpack.c.bf16 %v5336_v7, %v5335_v22  ;;  %v5337_v28 = vld [vmem:[%s22620_s18 + $0x60] sm:$0xff]  ;;  %v5338_v61 = vld [vmem:[%s22620_s18 + $0x68] sm:$0xff] }
0x1217   : > { %5021 = vmatprep.mubr.f32.mxu0 %v22738_v14  ;;  %5104 = vmatprep.mubr.f32.mxu1 %v22738_v14  ;;  %v14428_v36 = vpack.c.bf16 %v5368_v20, %v5367_v9  ;;  %v5421_v7 = vld [vmem:[%s22620_s18 + $0x300] sm:$0xff] }
0x1218   : > { %14351 = vmatprep.subr.bf16.mxu0 %v14350_v18  ;;  %14367 = vmatprep.subr.bf16.mxu1 %v14366_v15  ;;  %v5380_v18 = vld [vmem:[%s22620_s18 + $0x1b8] sm:$0xff]  ;;  %v14384_v15 = vpack.c.bf16 %v5330_v2, %v5329_v50  ;;  %v5369_v50 = vld [vmem:[%s22620_s18 + $0x160] sm:$0xff]  ;;  %v5370_v2 = vld [vmem:[%s22620_s18 + $0x168] sm:$0xff] }
0x1219   : > { %11823 = vmatmul.mubr.msk.f32.gmra.mrb[90].mxu0 %vm1079_vm0, %v18493_v55  ;;  %11826 = vmatmul.mubr.msk.f32.gmra.mrb[82].mxu1 %vm1079_vm0, %v18493_v55 }
0x121a   : > { %14353 = vmatpush1.bf16.msra.mxu0 %v14352_v54  ;;  %14369 = vmatpush1.bf16.msra.mxu1 %v14368_v60  ;;  %v14386_v54 = vpack.c.bf16 %v5348_v39, %v5347_v34  ;;  %v14418_v60 = vpack.c.bf16 %v5380_v18, %v5379_v13  ;;  %v14400_v34 = vpack.c.bf16 %v5338_v61, %v5337_v28  ;;  %v5339_v13 = vld [vmem:[%s22620_s18 + $0x70] sm:$0xff]  ;;  %v5340_v18 = vld [vmem:[%s22620_s18 + $0x78] sm:$0xff] }
0x121b   : > { %14355 = vmatprep.subr.bf16.mxu0 %v14354_v43  ;;  %14371 = vmatprep.subr.bf16.mxu1 %v14370_v19  ;;  %v5349_v43 = vld [vmem:[%s22620_s18 + $0xc0] sm:$0xff]  ;;  %v5350_v19 = vld [vmem:[%s22620_s18 + $0xc8] sm:$0xff]  ;;  %v14432_v39 = vpack.c.bf16 %v5370_v2, %v5369_v50  ;;  %v5391_v61 = vld [vmem:[%s22620_s18 + $0x210] sm:$0xff] }
0x121c   : > { %5175 = vmatprep.mubr.f32.mxu0 %v22738_v14  ;;  %5258 = vmatprep.mubr.f32.mxu1 %v22738_v14 }
0x121e   : > { %14357 = vmatpush1.bf16.msra.mxu0 %v14356_v0  ;;  %14373 = vmatpush1.bf16.msra.mxu1 %v14372_v46  ;;  %v14390_v0 = vpack.c.bf16 %v5350_v19, %v5349_v43  ;;  %v14422_v46 = vpack.c.bf16 %v5382_v63, %v5381_v49  ;;  %v14404_v43 = vpack.c.bf16 %v5340_v18, %v5339_v13  ;;  %v5442_v13 = vld [vmem:[%s22620_s18 + $0x3a8] sm:$0xff] }
0x121f   : > { %14375 = vmatprep.subr.bf16.mxu0 %v14374_v11  ;;  %14407 = vmatprep.subr.bf16.mxu1 %v14406_v10  ;;  %v5365_v11 = vld [vmem:[%s22620_s18 + $0x140] sm:$0xff]  ;;  %v5366_v10 = vld [vmem:[%s22620_s18 + $0x148] sm:$0xff]  ;;  %v14436_v19 = vpack.c.bf16 %v5372_v40, %v5371_v31  ;;  %v14470_v63 = vpack.c.bf16 %v5438_v8, %v5437_v52 }
0x1220   : > { %v14424_v42 = vpack.c.bf16 %v5366_v10, %v5365_v11  ;;  %v5394_v52 = vld [vmem:[%s22620_s18 + $0x228] sm:$0xff] }
0x1221   : > { %11827 = vmatmul.mubr.msk.f32.vlgmr.msra.gmra.mrb[92].mxu0 %vm1079_vm0, %v18396_v24  ;;  %11830 = vmatmul.mubr.msk.f32.vlgmr.msra.gmra.mrb[84].mxu1 %vm1079_vm0, %v18396_v24 }
0x1222   : > { %5181 = vmatprep.mubr.f32.mxu0 %v22738_v14  ;;  %5264 = vmatprep.mubr.f32.mxu1 %v22738_v14 }
0x1223   : > { %14377 = vmatpush3.bf16.msra.mxu0 %v14376_v25  ;;  %14409 = vmatpush3.bf16.msra.mxu1 %v14408_v16  ;;  %v14394_v25 = vpack.c.bf16 %v5352_v12, %v5351_v5  ;;  %v14426_v16 = vpack.c.bf16 %v5384_v41, %v5383_v33  ;;  %v5389_v12 = vld [vmem:[%s22620_s18 + $0x200] sm:$0xff]  ;;  %v5390_v33 = vld [vmem:[%s22620_s18 + $0x208] sm:$0xff] }
0x1224   : > { %14379 = vmatprep.subr.bf16.mxu0 %v14378_v58  ;;  %14411 = vmatprep.subr.bf16.mxu1 %v14410_v44  ;;  %v5353_v58 = vld [vmem:[%s22620_s18 + $0xe0] sm:$0xff]  ;;  %v5354_v44 = vld [vmem:[%s22620_s18 + $0xe8] sm:$0xff] }
0x1225   : > { %11828 = vmatmul.mubr.msk.f32.gmra.mrb[94].mxu0 %vm1079_vm0, %v18461_v37  ;;  %11831 = vmatmul.mubr.msk.f32.gmra.mrb[86].mxu1 %vm1079_vm0, %v18461_v37 }
0x1226   : > { %5187 = vmatprep.mubr.f32.mxu0 %v22738_v14  ;;  %5270 = vmatprep.mubr.f32.mxu1 %v22738_v14 }
0x1227   : > { %14381 = vmatpush3.bf16.msra.mxu0 %v14380_v26  ;;  %14413 = vmatpush3.bf16.msra.mxu1 %v14412_v1  ;;  %v14398_v26 = vpack.c.bf16 %v5354_v44, %v5353_v58  ;;  %v14430_v1 = vpack.c.bf16 %v5386_v27, %v5385_v51  ;;  %v5408_v58 = vld [vmem:[%s22620_s18 + $0x298] sm:$0xff]  ;;  %v5439_v44 = vld [vmem:[%s22620_s18 + $0x390] sm:$0xff] }
0x1228   : > { %14383 = vmatprep.subr.bf16.mxu0 %v14382_v4  ;;  %14415 = vmatprep.subr.bf16.mxu1 %v14414_v38  ;;  %v5355_v4 = vld [vmem:[%s22620_s18 + $0xf0] sm:$0xff]  ;;  %v5356_v38 = vld [vmem:[%s22620_s18 + $0xf8] sm:$0xff] }
0x1229   : > { %11829 = vmatmul.mubr.msk.f32.gmra.mrb[96].mxu0 %vm1079_vm0, %v18493_v55  ;;  %11832 = vmatmul.mubr.msk.f32.gmra.mrb[88].mxu1 %vm1079_vm0, %v18493_v55  ;;  %v5440_v51 = vld [vmem:[%s22620_s18 + $0x398] sm:$0xff] }
0x122b   : > { %14385 = vmatpush3.bf16.msra.mxu0 %v14384_v15  ;;  %14417 = vmatpush3.bf16.msra.mxu1 %v14416_v62  ;;  %v14402_v15 = vpack.c.bf16 %v5356_v38, %v5355_v4  ;;  %v14434_v62 = vpack.c.bf16 %v5388_v53, %v5387_v59  ;;  %v14474_v4 = vpack.c.bf16 %v5440_v51, %v5439_v44  ;;  %v5423_v38 = vld [vmem:[%s22620_s18 + $0x310] sm:$0xff]  ;;  %v5424_v59 = vld [vmem:[%s22620_s18 + $0x318] sm:$0xff]  ;;  %v5409_v53 = vld [vmem:[%s22620_s18 + $0x2a0] sm:$0xff] }
0x122c   : > { %14387 = vmatprep.subr.bf16.mxu0 %v14386_v54  ;;  %14419 = vmatprep.subr.bf16.mxu1 %v14418_v60  ;;  %v5405_v54 = vld [vmem:[%s22620_s18 + $0x280] sm:$0xff]  ;;  %v5406_v60 = vld [vmem:[%s22620_s18 + $0x288] sm:$0xff] }
0x122d   : > { %v14438_v49 = vpack.c.bf16 %v5406_v60, %v5405_v54  ;;  %v5393_v60 = vld [vmem:[%s22620_s18 + $0x220] sm:$0xff] }
0x122f   : > { %14389 = vmatpush3.bf16.msra.mxu0 %v14388_v21  ;;  %14421 = vmatpush3.bf16.msra.mxu1 %v14420_v45  ;;  %v18935_v21 = vsub.s32 2, %v16741_v29  ;;  %v18940_v45 = vld [vmem:[%s22619_s17] ss:$2 sm:$0xff] }
0x1230   : > { %14391 = vmatprep.subr.bf16.mxu0 %v14390_v0  ;;  %14423 = vmatprep.subr.bf16.mxu1 %v14422_v46  ;;  %v18947_v3 = vrot.slane %v18940_v45, %v16744_v30  ;;  %v18955_v46 = vrot.slane %v18940_v45, %v16750_v32  ;;  %v18959_v11 = vrot.slane %v18940_v45, %v18943_v17 }
0x1231   : > { %v18951_v0 = vrot.slane %v18940_v45, %v18935_v21 }
0x1233   : > { %14393 = vmatpush3.bf16.msra.mxu0 %v14392_v47  ;;  %14425 = vmatpush3.bf16.msra.mxu1 %v14424_v42 }
0x1234   : > { %14395 = vmatprep.subr.bf16.mxu0 %v14394_v25  ;;  %14427 = vmatprep.subr.bf16.mxu1 %v14426_v16  ;;  %v5422_v25 = vld [vmem:[%s22620_s18 + $0x308] sm:$0xff]  ;;  %v5407_v16 = vld [vmem:[%s22620_s18 + $0x290] sm:$0xff] }
0x1235   : > { %v14472_v28 = vpack.c.bf16 %v5422_v25, %v5421_v7  ;;  %v14442_v2 = vpack.c.bf16 %v5408_v58, %v5407_v16  ;;  %v14448_v25 = vpack.c.bf16 %v5394_v52, %v5393_v60  ;;  %v5400_v60 = vld [vmem:[%s22620_s18 + $0x258] sm:$0xff] }
0x1237   : > { %14397 = vmatpush3.bf16.msra.mxu0 %v14396_v6  ;;  %14429 = vmatpush3.bf16.msra.mxu1 %v14428_v36  ;;  %v14440_v36 = vpack.c.bf16 %v5390_v33, %v5389_v12 }
0x1238   : > { %14399 = vmatprep.subr.bf16.mxu0 %v14398_v26  ;;  %14431 = vmatprep.subr.bf16.mxu1 %v14430_v1  ;;  %v5392_v26 = vld [vmem:[%s22620_s18 + $0x218] sm:$0xff] }
0x1239   : > { %v14444_v18 = vpack.c.bf16 %v5392_v26, %v5391_v61  ;;  %v5414_v61 = vld [vmem:[%s22620_s18 + $0x2c8] sm:$0xff]  ;;  %v5445_v26 = vld [vmem:[%s22620_s18 + $0x3c0] sm:$0xff] }
0x123b   : > { %14401 = vmatpush3.bf16.msra.mxu0 %v14400_v34  ;;  %14433 = vmatpush3.bf16.msra.mxu1 %v14432_v39  ;;  %v5410_v34 = vld [vmem:[%s22620_s18 + $0x2a8] sm:$0xff]  ;;  %v5441_v39 = vld [vmem:[%s22620_s18 + $0x3a0] sm:$0xff] }
0x123c   : > { %14403 = vmatprep.subr.bf16.mxu0 %v14402_v15  ;;  %14435 = vmatprep.subr.bf16.mxu1 %v14434_v62  ;;  %v14476_v15 = vpack.c.bf16 %v5424_v59, %v5423_v38  ;;  %v14446_v40 = vpack.c.bf16 %v5410_v34, %v5409_v53  ;;  %v14478_v54 = vpack.c.bf16 %v5442_v13, %v5441_v39  ;;  %v5398_v38 = vld [vmem:[%s22620_s18 + $0x248] sm:$0xff]  ;;  %v5429_v34 = vld [vmem:[%s22620_s18 + $0x340] sm:$0xff]  ;;  %v5415_v13 = vld [vmem:[%s22620_s18 + $0x2d0] sm:$0xff] }
0x123d   : > { %v5430_v39 = vld [vmem:[%s22620_s18 + $0x348] sm:$0xff] }
0x123f   : > { %14405 = vmatpush3.bf16.msra.mxu0 %v14404_v43  ;;  %14437 = vmatpush3.bf16.msra.mxu1 %v14436_v19 }
0x1240   : > { %14439 = vmatprep.subr.bf16.mxu0 %v14438_v49  ;;  %14471 = vmatprep.subr.bf16.mxu1 %v14470_v63  ;;  %v5425_v63 = vld [vmem:[%s22620_s18 + $0x320] sm:$0xff] }
0x129b   : > { %v4679_v10 = vpop.f32.mrb[74].mxu0  ;;  %v4762_v5 = vpop.f32.mrb[66].mxu1 }
0x129c   : > { %v4680_v41 = vadd.f32 %v4679_v10, %v18947_v3  ;;  %v4763_v47 = vadd.f32 %v4762_v5, %v18951_v0  ;;  %v4681_v42 = vpop.f32.mrb[75].mxu0  ;;  %v4764_v22 = vpop.f32.mrb[67].mxu1  ;;  %v5426_v10 = vld [vmem:[%s22620_s18 + $0x328] sm:$0xff]  ;;  %v5411_v5 = vld [vmem:[%s22620_s18 + $0x2b0] sm:$0xff] }
0x129d   : > { %v4682_v9 = vadd.f32 %v4681_v42, %v18955_v46  ;;  %v4765_v20 = vadd.f32 %v4764_v22, %v18959_v11  ;;  %v5444_v42 = vld [vmem:[%s22620_s18 + $0x3b8] sm:$0xff]  ;;  %v14480_v16 = vpack.c.bf16 %v5426_v10, %v5425_v63  ;;  %v5418_v63 = vld [vmem:[%s22620_s18 + $0x2e8] sm:$0xff]  ;;  %v5449_v10 = vld [vmem:[%s22620_s18 + $0x3e0] sm:$0xff] }
0x129e   : > { %v5277_v1 = vmax.f32 %v4680_v41, 0.0  ;;  %v5279_v50 = vmax.f32 %v4763_v47, 0.0  ;;  %v5412_v41 = vld [vmem:[%s22620_s18 + $0x2b8] sm:$0xff]  ;;  %v5443_v47 = vld [vmem:[%s22620_s18 + $0x3b0] sm:$0xff] }
0x129f   : > { %v5278_v27 = vmax.f32 %v4682_v9, 0.0  ;;  %v5280_v6 = vmax.f32 %v4765_v20, 0.0  ;;  %v5395_v9 = vld [vmem:[%s22620_s18 + $0x230] sm:$0xff]  ;;  %v5396_v20 = vld [vmem:[%s22620_s18 + $0x238] sm:$0xff]  ;;  %v14450_v51 = vpack.c.bf16 %v5412_v41, %v5411_v5  ;;  %v5450_v5 = vld [vmem:[%s22620_s18 + $0x3e8] sm:$0xff] }
0x12a0   : > { %v5401_v41 = vld [vmem:[%s22620_s18 + $0x260] sm:$0xff] }
0x12a1   : > { %5650 = vmatprep.mubr.f32.mxu0 %v5278_v27  ;;  %5730 = vmatprep.mubr.f32.mxu1 %v5280_v6  ;;  %v14482_v27 = vpack.c.bf16 %v5444_v42, %v5443_v47  ;;  %v5427_v6 = vld [vmem:[%s22620_s18 + $0x330] sm:$0xff]  ;;  %v5402_v47 = vld [vmem:[%s22620_s18 + $0x268] sm:$0xff] }
0x12a2   : > { %5651 = vmatmul.mubr.f32.vlgmr.msra.gmra.mrb[98].mxu0 %v5277_v1  ;;  %5731 = vmatmul.mubr.f32.vlgmr.msra.gmra.mrb[90].mxu1 %v5279_v50  ;;  %v5446_v1 = vld [vmem:[%s22620_s18 + $0x3c8] sm:$0xff]  ;;  %v14452_v50 = vpack.c.bf16 %v5396_v20, %v5395_v9  ;;  %v5420_v9 = vld [vmem:[%s22620_s18 + $0x2f8] sm:$0xff]  ;;  %v5451_v20 = vld [vmem:[%s22620_s18 + $0x3f0] sm:$0xff] }
0x12a3   : > { %14441 = vmatpush3.bf16.msra.mxu0 %v14440_v36  ;;  %14473 = vmatpush3.bf16.msra.mxu1 %v14472_v28  ;;  %v5428_v36 = vld [vmem:[%s22620_s18 + $0x338] sm:$0xff]  ;;  %v5413_v28 = vld [vmem:[%s22620_s18 + $0x2c0] sm:$0xff]  ;;  %v14486_v53 = vpack.c.bf16 %v5446_v1, %v5445_v26 }
0x12a4   : > { %v4685_v62 = vpop.f32.mrb[76].mxu0  ;;  %v4768_v31 = vpop.f32.mrb[68].mxu1  ;;  %14443 = vmatprep.subr.bf16.mxu0 %v14442_v2  ;;  %14475 = vmatprep.subr.bf16.mxu1 %v14474_v4  ;;  %v14484_v2 = vpack.c.bf16 %v5428_v36, %v5427_v6  ;;  %v5397_v4 = vld [vmem:[%s22620_s18 + $0x240] sm:$0xff]  ;;  %v14454_v59 = vpack.c.bf16 %v5414_v61, %v5413_v28  ;;  %v5404_v6 = vld [vmem:[%s22620_s18 + $0x278] sm:$0xff]  ;;  %v5435_v61 = vld [vmem:[%s22620_s18 + $0x370] sm:$0xff] }
0x12a5   : > { %v4686_v8 = vadd.f32 %v4685_v62, %v18947_v3  ;;  %v4769_v43 = vadd.f32 %v4768_v31, %v18951_v0  ;;  %v4687_v19 = vpop.f32.mrb[77].mxu0  ;;  %v4770_v49 = vpop.f32.mrb[69].mxu1  ;;  %v5448_v62 = vld [vmem:[%s22620_s18 + $0x3d8] sm:$0xff]  ;;  %v14456_v31 = vpack.c.bf16 %v5398_v38, %v5397_v4  ;;  %v5469_v1 = vld [vmem:[%s22620_s18 + $0x480] sm:$0xff]  ;;  %v5502_v4 = vld [vmem:[%s22620_s18 + $0x588] sm:$0xff] }
0x12a6   : > { %v4688_v12 = vadd.f32 %v4687_v19, %v18955_v46  ;;  %v4771_v33 = vadd.f32 %v4770_v49, %v18959_v11  ;;  %v5432_v19 = vld [vmem:[%s22620_s18 + $0x358] sm:$0xff]  ;;  %v5417_v49 = vld [vmem:[%s22620_s18 + $0x2e0] sm:$0xff] }
0x12a7   : > { %14445 = vmatpush3.bf16.msra.mxu0 %v14444_v18  ;;  %14477 = vmatpush3.bf16.msra.mxu1 %v14476_v15  ;;  %v5293_v58 = vmax.f32 %v4686_v8, 0.0  ;;  %v5295_v44 = vmax.f32 %v4769_v43, 0.0  ;;  %v5416_v18 = vld [vmem:[%s22620_s18 + $0x2d8] sm:$0xff]  ;;  %v5447_v15 = vld [vmem:[%s22620_s18 + $0x3d0] sm:$0xff]  ;;  %v14462_v42 = vpack.c.bf16 %v5418_v63, %v5417_v49  ;;  %v5454_v63 = vld [vmem:[%s22620_s18 + $0x408] sm:$0xff] }
0x12a8   : > { %v5294_v22 = vmax.f32 %v4688_v12, 0.0  ;;  %v5296_v7 = vmax.f32 %v4771_v33, 0.0  ;;  %14447 = vmatprep.subr.bf16.mxu0 %v14446_v40  ;;  %14479 = vmatprep.subr.bf16.mxu1 %v14478_v54  ;;  %v14488_v40 = vpack.c.bf16 %v5430_v39, %v5429_v34  ;;  %v5399_v54 = vld [vmem:[%s22620_s18 + $0x250] sm:$0xff]  ;;  %v14458_v52 = vpack.c.bf16 %v5416_v18, %v5415_v13  ;;  %v5436_v26 = vld [vmem:[%s22620_s18 + $0x378] sm:$0xff] }
0x12a9   : > { %v14490_v8 = vpack.c.bf16 %v5448_v62, %v5447_v15  ;;  %v5431_v43 = vld [vmem:[%s22620_s18 + $0x350] sm:$0xff]  ;;  %v14460_v12 = vpack.c.bf16 %v5400_v60, %v5399_v54  ;;  %v19162_v39 = vsub.s32 4, %v16741_v29  ;;  %v19165_v13 = vsub.s32 6, %v16741_v29 }
0x12aa   : > { %5655 = vmatprep.mubr.f32.mxu0 %v5294_v22  ;;  %5735 = vmatprep.mubr.f32.mxu1 %v5296_v7  ;;  %v14492_v33 = vpack.c.bf16 %v5432_v19, %v5431_v43  ;;  %v14494_v22 = vpack.c.bf16 %v5450_v5, %v5449_v10  ;;  %v5433_v7 = vld [vmem:[%s22620_s18 + $0x360] sm:$0xff]  ;;  %v19168_v18 = vsub.s32 5, %v16741_v29  ;;  %v19171_v15 = vsub.s32 7, %v16741_v29 }
0x12ab   : > { %5656 = vmatmul.mubr.f32.gmra.mrb[100].mxu0 %v5293_v58  ;;  %5736 = vmatmul.mubr.f32.gmra.mrb[92].mxu1 %v5295_v44  ;;  %v5452_v58 = vld [vmem:[%s22620_s18 + $0x3f8] sm:$0xff]  ;;  %v14464_v44 = vpack.c.bf16 %v5402_v47, %v5401_v41  ;;  %v19181_v43 = vrot.slane %v18940_v45, %v19165_v13 }
0x12ac   : > { %14449 = vmatpush3.bf16.msra.mxu0 %v14448_v25  ;;  %14481 = vmatpush3.bf16.msra.mxu1 %v14480_v16  ;;  %v5434_v25 = vld [vmem:[%s22620_s18 + $0x368] sm:$0xff]  ;;  %v5419_v16 = vld [vmem:[%s22620_s18 + $0x2f0] sm:$0xff]  ;;  %v14498_v28 = vpack.c.bf16 %v5452_v58, %v5451_v20  ;;  %22744 = vst [vmem:[#allocation20_spill] sm:$0xff] %v19168_v18  ;;  %22745 = vst [vmem:[#allocation21_spill] sm:$0xff] %v19171_v15  ;;  %v19187_v49 = vrot.slane %v18940_v45, %v19168_v18 }
0x12ad   : > { %14451 = vmatprep.subr.bf16.mxu0 %v14450_v51  ;;  %14483 = vmatprep.subr.bf16.mxu1 %v14482_v27  ;;  %v14496_v51 = vpack.c.bf16 %v5434_v25, %v5433_v7  ;;  %v5403_v27 = vld [vmem:[%s22620_s18 + $0x270] sm:$0xff]  ;;  %v14466_v36 = vpack.c.bf16 %v5420_v9, %v5419_v16  ;;  %v5472_v41 = vld [vmem:[%s22620_s18 + $0x498] sm:$0xff] }
0x12ae   : > { %v14468_v38 = vpack.c.bf16 %v5404_v6, %v5403_v27  ;;  %v5503_v9 = vld [vmem:[%s22620_s18 + $0x590] sm:$0xff]  ;;  %v5504_v20 = vld [vmem:[%s22620_s18 + $0x598] sm:$0xff] }
0x12b0   : > { %14453 = vmatpush3.bf16.msra.mxu0 %v14452_v50  ;;  %14485 = vmatpush3.bf16.msra.mxu1 %v14484_v2  ;;  %v5470_v50 = vld [vmem:[%s22620_s18 + $0x488] sm:$0xff]  ;;  %v5501_v2 = vld [vmem:[%s22620_s18 + $0x580] sm:$0xff] }
0x12b1   : > { %14455 = vmatprep.subr.bf16.mxu0 %v14454_v59  ;;  %14487 = vmatprep.subr.bf16.mxu1 %v14486_v53  ;;  %v14500_v59 = vpack.c.bf16 %v5436_v26, %v5435_v61  ;;  %v14502_v53 = vpack.c.bf16 %v5470_v50, %v5469_v1  ;;  %v14534_v34 = vpack.c.bf16 %v5502_v4, %v5501_v2  ;;  %v5488_v61 = vld [vmem:[%s22620_s18 + $0x518] sm:$0xff] }
0x12b4   : > { %14457 = vmatpush3.bf16.msra.mxu0 %v14456_v31  ;;  %14489 = vmatpush3.bf16.msra.mxu1 %v14488_v40 }
0x12b5   : > { %14459 = vmatprep.subr.bf16.mxu0 %v14458_v52  ;;  %14491 = vmatprep.subr.bf16.mxu1 %v14490_v8  ;;  %v19177_v8 = vrot.slane %v18940_v45, %v19162_v39 }
0x12b8   : > { %14461 = vmatpush3.bf16.msra.mxu0 %v14460_v12  ;;  %14493 = vmatpush3.bf16.msra.mxu1 %v14492_v33  ;;  %v19208_v33 = vld [vmem:[%s22620_s18 + $0x490] sm:$0xff] }
0x12b9   : > { %14463 = vmatprep.subr.bf16.mxu0 %v14462_v42  ;;  %14495 = vmatprep.subr.bf16.mxu1 %v14494_v22  ;;  %v14506_v4 = vpack.c.bf16 %v5472_v41, %v19208_v33 }
0x12bc   : > { %14465 = vmatpush3.bf16.msra.mxu0 %v14464_v44  ;;  %14497 = vmatpush3.bf16.msra.mxu1 %v14496_v51  ;;  %v19226_v51 = vld [vmem:[%s22620_s18 + $0x410] sm:$0xff] }
0x12bd   : > { %14467 = vmatprep.subr.bf16.mxu0 %v14466_v36  ;;  %14499 = vmatprep.subr.bf16.mxu1 %v14498_v28  ;;  %v5456_v36 = vld [vmem:[%s22620_s18 + $0x418] sm:$0xff]  ;;  %v5487_v28 = vld [vmem:[%s22620_s18 + $0x510] sm:$0xff] }
0x12c0   : > { %14469 = vmatpush3.bf16.msra.mxu0 %v14468_v38  ;;  %14501 = vmatpush3.bf16.msra.mxu1 %v14500_v59  ;;  %v14538_v38 = vpack.c.bf16 %v5504_v20, %v5503_v9  ;;  %v5473_v59 = vld [vmem:[%s22620_s18 + $0x4a0] sm:$0xff] }
0x12c1   : > { %14503 = vmatprep.subr.bf16.mxu0 %v14502_v53  ;;  %14535 = vmatprep.subr.bf16.mxu1 %v14534_v34  ;;  %v5474_v53 = vld [vmem:[%s22620_s18 + $0x4a8] sm:$0xff] }
0x12c2   : > { %v14510_v33 = vpack.c.bf16 %v5474_v53, %v5473_v59  ;;  %v5491_v59 = vld [vmem:[%s22620_s18 + $0x530] sm:$0xff]  ;;  %v5492_v53 = vld [vmem:[%s22620_s18 + $0x538] sm:$0xff] }
0x12d0   : > { %v4691_v62 = vpop.f32.mrb[78].mxu0  ;;  %v4774_v31 = vpop.f32.mrb[70].mxu1 }
0x12d1   : > { %v4692_v40 = vadd.f32 %v4691_v62, %v18947_v3  ;;  %v4775_v54 = vadd.f32 %v4774_v31, %v18951_v0  ;;  %v4693_v60 = vpop.f32.mrb[79].mxu0  ;;  %v4776_v52 = vpop.f32.mrb[71].mxu1  ;;  %v19191_v3 = vrot.slane %v18940_v45, %v19171_v15  ;;  %v5453_v0 = vld [vmem:[%s22620_s18 + $0x400] sm:$0xff] }
0x12d2   : > { %v4694_v19 = vadd.f32 %v4693_v60, %v18955_v46  ;;  %v4777_v29 = vadd.f32 %v4776_v52, %v18959_v11  ;;  %v5485_v46 = vld [vmem:[%s22620_s18 + $0x500] sm:$0xff]  ;;  %v5486_v11 = vld [vmem:[%s22620_s18 + $0x508] sm:$0xff]  ;;  %v14504_v27 = vpack.c.bf16 %v5454_v63, %v5453_v0  ;;  %v14508_v63 = vpack.c.bf16 %v5456_v36, %v19226_v51 }
0x12d3   : > { %v5309_v47 = vmax.f32 %v4692_v40, 0.0  ;;  %v5311_v42 = vmax.f32 %v4775_v54, 0.0  ;;  %v14536_v6 = vpack.c.bf16 %v5486_v11, %v5485_v46  ;;  %v5505_v52 = vld [vmem:[%s22620_s18 + $0x5a0] sm:$0xff]  ;;  %v14540_v46 = vpack.c.bf16 %v5488_v61, %v5487_v28 }
0x12d4   : > { %v5310_v10 = vmax.f32 %v4694_v19, 0.0  ;;  %v5312_v5 = vmax.f32 %v4777_v29, 0.0  ;;  %v4845_v45 = vpop.f32.mrb[80].mxu0  ;;  %v4928_v12 = vpop.f32.mrb[72].mxu1  ;;  %v5506_v19 = vld [vmem:[%s22620_s18 + $0x5a8] sm:$0xff]  ;;  %v5457_v11 = vld [vmem:[%s22620_s18 + $0x420] sm:$0xff] }
0x12d5   : > { %v4846_v22 = vadd.f32 %v4845_v45, %v19177_v8  ;;  %v4929_v7 = vadd.f32 %v4928_v12, %v19181_v43  ;;  %v4847_v25 = vpop.f32.mrb[81].mxu0  ;;  %v4930_v16 = vpop.f32.mrb[73].mxu1  ;;  %v14542_v41 = vpack.c.bf16 %v5506_v19, %v5505_v52 }
0x12d6   : > { %v4848_v58 = vadd.f32 %v4847_v25, %v19187_v49  ;;  %v4931_v44 = vadd.f32 %v4930_v16, %v19191_v3  ;;  %5660 = vmatprep.mubr.f32.mxu0 %v5310_v10  ;;  %5740 = vmatprep.mubr.f32.mxu1 %v5312_v5 }
0x12d7   : > { %5661 = vmatmul.mubr.f32.gmra.mrb[102].mxu0 %v5309_v47  ;;  %5741 = vmatmul.mubr.f32.gmra.mrb[94].mxu1 %v5311_v42  ;;  %v5281_v34 = vmax.f32 %v4846_v22, 0.0  ;;  %v5283_v62 = vmax.f32 %v4929_v7, 0.0  ;;  %v5458_v47 = vld [vmem:[%s22620_s18 + $0x428] sm:$0xff]  ;;  %v5489_v42 = vld [vmem:[%s22620_s18 + $0x520] sm:$0xff] }
0x12d8   : > { %v5282_v26 = vmax.f32 %v4848_v58, 0.0  ;;  %v5284_v1 = vmax.f32 %v4931_v44, 0.0  ;;  %v4851_v50 = vpop.f32.mrb[82].mxu0  ;;  %v4934_v2 = vpop.f32.mrb[74].mxu1  ;;  %v5490_v58 = vld [vmem:[%s22620_s18 + $0x528] sm:$0xff]  ;;  %v5475_v44 = vld [vmem:[%s22620_s18 + $0x4b0] sm:$0xff]  ;;  %v14512_v28 = vpack.c.bf16 %v5458_v47, %v5457_v11 }
0x12d9   : > { %v4852_v31 = vadd.f32 %v4851_v50, %v19177_v8  ;;  %v4935_v40 = vadd.f32 %v4934_v2, %v19181_v43  ;;  %v4853_v54 = vpop.f32.mrb[83].mxu0  ;;  %v4936_v60 = vpop.f32.mrb[75].mxu1  ;;  %v14544_v61 = vpack.c.bf16 %v5490_v58, %v5489_v42 }
0x12da   : > { %v4854_v29 = vadd.f32 %v4853_v54, %v19187_v49  ;;  %v4937_v0 = vadd.f32 %v4936_v60, %v19191_v3  ;;  %5810 = vmatprep.mubr.f32.mxu0 %v5282_v26  ;;  %5890 = vmatprep.mubr.f32.mxu1 %v5284_v1  ;;  %v5459_v26 = vld [vmem:[%s22620_s18 + $0x430] sm:$0xff]  ;;  %v5460_v1 = vld [vmem:[%s22620_s18 + $0x438] sm:$0xff]  ;;  %v5509_v54 = vld [vmem:[%s22620_s18 + $0x5c0] sm:$0xff] }
0x12db   : > { %5811 = vmatmul.mubr.f32.vlgmr.msra.gmra.mrb[104].mxu0 %v5281_v34  ;;  %5891 = vmatmul.mubr.f32.vlgmr.msra.gmra.mrb[96].mxu1 %v5283_v62  ;;  %v5297_v22 = vmax.f32 %v4852_v31, 0.0  ;;  %v5299_v7 = vmax.f32 %v4935_v40, 0.0  ;;  %v5477_v34 = vld [vmem:[%s22620_s18 + $0x4c0] sm:$0xff]  ;;  %v5478_v40 = vld [vmem:[%s22620_s18 + $0x4c8] sm:$0xff] }
0x12dc   : > { %v5298_v10 = vmax.f32 %v4854_v29, 0.0  ;;  %v5300_v5 = vmax.f32 %v4937_v0, 0.0  ;;  %14505 = vmatpush3.bf16.msra.mxu0 %v14504_v27  ;;  %14537 = vmatpush3.bf16.msra.mxu1 %v14536_v6  ;;  %v4857_v45 = vpop.f32.mrb[84].mxu0  ;;  %v4940_v12 = vpop.f32.mrb[76].mxu1  ;;  %v5508_v6 = vld [vmem:[%s22620_s18 + $0x5b8] sm:$0xff]  ;;  %v5510_v60 = vld [vmem:[%s22620_s18 + $0x5c8] sm:$0xff]  ;;  %v14516_v29 = vpack.c.bf16 %v5460_v1, %v5459_v26  ;;  %v14548_v0 = vpack.c.bf16 %v5492_v53, %v5491_v59 }
0x12dd   : > { %v4858_v25 = vadd.f32 %v4857_v45, %v19177_v8  ;;  %v4941_v16 = vadd.f32 %v4940_v12, %v19181_v43  ;;  %v4859_v9 = vpop.f32.mrb[85].mxu0  ;;  %v4942_v20 = vpop.f32.mrb[77].mxu1  ;;  %14507 = vmatprep.subr.bf16.mxu0 %v14506_v4  ;;  %14539 = vmatprep.subr.bf16.mxu1 %v14538_v38  ;;  %v5476_v8 = vld [vmem:[%s22620_s18 + $0x4b8] sm:$0xff]  ;;  %v5507_v43 = vld [vmem:[%s22620_s18 + $0x5b0] sm:$0xff]  ;;  %v14550_v45 = vpack.c.bf16 %v5510_v60, %v5509_v54  ;;  %v5493_v12 = vld [vmem:[%s22620_s18 + $0x540] sm:$0xff] }
0x12de   : > { %v4860_v51 = vadd.f32 %v4859_v9, %v19187_v49  ;;  %v4943_v27 = vadd.f32 %v4942_v20, %v19191_v3  ;;  %5815 = vmatprep.mubr.f32.mxu0 %v5298_v10  ;;  %5895 = vmatprep.mubr.f32.mxu1 %v5300_v5  ;;  %v19286_v49 = vld [vmem:[%s22619_s17 + $0x10] ss:$2 sm:$0xff]  ;;  %v14514_v4 = vpack.c.bf16 %v5476_v8, %v5475_v44  ;;  %v5481_v26 = vld [vmem:[%s22620_s18 + $0x4e0] sm:$0xff]  ;;  %v5482_v1 = vld [vmem:[%s22620_s18 + $0x4e8] sm:$0xff] }
0x12df   : > { %5816 = vmatmul.mubr.f32.gmra.mrb[106].mxu0 %v5297_v22  ;;  %5896 = vmatmul.mubr.f32.gmra.mrb[98].mxu1 %v5299_v7  ;;  %v5313_v50 = vmax.f32 %v4858_v25, 0.0  ;;  %v5315_v2 = vmax.f32 %v4941_v16, 0.0  ;;  %v14546_v38 = vpack.c.bf16 %v5508_v6, %v5507_v43  ;;  %v19305_v62 = vrot.slane %v19286_v49, %v16750_v32  ;;  %v5480_v22 = vld [vmem:[%s22620_s18 + $0x4d8] sm:$0xff]  ;;  %v5511_v7 = vld [vmem:[%s22620_s18 + $0x5d0] sm:$0xff] }
0x12e0   : > { %v5314_v3 = vmax.f32 %v4860_v51, 0.0  ;;  %v5316_v36 = vmax.f32 %v4943_v27, 0.0  ;;  %14509 = vmatpush3.bf16.msra.mxu0 %v14508_v63  ;;  %14541 = vmatpush3.bf16.msra.mxu1 %v14540_v46  ;;  %v19309_v31 = vrot.slane %v19286_v49, %v18943_v17  ;;  %v5461_v63 = vld [vmem:[%s22620_s18 + $0x440] sm:$0xff]  ;;  %v5462_v46 = vld [vmem:[%s22620_s18 + $0x448] sm:$0xff]  ;;  %v14518_v5 = vpack.c.bf16 %v5478_v40, %v5477_v34  ;;  %v5512_v25 = vld [vmem:[%s22620_s18 + $0x5d8] sm:$0xff] }
0x12e1   : > { %14511 = vmatprep.subr.bf16.mxu0 %v14510_v33  ;;  %14543 = vmatprep.subr.bf16.mxu1 %v14542_v41  ;;  %v5494_v33 = vld [vmem:[%s22620_s18 + $0x548] sm:$0xff]  ;;  %v5479_v41 = vld [vmem:[%s22620_s18 + $0x4d0] sm:$0xff]  ;;  %v14520_v44 = vpack.c.bf16 %v5462_v46, %v5461_v63  ;;  %v5464_v8 = vld [vmem:[%s22620_s18 + $0x458] sm:$0xff] }
0x12e2   : > { %5820 = vmatprep.mubr.f32.mxu0 %v5314_v3  ;;  %5900 = vmatprep.mubr.f32.mxu1 %v5316_v36  ;;  %v14552_v51 = vpack.c.bf16 %v5494_v33, %v5493_v12  ;;  %v5463_v27 = vld [vmem:[%s22620_s18 + $0x450] sm:$0xff]  ;;  %v14522_v3 = vpack.c.bf16 %v5480_v22, %v5479_v41  ;;  %v14554_v36 = vpack.c.bf16 %v5512_v25, %v5511_v7  ;;  %v5465_v34 = vld [vmem:[%s22620_s18 + $0x460] sm:$0xff]  ;;  %v5466_v40 = vld [vmem:[%s22620_s18 + $0x468] sm:$0xff] }
0x12e3   : > { %5821 = vmatmul.mubr.f32.gmra.mrb[108].mxu0 %v5313_v50  ;;  %5901 = vmatmul.mubr.f32.gmra.mrb[100].mxu1 %v5315_v2  ;;  %v5513_v50 = vld [vmem:[%s22620_s18 + $0x5e0] sm:$0xff]  ;;  %v5514_v2 = vld [vmem:[%s22620_s18 + $0x5e8] sm:$0xff]  ;;  %v14524_v59 = vpack.c.bf16 %v5464_v8, %v5463_v27  ;;  %v19416_v12 = vrot.slane %v19286_v49, %v16744_v30  ;;  %v14528_v33 = vpack.c.bf16 %v5466_v40, %v5465_v34  ;;  %v5499_v22 = vld [vmem:[%s22620_s18 + $0x570] sm:$0xff] }
0x12e4   : > { %v19320_v52 = vpop.f32.mrb[86].mxu0  ;;  %v19322_v19 = vpop.f32.mrb[78].mxu1  ;;  %14513 = vmatpush3.bf16.msra.mxu0 %v14512_v28  ;;  %14545 = vmatpush3.bf16.msra.mxu1 %v14544_v61  ;;  %v5495_v28 = vld [vmem:[%s22620_s18 + $0x550] sm:$0xff]  ;;  %v5496_v61 = vld [vmem:[%s22620_s18 + $0x558] sm:$0xff]  ;;  %v5497_v63 = vld [vmem:[%s22620_s18 + $0x560] sm:$0xff]  ;;  %v19429_v7 = vrot.slane %v19286_v49, %v18935_v21 }
0x12e5   : > { %v5013_v11 = vpop.f32.mrb[87].mxu0  ;;  %v5096_v10 = vpop.f32.mrb[79].mxu1  ;;  %14515 = vmatprep.subr.bf16.mxu0 %v14514_v4  ;;  %14547 = vmatprep.subr.bf16.mxu1 %v14546_v38  ;;  %v14556_v53 = vpack.c.bf16 %v5496_v61, %v5495_v28  ;;  %v5498_v46 = vld [vmem:[%s22620_s18 + $0x568] sm:$0xff]  ;;  %v5565_v27 = vld [vmem:[%s22620_s18 + $0x780] sm:$0xff]  ;;  %v5012_v34 = vadd.f32 %v19320_v52, %v19416_v12  ;;  %v5568_v52 = vld [vmem:[%s22620_s18 + $0x798] sm:$0xff] }
0x12e6   : > { %v5014_v47 = vadd.f32 %v5013_v11, %v19305_v62  ;;  %v5097_v42 = vadd.f32 %v5096_v10, %v19309_v31  ;;  %v5483_v11 = vld [vmem:[%s22620_s18 + $0x4f0] sm:$0xff]  ;;  %v5484_v10 = vld [vmem:[%s22620_s18 + $0x4f8] sm:$0xff]  ;;  %v14560_v41 = vpack.c.bf16 %v5498_v46, %v5497_v63  ;;  %v5566_v8 = vld [vmem:[%s22620_s18 + $0x788] sm:$0xff]  ;;  %v5095_v40 = vadd.f32 %v19322_v19, %v19429_v7 }
0x12e7   : > { %v14530_v25 = vpack.c.bf16 %v5484_v10, %v5483_v11  ;;  %v14598_v63 = vpack.c.bf16 %v5566_v8, %v5565_v27  ;;  %v5536_v46 = vld [vmem:[%s22620_s18 + $0x698] sm:$0xff]  ;;  %v5567_v11 = vld [vmem:[%s22620_s18 + $0x790] sm:$0xff]  ;;  %v5285_v27 = vmax.f32 %v5012_v34, 0.0 }
0x12e8   : > { %v5286_v16 = vmax.f32 %v5014_v47, 0.0  ;;  %v5288_v9 = vmax.f32 %v5097_v42, 0.0  ;;  %v19350_v20 = vpop.f32.mrb[88].mxu0  ;;  %v19352_v58 = vpop.f32.mrb[80].mxu1  ;;  %14517 = vmatpush3.bf16.msra.mxu0 %v14516_v29  ;;  %14549 = vmatpush3.bf16.msra.mxu1 %v14548_v0  ;;  %v14526_v29 = vpack.c.bf16 %v5482_v1, %v5481_v26  ;;  %v14558_v0 = vpack.c.bf16 %v5514_v2, %v5513_v50  ;;  %v5467_v47 = vld [vmem:[%s22620_s18 + $0x470] sm:$0xff]  ;;  %v5468_v42 = vld [vmem:[%s22620_s18 + $0x478] sm:$0xff] }
0x12e9   : > { %v19360_v43 = vpop.f32.mrb[89].mxu0  ;;  %v19362_v6 = vpop.f32.mrb[81].mxu1  ;;  %14519 = vmatprep.subr.bf16.mxu0 %v14518_v5  ;;  %14551 = vmatprep.subr.bf16.mxu1 %v14550_v45  ;;  %v5515_v5 = vld [vmem:[%s22620_s18 + $0x5f0] sm:$0xff]  ;;  %v5516_v45 = vld [vmem:[%s22620_s18 + $0x5f8] sm:$0xff]  ;;  %v14532_v26 = vpack.c.bf16 %v5468_v42, %v5467_v47  ;;  %v5549_v2 = vld [vmem:[%s22620_s18 + $0x700] sm:$0xff]  ;;  %v5287_v8 = vmax.f32 %v5095_v40, 0.0 }
0x12ea   : > { %5970 = vmatprep.mubr.f32.mxu0 %v5286_v16  ;;  %6050 = vmatprep.mubr.f32.mxu1 %v5288_v9  ;;  %v14562_v16 = vpack.c.bf16 %v5516_v45, %v5515_v5  ;;  %v5500_v9 = vld [vmem:[%s22620_s18 + $0x578] sm:$0xff]  ;;  %v5020_v19 = vadd.f32 %v19360_v43, %v19305_v62  ;;  %v5103_v10 = vadd.f32 %v19362_v6, %v19309_v31  ;;  %v19511_v6 = vld [vmem:[%s22620_s18 + $0x710] sm:$0xff] }
0x12eb   : > { %v14564_v1 = vpack.c.bf16 %v5500_v9, %v5499_v22  ;;  %v19490_v5 = vrot.slane %v19286_v49, %v19168_v18  ;;  %v19494_v45 = vrot.slane %v19286_v49, %v19171_v15  ;;  %v19506_v43 = vld [vmem:[%s22620_s18 + $0x618] sm:$0xff] }
0x12ec   : > { %v19382_v4 = vpop.f32.mrb[90].mxu0  ;;  %v19384_v38 = vpop.f32.mrb[82].mxu1  ;;  %14521 = vmatpush3.bf16.msra.mxu0 %v14520_v44  ;;  %14553 = vmatpush3.bf16.msra.mxu1 %v14552_v51  ;;  %v5533_v44 = vld [vmem:[%s22620_s18 + $0x680] sm:$0xff]  ;;  %v5534_v51 = vld [vmem:[%s22620_s18 + $0x688] sm:$0xff]  ;;  %v5552_v9 = vld [vmem:[%s22620_s18 + $0x718] sm:$0xff]  ;;  %v5304_v34 = vmax.f32 %v5103_v10, 0.0 }
0x12ed   : > { %v19392_v54 = vpop.f32.mrb[91].mxu0  ;;  %v19394_v60 = vpop.f32.mrb[83].mxu1  ;;  %14523 = vmatprep.subr.bf16.mxu0 %v14522_v3  ;;  %14555 = vmatprep.subr.bf16.mxu1 %v14554_v36  ;;  %v19449_v3 = vld [vmem:[%s22620_s18 + $0x600] sm:$0xff]  ;;  %v19454_v36 = vld [vmem:[%s22620_s18 + $0x608] sm:$0xff]  ;;  %v14566_v50 = vpack.c.bf16 %v5534_v51, %v5533_v44 }
0x12ee   : > { %v5537_v44 = vld [vmem:[%s22620_s18 + $0x6a0] sm:$0xff]  ;;  %v5538_v51 = vld [vmem:[%s22620_s18 + $0x6a8] sm:$0xff] }
0x12f0   : > { %14525 = vmatpush3.bf16.msra.mxu0 %v14524_v59  ;;  %14557 = vmatpush3.bf16.msra.mxu1 %v14556_v53  ;;  %v5550_v59 = vld [vmem:[%s22620_s18 + $0x708] sm:$0xff]  ;;  %v19469_v53 = vld [vmem:[%s22620_s18 + $0x690] sm:$0xff] }
0x12f1   : > { %14527 = vmatprep.subr.bf16.mxu0 %v14526_v29  ;;  %14559 = vmatprep.subr.bf16.mxu1 %v14558_v0  ;;  %v14600_v22 = vpack.c.bf16 %v5550_v59, %v5549_v2  ;;  %v5569_v2 = vld [vmem:[%s22620_s18 + $0x7a0] sm:$0xff]  ;;  %v5570_v59 = vld [vmem:[%s22620_s18 + $0x7a8] sm:$0xff] }
0x12f4   : > { %v19456_v28 = vpop.f32.mrb[92].mxu0  ;;  %v19458_v61 = vpop.f32.mrb[84].mxu1  ;;  %14529 = vmatpush3.bf16.msra.mxu0 %v14528_v33  ;;  %14561 = vmatpush3.bf16.msra.mxu1 %v14560_v41  ;;  %v14568_v33 = vpack.c.bf16 %v19454_v36, %v19449_v3  ;;  %v19501_v41 = vld [vmem:[%s22620_s18 + $0x610] sm:$0xff]  ;;  %v5018_v3 = vadd.f32 %v19350_v20, %v19416_v12  ;;  %v5101_v36 = vadd.f32 %v19352_v58, %v19429_v7 }
0x12f5   : > { %v5179_v29 = vpop.f32.mrb[93].mxu0  ;;  %v5262_v0 = vpop.f32.mrb[85].mxu1  ;;  %14531 = vmatprep.subr.bf16.mxu0 %v14530_v25  ;;  %14563 = vmatprep.subr.bf16.mxu1 %v14562_v16  ;;  %v14570_v25 = vpack.c.bf16 %v5536_v46, %v19469_v53  ;;  %v14602_v16 = vpack.c.bf16 %v5568_v52, %v5567_v11  ;;  %v5302_v53 = vmax.f32 %v5020_v19, 0.0  ;;  %v5026_v20 = vadd.f32 %v19392_v54, %v19305_v62 }
0x12f6   : > { %v5109_v58 = vadd.f32 %v19394_v60, %v19309_v31  ;;  %v14604_v46 = vpack.c.bf16 %v5552_v9, %v19511_v6  ;;  %v14574_v11 = vpack.c.bf16 %v5538_v51, %v5537_v44  ;;  %v14606_v52 = vpack.c.bf16 %v5570_v59, %v5569_v2 }
0x12f7   : > { %v5301_v19 = vmax.f32 %v5018_v3, 0.0  ;;  %v5303_v62 = vmax.f32 %v5101_v36, 0.0  ;;  %v5024_v31 = vadd.f32 %v19382_v4, %v19416_v12  ;;  %v5107_v54 = vadd.f32 %v19384_v38, %v19429_v7  ;;  %v5553_v12 = vld [vmem:[%s22620_s18 + $0x720] sm:$0xff]  ;;  %v5554_v7 = vld [vmem:[%s22620_s18 + $0x728] sm:$0xff] }
0x12f8   : > { %v19513_v47 = vpop.f32.mrb[94].mxu0  ;;  %v19515_v42 = vpop.f32.mrb[86].mxu1  ;;  %14533 = vmatpush3.bf16.msra.mxu0 %v14532_v26  ;;  %14565 = vmatpush3.bf16.msra.mxu1 %v14564_v1  ;;  %v5318_v6 = vmax.f32 %v5026_v20, 0.0  ;;  %v5320_v9 = vmax.f32 %v5109_v58, 0.0  ;;  %v5180_v4 = vadd.f32 %v5179_v29, %v19490_v5  ;;  %v5263_v38 = vadd.f32 %v5262_v0, %v19494_v45  ;;  %v5540_v29 = vld [vmem:[%s22620_s18 + $0x6b8] sm:$0xff]  ;;  %v5571_v0 = vld [vmem:[%s22620_s18 + $0x7b0] sm:$0xff] }
0x12f9   : > { %v19531_v26 = vpop.f32.mrb[95].mxu0  ;;  %v19533_v1 = vpop.f32.mrb[87].mxu1  ;;  %14567 = vmatprep.subr.bf16.mxu0 %v14566_v50  ;;  %14599 = vmatprep.subr.bf16.mxu1 %v14598_v63  ;;  %v14572_v50 = vpack.c.bf16 %v19506_v43, %v19501_v41  ;;  %v5521_v41 = vld [vmem:[%s22620_s18 + $0x620] sm:$0xff]  ;;  %v5522_v43 = vld [vmem:[%s22620_s18 + $0x628] sm:$0xff]  ;;  %v14608_v51 = vpack.c.bf16 %v5554_v7, %v5553_v12 }
0x12fa   : > { %v14576_v44 = vpack.c.bf16 %v5522_v43, %v5521_v41  ;;  %v5290_v3 = vmax.f32 %v5180_v4, 0.0  ;;  %v5292_v36 = vmax.f32 %v5263_v38, 0.0  ;;  %v5541_v20 = vld [vmem:[%s22620_s18 + $0x6c0] sm:$0xff]  ;;  %v5542_v58 = vld [vmem:[%s22620_s18 + $0x6c8] sm:$0xff]  ;;  %v5575_v4 = vld [vmem:[%s22620_s18 + $0x7d0] sm:$0xff] }
0x12fb   : > { %5971 = vmatmul.mubr.f32.vlgmr.msra.gmra.mrb[110].mxu0 %v5285_v27  ;;  %6051 = vmatmul.mubr.f32.vlgmr.msra.gmra.mrb[102].mxu1 %v5287_v8  ;;  %v5523_v27 = vld [vmem:[%s22620_s18 + $0x630] sm:$0xff]  ;;  %v5524_v8 = vld [vmem:[%s22620_s18 + $0x638] sm:$0xff]  ;;  %v5557_v41 = vld [vmem:[%s22620_s18 + $0x740] sm:$0xff] }
0x12fc   : > { %v19547_v40 = vpop.f32.mrb[96].mxu0  ;;  %v19549_v63 = vpop.f32.mrb[88].mxu1  ;;  %5975 = vmatprep.mubr.f32.mxu0 %v5302_v53  ;;  %6055 = vmatprep.mubr.f32.mxu1 %v5304_v34  ;;  %v5555_v53 = vld [vmem:[%s22620_s18 + $0x730] sm:$0xff]  ;;  %v5556_v34 = vld [vmem:[%s22620_s18 + $0x738] sm:$0xff]  ;;  %v5558_v43 = vld [vmem:[%s22620_s18 + $0x748] sm:$0xff] }
0x12fd   : > { %14569 = vmatpush3.bf16.msra.mxu0 %v14568_v33  ;;  %14601 = vmatpush3.bf16.msra.mxu1 %v14600_v22  ;;  %v19556_v60 = vpop.f32.mrb[97].mxu0  ;;  %v19558_v10 = vpop.f32.mrb[89].mxu1  ;;  %v5539_v33 = vld [vmem:[%s22620_s18 + $0x6b0] sm:$0xff]  ;;  %v5572_v22 = vld [vmem:[%s22620_s18 + $0x7b8] sm:$0xff]  ;;  %v14616_v7 = vpack.c.bf16 %v5558_v43, %v5557_v41  ;;  %v4583_v41 = vrot.slane %v19286_v49, %v19165_v13 }
0x12fe   : > { %14571 = vmatprep.subr.bf16.mxu0 %v14570_v25  ;;  %14603 = vmatprep.subr.bf16.mxu1 %v14602_v16  ;;  %v5317_v25 = vmax.f32 %v5024_v31, 0.0  ;;  %v5319_v16 = vmax.f32 %v5107_v54, 0.0  ;;  %v14578_v2 = vpack.c.bf16 %v5540_v29, %v5539_v33  ;;  %v14610_v59 = vpack.c.bf16 %v5572_v22, %v5571_v0  ;;  %v5576_v38 = vld [vmem:[%s22620_s18 + $0x7d8] sm:$0xff]  ;;  %v5527_v33 = vld [vmem:[%s22620_s18 + $0x650] sm:$0xff] }
0x12ff   : > { %5976 = vmatmul.mubr.f32.gmra.mrb[112].mxu0 %v5301_v19  ;;  %6056 = vmatmul.mubr.f32.gmra.mrb[104].mxu1 %v5303_v62  ;;  %v5525_v19 = vld [vmem:[%s22620_s18 + $0x640] sm:$0xff]  ;;  %v5526_v62 = vld [vmem:[%s22620_s18 + $0x648] sm:$0xff]  ;;  %v14582_v31 = vpack.c.bf16 %v5542_v58, %v5541_v20  ;;  %v5528_v29 = vld [vmem:[%s22620_s18 + $0x658] sm:$0xff]  ;;  %v14618_v22 = vpack.c.bf16 %v5576_v38, %v5575_v4 }
0x1300   : > { %5980 = vmatprep.mubr.f32.mxu0 %v5318_v6  ;;  %6060 = vmatprep.mubr.f32.mxu1 %v5320_v9  ;;  %v5543_v6 = vld [vmem:[%s22620_s18 + $0x6d0] sm:$0xff]  ;;  %v5544_v9 = vld [vmem:[%s22620_s18 + $0x6d8] sm:$0xff]  ;;  %v14584_v12 = vpack.c.bf16 %v5526_v62, %v5525_v19  ;;  %v5561_v20 = vld [vmem:[%s22620_s18 + $0x760] sm:$0xff]  ;;  %v4575_v19 = vrot.slane %v19286_v49, %v19162_v39 }
0x1301   : > { %14573 = vmatpush3.bf16.msra.mxu0 %v14572_v50  ;;  %14605 = vmatpush3.bf16.msra.mxu1 %v14604_v46  ;;  %v5573_v50 = vld [vmem:[%s22620_s18 + $0x7c0] sm:$0xff]  ;;  %v5574_v46 = vld [vmem:[%s22620_s18 + $0x7c8] sm:$0xff]  ;;  %v14586_v0 = vpack.c.bf16 %v5544_v9, %v5543_v6  ;;  %v5532_v9 = vld [vmem:[%s22620_s18 + $0x678] sm:$0xff] }
0x1302   : > { %14575 = vmatprep.subr.bf16.mxu0 %v14574_v11  ;;  %14607 = vmatprep.subr.bf16.mxu1 %v14606_v52  ;;  %v14580_v11 = vpack.c.bf16 %v5524_v8, %v5523_v27  ;;  %v14612_v52 = vpack.c.bf16 %v5556_v34, %v5555_v53  ;;  %v14614_v54 = vpack.c.bf16 %v5574_v46, %v5573_v50  ;;  %v5577_v27 = vld [vmem:[%s22620_s18 + $0x7e0] sm:$0xff]  ;;  %v5578_v8 = vld [vmem:[%s22620_s18 + $0x7e8] sm:$0xff]  ;;  %v5547_v50 = vld [vmem:[%s22620_s18 + $0x6f0] sm:$0xff] }
0x1303   : > { %5981 = vmatmul.mubr.f32.gmra.mrb[114].mxu0 %v5317_v25  ;;  %6061 = vmatmul.mubr.f32.gmra.mrb[106].mxu1 %v5319_v16  ;;  %v5559_v25 = vld [vmem:[%s22620_s18 + $0x750] sm:$0xff]  ;;  %v5560_v16 = vld [vmem:[%s22620_s18 + $0x758] sm:$0xff]  ;;  %v14622_v34 = vpack.c.bf16 %v5578_v8, %v5577_v27  ;;  %v5562_v58 = vld [vmem:[%s22620_s18 + $0x768] sm:$0xff] }
0x1304   : > { %6130 = vmatprep.mubr.f32.mxu0 %v5290_v3  ;;  %6210 = vmatprep.mubr.f32.mxu1 %v5292_v36  ;;  %v14588_v3 = vpack.c.bf16 %v5528_v29, %v5527_v33  ;;  %v14620_v36 = vpack.c.bf16 %v5560_v16, %v5559_v25  ;;  %v5548_v46 = vld [vmem:[%s22620_s18 + $0x6f8] sm:$0xff]  ;;  %v5563_v4 = vld [vmem:[%s22620_s18 + $0x770] sm:$0xff]  ;;  %v5261_v33 = vadd.f32 %v19458_v61, %v4583_v41 }
0x1305   : > { %14577 = vmatpush3.bf16.msra.mxu0 %v14576_v44  ;;  %14609 = vmatpush3.bf16.msra.mxu1 %v14608_v51  ;;  %v5545_v44 = vld [vmem:[%s22620_s18 + $0x6e0] sm:$0xff]  ;;  %v5546_v51 = vld [vmem:[%s22620_s18 + $0x6e8] sm:$0xff]  ;;  %v14594_v43 = vpack.c.bf16 %v5548_v46, %v5547_v50  ;;  %v5564_v38 = vld [vmem:[%s22620_s18 + $0x778] sm:$0xff]  ;;  %v5186_v29 = vadd.f32 %v19531_v26, %v19490_v5  ;;  %v5184_v16 = vadd.f32 %v19513_v47, %v4575_v19 }
0x1306   : > { %14579 = vmatprep.subr.bf16.mxu0 %v14578_v2  ;;  %14611 = vmatprep.subr.bf16.mxu1 %v14610_v59  ;;  %v5529_v2 = vld [vmem:[%s22620_s18 + $0x660] sm:$0xff]  ;;  %v5530_v59 = vld [vmem:[%s22620_s18 + $0x668] sm:$0xff]  ;;  %v14590_v53 = vpack.c.bf16 %v5546_v51, %v5545_v44  ;;  %v14628_v49 = vpack.c.bf16 %v5564_v38, %v5563_v4  ;;  %v5291_v25 = vmax.f32 %v5261_v33, 0.0  ;;  %v5267_v44 = vadd.f32 %v19515_v42, %v4583_v41 }
0x1307   : > { %v14592_v62 = vpack.c.bf16 %v5530_v59, %v5529_v2  ;;  %v5192_v51 = vadd.f32 %v19556_v60, %v19490_v5  ;;  %v5275_v26 = vadd.f32 %v19558_v10, %v19494_v45  ;;  %v5190_v47 = vadd.f32 %v19547_v40, %v4575_v19  ;;  %v11833_v40 = vld [vmem:[%s22621_s19] ss:$0 sm:$0xff] }
0x1308   : > { %v5307_v27 = vmax.f32 %v5267_v44, 0.0  ;;  %v5273_v42 = vadd.f32 %v19549_v63, %v4583_v41 }
0x1309   : > { %14581 = vmatpush3.bf16.msra.mxu0 %v14580_v11  ;;  %14613 = vmatpush3.bf16.msra.mxu1 %v14612_v52  ;;  %v5579_v11 = vld [vmem:[%s22620_s18 + $0x7f0] sm:$0xff]  ;;  %v5580_v52 = vld [vmem:[%s22620_s18 + $0x7f8] sm:$0xff]  ;;  %v5322_v8 = vmax.f32 %v5192_v51, 0.0  ;;  %v5321_v5 = vmax.f32 %v5190_v47, 0.0 }
0x130a   : > { %14583 = vmatprep.subr.bf16.mxu0 %v14582_v31  ;;  %14615 = vmatprep.subr.bf16.mxu1 %v14614_v54  ;;  %v14624_v31 = vpack.c.bf16 %v5562_v58, %v5561_v20  ;;  %v5531_v54 = vld [vmem:[%s22620_s18 + $0x670] sm:$0xff]  ;;  %v14626_v6 = vpack.c.bf16 %v5580_v52, %v5579_v11  ;;  %v5323_v60 = vmax.f32 %v5273_v42, 0.0 }
0x130d   : > { %14585 = vmatpush3.bf16.msra.mxu0 %v14584_v12  ;;  %14617 = vmatpush3.bf16.msra.mxu1 %v14616_v7  ;;  %v14596_v12 = vpack.c.bf16 %v5532_v9, %v5531_v54  ;;  %v5178_v7 = vadd.f32 %v19456_v28, %v4575_v19  ;;  %v5306_v28 = vmax.f32 %v5186_v29, 0.0 }
0x130e   : > { %14587 = vmatprep.subr.bf16.mxu0 %v14586_v0  ;;  %14619 = vmatprep.subr.bf16.mxu1 %v14618_v22  ;;  %v5269_v0 = vadd.f32 %v19533_v1, %v19494_v45  ;;  %v5305_v1 = vmax.f32 %v5184_v16, 0.0 }
0x130f   : > { %v5289_v22 = vmax.f32 %v5178_v7, 0.0 }
0x1310   : > { %v5308_v61 = vmax.f32 %v5269_v0, 0.0 }
0x1311   : > { %14589 = vmatpush3.bf16.msra.mxu0 %v14588_v3  ;;  %14621 = vmatpush3.bf16.msra.mxu1 %v14620_v36  ;;  %v5324_v3 = vmax.f32 %v5275_v26, 0.0 }
0x1312   : > { %14591 = vmatprep.subr.bf16.mxu0 %v14590_v53  ;;  %14623 = vmatprep.subr.bf16.mxu1 %v14622_v34 }
0x1315   : > { %14593 = vmatpush3.bf16.msra.mxu0 %v14592_v62  ;;  %14625 = vmatpush3.bf16.msra.mxu1 %v14624_v31 }
0x1316   : > { %14595 = vmatprep.subr.bf16.mxu0 %v14594_v43  ;;  %14627 = vmatprep.subr.bf16.mxu1 %v14626_v6 }
0x1319   : > { %14597 = vmatpush3.bf16.msra.mxu0 %v14596_v12  ;;  %14629 = vmatpush3.bf16.msra.mxu1 %v14628_v49 }
0x131a   : > { %14646 = vmatprep.subr.bf16.mxu1 %v22737_v23 }
0x131c   : > { %6131 = vmatmul.mubr.f32.vlgmr.msra.gmra.mrb[116].mxu0 %v5289_v22  ;;  %6211 = vmatmul.mubr.f32.vlgmr.msra.gmra.mrb[108].mxu1 %v5291_v25 }
0x131d   : > { %6135 = vmatprep.mubr.f32.mxu0 %v5306_v28  ;;  %6215 = vmatprep.mubr.f32.mxu1 %v5308_v61 }
0x1320   : > { %6136 = vmatmul.mubr.f32.gmra.mrb[118].mxu0 %v5305_v1  ;;  %6216 = vmatmul.mubr.f32.gmra.mrb[110].mxu1 %v5307_v27 }
0x1321   : > { %6140 = vmatprep.mubr.f32.mxu0 %v5322_v8  ;;  %6220 = vmatprep.mubr.f32.mxu1 %v5324_v3 }
0x1324   : > { %6141 = vmatmul.mubr.f32.gmra.mrb[120].mxu0 %v5321_v5  ;;  %6221 = vmatmul.mubr.f32.gmra.mrb[112].mxu1 %v5323_v60 }
0x1325   : > { %6389 = vmatprep.mubr.f32.mxu0 %v22738_v14  ;;  %13610 = vmatprep.mubr.msk.f32.mxu1 %vm16537_vm1, %v22738_v14 }
0x1375   : > { %v12619_v45 = vpop.f32.mrb[98].mxu0  ;;  %v12660_v10 = vpop.f32.mrb[90].mxu1 }
0x1376   : > { %v12620_v63 = vpop.f32.mrb[99].mxu0  ;;  %v12661_v36 = vpop.f32.mrb[91].mxu1 }
0x1377   : > { %v12621_v2 = vadd.f32 %v12620_v63, %v12619_v45  ;;  %v12662_v59 = vadd.f32 %v12661_v36, %v12660_v10 }
0x1379   : > { %v5653_v53 = vadd.f32 %v12621_v2, %v11833_v40 }
0x137b   : > { %v5733_v34 = vadd.f32 %v12662_v59, %v5653_v53 }
0x137e   : > { %v12622_v20 = vpop.f32.mrb[100].mxu0  ;;  %v12663_v58 = vpop.f32.mrb[92].mxu1 }
0x137f   : > { %v12623_v50 = vpop.f32.mrb[101].mxu0  ;;  %v12664_v46 = vpop.f32.mrb[93].mxu1 }
0x1380   : > { %v12624_v11 = vadd.f32 %v12623_v50, %v12622_v20  ;;  %v12665_v52 = vadd.f32 %v12664_v46, %v12663_v58 }
0x1382   : > { %v5658_v19 = vadd.f32 %v12624_v11, %v11833_v40 }
0x1384   : > { %v5738_v62 = vadd.f32 %v12665_v52, %v5658_v19 }
0x13aa   : > { %v12625_v31 = vpop.f32.mrb[102].mxu0  ;;  %v12666_v54 = vpop.f32.mrb[94].mxu1 }
0x13ab   : > { %v12626_v41 = vpop.f32.mrb[103].mxu0  ;;  %v12667_v43 = vpop.f32.mrb[95].mxu1 }
0x13ac   : > { %v12627_v6 = vadd.f32 %v12626_v41, %v12625_v31  ;;  %v12668_v9 = vadd.f32 %v12667_v43, %v12666_v54 }
0x13ae   : > { %v5663_v4 = vadd.f32 %v12627_v6, %v11833_v40  ;;  %v12701_v38 = vpop.f32.mrb[104].mxu0  ;;  %v12742_v12 = vpop.f32.mrb[96].mxu1 }
0x13af   : > { %v12702_v49 = vpop.f32.mrb[105].mxu0  ;;  %v12743_v7 = vpop.f32.mrb[97].mxu1 }
0x13b0   : > { %v5743_v33 = vadd.f32 %v12668_v9, %v5663_v4  ;;  %v12703_v29 = vadd.f32 %v12702_v49, %v12701_v38  ;;  %v12744_v0 = vadd.f32 %v12743_v7, %v12742_v12 }
0x13b2   : > { %v5813_v22 = vadd.f32 %v12703_v29, %v5733_v34  ;;  %v12704_v25 = vpop.f32.mrb[106].mxu0  ;;  %v12745_v16 = vpop.f32.mrb[98].mxu1 }
0x13b3   : > { %v12705_v44 = vpop.f32.mrb[107].mxu0  ;;  %v12746_v28 = vpop.f32.mrb[99].mxu1 }
0x13b4   : > { %v5893_v61 = vadd.f32 %v12744_v0, %v5813_v22  ;;  %v12706_v51 = vadd.f32 %v12705_v44, %v12704_v25  ;;  %v12747_v26 = vadd.f32 %v12746_v28, %v12745_v16 }
0x13b6   : > { %v5818_v1 = vadd.f32 %v12706_v51, %v5738_v62  ;;  %v12707_v27 = vpop.f32.mrb[108].mxu0  ;;  %v12748_v47 = vpop.f32.mrb[100].mxu1 }
0x13b7   : > { %v12708_v42 = vpop.f32.mrb[109].mxu0  ;;  %v12749_v8 = vpop.f32.mrb[101].mxu1 }
0x13b8   : > { %v5898_v3 = vadd.f32 %v12747_v26, %v5818_v1  ;;  %v12709_v5 = vadd.f32 %v12708_v42, %v12707_v27  ;;  %v12750_v60 = vadd.f32 %v12749_v8, %v12748_v47 }
0x13ba   : > { %v5823_v45 = vadd.f32 %v12709_v5, %v5743_v33 }
0x13bc   : > { %v5903_v10 = vadd.f32 %v12750_v60, %v5823_v45 }
0x13ce   : > { %v12783_v40 = vpop.f32.mrb[110].mxu0  ;;  %v12824_v63 = vpop.f32.mrb[102].mxu1 }
0x13cf   : > { %v12784_v36 = vpop.f32.mrb[111].mxu0  ;;  %v12825_v2 = vpop.f32.mrb[103].mxu1 }
0x13d0   : > { %v12785_v59 = vadd.f32 %v12784_v36, %v12783_v40  ;;  %v12826_v53 = vadd.f32 %v12825_v2, %v12824_v63 }
0x13d2   : > { %v5973_v34 = vadd.f32 %v12785_v59, %v5893_v61  ;;  %v12786_v20 = vpop.f32.mrb[112].mxu0  ;;  %v12827_v58 = vpop.f32.mrb[104].mxu1 }
0x13d3   : > { %v12787_v50 = vpop.f32.mrb[113].mxu0  ;;  %v12828_v46 = vpop.f32.mrb[105].mxu1 }
0x13d4   : > { %v6053_v11 = vadd.f32 %v12826_v53, %v5973_v34  ;;  %v12788_v52 = vadd.f32 %v12787_v50, %v12786_v20  ;;  %v12829_v19 = vadd.f32 %v12828_v46, %v12827_v58 }
0x13d6   : > { %v5978_v62 = vadd.f32 %v12788_v52, %v5898_v3  ;;  %v12789_v31 = vpop.f32.mrb[114].mxu0  ;;  %v12830_v54 = vpop.f32.mrb[106].mxu1 }
0x13d7   : > { %v12790_v41 = vpop.f32.mrb[115].mxu0  ;;  %v12831_v43 = vpop.f32.mrb[107].mxu1 }
0x13d8   : > { %v6058_v6 = vadd.f32 %v12829_v19, %v5978_v62  ;;  %v12791_v9 = vadd.f32 %v12790_v41, %v12789_v31  ;;  %v12832_v4 = vadd.f32 %v12831_v43, %v12830_v54 }
0x13da   : > { %v5983_v38 = vadd.f32 %v12791_v9, %v5903_v10  ;;  %v11839_v9 = vld [vmem:[%s22697_s6 + $0x98] sm:$0xff] }
0x13dc   : > { %v6063_v12 = vadd.f32 %v12832_v4, %v5983_v38  ;;  %v11836_v38 = vld [vmem:[%s22697_s6 + $0x80] sm:$0xff] }
0x13ef   : > { %v12865_v49 = vpop.f32.mrb[116].mxu0  ;;  %v12906_v7 = vpop.f32.mrb[108].mxu1 }
0x13f0   : > { %v12866_v33 = vpop.f32.mrb[117].mxu0  ;;  %v12907_v29 = vpop.f32.mrb[109].mxu1 }
0x13f1   : > { %v12867_v0 = vadd.f32 %v12866_v33, %v12865_v49  ;;  %v12908_v22 = vadd.f32 %v12907_v29, %v12906_v7  ;;  %v11841_v7 = vld [vmem:[%s22697_s6 + $0xa8] sm:$0xff]  ;;  %v11843_v33 = vld [vmem:[%s22697_s6 + $0xb8] sm:$0xff] }
0x13f2   : > { %v14634_v29 = vpack.c.bf16 %v11843_v33, %v11841_v7 }
0x13f3   : > { %v6133_v25 = vadd.f32 %v12867_v0, %v6053_v11  ;;  %v12868_v16 = vpop.f32.mrb[118].mxu0  ;;  %v12909_v44 = vpop.f32.mrb[110].mxu1  ;;  %v11840_v0 = vld [vmem:[%s22697_s6 + $0xa0] sm:$0xff] }
0x13f4   : > { %v12869_v28 = vpop.f32.mrb[119].mxu0  ;;  %v12910_v61 = vpop.f32.mrb[111].mxu1 }
0x13f5   : > { %v6213_v51 = vadd.f32 %v12908_v22, %v6133_v25  ;;  %v12870_v26 = vadd.f32 %v12869_v28, %v12868_v16  ;;  %v12911_v1 = vadd.f32 %v12910_v61, %v12909_v44  ;;  %v11842_v22 = vld [vmem:[%s22697_s6 + $0xb0] sm:$0xff]  ;;  %v11845_v16 = vld [vmem:[%s22697_s6 + $0xc8] sm:$0xff]  ;;  %v11847_v44 = vld [vmem:[%s22697_s6 + $0xd8] sm:$0xff] }
0x13f6   : > { %v14636_v25 = vpack.c.bf16 %v11842_v22, %v11840_v0  ;;  %v14638_v28 = vpack.c.bf16 %v11847_v44, %v11845_v16  ;;  %v11844_v61 = vld [vmem:[%s22697_s6 + $0xc0] sm:$0xff] }
0x13f7   : > { %v6138_v27 = vadd.f32 %v12870_v26, %v6058_v6  ;;  %v12871_v47 = vpop.f32.mrb[120].mxu0  ;;  %v12912_v42 = vpop.f32.mrb[112].mxu1  ;;  %v6226_v8 = vadd.f32 %v6213_v51, %v18396_v24  ;;  %v11837_v6 = vld [vmem:[%s22697_s6 + $0x88] sm:$0xff]  ;;  %v11846_v51 = vld [vmem:[%s22697_s6 + $0xd0] sm:$0xff] }
0x13f8   : > { %v12872_v3 = vpop.f32.mrb[121].mxu0  ;;  %v12913_v5 = vpop.f32.mrb[113].mxu1  ;;  %v14630_v4 = vpack.c.bf16 %v11839_v9, %v11837_v6  ;;  %v14640_v26 = vpack.c.bf16 %v11846_v51, %v11844_v61 }
0x13f9   : > { %v6218_v60 = vadd.f32 %v12911_v1, %v6138_v27  ;;  %v12873_v45 = vadd.f32 %v12872_v3, %v12871_v47  ;;  %v12914_v10 = vadd.f32 %v12913_v5, %v12912_v42  ;;  %v6229_v40 = vsel %vm1079_vm0, %v6226_v8, 0.0  ;;  %v11849_v1 = vld [vmem:[%s22697_s6 + $0xe8] sm:$0xff]  ;;  %v11851_v27 = vld [vmem:[%s22697_s6 + $0xf8] sm:$0xff]  ;;  %v11848_v42 = vld [vmem:[%s22697_s6 + $0xe0] sm:$0xff] }
0x13fa   : > { %6230 = vadd.xlane.f32.xlu1 %v6229_v40  ;;  %14631 = vmatprep.subr.bf16.mxu0 %v14630_v4  ;;  %v14642_v47 = vpack.c.bf16 %v11851_v27, %v11849_v1 }
0x13fb   : > { %v6143_v63 = vadd.f32 %v12873_v45, %v6063_v12  ;;  %v6227_v36 = vadd.f32 %v6218_v60, %v18461_v37  ;;  %v11838_v12 = vld [vmem:[%s22697_s6 + $0x90] sm:$0xff] }
0x13fc   : > { %v14632_v49 = vpack.c.bf16 %v11838_v12, %v11836_v38 }
0x13fd   : > { %v6223_v2 = vadd.f32 %v12914_v10, %v6143_v63  ;;  %v6232_v59 = vsel %vm1079_vm0, %v6227_v36, 0.0 }
0x13fe   : > { %6233 = vadd.xlane.f32.xlu0 %v6232_v59  ;;  %14633 = vmatpush1.bf16.msra.mxu0 %v14632_v49 }
0x13ff   : > { %v6228_v53 = vadd.f32 %v6223_v2, %v18493_v55  ;;  %14635 = vmatprep.subr.bf16.mxu0 %v14634_v29 }
0x1401   : > { %v6235_v34 = vsel %vm1079_vm0, %v6228_v53, 0.0 }
0x1402   : > { %6236 = vadd.xlane.f32.xlu1 %v6235_v34  ;;  %14637 = vmatpush1.bf16.msra.mxu0 %v14636_v25 }
0x1403   : > { %14639 = vmatprep.subr.bf16.mxu0 %v14638_v28 }
0x1406   : > { %14641 = vmatpush1.bf16.msra.mxu0 %v14640_v26 }
0x1407   : > { %14643 = vmatprep.subr.bf16.mxu0 %v14642_v47 }
0x1487   : > { %v6231_v24 = vpop.xlane.xlu1 %6230 }
0x1488   : > { %v6238_v20 = vmul.f32 0.015625, %v6231_v24 }
0x148a   : > { %v19725_v58 = vsub.f32 %v6226_v8, %v6238_v20  ;;  %v11850_v8 = vld [vmem:[%s22697_s6 + $0xf0] sm:$0xff] }
0x148b   : > { %v6234_v50 = vpop.xlane.xlu0 %6233  ;;  %v14644_v3 = vpack.c.bf16 %v11850_v8, %v11848_v42 }
0x148c   : > { %v6239_v46 = vmul.f32 0.015625, %v6234_v50  ;;  %v6244_v11 = vmul.f32 %v19725_v58, %v19725_v58  ;;  %v16505_v50 = vld [vmem:[%s22623_s21] sm:$0x7] }
0x148d   : > { %14645 = vmatpush1.bf16.msra.mxu0 %v14644_v3 }
0x148e   : > { %v19729_v52 = vsub.f32 %v6227_v36, %v6239_v46  ;;  %v6247_v37 = vsel %vm1079_vm0, %v6244_v11, 0.0  ;;  %14650 = vmatprep.subr.bf16.mxu0 %v22737_v23  ;;  %v6278_v46 = vrot.slane %v16505_v50, %v18935_v21 }
0x148f   : > { %6248 = vadd.xlane.f32.xlu0 %v6247_v37  ;;  %v6237_v19 = vpop.xlane.xlu1 %6236 }
0x1490   : > { %v6240_v62 = vmul.f32 0.015625, %v6237_v19  ;;  %v6245_v55 = vmul.f32 %v19729_v52, %v19729_v52 }
0x1492   : > { %v19734_v31 = vsub.f32 %v6228_v53, %v6240_v62  ;;  %v6250_v54 = vsel %vm1079_vm0, %v6245_v55, 0.0  ;;  %v16504_v53 = vld [vmem:[%s22622_s20] sm:$0x7] }
0x1493   : > { %6251 = vadd.xlane.f32.xlu1 %v6250_v54  ;;  %v6271_v34 = vrot.slane %v16504_v53, %v18935_v21 }
0x1494   : > { %v6246_v41 = vmul.f32 %v19734_v31, %v19734_v31 }
0x1496   : > { %v6253_v43 = vsel %vm1079_vm0, %v6246_v41, 0.0 }
0x1497   : > { %6254 = vadd.xlane.f32.xlu0 %v6253_v43 }
0x151c   : > { %v6249_v5 = vpop.xlane.xlu0 %6248 }
0x151d   : > { %v6256_v60 = vmul.f32 0.015625, %v6249_v5 }
0x151f   : > { %v6259_v45 = vadd.f32 1e-05, %v6256_v60 }
0x1520   : > { %v6252_v10 = vpop.xlane.xlu1 %6251 }
0x1521   : > { %16349 = vrsqrt.f32 %v6259_v45  ;;  %v6257_v40 = vmul.f32 0.015625, %v6252_v10 }
0x1523   : > { %v6260_v63 = vadd.f32 1e-05, %v6257_v40 }
0x1524   : > { %v6255_v36 = vpop.xlane.xlu0 %6254 }
0x1525   : > { %16351 = vrsqrt.f32 %v6260_v63  ;;  %v6258_v2 = vmul.f32 0.015625, %v6255_v36 }
0x1527   : > { %v6261_v59 = vadd.f32 1e-05, %v6258_v2 }
0x1529   : > { %16353 = vrsqrt.f32 %v6261_v59 }
0x152b   : > { %v16350_v24 = vpop.eup %16349 }
0x152c   : > { %v6265_v20 = vmul.f32 %v16350_v24, %v19725_v58 }
0x152e   : > { %v6272_v11 = vmul.f32 %v6271_v34, %v6265_v20 }
0x152f   : > { %v16352_v37 = vpop.eup %16351 }
0x1530   : > { %v19798_v19 = vadd.f32 %v6278_v46, %v6272_v11  ;;  %v6266_v62 = vmul.f32 %v16352_v37, %v19729_v52  ;;  %v11852_v52 = vld [vmem:[%s22699_s7 + $0x1] ss:$2 sm:$0x3] }
0x1531   : > { %v6313_v38 = vrot.slane %v11852_v52, %v16750_v32 }
0x1532   : > { %11853 = vmatmul.mubr.msk.f32.vlgmr.msra.gmra.mrb[122].mxu0 %vm1079_vm0, %v19798_v19  ;;  %v6273_v55 = vmul.f32 %v6271_v34, %v6266_v62 }
0x1533   : > { %v16354_v54 = vpop.eup %16353  ;;  %6395 = vmatprep.mubr.f32.mxu0 %v22738_v14 }
0x1534   : > { %v19804_v58 = vadd.f32 %v6278_v46, %v6273_v55  ;;  %v6267_v41 = vmul.f32 %v16354_v54, %v19734_v31  ;;  %v6309_v31 = vrot.slane %v11852_v52, %v16744_v30 }
0x1536   : > { %11854 = vmatmul.mubr.msk.f32.gmra.mrb[124].mxu0 %vm1079_vm0, %v19804_v58  ;;  %v6274_v43 = vmul.f32 %v6271_v34, %v6267_v41 }
0x1537   : > { %6401 = vmatprep.mubr.f32.mxu0 %v22738_v14 }
0x1538   : > { %v19810_v6 = vadd.f32 %v6278_v46, %v6274_v43 }
0x153a   : > { %11855 = vmatmul.mubr.msk.f32.gmra.mrb[126].mxu0 %vm1079_vm0, %v19810_v6 }
0x153b   : > { %13625 = vmatprep.mubr.msk.f32.mxu0 %vm16537_vm1, %v22738_v14 }
0x1605   : > { %v6391_v9 = vpop.f32.mrb[122].mxu0 }
0x1606   : > { %v6393_v4 = vpop.f32.mrb[123].mxu0  ;;  %v6392_v49 = vadd.f32 %v6391_v9, %v6309_v31 }
0x1607   : > { %v6394_v29 = vadd.f32 %v6393_v4, %v6313_v38  ;;  %v16506_v4 = vld [vmem:[%s22702_s0] sm:$0xff] }
0x1609   : > { %v6397_v12 = vpop.f32.mrb[124].mxu0 }
0x160a   : > { %v6398_v7 = vadd.f32 %v6397_v12, %v6309_v31  ;;  %v6399_v33 = vpop.f32.mrb[125].mxu0 }
0x160b   : > { %v6400_v0 = vadd.f32 %v6399_v33, %v6313_v38 }
0x160c   : > { %v15832_v22 = vpack.i.bf16 %v6398_v7, %v6392_v49 }
0x160d   : > { %v6403_v25 = vpop.f32.mrb[126].mxu0  ;;  %v14651_v16 = vpack.c.bf16 %v6400_v0, %v6394_v29  ;;  %v19821_v44 = vpack.i.bf16 %v6400_v0, %v6394_v29  ;;  %v19913_v29 = vld [vmem:[%s22702_s0 + $0x8] sm:$0xff] }
0x160e   : > { %v6404_v28 = vadd.f32 %v6403_v25, %v6309_v31  ;;  %v6405_v61 = vpop.f32.mrb[127].mxu0  ;;  %15833 = vrot.lane.b32.xlu1 %v15832_v22, %s22727_s30 }
0x160f   : > { %14652 = vmatpush3.bf16.msra.mxu0 %v14651_v16  ;;  %v19826_v51 = vadd.f32 %v6405_v61, %v6313_v38  ;;  %v16508_v61 = vld [vmem:[%s22702_s0 + $0x10] sm:$0xff] }
0x1610   : > { %6425 = vrot.lane.b32.xlu0 %v6404_v28, %s22727_s30  ;;  %13623 = vmatprep.subr.mxu0 %v22738_v14 }
0x1612   : > { %15838 = vrot.lane.b32.xlu1 %v15832_v22, %s22705_s28 }
0x1613   : > { %13624 = vmatpush3.msra.mxu0 %v19826_v51 }
0x1614   : > { %15843 = vrot.lane.b32.xlu0 %v15832_v22, %s22704_s26  ;;  %14657 = vmatprep.subr.bf16.mxu0 %v22737_v23 }
0x1616   : > { %6657 = vrot.lane.b32.xlu1 %v6404_v28, %s22705_s28 }
0x1618   : > { %6649 = vrot.lane.b32.xlu0 %v6398_v7, %s22734_s22 }
0x161a   : > { %6647 = vrot.lane.b32.xlu1 %v6392_v49, %s22734_s22 }
0x161c   : > { %6901 = vrot.lane.b32.xlu0 %v6404_v28, %s22704_s26 }
0x161e   : > { %6651 = vrot.lane.b32.xlu1 %v6404_v28, %s22734_s22 }
0x1620   : > { %6891 = vrot.lane.b32.xlu0 %v6392_v49, %s22736_s27 }
0x1622   : > { %15848 = vrot.lane.b32.xlu1 %v15832_v22, %s22740_s24 }
0x1624   : > { %6895 = vrot.lane.b32.xlu0 %v6404_v28, %s22736_s27 }
0x1626   : > { %6893 = vrot.lane.b32.xlu1 %v6398_v7, %s22736_s27 }
0x1628   : > { %7132 = vrot.lane.b32.xlu0 %v6392_v49, %s22739_s23 }
0x162a   : > { %7142 = vrot.lane.b32.xlu1 %v6404_v28, %s22740_s24 }
0x162c   : > { %7136 = vrot.lane.b32.xlu0 %v6404_v28, %s22739_s23 }
0x162e   : > { %7134 = vrot.lane.b32.xlu1 %v6398_v7, %s22739_s23 }
0x1632   : > { %15853 = vrot.lane.b32.xlu1 %v19821_v44, %s22734_s22 }
0x1680   : > { %v15834_v26 = vpop.permute.xlu1 %15833 }
0x1681   : > { %v15836_v1 = vunpack.i.h.bf16 %v15834_v26  ;;  %v15835_v27 = vunpack.i.l.bf16 %v15834_v26 }
0x1682   : > { %v6426_v5 = vpop.permute.xlu0 %6425 }
0x1683   : > { %v14647_v47 = vpack.c.bf16 %v15836_v1, %v15835_v27 }
0x1684   : > { %v15839_v42 = vpop.permute.xlu1 %15838 }
0x1685   : > { %14649 = vmatpush3.bf16.xpose.msk.msra.mxu1 %vm16814_vm3, %v14647_v47  ;;  %v15841_v8 = vunpack.i.h.bf16 %v15839_v42  ;;  %v15840_v3 = vunpack.i.l.bf16 %v15839_v42 }
0x1686   : > { %13608 = vmatprep.subr.mxu1 %v22738_v14  ;;  %v15844_v10 = vpop.permute.xlu0 %15843 }
0x1687   : > { %v14654_v45 = vpack.c.bf16 %v15841_v8, %v15840_v3  ;;  %v15846_v63 = vunpack.i.h.bf16 %v15844_v10  ;;  %v15845_v36 = vunpack.i.l.bf16 %v15844_v10 }
0x1688   : > { %v6658_v60 = vpop.permute.xlu1 %6657 }
0x1689   : > { %v14661_v59 = vpack.c.bf16 %v15846_v63, %v15845_v36 }
0x168a   : > { %v6650_v53 = vpop.permute.xlu0 %6649 }
0x168c   : > { %v6648_v40 = vpop.permute.xlu1 %6647 }
0x168d   : > { %13609 = vmatpush3.xpose.msk.msra.mxu1 %vm1190_vm2, %v6426_v5 }
0x168e   : > { %14653 = vmatprep.subr.bf16.mxu1 %v22737_v23  ;;  %v6902_v24 = vpop.permute.xlu0 %6901 }
0x1690   : > { %13611 = vmatmul.mubr.msk.f32.vlgmr.msra.gmra.mrb[114].mxu1 %vm1190_vm2, %v6392_v49  ;;  %v6652_v2 = vpop.permute.xlu1 %6651 }
0x1691   : > { %14656 = vmatpush3.bf16.xpose.msk.msra.mxu1 %vm16814_vm3, %v14654_v45  ;;  %13613 = vmatprep.mubr.msk.f32.mxu1 %vm16537_vm1, %v22738_v14 }
0x1692   : > { %13638 = vmatprep.subr.mxu1 %v22738_v14  ;;  %v6892_v46 = vpop.permute.xlu0 %6891 }
0x1694   : > { %13614 = vmatmul.mubr.msk.f32.gmra.mrb[116].mxu1 %vm1190_vm2, %v6398_v7  ;;  %v15849_v34 = vpop.permute.xlu1 %15848 }
0x1695   : > { %13616 = vmatprep.mubr.msk.f32.mxu1 %vm16537_vm1, %v22738_v14  ;;  %v15851_v20 = vunpack.i.h.bf16 %v15849_v34  ;;  %v15850_v50 = vunpack.i.l.bf16 %v15849_v34 }
0x1696   : > { %v6896_v62 = vpop.permute.xlu0 %6895 }
0x1697   : > { %v14668_v11 = vpack.c.bf16 %v15851_v20, %v15850_v50 }
0x1698   : > { %13617 = vmatmul.mubr.msk.f32.gmra.mrb[118].mxu1 %vm1190_vm2, %v6404_v28  ;;  %v6894_v37 = vpop.permute.xlu1 %6893 }
0x1699   : > { %13639 = vmatpush3.xpose.msk.msra.mxu1 %vm1190_vm2, %v6658_v60  ;;  %13640 = vmatprep.mubr.msk.f32.mxu1 %vm16537_vm1, %v22738_v14 }
0x169a   : > { %14660 = vmatprep.subr.bf16.mxu1 %v22737_v23  ;;  %v7133_v54 = vpop.permute.xlu0 %7132 }
0x169c   : > { %13641 = vmatmul.mubr.msk.f32.vlgmr.msra.gmra.mrb[120].mxu1 %vm1190_vm2, %v6648_v40  ;;  %v7143_v55 = vpop.permute.xlu1 %7142 }
0x169d   : > { %14663 = vmatpush3.bf16.xpose.msk.msra.mxu1 %vm16814_vm3, %v14661_v59  ;;  %13643 = vmatprep.mubr.msk.f32.mxu1 %vm16537_vm1, %v22738_v14 }
0x169e   : > { %13668 = vmatprep.subr.mxu1 %v22738_v14  ;;  %v7137_v43 = vpop.permute.xlu0 %7136 }
0x16a0   : > { %13644 = vmatmul.mubr.msk.f32.gmra.mrb[122].mxu1 %vm1190_vm2, %v6650_v53  ;;  %v7135_v41 = vpop.permute.xlu1 %7134 }
0x16a1   : > { %13646 = vmatprep.mubr.msk.f32.mxu1 %vm16537_vm1, %v22738_v14 }
0x16a4   : > { %13647 = vmatmul.mubr.msk.f32.gmra.mrb[124].mxu1 %vm1190_vm2, %v6652_v2 }
0x16a5   : > { %13669 = vmatpush3.xpose.msk.msra.mxu1 %vm1190_vm2, %v6902_v24  ;;  %13670 = vmatprep.mubr.msk.f32.mxu1 %vm16537_vm1, %v22738_v14 }
0x16a6   : > { %14667 = vmatprep.subr.bf16.mxu1 %v22737_v23 }
0x16a8   : > { %13671 = vmatmul.mubr.msk.f32.vlgmr.msra.gmra.mrb[126].mxu1 %vm1190_vm2, %v6892_v46 }
0x16a9   : > { %14670 = vmatpush3.bf16.xpose.msk.msra.mxu1 %vm16814_vm3, %v14668_v11  ;;  %13673 = vmatprep.mubr.msk.f32.mxu1 %vm16537_vm1, %v22738_v14 }
0x16aa   : > { %13698 = vmatprep.subr.mxu1 %v22738_v14 }
0x16ac   : > { %13674 = vmatmul.mubr.msk.f32.gmra.mrb[128].mxu1 %vm1190_vm2, %v6894_v37 }
0x16ad   : > { %13676 = vmatprep.mubr.msk.f32.mxu1 %vm16537_vm1, %v22738_v14 }
0x16b0   : > { %13677 = vmatmul.mubr.msk.f32.gmra.mrb[130].mxu1 %vm1190_vm2, %v6896_v62 }
0x16b1   : > { %13699 = vmatpush3.xpose.msk.msra.mxu1 %vm1190_vm2, %v7143_v55  ;;  %13700 = vmatprep.mubr.msk.f32.mxu1 %vm16537_vm1, %v22738_v14 }
0x16b2   : > { %14674 = vmatprep.subr.bf16.mxu1 %v22737_v23 }
0x16b4   : > { %13701 = vmatmul.mubr.msk.f32.vlgmr.msra.gmra.mrb[132].mxu1 %vm1190_vm2, %v7133_v54 }
0x16b5   : > { %13703 = vmatprep.mubr.msk.f32.mxu1 %vm16537_vm1, %v22738_v14 }
0x16b8   : > { %13704 = vmatmul.mubr.msk.f32.gmra.mrb[134].mxu1 %vm1190_vm2, %v7135_v41 }
0x16b9   : > { %13706 = vmatprep.mubr.msk.f32.mxu1 %vm16537_vm1, %v22738_v14 }
0x16bc   : > { %13707 = vmatmul.mubr.msk.f32.gmra.mrb[136].mxu1 %vm1190_vm2, %v7137_v43 }
0x16bd   : > { %13740 = vmatprep.mubr.msk.f32.mxu1 %vm16537_vm1, %v22738_v14 }
0x1763   : > { %v6505_v52 = vpop.f32.mrb[114].mxu1 }
0x1764   : > { %v6519_v9 = vmul.f32 0.25, %v6505_v52  ;;  %v13612_v31 = vpop.f32.mrb[115].mxu1 }
0x1766   : > { %v19906_v38 = vadd.f32 %v16506_v4, %v6519_v9 }
0x1767   : > { %v6510_v12 = vpop.f32.mrb[116].mxu1 }
0x1768   : > { %v6520_v49 = vmul.f32 0.25, %v6510_v12  ;;  %v13615_v7 = vpop.f32.mrb[117].mxu1  ;;  %v6525_v33 = vsel %vm1289_vm4, %v19906_v38, -inf }
0x1769   : > { %6526 = vmax.xlane.f32.xlu1 %v6525_v33 }
0x176a   : > { %v19916_v0 = vadd.f32 %v19913_v29, %v6520_v49 }
0x176b   : > { %v6515_v22 = vpop.f32.mrb[118].mxu1 }
0x176c   : > { %v6521_v25 = vmul.f32 0.25, %v6515_v22  ;;  %v13618_v16 = vpop.f32.mrb[119].mxu1  ;;  %v6528_v28 = vsel %vm1289_vm4, %v19916_v0, -inf }
0x176d   : > { %6529 = vmax.xlane.f32.xlu0 %v6528_v28 }
0x176e   : > { %v19923_v26 = vadd.f32 %v16508_v61, %v6521_v25 }
0x176f   : > { %v6737_v1 = vpop.f32.mrb[120].mxu1 }
0x1770   : > { %v6751_v27 = vmul.f32 0.25, %v6737_v1  ;;  %v13642_v47 = vpop.f32.mrb[121].mxu1  ;;  %v6531_v42 = vsel %vm1289_vm4, %v19923_v26, -inf }
0x1771   : > { %6532 = vmax.xlane.f32.xlu0 %v6531_v42 }
0x1772   : > { %v19927_v8 = vadd.f32 %v16506_v4, %v6751_v27 }
0x1773   : > { %v6742_v3 = vpop.f32.mrb[122].mxu1 }
0x1774   : > { %v6752_v5 = vmul.f32 0.25, %v6742_v3  ;;  %v13645_v60 = vpop.f32.mrb[123].mxu1  ;;  %v6757_v45 = vsel %vm1289_vm4, %v19927_v8, -inf }
0x1775   : > { %6758 = vmax.xlane.f32.xlu1 %v6757_v45  ;;  %v15854_v60 = vpop.permute.xlu1 %15853 }
0x1776   : > { %v19932_v10 = vadd.f32 %v19913_v29, %v6752_v5 }
0x1777   : > { %v6747_v40 = vpop.f32.mrb[124].mxu1 }
0x1778   : > { %v6753_v63 = vmul.f32 0.25, %v6747_v40  ;;  %v13648_v36 = vpop.f32.mrb[125].mxu1  ;;  %v6760_v2 = vsel %vm1289_vm4, %v19932_v10, -inf }
0x1779   : > { %6761 = vmax.xlane.f32.xlu0 %v6760_v2  ;;  %v15856_v2 = vunpack.i.h.bf16 %v15854_v60 }
0x177a   : > { %v19936_v59 = vadd.f32 %v16508_v61, %v6753_v63 }
0x177b   : > { %v6981_v53 = vpop.f32.mrb[126].mxu1 }
0x177c   : > { %v6995_v34 = vmul.f32 0.25, %v6981_v53  ;;  %v13672_v24 = vpop.f32.mrb[127].mxu1  ;;  %v6763_v20 = vsel %vm1289_vm4, %v19936_v59, -inf  ;;  %v15855_v53 = vunpack.i.l.bf16 %v15854_v60 }
0x177d   : > { %6764 = vmax.xlane.f32.xlu1 %v6763_v20 }
0x177e   : > { %v19940_v50 = vadd.f32 %v16506_v4, %v6995_v34 }
0x177f   : > { %v6986_v46 = vpop.f32.mrb[128].mxu1 }
0x1780   : > { %v13675_v11 = vpop.f32.mrb[129].mxu1  ;;  %v7001_v37 = vsel %vm1289_vm4, %v19940_v50, -inf  ;;  %v6996_v12 = vmul.f32 0.25, %v6986_v46 }
0x1781   : > { %7002 = vmax.xlane.f32.xlu0 %v7001_v37  ;;  %v14658_v11 = vpack.c.bf16 %v15856_v2, %v15855_v53 }
0x1782   : > { %v19951_v7 = vadd.f32 %v19913_v29, %v6996_v12 }
0x1783   : > { %v6991_v62 = vpop.f32.mrb[130].mxu1 }
0x1784   : > { %v13678_v55 = vpop.f32.mrb[131].mxu1  ;;  %v6997_v49 = vmul.f32 0.25, %v6991_v62  ;;  %v7004_v16 = vsel %vm1289_vm4, %v19951_v7, -inf }
0x1786   : > { %v19953_v33 = vadd.f32 %v16508_v61, %v6997_v49 }
0x1787   : > { %v7222_v54 = vpop.f32.mrb[132].mxu1 }
0x1788   : > { %v13702_v41 = vpop.f32.mrb[133].mxu1  ;;  %v7236_v22 = vmul.f32 0.25, %v7222_v54  ;;  %v7007_v28 = vsel %vm1289_vm4, %v19953_v33, -inf }
0x178a   : > { %v19955_v25 = vadd.f32 %v16506_v4, %v7236_v22 }
0x178b   : > { %v7227_v43 = vpop.f32.mrb[134].mxu1 }
0x178c   : > { %v13705_v52 = vpop.f32.mrb[135].mxu1  ;;  %v7242_v1 = vsel %vm1289_vm4, %v19955_v25, -inf  ;;  %v7237_v4 = vmul.f32 0.25, %v7227_v43 }
0x178e   : > { %15858 = vrot.lane.b32.xlu1 %v19821_v44, %s22736_s27  ;;  %v19968_v27 = vadd.f32 %v19913_v29, %v7237_v4 }
0x178f   : > { %v7232_v9 = vpop.f32.mrb[136].mxu1 }
0x1790   : > { %v13708_v31 = vpop.f32.mrb[137].mxu1  ;;  %v7238_v47 = vmul.f32 0.25, %v7232_v9  ;;  %v7245_v3 = vsel %vm1289_vm4, %v19968_v27, -inf }
0x1792   : > { %7032 = vrot.lane.b32.xlu1 %v19826_v51, %s22736_s27  ;;  %v19970_v42 = vadd.f32 %v16508_v61, %v7238_v47 }
0x1794   : > { %v7248_v5 = vsel %vm1289_vm4, %v19970_v42, -inf }
0x1797   : > { %6791 = vrot.lane.b32.xlu0 %v19826_v51, %s22734_s22 }
0x17b6   : > { %7005 = vmax.xlane.f32.xlu1 %v7004_v16  ;;  %7008 = vmax.xlane.f32.xlu0 %v7007_v28 }
0x17ba   : > { %7243 = vmax.xlane.f32.xlu0 %v7242_v1 }
0x17c7   : > { %15863 = vrot.lane.b32.xlu1 %v19821_v44, %s22739_s23 }
0x17d0   : > { %7273 = vrot.lane.b32.xlu0 %v19826_v51, %s22739_s23 }
0x17eb   : > { %7246 = vmax.xlane.f32.xlu1 %v7245_v3 }
0x17ef   : > { %7249 = vmax.xlane.f32.xlu0 %v7248_v5 }
0x17f6   : > { %v6527_v44 = vpop.xlane.xlu1 %6526 }
0x17f7   : > { %v6534_v45 = vsub.f32 %v19906_v38, %v6527_v44 }
0x17f9   : > { %v6537_v51 = vmul.f32 1.442695, %v6534_v45 }
0x17fa   : > { %v6530_v40 = vpop.xlane.xlu0 %6529 }
0x17fb   : > { %16355 = vpow2.f32 %v6537_v51  ;;  %v6535_v29 = vsub.f32 %v19916_v0, %v6530_v40 }
0x17fd   : > { %v6539_v63 = vmul.f32 1.442695, %v6535_v29 }
0x17fe   : > { %v6533_v61 = vpop.xlane.xlu0 %6532 }
0x17ff   : > { %16357 = vpow2.f32 %v6539_v63  ;;  %v6536_v36 = vsub.f32 %v19923_v26, %v6533_v61 }
0x1801   : > { %v6541_v34 = vmul.f32 1.442695, %v6536_v36 }
0x1802   : > { %v6759_v24 = vpop.xlane.xlu1 %6758 }
0x1803   : > { %16359 = vpow2.f32 %v6541_v34  ;;  %v6766_v20 = vsub.f32 %v19927_v8, %v6759_v24 }
0x1805   : > { %v16356_v46 = vpop.eup %16355  ;;  %v6769_v38 = vmul.f32 1.442695, %v6766_v20 }
0x1806   : > { %13626 = vmatmul.mubr.msk.f32.vlgmr.msra.gmra.mrb[128].mxu0 %vm1289_vm4, %v16356_v46  ;;  %v6762_v37 = vpop.xlane.xlu0 %6761  ;;  %v6543_v3 = vsel %vm1289_vm4, %v16356_v46, 0.0 }
0x1807   : > { %16361 = vpow2.f32 %v6769_v38  ;;  %14659 = vmatpush3.bf16.msra.mxu0 %v14658_v11  ;;  %v6767_v0 = vsub.f32 %v19932_v10, %v6762_v37  ;;  %13628 = vmatprep.mubr.msk.f32.mxu0 %vm16537_vm1, %v22738_v14 }
0x1808   : > { %13653 = vmatprep.subr.mxu0 %v22738_v14 }
0x1809   : > { %v19985_v26 = vpop.eup %16357  ;;  %v6771_v62 = vmul.f32 1.442695, %v6767_v0 }
0x180a   : > { %13629 = vmatmul.mubr.msk.f32.gmra.mrb[130].mxu0 %vm1289_vm4, %v19985_v26  ;;  %v6765_v8 = vpop.xlane.xlu1 %6764 }
0x180b   : > { %v6768_v55 = vsub.f32 %v19936_v59, %v6765_v8  ;;  %13631 = vmatprep.mubr.msk.f32.mxu0 %vm16537_vm1, %v22738_v14  ;;  %16363 = vpow2.f32 %v6771_v62 }
0x180d   : > { %v19992_v54 = vpop.eup %16359  ;;  %v6773_v10 = vmul.f32 1.442695, %v6768_v55 }
0x180e   : > { %13632 = vmatmul.mubr.msk.f32.gmra.mrb[132].mxu0 %vm1289_vm4, %v19992_v54  ;;  %v15859_v41 = vpop.permute.xlu1 %15858  ;;  %v7003_v43 = vpop.xlane.xlu0 %7002 }
0x180f   : > { %v15861_v52 = vunpack.i.h.bf16 %v15859_v41  ;;  %v15860_v9 = vunpack.i.l.bf16 %v15859_v41  ;;  %v7010_v31 = vsub.f32 %v19940_v50, %v7003_v43  ;;  %13655 = vmatprep.mubr.msk.f32.mxu0 %vm16537_vm1, %v22738_v14  ;;  %16365 = vpow2.f32 %v6773_v10 }
0x1811   : > { %v16362_v59 = vpop.eup %16361  ;;  %v7013_v12 = vmul.f32 1.442695, %v7010_v31  ;;  %v14665_v16 = vpack.c.bf16 %v15861_v52, %v15860_v9 }
0x1812   : > { %v6792_v49 = vpop.permute.xlu0 %6791  ;;  %v6775_v22 = vsel %vm1289_vm4, %v16362_v59, 0.0  ;;  %v7033_v28 = vpop.permute.xlu1 %7032 }
0x1813   : > { %16367 = vpow2.f32 %v7013_v12  ;;  %13654 = vmatpush3.msra.mxu0 %v6792_v49  ;;  %6776 = vadd.xlane.f32.xlu0 %v6775_v22 }
0x1814   : > { %13656 = vmatmul.mubr.msk.f32.vlgmr.msra.gmra.mrb[134].mxu0 %vm1289_vm4, %v16362_v59  ;;  %14664 = vmatprep.subr.bf16.mxu0 %v22737_v23 }
0x1815   : > { %14666 = vmatpush3.bf16.msra.mxu0 %v14665_v16  ;;  %13658 = vmatprep.mubr.msk.f32.mxu0 %vm16537_vm1, %v22738_v14  ;;  %v16364_v50 = vpop.eup %16363 }
0x1816   : > { %13683 = vmatprep.subr.mxu0 %v22738_v14  ;;  %v6778_v38 = vsel %vm1289_vm4, %v16364_v50, 0.0 }
0x1818   : > { %13659 = vmatmul.mubr.msk.f32.gmra.mrb[136].mxu0 %vm1289_vm4, %v16364_v50 }
0x1819   : > { %13684 = vmatpush3.msra.mxu0 %v7033_v28  ;;  %13661 = vmatprep.mubr.msk.f32.mxu0 %vm16537_vm1, %v22738_v14  ;;  %v16366_v1 = vpop.eup %16365 }
0x181a   : > { %14671 = vmatprep.subr.bf16.mxu0 %v22737_v23  ;;  %v6781_v46 = vsel %vm1289_vm4, %v16366_v1, 0.0 }
0x181c   : > { %13662 = vmatmul.mubr.msk.f32.gmra.mrb[138].mxu0 %vm1289_vm4, %v16366_v1 }
0x181d   : > { %v16368_v4 = vpop.eup %16367  ;;  %13685 = vmatprep.mubr.msk.f32.mxu0 %vm16537_vm1, %v22738_v14 }
0x181e   : > { %v7019_v47 = vsel %vm1289_vm4, %v16368_v4, 0.0 }
0x181f   : > { %7020 = vadd.xlane.f32.xlu1 %v7019_v47 }
0x1820   : > { %13686 = vmatmul.mubr.msk.f32.vlgmr.msra.gmra.mrb[140].mxu0 %vm1289_vm4, %v16368_v4 }
0x1821   : > { %13688 = vmatprep.mubr.msk.f32.mxu0 %vm16537_vm1, %v22738_v14 }
0x1823   : > { %6544 = vadd.xlane.f32.xlu1 %v6543_v3 }
0x1843   : > { %v7006_v5 = vpop.xlane.xlu1 %7005  ;;  %v7009_v60 = vpop.xlane.xlu0 %7008 }
0x1844   : > { %v7011_v44 = vsub.f32 %v19951_v7, %v7006_v5  ;;  %v7012_v45 = vsub.f32 %v19953_v33, %v7009_v60  ;;  %v11856_v60 = vld [vmem:[%s22703_s2 + $0x40] sm:$0xff] }
0x1846   : > { %v7015_v51 = vmul.f32 1.442695, %v7011_v44  ;;  %v7017_v40 = vmul.f32 1.442695, %v7012_v45  ;;  %v11857_v44 = vld [vmem:[%s22703_s2 + $0x48] sm:$0xff] }
0x1847   : > { %v15864_v29 = vpop.permute.xlu1 %15863  ;;  %v7244_v63 = vpop.xlane.xlu0 %7243 }
0x1848   : > { %16369 = vpow2.f32 %v7015_v51  ;;  %v15866_v61 = vunpack.i.h.bf16 %v15864_v29  ;;  %v15865_v36 = vunpack.i.l.bf16 %v15864_v29  ;;  %v7251_v2 = vsub.f32 %v19955_v25, %v7244_v63 }
0x1849   : > { %16371 = vpow2.f32 %v7017_v40  ;;  %v14675_v51 = vpack.c.bf16 %v11857_v44, %v11856_v60 }
0x184a   : > { %v14672_v53 = vpack.c.bf16 %v15866_v61, %v15865_v36  ;;  %v7254_v34 = vmul.f32 1.442695, %v7251_v2 }
0x184b   : > { %v7274_v24 = vpop.permute.xlu0 %7273  ;;  %14676 = vmatpush3.bf16.msra.mxu1 %v14675_v51 }
0x184c   : > { %16373 = vpow2.f32 %v7254_v34  ;;  %14673 = vmatpush3.bf16.msra.mxu0 %v14672_v53  ;;  %14677 = vmatprep.subr.bf16.mxu1 %v22737_v23  ;;  %v6546_v53 = vsel %vm1289_vm4, %v19985_v26, 0.0  ;;  %v11860_v26 = vld [vmem:[%s22703_s2 + $0x60] sm:$0xff] }
0x184d   : > { %13713 = vmatprep.subr.mxu0 %v22738_v14 }
0x1850   : > { %13714 = vmatpush3.msra.mxu0 %v7274_v24  ;;  %v11858_v24 = vld [vmem:[%s22703_s2 + $0x50] sm:$0xff] }
0x1851   : > { %14686 = vmatprep.subr.bf16.mxu0 %v22737_v23 }
0x1852   : > { %v16370_v7 = vpop.eup %16369 }
0x1853   : > { %13689 = vmatmul.mubr.msk.f32.gmra.mrb[142].mxu0 %vm1289_vm4, %v16370_v7  ;;  %v7022_v33 = vsel %vm1289_vm4, %v16370_v7, 0.0  ;;  %v16372_v25 = vpop.eup %16371  ;;  %v11859_v7 = vld [vmem:[%s22703_s2 + $0x58] sm:$0xff] }
0x1854   : > { %7023 = vadd.xlane.f32.xlu1 %v7022_v33  ;;  %13691 = vmatprep.mubr.msk.f32.mxu0 %vm16537_vm1, %v22738_v14  ;;  %v7025_v37 = vsel %vm1289_vm4, %v16372_v25, 0.0  ;;  %v14678_v33 = vpack.c.bf16 %v11859_v7, %v11858_v24 }
0x1856   : > { %v16374_v20 = vpop.eup %16373  ;;  %14679 = vmatpush3.bf16.msra.mxu1 %v14678_v33 }
0x1857   : > { %13692 = vmatmul.mubr.msk.f32.gmra.mrb[144].mxu0 %vm1289_vm4, %v16372_v25  ;;  %v7260_v11 = vsel %vm1289_vm4, %v16374_v20, 0.0  ;;  %14680 = vmatprep.subr.bf16.mxu1 %v22737_v23 }
0x1858   : > { %6782 = vadd.xlane.f32.xlu1 %v6781_v46  ;;  %7261 = vadd.xlane.f32.xlu0 %v7260_v11 }
0x1859   : > { %13715 = vmatprep.mubr.msk.f32.mxu0 %vm16537_vm1, %v22738_v14 }
0x185b   : > { %13716 = vmatmul.mubr.msk.f32.vlgmr.msra.gmra.mrb[146].mxu0 %vm1289_vm4, %v16374_v20  ;;  %v11861_v20 = vld [vmem:[%s22703_s2 + $0x68] sm:$0xff] }
0x185c   : > { %6779 = vadd.xlane.f32.xlu0 %v6778_v38  ;;  %13718 = vmatprep.mubr.msk.f32.mxu0 %vm16537_vm1, %v22738_v14  ;;  %v14681_v11 = vpack.c.bf16 %v11861_v20, %v11860_v26  ;;  %v11862_v38 = vld [vmem:[%s22703_s2 + $0x70] sm:$0xff] }
0x185d   : > { %v11918_v26 = vld [vmem:[%s22614_s12 + $0x50] sm:$0xff] }
0x185e   : > { %14682 = vmatpush3.bf16.msra.mxu1 %v14681_v11 }
0x185f   : > { %14683 = vmatprep.subr.bf16.mxu1 %v22737_v23 }
0x1860   : > { %7026 = vadd.xlane.f32.xlu0 %v7025_v37  ;;  %v11863_v37 = vld [vmem:[%s22703_s2 + $0x78] sm:$0xff] }
0x1878   : > { %v7247_v0 = vpop.xlane.xlu1 %7246 }
0x1879   : > { %v7252_v62 = vsub.f32 %v19968_v27, %v7247_v0  ;;  %v14684_v0 = vpack.c.bf16 %v11863_v37, %v11862_v38 }
0x187b   : > { %v7256_v8 = vmul.f32 1.442695, %v7252_v62  ;;  %14685 = vmatpush3.bf16.msra.mxu1 %v14684_v0  ;;  %v11921_v0 = vld [vmem:[%s22614_s12 + $0x68] sm:$0xff] }
0x187c   : > { %v7250_v55 = vpop.xlane.xlu0 %7249 }
0x187d   : > { %16375 = vpow2.f32 %v7256_v8  ;;  %v7253_v10 = vsub.f32 %v19970_v42, %v7250_v55 }
0x187f   : > { %v7258_v41 = vmul.f32 1.442695, %v7253_v10 }
0x1881   : > { %16377 = vpow2.f32 %v7258_v41 }
0x1887   : > { %v16376_v43 = vpop.eup %16375 }
0x1888   : > { %13719 = vmatmul.mubr.msk.f32.gmra.mrb[148].mxu0 %vm1289_vm4, %v16376_v43  ;;  %v7263_v52 = vsel %vm1289_vm4, %v16376_v43, 0.0 }
0x1889   : > { %7264 = vadd.xlane.f32.xlu0 %v7263_v52  ;;  %13721 = vmatprep.mubr.msk.f32.mxu0 %vm16537_vm1, %v22738_v14 }
0x188b   : > { %v16378_v9 = vpop.eup %16377 }
0x188c   : > { %13722 = vmatmul.mubr.msk.f32.gmra.mrb[150].mxu0 %vm1289_vm4, %v16378_v9  ;;  %v7266_v27 = vsel %vm1289_vm4, %v16378_v9, 0.0 }
0x188d   : > { %7267 = vadd.xlane.f32.xlu1 %v7266_v27  ;;  %13765 = vmatprep.mubr.msk.f32.mxu0 %vm16537_vm1, %v22738_v14 }
0x18a0   : > { %v6777_v31 = vpop.xlane.xlu0 %6776 }
0x18a1   : > { %16379 = vrcp.f32 %v6777_v31 }
0x18ab   : > { %v16380_v28 = vpop.eup %16379 }
0x18ac   : > { %v7021_v50 = vpop.xlane.xlu1 %7020 }
0x18ad   : > { %16381 = vrcp.f32 %v7021_v50 }
0x18b0   : > { %v6545_v31 = vpop.xlane.xlu1 %6544 }
0x18b7   : > { %v16382_v29 = vpop.eup %16381 }
0x18d9   : > { %v20046_v42 = vpop.f32.mrb[128].mxu0 }
0x18da   : > { %v13627_v59 = vpop.f32.mrb[129].mxu0 }
0x18dd   : > { %v20048_v12 = vpop.f32.mrb[130].mxu0 }
0x18de   : > { %v13630_v49 = vpop.f32.mrb[131].mxu0 }
0x18e1   : > { %v20050_v22 = vpop.f32.mrb[132].mxu0  ;;  %v7024_v49 = vpop.xlane.xlu1 %7023 }
0x18e2   : > { %v13633_v16 = vpop.f32.mrb[133].mxu0 }
0x18e3   : > { %v6549_v16 = vsel %vm1289_vm4, %v19992_v54, 0.0 }
0x18e5   : > { %v7262_v2 = vpop.xlane.xlu0 %7261  ;;  %v6783_v50 = vpop.xlane.xlu1 %6782 }
0x18e7   : > { %v6871_v1 = vpop.f32.mrb[134].mxu0 }
0x18e8   : > { %v6886_v4 = vmul.f32 %v16380_v28, %v6871_v1  ;;  %v13657_v47 = vpop.f32.mrb[135].mxu0 }
0x18e9   : > { %v6780_v34 = vpop.xlane.xlu0 %6779 }
0x18ea   : > { %7376 = vrot.lane.b32.xlu0 %v6886_v4, %s22740_s24  ;;  %16383 = vrcp.f32 %v6780_v34 }
0x18eb   : > { %v6876_v3 = vpop.f32.mrb[136].mxu0  ;;  %16385 = vrcp.f32 %v7262_v2 }
0x18ec   : > { %v13660_v5 = vpop.f32.mrb[137].mxu0 }
0x18ed   : > { %v7027_v27 = vpop.xlane.xlu0 %7026 }
0x18ef   : > { %v20059_v45 = vpop.f32.mrb[138].mxu0 }
0x18f0   : > { %v13663_v40 = vpop.f32.mrb[139].mxu0 }
0x18f3   : > { %v7112_v63 = vpop.f32.mrb[140].mxu0 }
0x18f4   : > { %v7127_v61 = vmul.f32 %v16382_v29, %v7112_v63  ;;  %v13687_v36 = vpop.f32.mrb[141].mxu0  ;;  %v16384_v25 = vpop.eup %16383  ;;  %v11916_v63 = vld [vmem:[%s22614_s12 + $0x40] sm:$0xff] }
0x18f5   : > { %v6888_v46 = vmul.f32 %v16384_v25, %v6876_v3  ;;  %v16386_v41 = vpop.eup %16385 }
0x18f6   : > { %7388 = vrot.lane.b32.xlu1 %v7127_v61, %s22704_s26  ;;  %v11917_v61 = vld [vmem:[%s22614_s12 + $0x48] sm:$0xff] }
0x18f7   : > { %v14698_v36 = vpack.c.bf16 %v11917_v61, %v11916_v63  ;;  %v22755_v63 = vld [vmem:[#allocation12_spill] sm:$0xff]  ;;  %v22756_v61 = vld [vmem:[#allocation13_spill] sm:$0xff] }
0x18f9   : > { %14699 = vmatprep.subr.bf16.mxu1 %v14698_v36 }
0x1909   : > { %6547 = vadd.xlane.f32.xlu0 %v6546_v53 }
0x1916   : > { %v7265_v59 = vpop.xlane.xlu0 %7264 }
0x1917   : > { %16387 = vrcp.f32 %v7265_v59 }
0x1918   : > { %16389 = vrcp.f32 %v7027_v27 }
0x1919   : > { %16391 = vrcp.f32 %v7024_v49 }
0x191a   : > { %16393 = vrcp.f32 %v6783_v50  ;;  %v7268_v3 = vpop.xlane.xlu1 %7267 }
0x191b   : > { %16395 = vrcp.f32 %v7268_v3 }
0x191c   : > { %16397 = vrcp.f32 %v6545_v31 }
0x191f   : > { %7378 = vrot.lane.b32.xlu0 %v6888_v46, %s22740_s24 }
0x1921   : > { %v16388_v28 = vpop.eup %16387 }
0x1922   : > { %v16390_v5 = vpop.eup %16389 }
0x1923   : > { %v16392_v54 = vpop.eup %16391 }
0x1924   : > { %v16394_v29 = vpop.eup %16393 }
0x1925   : > { %v6890_v2 = vmul.f32 %v16394_v29, %v20059_v45  ;;  %v16396_v53 = vpop.eup %16395  ;;  %v11919_v45 = vld [vmem:[%s22614_s12 + $0x58] sm:$0xff]  ;;  %v22754_v29 = vld [vmem:[#allocation11_spill] sm:$0xff] }
0x1926   : > { %v7117_v62 = vpop.f32.mrb[142].mxu0  ;;  %v16398_v24 = vpop.eup %16397  ;;  %v14702_v38 = vpack.c.bf16 %v11919_v45, %v11918_v26 }
0x1927   : > { %v13690_v8 = vpop.f32.mrb[143].mxu0  ;;  %v7129_v40 = vmul.f32 %v16392_v54, %v7117_v62  ;;  %v6642_v25 = vmul.f32 %v16398_v24, %v20046_v42  ;;  %v11920_v42 = vld [vmem:[%s22614_s12 + $0x60] sm:$0xff]  ;;  %v22749_v54 = vld [vmem:[#allocation6_spill] sm:$0xff]  ;;  %v22761_v24 = vld [vmem:[#allocation17_spill] sm:$0xff] }
0x1928   : > { %v14706_v62 = vpack.c.bf16 %v11921_v0, %v11920_v42  ;;  %v11922_v8 = vld [vmem:[%s22614_s12 + $0x70] sm:$0xff] }
0x192a   : > { %v7122_v55 = vpop.f32.mrb[144].mxu0 }
0x192b   : > { %v13693_v10 = vpop.f32.mrb[145].mxu0  ;;  %v7131_v44 = vmul.f32 %v16390_v5, %v7122_v55  ;;  %v11923_v55 = vld [vmem:[%s22614_s12 + $0x78] sm:$0xff] }
0x192c   : > { %v14710_v10 = vpack.c.bf16 %v11923_v55, %v11922_v8 }
0x192e   : > { %v7353_v43 = vpop.f32.mrb[146].mxu0 }
0x192f   : > { %v7368_v52 = vmul.f32 %v16386_v41, %v7353_v43  ;;  %v13717_v9 = vpop.f32.mrb[147].mxu0 }
0x1931   : > { %7400 = vrot.lane.b32.xlu1 %v7368_v52, %s22705_s28 }
0x1955   : > { %6550 = vadd.xlane.f32.xlu1 %v6549_v16 }
0x195b   : > { %v7358_v1 = vpop.f32.mrb[148].mxu0 }
0x195c   : > { %v7370_v4 = vmul.f32 %v16388_v28, %v7358_v1  ;;  %v13720_v47 = vpop.f32.mrb[149].mxu0  ;;  %v7377_v7 = vpop.permute.xlu0 %7376 }
0x195d   : > { %v7409_v20 = vsel %vm1190_vm2, %v6642_v25, %v7377_v7  ;;  %v22762_v7 = vld [vmem:[#allocation19_spill] sm:$0xff] }
0x195e   : > { %7402 = vrot.lane.b32.xlu0 %v7370_v4, %s22705_s28 }
0x195f   : > { %v7363_v60 = vpop.f32.mrb[150].mxu0 }
0x1960   : > { %v13723_v51 = vpop.f32.mrb[151].mxu0  ;;  %v7372_v34 = vmul.f32 %v16396_v53, %v7363_v60  ;;  %v22759_v53 = vld [vmem:[#allocation16_spill] sm:$0xff] }
0x1961   : > { %v22748_v51 = vld [vmem:[#allocation5_spill] sm:$0xff] }
0x1962   : > { %7392 = vrot.lane.b32.xlu0 %v7131_v44, %s22704_s26  ;;  %v22747_v44 = vld [vmem:[#allocation4_spill] sm:$0xff] }
0x1966   : > { %7390 = vrot.lane.b32.xlu1 %v7129_v40, %s22704_s26  ;;  %v22750_v40 = vld [vmem:[#allocation7_spill] sm:$0xff] }
0x1968   : > { %v7389_v33 = vpop.permute.xlu1 %7388 }
0x1969   : > { %v7412_v46 = vsel %vm2177_vm5, %v7409_v20, %v7389_v33  ;;  %v11900_v33 = vld [vmem:[%s22611_s9 + $0x1] ss:$0 sm:$0xff] }
0x196a   : > { %7380 = vrot.lane.b32.xlu1 %v6890_v2, %s22740_s24  ;;  %v22758_v2 = vld [vmem:[#allocation15_spill] sm:$0xff] }
0x196e   : > { %7404 = vrot.lane.b32.xlu1 %v7372_v34, %s22705_s28  ;;  %v22760_v34 = vld [vmem:[#allocation18_spill] sm:$0xff] }
0x1996   : > { %v6548_v41 = vpop.xlane.xlu0 %6547 }
0x1997   : > { %16399 = vrcp.f32 %v6548_v41 }
0x199a   : > { %v7379_v27 = vpop.permute.xlu0 %7378 }
0x19a1   : > { %v16400_v43 = vpop.eup %16399 }
0x19a2   : > { %v6644_v52 = vmul.f32 %v16400_v43, %v20048_v12 }
0x19a3   : > { %v7401_v11 = vpop.permute.xlu1 %7400 }
0x19a4   : > { %v7415_v37 = vsel %vm2181_vm6, %v7412_v46, %v7401_v11  ;;  %v7410_v31 = vsel %vm1190_vm2, %v6644_v52, %v7379_v27 }
0x19a5   : > { %13741 = vmatmul.mubr.msk.f32.vlgmr.msra.gmra.mrb[138].mxu1 %vm1079_vm0, %v7415_v37 }
0x19a6   : > { %13743 = vmatprep.mubr.msk.f32.mxu1 %vm16537_vm1, %v22738_v14  ;;  %14701 = vmatpush3.bf16.msra.mxu1 %v14698_v36  ;;  %v22757_v36 = vld [vmem:[#allocation14_spill] sm:$0xff] }
0x19a7   : > { %14703 = vmatprep.subr.bf16.mxu1 %v14702_v38 }
0x19aa   : > { %14705 = vmatpush3.bf16.msra.mxu1 %v14702_v38 }
0x19ab   : > { %14707 = vmatprep.subr.bf16.mxu1 %v14706_v62 }
0x19ae   : > { %14709 = vmatpush3.bf16.msra.mxu1 %v14706_v62 }
0x19af   : > { %14711 = vmatprep.subr.bf16.mxu1 %v14710_v10 }
0x19b2   : > { %14713 = vmatpush3.bf16.msra.mxu1 %v14710_v10 }
0x19b3   : > { %14754 = vmatprep.subr.bf16.mxu1 %v22737_v23 }
0x19d0   : > { %v7403_v49 = vpop.permute.xlu0 %7402 }
0x19d4   : > { %v7393_v4 = vpop.permute.xlu0 %7392 }
0x19e2   : > { %v6551_v9 = vpop.xlane.xlu1 %6550 }
0x19e3   : > { %16401 = vrcp.f32 %v6551_v9 }
0x19e6   : > { %v7391_v59 = vpop.permute.xlu1 %7390 }
0x19e7   : > { %v7413_v16 = vsel %vm2177_vm5, %v7410_v31, %v7391_v59 }
0x19e8   : > { %v7416_v50 = vsel %vm2181_vm6, %v7413_v16, %v7403_v49 }
0x19e9   : > { %13744 = vmatmul.mubr.msk.f32.gmra.mrb[140].mxu1 %vm1079_vm0, %v7416_v50 }
0x19ea   : > { %13746 = vmatprep.mubr.msk.f32.mxu1 %vm16537_vm1, %v22738_v14  ;;  %v7381_v28 = vpop.permute.xlu1 %7380 }
0x19ed   : > { %v16402_v1 = vpop.eup %16401 }
0x19ee   : > { %v6646_v12 = vmul.f32 %v16402_v1, %v20050_v22  ;;  %v7405_v3 = vpop.permute.xlu1 %7404  ;;  %v22746_v22 = vld [vmem:[#allocation3_spill] sm:$0xff] }
0x19f0   : > { %v7411_v47 = vsel %vm1190_vm2, %v6646_v12, %v7381_v28 }
0x19f1   : > { %v7414_v5 = vsel %vm2177_vm5, %v7411_v47, %v7393_v4 }
0x19f2   : > { %v7417_v60 = vsel %vm2181_vm6, %v7414_v5, %v7405_v3 }
0x19f3   : > { %13747 = vmatmul.mubr.msk.f32.gmra.mrb[142].mxu1 %vm1079_vm0, %v7417_v60 }
0x19f4   : > { %13790 = vmatprep.mubr.msk.f32.mxu1 %vm1079_vm0, %v17174_v56  ;;  %v22751_v56 = vld [vmem:[#allocation8_spill] sm:$0xff] }
0x19f7   : > { %13791 = vmatmul.mubr.msk.f32.vlgmr.msra.gmra.mrb[144].mxu1 %vm1079_vm0, %v17216_v35  ;;  %v22752_v35 = vld [vmem:[#allocation9_spill] sm:$0xff] }
0x19f8   : > { %13793 = vmatprep.mubr.msk.f32.mxu1 %vm1079_vm0, %v17221_v48  ;;  %v22753_v48 = vld [vmem:[#allocation10_spill] sm:$0xff] }
0x19fb   : > { %13794 = vmatmul.mubr.msk.f32.gmra.mrb[146].mxu1 %vm1079_vm0, %v22746_v22 }
0x19fc   : > { %13796 = vmatprep.mubr.msk.f32.mxu1 %vm1079_vm0, %v22747_v44 }
0x19ff   : > { %13797 = vmatmul.mubr.msk.f32.gmra.mrb[148].mxu1 %vm1079_vm0, %v22748_v51 }
0x1a00   : > { %13799 = vmatprep.mubr.msk.f32.mxu1 %vm1079_vm0, %v22749_v54 }
0x1a03   : > { %13800 = vmatmul.mubr.msk.f32.gmra.mrb[150].mxu1 %vm1079_vm0, %v22750_v40 }
0x1a04   : > { %13802 = vmatprep.mubr.msk.f32.mxu1 %vm1079_vm0, %v22751_v56 }
0x1a07   : > { %13803 = vmatmul.mubr.msk.f32.gmra.mrb[152].mxu1 %vm1079_vm0, %v22752_v35 }
0x1a08   : > { %13805 = vmatprep.mubr.msk.f32.mxu1 %vm1079_vm0, %v22753_v48 }
0x1a0b   : > { %13806 = vmatmul.mubr.msk.f32.gmra.mrb[154].mxu1 %vm1079_vm0, %v22754_v29 }
0x1a0c   : > { %13808 = vmatprep.mubr.msk.f32.mxu1 %vm1079_vm0, %v22755_v63 }
0x1a0f   : > { %13809 = vmatmul.mubr.msk.f32.gmra.mrb[156].mxu1 %vm1079_vm0, %v22756_v61 }
0x1a10   : > { %13811 = vmatprep.mubr.msk.f32.mxu1 %vm1079_vm0, %v22757_v36 }
0x1a13   : > { %13812 = vmatmul.mubr.msk.f32.gmra.mrb[158].mxu1 %vm1079_vm0, %v22758_v2 }
0x1a14   : > { %13814 = vmatprep.mubr.msk.f32.mxu1 %vm1079_vm0, %v22759_v53 }
0x1a17   : > { %13815 = vmatmul.mubr.msk.f32.gmra.mrb[160].mxu1 %vm1079_vm0, %v22760_v34 }
0x1a18   : > { %13817 = vmatprep.mubr.msk.f32.mxu1 %vm1079_vm0, %v22761_v24 }
0x1a1b   : > { %13818 = vmatmul.mubr.msk.f32.gmra.mrb[162].mxu1 %vm1079_vm0, %v22762_v7 }
0x1a78   : > { %v7497_v25 = vpop.f32.mrb[138].mxu1 }
0x1a79   : > { %v7498_v26 = vadd.f32 %v11900_v33, %v7497_v25  ;;  %v13742_v45 = vpop.f32.mrb[139].mxu1 }
0x1a7b   : > { %v20183_v20 = vadd.f32 %v7498_v26, %v19798_v19  ;;  %v11924_v19 = vld [vmem:[%s22615_s13 + $0x1] ss:$0 sm:$0xff] }
0x1a7d   : > { %v7514_v46 = vsel %vm1079_vm0, %v20183_v20, 0.0 }
0x1a7e   : > { %7515 = vadd.xlane.f32.xlu0 %v7514_v46 }
0x1abc   : > { %v7502_v11 = vpop.f32.mrb[140].mxu1 }
0x1abd   : > { %v7503_v38 = vadd.f32 %v11900_v33, %v7502_v11  ;;  %v13745_v37 = vpop.f32.mrb[141].mxu1 }
0x1abf   : > { %v20188_v42 = vadd.f32 %v7503_v38, %v19804_v58 }
0x1ac1   : > { %v7517_v0 = vsel %vm1079_vm0, %v20188_v42, 0.0 }
0x1ac2   : > { %7518 = vadd.xlane.f32.xlu1 %v7517_v0 }
0x1ac6   : > { %v7507_v62 = vpop.f32.mrb[142].mxu1 }
0x1ac7   : > { %v7508_v8 = vadd.f32 %v11900_v33, %v7507_v62  ;;  %v13748_v55 = vpop.f32.mrb[143].mxu1 }
0x1ac9   : > { %v20196_v10 = vadd.f32 %v7508_v8, %v19810_v6 }
0x1aca   : > { %v13792_v41 = vpop.f32.mrb[144].mxu1 }
0x1acb   : > { %v20198_v43 = vadd.f32 %v13792_v41, %v11924_v19  ;;  %v7750_v52 = vpop.f32.mrb[145].mxu1  ;;  %v7520_v58 = vsel %vm1079_vm0, %v20196_v10, 0.0 }
0x1acc   : > { %v20202_v9 = vadd.f32 %v11924_v19, %v7750_v52  ;;  %7521 = vadd.xlane.f32.xlu0 %v7520_v58 }
0x1ace   : > { %v13795_v27 = vpop.f32.mrb[146].mxu1  ;;  %v20206_v31 = vpack.i.bf16 %v20198_v43, %v20202_v9  ;;  %v14715_v59 = vpack.c.bf16 %v20198_v43, %v20202_v9 }
0x1acf   : > { %v20210_v6 = vadd.f32 %v13795_v27, %v11924_v19  ;;  %v7760_v49 = vpop.f32.mrb[147].mxu1 }
0x1ad0   : > { %v20212_v16 = vadd.f32 %v11924_v19, %v7760_v49 }
0x1ad2   : > { %v13798_v50 = vpop.f32.mrb[148].mxu1  ;;  %v20216_v28 = vpack.i.bf16 %v20210_v6, %v20212_v16  ;;  %v14719_v1 = vpack.c.bf16 %v20210_v6, %v20212_v16 }
0x1ad3   : > { %v20220_v12 = vadd.f32 %v13798_v50, %v11924_v19  ;;  %v7770_v4 = vpop.f32.mrb[149].mxu1 }
0x1ad4   : > { %v20222_v47 = vadd.f32 %v11924_v19, %v7770_v4 }
0x1ad6   : > { %v13801_v3 = vpop.f32.mrb[150].mxu1  ;;  %v20226_v5 = vpack.i.bf16 %v20220_v12, %v20222_v47  ;;  %v14723_v60 = vpack.c.bf16 %v20220_v12, %v20222_v47 }
0x1ad7   : > { %v20230_v22 = vadd.f32 %v13801_v3, %v11924_v19  ;;  %v7780_v44 = vpop.f32.mrb[151].mxu1 }
0x1ad8   : > { %v20232_v51 = vadd.f32 %v11924_v19, %v7780_v44 }
0x1ada   : > { %v13804_v54 = vpop.f32.mrb[152].mxu1  ;;  %v20236_v40 = vpack.i.bf16 %v20230_v22, %v20232_v51  ;;  %v14727_v56 = vpack.c.bf16 %v20230_v22, %v20232_v51 }
0x1adb   : > { %v20240_v35 = vadd.f32 %v13804_v54, %v11924_v19  ;;  %v7790_v48 = vpop.f32.mrb[153].mxu1 }
0x1adc   : > { %v20242_v29 = vadd.f32 %v11924_v19, %v7790_v48 }
0x1ade   : > { %v13807_v63 = vpop.f32.mrb[154].mxu1  ;;  %v20246_v61 = vpack.i.bf16 %v20240_v35, %v20242_v29  ;;  %v14731_v36 = vpack.c.bf16 %v20240_v35, %v20242_v29 }
0x1adf   : > { %v20250_v2 = vadd.f32 %v13807_v63, %v11924_v19  ;;  %v7800_v53 = vpop.f32.mrb[155].mxu1 }
0x1ae0   : > { %v20252_v34 = vadd.f32 %v11924_v19, %v7800_v53 }
0x1ae2   : > { %v13810_v24 = vpop.f32.mrb[156].mxu1  ;;  %v20256_v7 = vpack.i.bf16 %v20250_v2, %v20252_v34  ;;  %v14735_v33 = vpack.c.bf16 %v20250_v2, %v20252_v34 }
0x1ae3   : > { %v20260_v25 = vadd.f32 %v13810_v24, %v11924_v19  ;;  %v7810_v26 = vpop.f32.mrb[157].mxu1 }
0x1ae4   : > { %v20262_v45 = vadd.f32 %v11924_v19, %v7810_v26 }
0x1ae6   : > { %v13813_v46 = vpop.f32.mrb[158].mxu1  ;;  %v20266_v11 = vpack.i.bf16 %v20260_v25, %v20262_v45  ;;  %v14739_v38 = vpack.c.bf16 %v20260_v25, %v20262_v45 }
0x1ae7   : > { %v20270_v37 = vadd.f32 %v13813_v46, %v11924_v19  ;;  %v7820_v0 = vpop.f32.mrb[159].mxu1 }
0x1ae8   : > { %v20272_v62 = vadd.f32 %v11924_v19, %v7820_v0 }
0x1aea   : > { %v13816_v8 = vpop.f32.mrb[160].mxu1  ;;  %v20276_v55 = vpack.i.bf16 %v20270_v37, %v20272_v62  ;;  %v14743_v41 = vpack.c.bf16 %v20270_v37, %v20272_v62 }
0x1aeb   : > { %v20280_v52 = vadd.f32 %v13816_v8, %v11924_v19  ;;  %v7830_v58 = vpop.f32.mrb[161].mxu1  ;;  %v11905_v8 = vld [vmem:[%s22763_s25 + $0x48] sm:$0xff] }
0x1aec   : > { %v20282_v27 = vadd.f32 %v11924_v19, %v7830_v58 }
0x1aee   : > { %v13819_v49 = vpop.f32.mrb[162].mxu1  ;;  %v20286_v50 = vpack.i.bf16 %v20280_v52, %v20282_v27  ;;  %v14747_v4 = vpack.c.bf16 %v20280_v52, %v20282_v27 }
0x1aef   : > { %v20290_v3 = vadd.f32 %v13819_v49, %v11924_v19  ;;  %v7840_v44 = vpop.f32.mrb[163].mxu1  ;;  %v11907_v49 = vld [vmem:[%s22763_s25 + $0x58] sm:$0xff] }
0x1af0   : > { %v20292_v54 = vadd.f32 %v11924_v19, %v7840_v44  ;;  %v11904_v19 = vld [vmem:[%s22763_s25 + $0x40] sm:$0xff] }
0x1af1   : > { %v14687_v58 = vpack.c.bf16 %v11905_v8, %v11904_v19  ;;  %v11911_v19 = vld [vmem:[%s22763_s25 + $0x78] sm:$0xff] }
0x1af2   : > { %v20296_v48 = vpack.i.bf16 %v20290_v3, %v20292_v54 }
0x1af3   : > { %14688 = vmatpush3.bf16.msra.mxu0 %v14687_v58 }
0x1af4   : > { %14689 = vmatprep.subr.bf16.mxu0 %v22737_v23 }
0x1b0b   : > { %v7516_v53 = vpop.xlane.xlu0 %7515 }
0x1b0c   : > { %v7523_v24 = vmul.f32 0.015625, %v7516_v53  ;;  %v11908_v53 = vld [vmem:[%s22763_s25 + $0x60] sm:$0xff] }
0x1b0e   : > { %v7526_v26 = vsub.f32 %v20183_v20, %v7523_v24  ;;  %v11906_v20 = vld [vmem:[%s22763_s25 + $0x50] sm:$0xff]  ;;  %v11909_v24 = vld [vmem:[%s22763_s25 + $0x68] sm:$0xff] }
0x1b0f   : > { %v14690_v44 = vpack.c.bf16 %v11907_v49, %v11906_v20 }
0x1b10   : > { %v7529_v46 = vmul.f32 %v7526_v26, %v7526_v26 }
0x1b11   : > { %14691 = vmatpush3.bf16.msra.mxu0 %v14690_v44 }
0x1b12   : > { %v7532_v0 = vsel %vm1079_vm0, %v7529_v46, 0.0  ;;  %14692 = vmatprep.subr.bf16.mxu0 %v22737_v23  ;;  %v14693_v46 = vpack.c.bf16 %v11909_v24, %v11908_v53 }
0x1b13   : > { %7533 = vadd.xlane.f32.xlu0 %v7532_v0  ;;  %v11910_v0 = vld [vmem:[%s22763_s25 + $0x70] sm:$0xff] }
0x1b14   : > { %v14696_v8 = vpack.c.bf16 %v11911_v19, %v11910_v0 }
0x1b15   : > { %14694 = vmatpush3.bf16.msra.mxu0 %v14693_v46 }
0x1b16   : > { %14695 = vmatprep.subr.bf16.mxu0 %v22737_v23 }
0x1b19   : > { %14697 = vmatpush3.bf16.msra.mxu0 %v14696_v8 }
0x1b1a   : > { %14714 = vmatprep.subr.bf16.mxu0 %v22737_v23 }
0x1b4f   : > { %v7519_v58 = vpop.xlane.xlu1 %7518 }
0x1b50   : > { %v7524_v20 = vmul.f32 0.015625, %v7519_v58  ;;  %v11834_v58 = vld [vmem:[%s22622_s20 + $0x4] sm:$0x7] }
0x1b52   : > { %v20331_v49 = vsub.f32 %v20188_v42, %v7524_v20  ;;  %v11835_v20 = vld [vmem:[%s22623_s21 + $0x4] sm:$0x7] }
0x1b54   : > { %v7530_v44 = vmul.f32 %v20331_v49, %v20331_v49 }
0x1b56   : > { %v7535_v53 = vsel %vm1079_vm0, %v7530_v44, 0.0  ;;  %v20381_v44 = vrot.slane %v11834_v58, %v16744_v30 }
0x1b57   : > { %7536 = vadd.xlane.f32.xlu1 %v7535_v53 }
0x1b59   : > { %v7522_v24 = vpop.xlane.xlu0 %7521 }
0x1b5a   : > { %v7525_v46 = vmul.f32 0.015625, %v7522_v24 }
0x1b5c   : > { %v20337_v63 = vsub.f32 %v20196_v10, %v7525_v46  ;;  %v20384_v46 = vrot.slane %v11835_v20, %v16744_v30  ;;  %v22764_v20 = vpack.c.bf16 %v20290_v3, %v20292_v54 }
0x1b5e   : > { %v7531_v0 = vmul.f32 %v20337_v63, %v20337_v63 }
0x1b60   : > { %v7538_v19 = vsel %vm1079_vm0, %v7531_v0, 0.0 }
0x1b61   : > { %7539 = vadd.xlane.f32.xlu0 %v7538_v19 }
0x1b68   : > { %15868 = vrot.lane.b32.xlu1 %v20206_v31, %s22727_s30 }
0x1b6c   : > { %15878 = vrot.lane.b32.xlu1 %v20226_v5, %s22727_s30 }
0x1b70   : > { %15883 = vrot.lane.b32.xlu1 %v20236_v40, %s22727_s30 }
0x1b77   : > { %15873 = vrot.lane.b32.xlu0 %v20216_v28, %s22727_s30 }
0x1b7b   : > { %15888 = vrot.lane.b32.xlu0 %v20246_v61, %s22727_s30 }
0x1b7f   : > { %15893 = vrot.lane.b32.xlu0 %v20256_v7, %s22727_s30 }
0x1b83   : > { %15898 = vrot.lane.b32.xlu0 %v20266_v11, %s22727_s30 }
0x1b87   : > { %15903 = vrot.lane.b32.xlu0 %v20276_v55, %s22727_s30 }
0x1b8b   : > { %15908 = vrot.lane.b32.xlu0 %v20286_v50, %s22727_s30 }
0x1b8f   : > { %15913 = vrot.lane.b32.xlu0 %v20296_v48, %s22727_s30  ;;  %s11630_s30 = sshll.u32 %s22781_s3, 3 }
0x1b93   : > { %15918 = vrot.lane.b32.xlu0 %v20206_v31, %s22734_s22 }
0x1b97   : > { %15923 = vrot.lane.b32.xlu0 %v20216_v28, %s22734_s22 }
0x1b9b   : > { %15928 = vrot.lane.b32.xlu0 %v20226_v5, %s22734_s22 }
0x1b9f   : > { %15933 = vrot.lane.b32.xlu0 %v20236_v40, %s22734_s22 }
0x1ba0   : > { %v7534_v42 = vpop.xlane.xlu0 %7533 }
0x1ba1   : > { %v7541_v10 = vmul.f32 0.015625, %v7534_v42 }
0x1ba3   : > { %v7544_v8 = vadd.f32 1e-05, %v7541_v10  ;;  %15943 = vrot.lane.b32.xlu0 %v20256_v7, %s22734_s22 }
0x1ba5   : > { %16403 = vrsqrt.f32 %v7544_v8 }
0x1ba7   : > { %15948 = vrot.lane.b32.xlu0 %v20266_v11, %s22734_s22 }
0x1baf   : > { %v16404_v53 = vpop.eup %16403 }
0x1bb0   : > { %v7550_v24 = vmul.f32 %v16404_v53, %v7526_v26 }
0x1bb2   : > { %v7557_v0 = vmul.f32 %v20381_v44, %v7550_v24 }
0x1bb4   : > { %v20388_v19 = vadd.f32 %v20384_v46, %v7557_v0 }
0x1bb6   : > { %13766 = vmatmul.mubr.msk.f32.vlgmr.msra.gmra.mrb[152].mxu0 %vm1079_vm0, %v20388_v19 }
0x1bb7   : > { %14717 = vmatpush1.bf16.xpose.msk.msra.mxu0 %vm16814_vm3, %v14715_v59  ;;  %13768 = vmatprep.mubr.msk.f32.mxu0 %vm16537_vm1, %v22738_v14 }
0x1bb8   : > { %14718 = vmatprep.subr.bf16.mxu0 %v22737_v23 }
0x1bbf   : > { %14721 = vmatpush1.bf16.xpose.msk.msra.mxu0 %vm16814_vm3, %v14719_v1 }
0x1bc0   : > { %14722 = vmatprep.subr.bf16.mxu0 %v22737_v23 }
0x1bc7   : > { %14725 = vmatpush1.bf16.xpose.msk.msra.mxu0 %vm16814_vm3, %v14723_v60 }
0x1bc8   : > { %14726 = vmatprep.subr.bf16.mxu0 %v22737_v23 }
0x1bcf   : > { %14729 = vmatpush1.bf16.xpose.msk.msra.mxu0 %vm16814_vm3, %v14727_v56 }
0x1bd0   : > { %14730 = vmatprep.subr.bf16.mxu0 %v22737_v23 }
0x1bd7   : > { %14733 = vmatpush1.bf16.xpose.msk.msra.mxu0 %vm16814_vm3, %v14731_v36 }
0x1bd8   : > { %14734 = vmatprep.subr.bf16.mxu0 %v22737_v23 }
0x1bdf   : > { %14737 = vmatpush1.bf16.xpose.msk.msra.mxu0 %vm16814_vm3, %v14735_v33 }
0x1be0   : > { %14738 = vmatprep.subr.bf16.mxu0 %v22737_v23 }
0x1be4   : > { %v7537_v43 = vpop.xlane.xlu1 %7536 }
0x1be5   : > { %v7542_v9 = vmul.f32 0.015625, %v7537_v43 }
0x1be7   : > { %v7545_v59 = vadd.f32 1e-05, %v7542_v9  ;;  %14741 = vmatpush1.bf16.xpose.msk.msra.mxu0 %vm16814_vm3, %v14739_v38 }
0x1be8   : > { %v15869_v6 = vpop.permute.xlu1 %15868  ;;  %14742 = vmatprep.subr.bf16.mxu0 %v22737_v23 }
0x1be9   : > { %16405 = vrsqrt.f32 %v7545_v59  ;;  %v15871_v16 = vunpack.i.h.bf16 %v15869_v6  ;;  %v15870_v1 = vunpack.i.l.bf16 %v15869_v6 }
0x1beb   : > { %v14755_v12 = vpack.c.bf16 %v15871_v16, %v15870_v1 }
0x1bec   : > { %v15879_v22 = vpop.permute.xlu1 %15878 }
0x1bed   : > { %14756 = vmatpush1.bf16.msra.mxu1 %v14755_v12  ;;  %v15881_v34 = vunpack.i.h.bf16 %v15879_v22  ;;  %v15880_v33 = vunpack.i.l.bf16 %v15879_v22 }
0x1bee   : > { %v7540_v47 = vpop.xlane.xlu0 %7539  ;;  %14757 = vmatprep.subr.bf16.mxu1 %v22737_v23 }
0x1bef   : > { %v7543_v60 = vmul.f32 0.015625, %v7540_v47  ;;  %14745 = vmatpush1.bf16.xpose.msk.msra.mxu0 %vm16814_vm3, %v14743_v41  ;;  %v14761_v41 = vpack.c.bf16 %v15881_v34, %v15880_v33 }
0x1bf0   : > { %14746 = vmatprep.subr.bf16.mxu0 %v22737_v23  ;;  %v15884_v45 = vpop.permute.xlu1 %15883 }
0x1bf1   : > { %v7546_v51 = vadd.f32 1e-05, %v7543_v60  ;;  %v15886_v26 = vunpack.i.h.bf16 %v15884_v45 }
0x1bf2   : > { %v15874_v56 = vpop.permute.xlu0 %15873 }
0x1bf3   : > { %v16406_v35 = vpop.eup %16405  ;;  %16407 = vrsqrt.f32 %v7546_v51  ;;  %v15876_v29 = vunpack.i.h.bf16 %v15874_v56  ;;  %v15875_v36 = vunpack.i.l.bf16 %v15874_v56 }
0x1bf4   : > { %v7551_v2 = vmul.f32 %v16406_v35, %v20331_v49  ;;  %v15885_v49 = vunpack.i.l.bf16 %v15884_v45 }
0x1bf5   : > { %v14758_v25 = vpack.c.bf16 %v15876_v29, %v15875_v36  ;;  %v11912_v29 = vld [vmem:[%s22765_s8 + $0x1] ss:$0 sm:$0xff]  ;;  %s22767_s8 = sld [smem:[#allocation33_spill]] }
0x1bf6   : > { %v15889_v38 = vpop.permute.xlu0 %15888  ;;  %v7558_v37 = vmul.f32 %v20381_v44, %v7551_v2  ;;  %v14764_v27 = vpack.c.bf16 %v15886_v26, %v15885_v49 }
0x1bf7   : > { %14749 = vmatpush1.bf16.xpose.msk.msra.mxu0 %vm16814_vm3, %v14747_v4  ;;  %14759 = vmatpush1.bf16.msra.mxu1 %v14758_v25  ;;  %v15891_v4 = vunpack.i.h.bf16 %v15889_v38  ;;  %v15890_v10 = vunpack.i.l.bf16 %v15889_v38 }
0x1bf8   : > { %v20451_v62 = vadd.f32 %v20384_v46, %v7558_v37  ;;  %14760 = vmatprep.subr.bf16.mxu1 %v22737_v23  ;;  %14750 = vmatprep.subr.bf16.mxu0 %v22737_v23 }
0x1bf9   : > { %v14767_v24 = vpack.c.bf16 %v15891_v4, %v15890_v10  ;;  %v20507_v10 = vld [vmem:[%s22766_s14] sm:$0xff] }
0x1bfa   : > { %13769 = vmatmul.mubr.msk.f32.gmra.mrb[154].mxu0 %vm1079_vm0, %v20451_v62  ;;  %v15894_v42 = vpop.permute.xlu0 %15893 }
0x1bfb   : > { %14762 = vmatpush1.bf16.msra.mxu1 %v14761_v41  ;;  %13771 = vmatprep.mubr.msk.f32.mxu0 %vm16537_vm1, %v22738_v14  ;;  %v15896_v0 = vunpack.i.h.bf16 %v15894_v42  ;;  %v15895_v43 = vunpack.i.l.bf16 %v15894_v42 }
0x1bfc   : > { %14763 = vmatprep.subr.bf16.mxu1 %v22737_v23 }
0x1bfd   : > { %v16408_v52 = vpop.eup %16407  ;;  %v14770_v3 = vpack.c.bf16 %v15896_v0, %v15895_v43 }
0x1bfe   : > { %v15899_v8 = vpop.permute.xlu0 %15898  ;;  %v7552_v58 = vmul.f32 %v16408_v52, %v20337_v63 }
0x1bff   : > { %14753 = vmatpush1.bf16.xpose.msk.msra.mxu0 %vm16814_vm3, %v22764_v20  ;;  %14765 = vmatpush1.bf16.msra.mxu1 %v14764_v27  ;;  %v15901_v54 = vunpack.i.h.bf16 %v15899_v8  ;;  %v15900_v63 = vunpack.i.l.bf16 %v15899_v8  ;;  %v20501_v27 = vld [vmem:[%s22766_s14 + $0x8] sm:$0xff] }
0x1c00   : > { %14766 = vmatprep.subr.bf16.mxu1 %v22737_v23  ;;  %v7559_v53 = vmul.f32 %v20381_v44, %v7552_v58  ;;  %14824 = vmatprep.subr.bf16.mxu0 %v22737_v23 }
0x1c01   : > { %v14773_v6 = vpack.c.bf16 %v15901_v54, %v15900_v63  ;;  %v20524_v54 = vld [vmem:[%s22766_s14 + $0x10] sm:$0xff] }
0x1c02   : > { %v15904_v9 = vpop.permute.xlu0 %15903  ;;  %v20470_v59 = vadd.f32 %v20384_v46, %v7559_v53 }
0x1c03   : > { %14768 = vmatpush1.bf16.msra.mxu1 %v14767_v24  ;;  %v15906_v16 = vunpack.i.h.bf16 %v15904_v9  ;;  %v15905_v1 = vunpack.i.l.bf16 %v15904_v9  ;;  %v20516_v9 = vld [vmem:[%s22766_s14 + $0x18] sm:$0xff] }
0x1c04   : > { %13772 = vmatmul.mubr.msk.f32.gmra.mrb[156].mxu0 %vm1079_vm0, %v20470_v59  ;;  %14769 = vmatprep.subr.bf16.mxu1 %v22737_v23 }
0x1c05   : > { %7992 = vmatprep.mubr.f32.mxu0 %v22738_v14  ;;  %v14776_v46 = vpack.c.bf16 %v15906_v16, %v15905_v1 }
0x1c06   : > { %v15909_v44 = vpop.permute.xlu0 %15908 }
0x1c07   : > { %14771 = vmatpush1.bf16.msra.mxu1 %v14770_v3  ;;  %v15911_v12 = vunpack.i.h.bf16 %v15909_v44  ;;  %v15910_v47 = vunpack.i.l.bf16 %v15909_v44 }
0x1c08   : > { %14772 = vmatprep.subr.bf16.mxu1 %v22737_v23 }
0x1c09   : > { %v14779_v22 = vpack.c.bf16 %v15911_v12, %v15910_v47  ;;  %v20535_v47 = vld [vmem:[%s22766_s14 + $0x28] sm:$0xff] }
0x1c0a   : > { %v15914_v60 = vpop.permute.xlu0 %15913 }
0x1c0b   : > { %14774 = vmatpush1.bf16.msra.mxu1 %v14773_v6  ;;  %v15916_v51 = vunpack.i.h.bf16 %v15914_v60  ;;  %v15915_v56 = vunpack.i.l.bf16 %v15914_v60 }
0x1c0c   : > { %14775 = vmatprep.subr.bf16.mxu1 %v22737_v23 }
0x1c0d   : > { %v14782_v35 = vpack.c.bf16 %v15916_v51, %v15915_v56 }
0x1c0f   : > { %14777 = vmatpush1.bf16.msra.mxu1 %v14776_v46 }
0x1c10   : > { %14778 = vmatprep.subr.bf16.mxu1 %v22737_v23 }
0x1c13   : > { %14780 = vmatpush1.bf16.msra.mxu1 %v14779_v22  ;;  %v20543_v22 = vld [vmem:[%s22766_s14 + $0x20] sm:$0xff] }
0x1c14   : > { %14781 = vmatprep.subr.bf16.mxu1 %v22737_v23 }
0x1c17   : > { %14783 = vmatpush1.bf16.msra.mxu1 %v14782_v35 }
0x1c18   : > { %14784 = vmatprep.subr.bf16.mxu1 %v22737_v23 }
0x1c89   : > { %v7656_v36 = vpop.f32.mrb[152].mxu0 }
0x1c8a   : > { %v20484_v2 = vadd.f32 %v11912_v29, %v7656_v36  ;;  %v13767_v34 = vpop.f32.mrb[153].mxu0 }
0x1c8c   : > { %11973 = vmatmul.mubr.msk.f32.vlgmr.msra.gmra.mrb[158].mxu0 %vm1190_vm2, %v20484_v2 }
0x1c8d   : > { %7998 = vmatprep.mubr.f32.mxu0 %v22738_v14 }
0x1ccd   : > { %v7661_v33 = vpop.f32.mrb[154].mxu0 }
0x1cce   : > { %v20489_v25 = vadd.f32 %v11912_v29, %v7661_v33  ;;  %v13770_v45 = vpop.f32.mrb[155].mxu0 }
0x1cd0   : > { %11974 = vmatmul.mubr.msk.f32.gmra.mrb[160].mxu0 %vm1190_vm2, %v20489_v25 }
0x1cd1   : > { %8004 = vmatprep.mubr.f32.mxu0 %v22738_v14 }
0x1cd7   : > { %v7666_v38 = vpop.f32.mrb[156].mxu0 }
0x1cd8   : > { %v20494_v37 = vadd.f32 %v11912_v29, %v7666_v38  ;;  %v13773_v41 = vpop.f32.mrb[157].mxu0  ;;  %v15919_v38 = vpop.permute.xlu0 %15918 }
0x1cd9   : > { %v15921_v41 = vunpack.i.h.bf16 %v15919_v38 }
0x1cda   : > { %11975 = vmatmul.mubr.msk.f32.gmra.mrb[162].mxu0 %vm1190_vm2, %v20494_v37 }
0x1d5f   : > { %v7994_v26 = vpop.f32.mrb[158].mxu0 }
0x1d60   : > { %v8011_v49 = vmul.f32 0.25, %v7994_v26  ;;  %v7996_v42 = vpop.f32.mrb[159].mxu0  ;;  %v15920_v26 = vunpack.i.l.bf16 %v15919_v38 }
0x1d61   : > { %v8012_v52 = vmul.f32 0.25, %v7996_v42 }
0x1d62   : > { %v8017_v8 = vadd.f32 %v20507_v10, %v8011_v49 }
0x1d63   : > { %v8018_v4 = vadd.f32 %v20501_v27, %v8012_v52  ;;  %v14785_v52 = vpack.c.bf16 %v15921_v41, %v15920_v26 }
0x1d65   : > { %v8023_v58 = vsel %vm2177_vm5, %v8018_v4, -inf }
0x1d66   : > { %v8024_v20 = vmax.f32 %v8017_v8, %v8023_v58 }
0x1d68   : > { %8025 = vmax.xlane.f32.xlu1 %v8024_v20 }
0x1d79   : > { %15938 = vrot.lane.b32.xlu1 %v20246_v61, %s22734_s22 }
0x1da3   : > { %v8000_v53 = vpop.f32.mrb[160].mxu0 }
0x1da4   : > { %v8013_v24 = vmul.f32 0.25, %v8000_v53  ;;  %v8002_v0 = vpop.f32.mrb[161].mxu0 }
0x1da5   : > { %v8014_v43 = vmul.f32 0.25, %v8002_v0 }
0x1da6   : > { %v20527_v63 = vadd.f32 %v20524_v54, %v8013_v24 }
0x1da7   : > { %v20519_v3 = vadd.f32 %v20516_v9, %v8014_v43 }
0x1da9   : > { %v8027_v44 = vsel %vm2177_vm5, %v20519_v3, -inf }
0x1daa   : > { %v8028_v6 = vmax.f32 %v20527_v63, %v8027_v44 }
0x1dac   : > { %8029 = vmax.xlane.f32.xlu0 %v8028_v6 }
0x1dad   : > { %v8006_v16 = vpop.f32.mrb[162].mxu0 }
0x1dae   : > { %v8015_v1 = vmul.f32 0.25, %v8006_v16  ;;  %v8008_v46 = vpop.f32.mrb[163].mxu0 }
0x1daf   : > { %v8016_v12 = vmul.f32 0.25, %v8008_v46 }
0x1db0   : > { %v20546_v51 = vadd.f32 %v20543_v22, %v8015_v1 }
0x1db1   : > { %v20538_v60 = vadd.f32 %v20535_v47, %v8016_v12 }
0x1db3   : > { %v8031_v56 = vsel %vm2177_vm5, %v20538_v60, -inf }
0x1db4   : > { %v8032_v35 = vmax.f32 %v20546_v51, %v8031_v56 }
0x1db6   : > { %8033 = vmax.xlane.f32.xlu1 %v8032_v35 }
0x1dc2   : > { %15958 = vrot.lane.b32.xlu0 %v20286_v50, %s22734_s22 }
0x1dc6   : > { %15963 = vrot.lane.b32.xlu0 %v20296_v48, %s22734_s22 }
0x1dc7   : > { %15953 = vrot.lane.b32.xlu1 %v20276_v55, %s22734_s22 }
0x1dca   : > { %8220 = vrot.lane.b32.xlu0 %v20484_v2, %s22734_s22 }
0x1dcb   : > { %8222 = vrot.lane.b32.xlu1 %v20489_v25, %s22734_s22 }
0x1dce   : > { %8224 = vrot.lane.b32.xlu0 %v20494_v37, %s22734_s22 }
0x1dcf   : > { %15968 = vrot.lane.b32.xlu1 %v20206_v31, %s22705_s28 }
0x1dd2   : > { %15973 = vrot.lane.b32.xlu0 %v20216_v28, %s22705_s28 }
0x1dd3   : > { %15978 = vrot.lane.b32.xlu1 %v20226_v5, %s22705_s28 }
0x1dd6   : > { %15983 = vrot.lane.b32.xlu0 %v20236_v40, %s22705_s28 }
0x1dd7   : > { %15988 = vrot.lane.b32.xlu1 %v20246_v61, %s22705_s28 }
0x1ddb   : > { %15993 = vrot.lane.b32.xlu1 %v20256_v7, %s22705_s28 }
0x1ddf   : > { %15998 = vrot.lane.b32.xlu1 %v20266_v11, %s22705_s28 }
0x1de3   : > { %16003 = vrot.lane.b32.xlu1 %v20276_v55, %s22705_s28 }
0x1de7   : > { %16008 = vrot.lane.b32.xlu1 %v20286_v50, %s22705_s28 }
0x1deb   : > { %16013 = vrot.lane.b32.xlu1 %v20296_v48, %s22705_s28 }
0x1def   : > { %16018 = vrot.lane.b32.xlu1 %v20206_v31, %s22736_s27 }
0x1df3   : > { %16023 = vrot.lane.b32.xlu1 %v20216_v28, %s22736_s27 }
0x1df5   : > { %v8026_v29 = vpop.xlane.xlu1 %8025 }
0x1df6   : > { %v8035_v36 = vsub.f32 %v8017_v8, %v8026_v29  ;;  %v8036_v34 = vsub.f32 %v8018_v4, %v8026_v29  ;;  %v15924_v8 = vpop.permute.xlu0 %15923 }
0x1df7   : > { %16028 = vrot.lane.b32.xlu1 %v20226_v5, %s22736_s27  ;;  %v15926_v20 = vunpack.i.h.bf16 %v15924_v8  ;;  %v15925_v53 = vunpack.i.l.bf16 %v15924_v8 }
0x1df8   : > { %v8041_v33 = vmul.f32 1.442695, %v8035_v36  ;;  %v8043_v45 = vmul.f32 1.442695, %v8036_v34 }
0x1df9   : > { %v14789_v24 = vpack.c.bf16 %v15926_v20, %v15925_v53  ;;  %v15939_v56 = vpop.permute.xlu1 %15938 }
0x1dfa   : > { %16409 = vpow2.f32 %v8041_v33  ;;  %v15929_v0 = vpop.permute.xlu0 %15928  ;;  %v15941_v35 = vunpack.i.h.bf16 %v15939_v56  ;;  %v15940_v29 = vunpack.i.l.bf16 %v15939_v56 }
0x1dfb   : > { %16411 = vpow2.f32 %v8043_v45  ;;  %16038 = vrot.lane.b32.xlu1 %v20246_v61, %s22736_s27  ;;  %v15931_v43 = vunpack.i.h.bf16 %v15929_v0  ;;  %v15930_v44 = vunpack.i.l.bf16 %v15929_v0 }
0x1dfc   : > { %v14801_v36 = vpack.c.bf16 %v15941_v35, %v15940_v29 }
0x1dfd   : > { %v14793_v6 = vpack.c.bf16 %v15931_v43, %v15930_v44 }
0x1dfe   : > { %v15934_v16 = vpop.permute.xlu0 %15933 }
0x1dff   : > { %16043 = vrot.lane.b32.xlu1 %v20256_v7, %s22736_s27  ;;  %v15936_v1 = vunpack.i.h.bf16 %v15934_v16  ;;  %v15935_v46 = vunpack.i.l.bf16 %v15934_v16 }
0x1e01   : > { %v14797_v12 = vpack.c.bf16 %v15936_v1, %v15935_v46 }
0x1e02   : > { %v15944_v34 = vpop.permute.xlu0 %15943 }
0x1e03   : > { %16048 = vrot.lane.b32.xlu1 %v20266_v11, %s22736_s27  ;;  %v15946_v33 = vunpack.i.h.bf16 %v15944_v34  ;;  %v15945_v45 = vunpack.i.l.bf16 %v15944_v34 }
0x1e04   : > { %v16410_v49 = vpop.eup %16409 }
0x1e05   : > { %v16412_v42 = vpop.eup %16411  ;;  %v14805_v38 = vpack.c.bf16 %v15946_v33, %v15945_v45 }
0x1e06   : > { %11976 = vmatprep.mubr.msk.f32.mxu1 %vm2177_vm5, %v16412_v42  ;;  %v8053_v4 = vsel %vm2177_vm5, %v16412_v42, 0.0  ;;  %v15949_v41 = vpop.permute.xlu0 %15948 }
0x1e07   : > { %8199 = vmatmul.mubr.f32.vlgmr.msra.gmra.mrb[164].mxu1 %v16410_v49  ;;  %v20597_v58 = vadd.f32 %v16410_v49, %v8053_v4  ;;  %v15951_v26 = vunpack.i.h.bf16 %v15949_v41  ;;  %v15950_v49 = vunpack.i.l.bf16 %v15949_v41 }
0x1e08   : > { %14787 = vmatpush1.bf16.xpose.msk.msra.mxu1 %vm16814_vm3, %v14785_v52 }
0x1e09   : > { %14788 = vmatprep.subr.bf16.mxu1 %v22737_v23  ;;  %v14809_v42 = vpack.c.bf16 %v15951_v26, %v15950_v49 }
0x1e10   : > { %14791 = vmatpush1.bf16.xpose.msk.msra.mxu1 %vm16814_vm3, %v14789_v24 }
0x1e11   : > { %14792 = vmatprep.subr.bf16.mxu1 %v22737_v23 }
0x1e18   : > { %14795 = vmatpush1.bf16.xpose.msk.msra.mxu1 %vm16814_vm3, %v14793_v6 }
0x1e19   : > { %14796 = vmatprep.subr.bf16.mxu1 %v22737_v23 }
0x1e20   : > { %14799 = vmatpush1.bf16.xpose.msk.msra.mxu1 %vm16814_vm3, %v14797_v12 }
0x1e21   : > { %14800 = vmatprep.subr.bf16.mxu1 %v22737_v23 }
0x1e28   : > { %14803 = vmatpush1.bf16.xpose.msk.msra.mxu1 %vm16814_vm3, %v14801_v36 }
0x1e29   : > { %14804 = vmatprep.subr.bf16.mxu1 %v22737_v23 }
0x1e30   : > { %14807 = vmatpush1.bf16.xpose.msk.msra.mxu1 %vm16814_vm3, %v14805_v38 }
0x1e31   : > { %14808 = vmatprep.subr.bf16.mxu1 %v22737_v23 }
0x1e38   : > { %14811 = vmatpush1.bf16.xpose.msk.msra.mxu1 %vm16814_vm3, %v14809_v42 }
0x1e39   : > { %v8030_v52 = vpop.xlane.xlu0 %8029  ;;  %14812 = vmatprep.subr.bf16.mxu1 %v22737_v23 }
0x1e3a   : > { %v8037_v4 = vsub.f32 %v20527_v63, %v8030_v52  ;;  %v8038_v8 = vsub.f32 %v20519_v3, %v8030_v52 }
0x1e3c   : > { %v8045_v20 = vmul.f32 1.442695, %v8037_v4  ;;  %v8047_v53 = vmul.f32 1.442695, %v8038_v8 }
0x1e3d   : > { %v15959_v24 = vpop.permute.xlu0 %15958 }
0x1e3e   : > { %16413 = vpow2.f32 %v8045_v20  ;;  %v15961_v33 = vunpack.i.h.bf16 %v15959_v24  ;;  %v15960_v45 = vunpack.i.l.bf16 %v15959_v24 }
0x1e3f   : > { %16415 = vpow2.f32 %v8047_v53 }
0x1e40   : > { %v14817_v52 = vpack.c.bf16 %v15961_v33, %v15960_v45 }
0x1e41   : > { %v15964_v0 = vpop.permute.xlu0 %15963 }
0x1e43   : > { %v8034_v43 = vpop.xlane.xlu1 %8033 }
0x1e44   : > { %v8039_v44 = vsub.f32 %v20546_v51, %v8034_v43  ;;  %v8040_v6 = vsub.f32 %v20538_v60, %v8034_v43 }
0x1e45   : > { %v20624_v16 = vpop.permute.xlu0 %8220 }
0x1e46   : > { %v8049_v1 = vmul.f32 1.442695, %v8039_v44  ;;  %v8051_v46 = vmul.f32 1.442695, %v8040_v6  ;;  %v15966_v6 = vunpack.i.h.bf16 %v15964_v0 }
0x1e47   : > { %v15954_v12 = vpop.permute.xlu1 %15953 }
0x1e48   : > { %v16414_v56 = vpop.eup %16413  ;;  %16417 = vpow2.f32 %v8049_v1  ;;  %v15956_v63 = vunpack.i.h.bf16 %v15954_v12  ;;  %v15955_v3 = vunpack.i.l.bf16 %v15954_v12  ;;  %v15965_v1 = vunpack.i.l.bf16 %v15964_v0 }
0x1e49   : > { %v16416_v35 = vpop.eup %16415  ;;  %16419 = vpow2.f32 %v8051_v46  ;;  %v20627_v36 = vpop.permute.xlu0 %8224 }
0x1e4a   : > { %v14813_v29 = vpack.c.bf16 %v15956_v63, %v15955_v3  ;;  %11977 = vmatprep.mubr.msk.f32.mxu1 %vm2177_vm5, %v16416_v35  ;;  %v8057_v51 = vsel %vm2177_vm5, %v16416_v35, 0.0  ;;  %v14821_v35 = vpack.c.bf16 %v15966_v6, %v15965_v1 }
0x1e4b   : > { %8204 = vmatmul.mubr.f32.gmra.mrb[166].mxu1 %v16414_v56  ;;  %v8223_v60 = vpop.permute.xlu1 %8222  ;;  %v20630_v34 = vadd.f32 %v16414_v56, %v8057_v51 }
0x1e4c   : > { %14815 = vmatpush1.bf16.xpose.msk.msra.mxu1 %vm16814_vm3, %v14813_v29 }
0x1e4d   : > { %14816 = vmatprep.subr.bf16.mxu1 %v22737_v23  ;;  %v15974_v41 = vpop.permute.xlu0 %15973 }
0x1e4e   : > { %v15976_v20 = vunpack.i.h.bf16 %v15974_v41  ;;  %v15975_v53 = vunpack.i.l.bf16 %v15974_v41 }
0x1e4f   : > { %v15969_v38 = vpop.permute.xlu1 %15968 }
0x1e50   : > { %v15971_v26 = vunpack.i.h.bf16 %v15969_v38  ;;  %v15970_v49 = vunpack.i.l.bf16 %v15969_v38  ;;  %v14828_v46 = vpack.c.bf16 %v15976_v20, %v15975_v53 }
0x1e51   : > { %v15984_v3 = vpop.permute.xlu0 %15983 }
0x1e52   : > { %v16418_v42 = vpop.eup %16417  ;;  %v14825_v4 = vpack.c.bf16 %v15971_v26, %v15970_v49  ;;  %v15986_v29 = vunpack.i.h.bf16 %v15984_v3  ;;  %v15985_v51 = vunpack.i.l.bf16 %v15984_v3 }
0x1e53   : > { %v16420_v8 = vpop.eup %16419  ;;  %v15979_v43 = vpop.permute.xlu1 %15978 }
0x1e54   : > { %11978 = vmatprep.mubr.msk.f32.mxu1 %vm2177_vm5, %v16420_v8  ;;  %14819 = vmatpush1.bf16.xpose.msk.msra.mxu1 %vm16814_vm3, %v14817_v52  ;;  %v8061_v44 = vsel %vm2177_vm5, %v16420_v8, 0.0  ;;  %v15981_v12 = vunpack.i.h.bf16 %v15979_v43  ;;  %v15980_v56 = vunpack.i.l.bf16 %v15979_v43  ;;  %v14834_v0 = vpack.c.bf16 %v15986_v29, %v15985_v51 }
0x1e55   : > { %8209 = vmatmul.mubr.f32.gmra.mrb[168].mxu1 %v16418_v42  ;;  %14826 = vmatpush1.bf16.msra.mxu0 %v14825_v4  ;;  %v20639_v24 = vadd.f32 %v16418_v42, %v8061_v44 }
0x1e56   : > { %14827 = vmatprep.subr.bf16.mxu0 %v22737_v23  ;;  %14820 = vmatprep.subr.bf16.mxu1 %v22737_v23  ;;  %v14831_v33 = vpack.c.bf16 %v15981_v12, %v15980_v56 }
0x1e57   : > { %v15989_v63 = vpop.permute.xlu1 %15988  ;;  %8376 = vmatprep.mubr.f32.mxu1 %v22738_v14 }
0x1e58   : > { %v15991_v38 = vunpack.i.h.bf16 %v15989_v63  ;;  %v15990_v41 = vunpack.i.l.bf16 %v15989_v63 }
0x1e59   : > { %14829 = vmatpush1.bf16.msra.mxu0 %v14828_v46 }
0x1e5a   : > { %14830 = vmatprep.subr.bf16.mxu0 %v22737_v23  ;;  %v14837_v49 = vpack.c.bf16 %v15991_v38, %v15990_v41 }
0x1e5b   : > { %v15994_v45 = vpop.permute.xlu1 %15993 }
0x1e5c   : > { %14823 = vmatpush1.bf16.xpose.msk.msra.mxu1 %vm16814_vm3, %v14821_v35  ;;  %v15996_v42 = vunpack.i.h.bf16 %v15994_v45  ;;  %v15995_v52 = vunpack.i.l.bf16 %v15994_v45 }
0x1e5d   : > { %14832 = vmatpush1.bf16.msra.mxu0 %v14831_v33  ;;  %14894 = vmatprep.subr.bf16.mxu1 %v22737_v23 }
0x1e5e   : > { %14833 = vmatprep.subr.bf16.mxu0 %v22737_v23  ;;  %v14840_v8 = vpack.c.bf16 %v15996_v42, %v15995_v52 }
0x1e5f   : > { %v15999_v26 = vpop.permute.xlu1 %15998 }
0x1e60   : > { %v16001_v20 = vunpack.i.h.bf16 %v15999_v26  ;;  %v16000_v53 = vunpack.i.l.bf16 %v15999_v26 }
0x1e61   : > { %14835 = vmatpush1.bf16.msra.mxu0 %v14834_v0 }
0x1e62   : > { %14836 = vmatprep.subr.bf16.mxu0 %v22737_v23  ;;  %v14843_v44 = vpack.c.bf16 %v16001_v20, %v16000_v53 }
0x1e63   : > { %11999 = vmatmul.mubr.msk.f32.vlgmr.msra.gmra.mrb[170].mxu1 %vm1190_vm2, %v20624_v16  ;;  %v16004_v4 = vpop.permute.xlu1 %16003 }
0x1e64   : > { %8382 = vmatprep.mubr.f32.mxu1 %v22738_v14  ;;  %v16006_v6 = vunpack.i.h.bf16 %v16004_v4  ;;  %v16005_v16 = vunpack.i.l.bf16 %v16004_v4 }
0x1e65   : > { %14838 = vmatpush1.bf16.msra.mxu0 %v14837_v49 }
0x1e66   : > { %14839 = vmatprep.subr.bf16.mxu0 %v22737_v23  ;;  %v14846_v1 = vpack.c.bf16 %v16006_v6, %v16005_v16 }
0x1e67   : > { %12000 = vmatmul.mubr.msk.f32.gmra.mrb[172].mxu1 %vm1190_vm2, %v8223_v60  ;;  %v16009_v43 = vpop.permute.xlu1 %16008 }
0x1e68   : > { %8388 = vmatprep.mubr.f32.mxu1 %v22738_v14  ;;  %v16011_v46 = vunpack.i.h.bf16 %v16009_v43  ;;  %v16010_v12 = vunpack.i.l.bf16 %v16009_v43 }
0x1e69   : > { %14841 = vmatpush1.bf16.msra.mxu0 %v14840_v8 }
0x1e6a   : > { %14842 = vmatprep.subr.bf16.mxu0 %v22737_v23  ;;  %v14849_v60 = vpack.c.bf16 %v16011_v46, %v16010_v12 }
0x1e6b   : > { %12001 = vmatmul.mubr.msk.f32.gmra.mrb[174].mxu1 %vm1190_vm2, %v20627_v36  ;;  %v16014_v56 = vpop.permute.xlu1 %16013 }
0x1e6c   : > { %v16016_v63 = vunpack.i.h.bf16 %v16014_v56  ;;  %v16015_v3 = vunpack.i.l.bf16 %v16014_v56 }
0x1e6d   : > { %14844 = vmatpush1.bf16.msra.mxu0 %v14843_v44 }
0x1e6e   : > { %14845 = vmatprep.subr.bf16.mxu0 %v22737_v23  ;;  %v14852_v35 = vpack.c.bf16 %v16016_v63, %v16015_v3 }
0x1e71   : > { %14847 = vmatpush1.bf16.msra.mxu0 %v14846_v1 }
0x1e72   : > { %14848 = vmatprep.subr.bf16.mxu0 %v22737_v23 }
0x1e75   : > { %14850 = vmatpush1.bf16.msra.mxu0 %v14849_v60 }
0x1e76   : > { %14851 = vmatprep.subr.bf16.mxu0 %v22737_v23 }
0x1e79   : > { %14853 = vmatpush1.bf16.msra.mxu0 %v14852_v35 }
0x1e7a   : > { %14854 = vmatprep.subr.bf16.mxu0 %v22737_v23 }
0x1eda   : > { %v20663_v36 = vpop.f32.mrb[164].mxu1 }
0x1edb   : > { %v8202_v29 = vpop.f32.mrb[165].mxu1 }
0x1f1e   : > { %v20665_v51 = vpop.f32.mrb[166].mxu1 }
0x1f1f   : > { %v8207_v33 = vpop.f32.mrb[167].mxu1 }
0x1f28   : > { %v20667_v45 = vpop.f32.mrb[168].mxu1 }
0x1f29   : > { %v8212_v0 = vpop.f32.mrb[169].mxu1 }
0x1f2a   : > { %v16019_v0 = vpop.permute.xlu1 %16018 }
0x1f36   : > { %v8378_v38 = vpop.f32.mrb[170].mxu1 }
0x1f37   : > { %v8395_v41 = vmul.f32 0.25, %v8378_v38  ;;  %v8380_v26 = vpop.f32.mrb[171].mxu1  ;;  %v16024_v38 = vpop.permute.xlu1 %16023 }
0x1f38   : > { %v8396_v49 = vmul.f32 0.25, %v8380_v26 }
0x1f39   : > { %v8401_v4 = vadd.f32 %v20507_v10, %v8395_v41 }
0x1f3a   : > { %v8402_v42 = vadd.f32 %v20501_v27, %v8396_v49  ;;  %v8384_v52 = vpop.f32.mrb[172].mxu1 }
0x1f3b   : > { %v8397_v8 = vmul.f32 0.25, %v8384_v52  ;;  %v8386_v20 = vpop.f32.mrb[173].mxu1  ;;  %v16029_v41 = vpop.permute.xlu1 %16028 }
0x1f3c   : > { %v8407_v53 = vsel %vm2177_vm5, %v8402_v42, -inf  ;;  %v8398_v43 = vmul.f32 0.25, %v8386_v20 }
0x1f3d   : > { %v8408_v44 = vmax.f32 %v8401_v4, %v8407_v53  ;;  %v8403_v1 = vadd.f32 %v20524_v54, %v8397_v8 }
0x1f3e   : > { %v8404_v6 = vadd.f32 %v20516_v9, %v8398_v43  ;;  %v8390_v16 = vpop.f32.mrb[174].mxu1 }
0x1f3f   : > { %8409 = vmax.xlane.f32.xlu0 %v8408_v44  ;;  %v8392_v46 = vpop.f32.mrb[175].mxu1  ;;  %v8399_v3 = vmul.f32 0.25, %v8390_v16  ;;  %v16039_v26 = vpop.permute.xlu1 %16038 }
0x1f40   : > { %v8411_v12 = vsel %vm2177_vm5, %v8404_v6, -inf  ;;  %v8400_v60 = vmul.f32 0.25, %v8392_v46 }
0x1f41   : > { %v8412_v56 = vmax.f32 %v8403_v1, %v8411_v12  ;;  %v20695_v29 = vadd.f32 %v20543_v22, %v8399_v3  ;;  %v16021_v3 = vunpack.i.h.bf16 %v16019_v0 }
0x1f42   : > { %v20690_v63 = vadd.f32 %v20535_v47, %v8400_v60 }
0x1f43   : > { %8413 = vmax.xlane.f32.xlu1 %v8412_v56  ;;  %v20728_v49 = vpop.permute.xlu1 %16043 }
0x1f44   : > { %v8415_v35 = vsel %vm2177_vm5, %v20690_v63, -inf }
0x1f45   : > { %v8416_v33 = vmax.f32 %v20695_v29, %v8415_v35  ;;  %v16020_v35 = vunpack.i.l.bf16 %v16019_v0 }
0x1f47   : > { %v20732_v52 = vpop.permute.xlu1 %16048  ;;  %v14855_v18 = vpack.c.bf16 %v16021_v3, %v16020_v35  ;;  %v16040_v3 = vunpack.i.l.bf16 %v16039_v26 }
0x1f54   : > { %16058 = vrot.lane.b32.xlu1 %v20286_v50, %s22736_s27 }
0x1f55   : > { %16033 = vrot.lane.b32.xlu0 %v20236_v40, %s22736_s27 }
0x1f58   : > { %16063 = vrot.lane.b32.xlu1 %v20296_v48, %s22736_s27 }
0x1f5c   : > { %8604 = vrot.lane.b32.xlu1 %v20484_v2, %s22736_s27 }
0x1f60   : > { %8608 = vrot.lane.b32.xlu1 %v20494_v37, %s22736_s27 }
0x1f64   : > { %16073 = vrot.lane.b32.xlu1 %v20216_v28, %s22704_s26 }
0x1f68   : > { %16083 = vrot.lane.b32.xlu1 %v20236_v40, %s22704_s26 }
0x1f74   : > { %8417 = vmax.xlane.f32.xlu0 %v8416_v33 }
0x1f8a   : > { %16053 = vrot.lane.b32.xlu0 %v20276_v55, %s22736_s27 }
0x1f8e   : > { %8606 = vrot.lane.b32.xlu0 %v20489_v25, %s22736_s27  ;;  %s22769_s27 = sld [smem:[#allocation35_spill]] }
0x1f92   : > { %16068 = vrot.lane.b32.xlu0 %v20206_v31, %s22704_s26 }
0x1f96   : > { %16078 = vrot.lane.b32.xlu0 %v20226_v5, %s22704_s26 }
0x1f9a   : > { %16088 = vrot.lane.b32.xlu0 %v20246_v61, %s22704_s26 }
0x1f9e   : > { %16093 = vrot.lane.b32.xlu0 %v20256_v7, %s22704_s26 }
0x1fa2   : > { %16098 = vrot.lane.b32.xlu0 %v20266_v11, %s22704_s26 }
0x1fa6   : > { %16103 = vrot.lane.b32.xlu0 %v20276_v55, %s22704_s26 }
0x1faa   : > { %16108 = vrot.lane.b32.xlu0 %v20286_v50, %s22704_s26 }
0x1fae   : > { %16113 = vrot.lane.b32.xlu0 %v20296_v48, %s22704_s26 }
0x1fb2   : > { %16118 = vrot.lane.b32.xlu0 %v20206_v31, %s22739_s23 }
0x1fb6   : > { %16123 = vrot.lane.b32.xlu0 %v20216_v28, %s22739_s23 }
0x1fba   : > { %16128 = vrot.lane.b32.xlu0 %v20226_v5, %s22739_s23 }
0x1fbe   : > { %16133 = vrot.lane.b32.xlu0 %v20236_v40, %s22739_s23 }
0x1fc2   : > { %16143 = vrot.lane.b32.xlu0 %v20256_v7, %s22739_s23 }
0x1fc6   : > { %16148 = vrot.lane.b32.xlu0 %v20266_v11, %s22739_s23 }
0x1fcc   : > { %v8410_v8 = vpop.xlane.xlu0 %8409 }
0x1fcd   : > { %v8419_v20 = vsub.f32 %v8401_v4, %v8410_v8  ;;  %v8420_v53 = vsub.f32 %v8402_v42, %v8410_v8 }
0x1fcf   : > { %v8425_v43 = vmul.f32 1.442695, %v8419_v20  ;;  %v8427_v44 = vmul.f32 1.442695, %v8420_v53  ;;  %v16025_v20 = vunpack.i.l.bf16 %v16024_v38 }
0x1fd0   : > { %v8414_v16 = vpop.xlane.xlu1 %8413 }
0x1fd1   : > { %16421 = vpow2.f32 %v8425_v43  ;;  %v8421_v46 = vsub.f32 %v8403_v1, %v8414_v16  ;;  %v8422_v12 = vsub.f32 %v8404_v6, %v8414_v16  ;;  %v16026_v1 = vunpack.i.h.bf16 %v16024_v38  ;;  %v16034_v16 = vpop.permute.xlu0 %16033 }
0x1fd2   : > { %16423 = vpow2.f32 %v8427_v44  ;;  %v16031_v43 = vunpack.i.h.bf16 %v16029_v41  ;;  %v16036_v38 = vunpack.i.h.bf16 %v16034_v16 }
0x1fd3   : > { %v8429_v56 = vmul.f32 1.442695, %v8421_v46  ;;  %v8431_v60 = vmul.f32 1.442695, %v8422_v12  ;;  %v16035_v46 = vunpack.i.l.bf16 %v16034_v16 }
0x1fd5   : > { %16425 = vpow2.f32 %v8429_v56  ;;  %v14867_v12 = vpack.c.bf16 %v16036_v38, %v16035_v46  ;;  %v20751_v56 = vpop.permute.xlu1 %16058 }
0x1fd6   : > { %16427 = vpow2.f32 %v8431_v60  ;;  %v16041_v60 = vunpack.i.h.bf16 %v16039_v26 }
0x1fd8   : > { %v14871_v35 = vpack.c.bf16 %v16041_v60, %v16040_v3 }
0x1fdb   : > { %v16422_v33 = vpop.eup %16421 }
0x1fdc   : > { %v16424_v15 = vpop.eup %16423 }
0x1fdd   : > { %12002 = vmatprep.mubr.msk.f32.mxu0 %vm2177_vm5, %v16424_v15  ;;  %v8437_v42 = vsel %vm2177_vm5, %v16424_v15, 0.0  ;;  %v14859_v15 = vpack.c.bf16 %v16026_v1, %v16025_v20 }
0x1fde   : > { %8583 = vmatmul.mubr.f32.vlgmr.msra.gmra.mrb[164].mxu0 %v16422_v33  ;;  %v20736_v4 = vadd.f32 %v16422_v33, %v8437_v42  ;;  %v16046_v33 = vunpack.i.h.bf16 %v20728_v49  ;;  %v16045_v42 = vunpack.i.l.bf16 %v20728_v49  ;;  %v16051_v49 = vunpack.i.h.bf16 %v20732_v52 }
0x1fdf   : > { %v16426_v8 = vpop.eup %16425  ;;  %14857 = vmatpush1.bf16.xpose.msk.msra.mxu0 %vm16814_vm3, %v14855_v18  ;;  %v16030_v18 = vunpack.i.l.bf16 %v16029_v41  ;;  %v20756_v41 = vpop.permute.xlu1 %16063 }
0x1fe0   : > { %v16428_v6 = vpop.eup %16427  ;;  %14858 = vmatprep.subr.bf16.mxu0 %v22737_v23 }
0x1fe1   : > { %12003 = vmatprep.mubr.msk.f32.mxu0 %vm2177_vm5, %v16428_v6  ;;  %v8441_v0 = vsel %vm2177_vm5, %v16428_v6, 0.0  ;;  %v14863_v44 = vpack.c.bf16 %v16031_v43, %v16030_v18 }
0x1fe2   : > { %8588 = vmatmul.mubr.f32.gmra.mrb[166].mxu0 %v16426_v8  ;;  %v20743_v53 = vadd.f32 %v16426_v8, %v8441_v0 }
0x1fe3   : > { %v20763_v8 = vpop.permute.xlu1 %8604 }
0x1fe7   : > { %14861 = vmatpush1.bf16.xpose.msk.msra.mxu0 %vm16814_vm3, %v14859_v15  ;;  %v14875_v15 = vpack.c.bf16 %v16046_v33, %v16045_v42  ;;  %v20767_v18 = vpop.permute.xlu1 %8608 }
0x1fe8   : > { %14862 = vmatprep.subr.bf16.mxu0 %v22737_v23 }
0x1feb   : > { %v16074_v16 = vpop.permute.xlu1 %16073 }
0x1fec   : > { %v16076_v3 = vunpack.i.h.bf16 %v16074_v16 }
0x1fef   : > { %14865 = vmatpush1.bf16.xpose.msk.msra.mxu0 %vm16814_vm3, %v14863_v44  ;;  %v16050_v44 = vunpack.i.l.bf16 %v20732_v52 }
0x1ff0   : > { %14866 = vmatprep.subr.bf16.mxu0 %v22737_v23 }
0x1ff7   : > { %14869 = vmatpush1.bf16.xpose.msk.msra.mxu0 %vm16814_vm3, %v14867_v12 }
0x1ff8   : > { %14870 = vmatprep.subr.bf16.mxu0 %v22737_v23 }
0x1fff   : > { %14873 = vmatpush1.bf16.xpose.msk.msra.mxu0 %vm16814_vm3, %v14871_v35  ;;  %v16075_v35 = vunpack.i.l.bf16 %v16074_v16 }
0x2000   : > { %14874 = vmatprep.subr.bf16.mxu0 %v22737_v23 }
0x2001   : > { %v8418_v6 = vpop.xlane.xlu0 %8417 }
0x2002   : > { %v8423_v1 = vsub.f32 %v20695_v29, %v8418_v6  ;;  %v8424_v20 = vsub.f32 %v20690_v63, %v8418_v6  ;;  %v14879_v63 = vpack.c.bf16 %v16051_v49, %v16050_v44  ;;  %v16084_v44 = vpop.permute.xlu1 %16083 }
0x2004   : > { %v8433_v26 = vmul.f32 1.442695, %v8423_v1  ;;  %v8435_v0 = vmul.f32 1.442695, %v8424_v20 }
0x2005   : > { %v16054_v43 = vpop.permute.xlu0 %16053 }
0x2006   : > { %16429 = vpow2.f32 %v8433_v26  ;;  %v16056_v6 = vunpack.i.h.bf16 %v16054_v43  ;;  %v16055_v1 = vunpack.i.l.bf16 %v16054_v43  ;;  %v16086_v43 = vunpack.i.h.bf16 %v16084_v44 }
0x2007   : > { %16431 = vpow2.f32 %v8435_v0  ;;  %14877 = vmatpush1.bf16.xpose.msk.msra.mxu0 %vm16814_vm3, %v14875_v15  ;;  %v14898_v0 = vpack.c.bf16 %v16076_v3, %v16075_v35 }
0x2008   : > { %14878 = vmatprep.subr.bf16.mxu0 %v22737_v23 }
0x2009   : > { %v20774_v29 = vpop.permute.xlu0 %8606 }
0x200d   : > { %v16069_v38 = vpop.permute.xlu0 %16068 }
0x200e   : > { %v16071_v46 = vunpack.i.h.bf16 %v16069_v38  ;;  %v16070_v12 = vunpack.i.l.bf16 %v16069_v38  ;;  %v16085_v38 = vunpack.i.l.bf16 %v16084_v44 }
0x200f   : > { %14881 = vmatpush1.bf16.xpose.msk.msra.mxu0 %vm16814_vm3, %v14879_v63  ;;  %v14883_v63 = vpack.c.bf16 %v16056_v6, %v16055_v1 }
0x2010   : > { %v16430_v60 = vpop.eup %16429  ;;  %v14895_v33 = vpack.c.bf16 %v16071_v46, %v16070_v12  ;;  %14882 = vmatprep.subr.bf16.mxu0 %v22737_v23  ;;  %v16061_v12 = vunpack.i.h.bf16 %v20751_v56  ;;  %v14904_v35 = vpack.c.bf16 %v16086_v43, %v16085_v38 }
0x2011   : > { %v16432_v42 = vpop.eup %16431  ;;  %v16079_v52 = vpop.permute.xlu0 %16078 }
0x2012   : > { %12004 = vmatprep.mubr.msk.f32.mxu0 %vm2177_vm5, %v16432_v42  ;;  %14896 = vmatpush1.bf16.msra.mxu1 %v14895_v33  ;;  %v8445_v20 = vsel %vm2177_vm5, %v16432_v42, 0.0  ;;  %v16081_v15 = vunpack.i.h.bf16 %v16079_v52  ;;  %v16080_v49 = vunpack.i.l.bf16 %v16079_v52 }
0x2013   : > { %8593 = vmatmul.mubr.f32.gmra.mrb[168].mxu0 %v16430_v60  ;;  %14897 = vmatprep.subr.bf16.mxu1 %v22737_v23  ;;  %v20782_v26 = vadd.f32 %v16430_v60, %v8445_v20  ;;  %v16060_v60 = vunpack.i.l.bf16 %v20751_v56  ;;  %v16066_v56 = vunpack.i.h.bf16 %v20756_v41 }
0x2014   : > { %8760 = vmatprep.mubr.f32.mxu0 %v22738_v14  ;;  %v14901_v46 = vpack.c.bf16 %v16081_v15, %v16080_v49  ;;  %v16065_v15 = vunpack.i.l.bf16 %v20756_v41 }
0x2015   : > { %v16089_v16 = vpop.permute.xlu0 %16088  ;;  %v14887_v6 = vpack.c.bf16 %v16061_v12, %v16060_v60 }
0x2016   : > { %14899 = vmatpush1.bf16.msra.mxu1 %v14898_v0  ;;  %v16091_v33 = vunpack.i.h.bf16 %v16089_v16  ;;  %v16090_v42 = vunpack.i.l.bf16 %v16089_v16  ;;  %v14891_v43 = vpack.c.bf16 %v16066_v56, %v16065_v15 }
0x2017   : > { %14885 = vmatpush1.bf16.xpose.msk.msra.mxu0 %vm16814_vm3, %v14883_v63  ;;  %14900 = vmatprep.subr.bf16.mxu1 %v22737_v23 }
0x2018   : > { %14886 = vmatprep.subr.bf16.mxu0 %v22737_v23  ;;  %v14907_v52 = vpack.c.bf16 %v16091_v33, %v16090_v42 }
0x2019   : > { %v16094_v3 = vpop.permute.xlu0 %16093 }
0x201a   : > { %14902 = vmatpush1.bf16.msra.mxu1 %v14901_v46  ;;  %v16096_v20 = vunpack.i.h.bf16 %v16094_v3  ;;  %v16095_v0 = vunpack.i.l.bf16 %v16094_v3 }
0x201b   : > { %14903 = vmatprep.subr.bf16.mxu1 %v22737_v23 }
0x201c   : > { %v14910_v44 = vpack.c.bf16 %v16096_v20, %v16095_v0 }
0x201d   : > { %v16099_v1 = vpop.permute.xlu0 %16098 }
0x201e   : > { %14905 = vmatpush1.bf16.msra.mxu1 %v14904_v35  ;;  %v16101_v63 = vunpack.i.h.bf16 %v16099_v1  ;;  %v16100_v16 = vunpack.i.l.bf16 %v16099_v1 }
0x201f   : > { %14889 = vmatpush1.bf16.xpose.msk.msra.mxu0 %vm16814_vm3, %v14887_v6  ;;  %14906 = vmatprep.subr.bf16.mxu1 %v22737_v23 }
0x2020   : > { %14890 = vmatprep.subr.bf16.mxu0 %v22737_v23  ;;  %v14913_v46 = vpack.c.bf16 %v16101_v63, %v16100_v16 }
0x2021   : > { %v16104_v49 = vpop.permute.xlu0 %16103 }
0x2022   : > { %14908 = vmatpush1.bf16.msra.mxu1 %v14907_v52  ;;  %v16106_v12 = vunpack.i.h.bf16 %v16104_v49  ;;  %v16105_v60 = vunpack.i.l.bf16 %v16104_v49 }
0x2023   : > { %14909 = vmatprep.subr.bf16.mxu1 %v22737_v23 }
0x2024   : > { %v14916_v41 = vpack.c.bf16 %v16106_v12, %v16105_v60 }
0x2025   : > { %v16109_v38 = vpop.permute.xlu0 %16108 }
0x2026   : > { %14911 = vmatpush1.bf16.msra.mxu1 %v14910_v44  ;;  %v16111_v3 = vunpack.i.h.bf16 %v16109_v38  ;;  %v16110_v35 = vunpack.i.l.bf16 %v16109_v38 }
0x2027   : > { %14893 = vmatpush1.bf16.xpose.msk.msra.mxu0 %vm16814_vm3, %v14891_v43  ;;  %14912 = vmatprep.subr.bf16.mxu1 %v22737_v23 }
0x2028   : > { %14964 = vmatprep.subr.bf16.mxu0 %v22737_v23  ;;  %v14919_v42 = vpack.c.bf16 %v16111_v3, %v16110_v35 }
0x2029   : > { %v16114_v33 = vpop.permute.xlu0 %16113 }
0x202a   : > { %14914 = vmatpush1.bf16.msra.mxu1 %v14913_v46  ;;  %v16116_v6 = vunpack.i.h.bf16 %v16114_v33  ;;  %v16115_v1 = vunpack.i.l.bf16 %v16114_v33 }
0x202b   : > { %14915 = vmatprep.subr.bf16.mxu1 %v22737_v23 }
0x202c   : > { %v14922_v52 = vpack.c.bf16 %v16116_v6, %v16115_v1 }
0x202e   : > { %12025 = vmatmul.mubr.msk.f32.vlgmr.msra.gmra.mrb[170].mxu0 %vm1190_vm2, %v20763_v8  ;;  %14917 = vmatpush1.bf16.msra.mxu1 %v14916_v41 }
0x202f   : > { %8766 = vmatprep.mubr.f32.mxu0 %v22738_v14  ;;  %14918 = vmatprep.subr.bf16.mxu1 %v22737_v23 }
0x2032   : > { %12026 = vmatmul.mubr.msk.f32.gmra.mrb[172].mxu0 %vm1190_vm2, %v20774_v29  ;;  %14920 = vmatpush1.bf16.msra.mxu1 %v14919_v42 }
0x2033   : > { %8772 = vmatprep.mubr.f32.mxu0 %v22738_v14  ;;  %14921 = vmatprep.subr.bf16.mxu1 %v22737_v23 }
0x2036   : > { %12027 = vmatmul.mubr.msk.f32.gmra.mrb[174].mxu0 %vm1190_vm2, %v20767_v18  ;;  %14923 = vmatpush1.bf16.msra.mxu1 %v14922_v52 }
0x2037   : > { %14924 = vmatprep.subr.bf16.mxu1 %v22737_v23 }
0x20b1   : > { %v20815_v8 = vpop.f32.mrb[164].mxu0 }
0x20b2   : > { %v8586_v20 = vpop.f32.mrb[165].mxu0 }
0x20b5   : > { %v20817_v0 = vpop.f32.mrb[166].mxu0 }
0x20b6   : > { %v8591_v56 = vpop.f32.mrb[167].mxu0 }
0x20e6   : > { %v20819_v15 = vpop.f32.mrb[168].mxu0 }
0x20e7   : > { %v8596_v29 = vpop.f32.mrb[169].mxu0 }
0x2101   : > { %v8762_v49 = vpop.f32.mrb[170].mxu0 }
0x2102   : > { %v8779_v44 = vmul.f32 0.25, %v8762_v49  ;;  %v8764_v63 = vpop.f32.mrb[171].mxu0 }
0x2103   : > { %v8780_v16 = vmul.f32 0.25, %v8764_v63 }
0x2104   : > { %v8785_v18 = vadd.f32 %v20507_v10, %v8779_v44 }
0x2105   : > { %v8786_v43 = vadd.f32 %v20501_v27, %v8780_v16  ;;  %v8768_v38 = vpop.f32.mrb[172].mxu0 }
0x2106   : > { %v8781_v46 = vmul.f32 0.25, %v8768_v38  ;;  %v8770_v12 = vpop.f32.mrb[173].mxu0 }
0x2107   : > { %v8791_v60 = vsel %vm2177_vm5, %v8786_v43, -inf  ;;  %v8782_v41 = vmul.f32 0.25, %v8770_v12 }
0x2108   : > { %v8792_v3 = vmax.f32 %v8785_v18, %v8791_v60  ;;  %v8787_v42 = vadd.f32 %v20524_v54, %v8781_v46 }
0x2109   : > { %v8788_v35 = vadd.f32 %v20516_v9, %v8782_v41  ;;  %v8774_v33 = vpop.f32.mrb[174].mxu0 }
0x210a   : > { %8793 = vmax.xlane.f32.xlu1 %v8792_v3  ;;  %v8776_v6 = vpop.f32.mrb[175].mxu0  ;;  %v8783_v9 = vmul.f32 0.25, %v8774_v33 }
0x210b   : > { %v8795_v1 = vsel %vm2177_vm5, %v8788_v35, -inf  ;;  %v8784_v27 = vmul.f32 0.25, %v8776_v6 }
0x210c   : > { %v8796_v52 = vmax.f32 %v8787_v42, %v8795_v1  ;;  %v20845_v20 = vadd.f32 %v20543_v22, %v8783_v9 }
0x210d   : > { %v20840_v10 = vadd.f32 %v20535_v47, %v8784_v27 }
0x210e   : > { %8797 = vmax.xlane.f32.xlu0 %v8796_v52 }
0x210f   : > { %v8799_v54 = vsel %vm2177_vm5, %v20840_v10, -inf }
0x2110   : > { %v8800_v56 = vmax.f32 %v20845_v20, %v8799_v54 }
0x211b   : > { %16138 = vrot.lane.b32.xlu1 %v20246_v61, %s22739_s23 }
0x2124   : > { %16158 = vrot.lane.b32.xlu0 %v20286_v50, %s22739_s23 }
0x2128   : > { %16163 = vrot.lane.b32.xlu0 %v20296_v48, %s22739_s23 }
0x212c   : > { %8988 = vrot.lane.b32.xlu0 %v20484_v2, %s22739_s23 }
0x2130   : > { %8992 = vrot.lane.b32.xlu0 %v20494_v37, %s22739_s23 }
0x2134   : > { %16173 = vrot.lane.b32.xlu0 %v20216_v28, %s22740_s24 }
0x213f   : > { %8801 = vmax.xlane.f32.xlu1 %v8800_v56 }
0x2150   : > { %16153 = vrot.lane.b32.xlu1 %v20276_v55, %s22739_s23 }
0x2154   : > { %8990 = vrot.lane.b32.xlu1 %v20489_v25, %s22739_s23 }
0x2158   : > { %16168 = vrot.lane.b32.xlu1 %v20206_v31, %s22740_s24  ;;  %v16119_v31 = vpop.permute.xlu0 %16118 }
0x2159   : > { %v16121_v44 = vunpack.i.h.bf16 %v16119_v31  ;;  %v16120_v63 = vunpack.i.l.bf16 %v16119_v31 }
0x215b   : > { %v14925_v46 = vpack.c.bf16 %v16121_v44, %v16120_v63 }
0x215c   : > { %16178 = vrot.lane.b32.xlu1 %v20226_v5, %s22740_s24  ;;  %v16124_v28 = vpop.permute.xlu0 %16123 }
0x215d   : > { %v16126_v41 = vunpack.i.h.bf16 %v16124_v28  ;;  %v16125_v3 = vunpack.i.l.bf16 %v16124_v28 }
0x2160   : > { %16183 = vrot.lane.b32.xlu1 %v20236_v40, %s22740_s24  ;;  %v16129_v5 = vpop.permute.xlu0 %16128 }
0x2161   : > { %v16131_v6 = vunpack.i.h.bf16 %v16129_v5  ;;  %v16130_v1 = vunpack.i.l.bf16 %v16129_v5 }
0x2163   : > { %v14933_v52 = vpack.c.bf16 %v16131_v6, %v16130_v1 }
0x2164   : > { %16188 = vrot.lane.b32.xlu1 %v20246_v61, %s22740_s24  ;;  %v16134_v2 = vpop.permute.xlu0 %16133 }
0x2165   : > { %v16136_v27 = vunpack.i.h.bf16 %v16134_v2  ;;  %v16135_v9 = vunpack.i.l.bf16 %v16134_v2 }
0x2167   : > { %v14937_v54 = vpack.c.bf16 %v16136_v27, %v16135_v9 }
0x2168   : > { %16193 = vrot.lane.b32.xlu1 %v20256_v7, %s22740_s24  ;;  %v20868_v40 = vpop.permute.xlu0 %16143 }
0x2169   : > { %v16146_v2 = vunpack.i.h.bf16 %v20868_v40 }
0x216c   : > { %16198 = vrot.lane.b32.xlu1 %v20266_v11, %s22740_s24  ;;  %v20870_v25 = vpop.permute.xlu0 %16148 }
0x2170   : > { %16203 = vrot.lane.b32.xlu1 %v20276_v55, %s22740_s24 }
0x2174   : > { %16208 = vrot.lane.b32.xlu1 %v20286_v50, %s22740_s24 }
0x2197   : > { %v8794_v61 = vpop.xlane.xlu1 %8793 }
0x2198   : > { %v8803_v37 = vsub.f32 %v8785_v18, %v8794_v61  ;;  %v8804_v7 = vsub.f32 %v8786_v43, %v8794_v61 }
0x219a   : > { %v8809_v47 = vmul.f32 1.442695, %v8803_v37  ;;  %v8811_v22 = vmul.f32 1.442695, %v8804_v7  ;;  %v16145_v7 = vunpack.i.l.bf16 %v20868_v40  ;;  %v16151_v40 = vunpack.i.h.bf16 %v20870_v25 }
0x219b   : > { %v8798_v11 = vpop.xlane.xlu0 %8797  ;;  %v16139_v31 = vpop.permute.xlu1 %16138 }
0x219c   : > { %16433 = vpow2.f32 %v8809_v47  ;;  %v8805_v29 = vsub.f32 %v8787_v42, %v8798_v11  ;;  %v8806_v55 = vsub.f32 %v8788_v35, %v8798_v11  ;;  %v14929_v42 = vpack.c.bf16 %v16126_v41, %v16125_v3 }
0x219d   : > { %16435 = vpow2.f32 %v8811_v22  ;;  %v16141_v28 = vunpack.i.h.bf16 %v16139_v31  ;;  %v16140_v61 = vunpack.i.l.bf16 %v16139_v31 }
0x219e   : > { %v8813_v49 = vmul.f32 1.442695, %v8805_v29  ;;  %v8815_v50 = vmul.f32 1.442695, %v8806_v55 }
0x219f   : > { %v20889_v56 = vpop.permute.xlu0 %16158  ;;  %v14941_v37 = vpack.c.bf16 %v16141_v28, %v16140_v61 }
0x21a0   : > { %16437 = vpow2.f32 %v8813_v49 }
0x21a1   : > { %16439 = vpow2.f32 %v8815_v50  ;;  %v14945_v50 = vpack.c.bf16 %v16146_v2, %v16145_v7 }
0x21a3   : > { %v20894_v5 = vpop.permute.xlu0 %16163 }
0x21a6   : > { %v16434_v16 = vpop.eup %16433 }
0x21a7   : > { %v16436_v38 = vpop.eup %16435  ;;  %v20901_v47 = vpop.permute.xlu0 %8988 }
0x21a8   : > { %12028 = vmatprep.mubr.msk.f32.mxu1 %vm2177_vm5, %v16436_v38  ;;  %v8821_v43 = vsel %vm2177_vm5, %v16436_v38, 0.0 }
0x21a9   : > { %8967 = vmatmul.mubr.f32.vlgmr.msra.gmra.mrb[176].mxu1 %v16434_v16  ;;  %v20874_v18 = vadd.f32 %v16434_v16, %v8821_v43  ;;  %v16150_v16 = vunpack.i.l.bf16 %v20870_v25 }
0x21aa   : > { %v16438_v12 = vpop.eup %16437  ;;  %14927 = vmatpush1.bf16.xpose.msk.msra.mxu1 %vm16814_vm3, %v14925_v46 }
0x21ab   : > { %v16440_v60 = vpop.eup %16439  ;;  %14928 = vmatprep.subr.bf16.mxu1 %v22737_v23  ;;  %v20905_v63 = vpop.permute.xlu0 %8992 }
0x21ac   : > { %12029 = vmatprep.mubr.msk.f32.mxu1 %vm2177_vm5, %v16440_v60  ;;  %v8825_v35 = vsel %vm2177_vm5, %v16440_v60, 0.0 }
0x21ad   : > { %8972 = vmatmul.mubr.f32.gmra.mrb[178].mxu1 %v16438_v12  ;;  %v20881_v33 = vadd.f32 %v16438_v12, %v8825_v35 }
0x21af   : > { %v16174_v38 = vpop.permute.xlu0 %16173 }
0x21b0   : > { %v16176_v41 = vunpack.i.h.bf16 %v16174_v38  ;;  %v16175_v3 = vunpack.i.l.bf16 %v16174_v38 }
0x21b2   : > { %14931 = vmatpush1.bf16.xpose.msk.msra.mxu1 %vm16814_vm3, %v14929_v42  ;;  %v14968_v9 = vpack.c.bf16 %v16176_v41, %v16175_v3 }
0x21b3   : > { %14932 = vmatprep.subr.bf16.mxu1 %v22737_v23 }
0x21ba   : > { %14935 = vmatpush1.bf16.xpose.msk.msra.mxu1 %vm16814_vm3, %v14933_v52 }
0x21bb   : > { %14936 = vmatprep.subr.bf16.mxu1 %v22737_v23 }
0x21c2   : > { %14939 = vmatpush1.bf16.xpose.msk.msra.mxu1 %vm16814_vm3, %v14937_v54 }
0x21c3   : > { %14940 = vmatprep.subr.bf16.mxu1 %v22737_v23 }
0x21ca   : > { %14943 = vmatpush1.bf16.xpose.msk.msra.mxu1 %vm16814_vm3, %v14941_v37 }
0x21cb   : > { %14944 = vmatprep.subr.bf16.mxu1 %v22737_v23 }
0x21cc   : > { %v8802_v22 = vpop.xlane.xlu1 %8801 }
0x21cd   : > { %v8807_v11 = vsub.f32 %v20845_v20, %v8802_v22  ;;  %v8808_v29 = vsub.f32 %v20840_v10, %v8802_v22  ;;  %v14949_v10 = vpack.c.bf16 %v16151_v40, %v16150_v16  ;;  %v16161_v22 = vunpack.i.h.bf16 %v20889_v56 }
0x21cf   : > { %v8817_v55 = vmul.f32 1.442695, %v8807_v11  ;;  %v8819_v49 = vmul.f32 1.442695, %v8808_v29  ;;  %v16160_v11 = vunpack.i.l.bf16 %v20889_v56  ;;  %v16166_v56 = vunpack.i.h.bf16 %v20894_v5 }
0x21d0   : > { %v16154_v44 = vpop.permute.xlu1 %16153 }
0x21d1   : > { %16441 = vpow2.f32 %v8817_v55  ;;  %v16156_v6 = vunpack.i.h.bf16 %v16154_v44  ;;  %v16155_v1 = vunpack.i.l.bf16 %v16154_v44  ;;  %v14957_v44 = vpack.c.bf16 %v16161_v22, %v16160_v11  ;;  %v16515_v11 = vld [vmem:[%s22766_s14 + $0x8] sm:$0xff] }
0x21d2   : > { %16443 = vpow2.f32 %v8819_v49  ;;  %14947 = vmatpush1.bf16.xpose.msk.msra.mxu1 %vm16814_vm3, %v14945_v50 }
0x21d3   : > { %14948 = vmatprep.subr.bf16.mxu1 %v22737_v23  ;;  %v14953_v28 = vpack.c.bf16 %v16156_v6, %v16155_v1 }
0x21d4   : > { %v20912_v20 = vpop.permute.xlu1 %8990 }
0x21d8   : > { %v16169_v46 = vpop.permute.xlu1 %16168 }
0x21d9   : > { %v16171_v43 = vunpack.i.h.bf16 %v16169_v46  ;;  %v16170_v12 = vunpack.i.l.bf16 %v16169_v46  ;;  %v16165_v46 = vunpack.i.l.bf16 %v20894_v5 }
0x21da   : > { %14951 = vmatpush1.bf16.xpose.msk.msra.mxu1 %vm16814_vm3, %v14949_v10 }
0x21db   : > { %v16442_v60 = vpop.eup %16441  ;;  %v14965_v35 = vpack.c.bf16 %v16171_v43, %v16170_v12  ;;  %14952 = vmatprep.subr.bf16.mxu1 %v22737_v23  ;;  %v14961_v3 = vpack.c.bf16 %v16166_v56, %v16165_v46 }
0x21dc   : > { %v16444_v42 = vpop.eup %16443  ;;  %v16179_v25 = vpop.permute.xlu1 %16178 }
0x21dd   : > { %12030 = vmatprep.mubr.msk.f32.mxu1 %vm2177_vm5, %v16444_v42  ;;  %14966 = vmatpush1.bf16.msra.mxu0 %v14965_v35  ;;  %v8829_v52 = vsel %vm2177_vm5, %v16444_v42, 0.0  ;;  %v16181_v54 = vunpack.i.h.bf16 %v16179_v25  ;;  %v16180_v31 = vunpack.i.l.bf16 %v16179_v25 }
0x21de   : > { %8977 = vmatmul.mubr.f32.gmra.mrb[180].mxu1 %v16442_v60  ;;  %14967 = vmatprep.subr.bf16.mxu0 %v22737_v23  ;;  %v20920_v27 = vadd.f32 %v16442_v60, %v8829_v52 }
0x21df   : > { %9144 = vmatprep.mubr.f32.mxu1 %v22738_v14  ;;  %v14971_v37 = vpack.c.bf16 %v16181_v54, %v16180_v31 }
0x21e0   : > { %v16184_v61 = vpop.permute.xlu1 %16183 }
0x21e1   : > { %14969 = vmatpush1.bf16.msra.mxu0 %v14968_v9  ;;  %v16186_v2 = vunpack.i.h.bf16 %v16184_v61  ;;  %v16185_v7 = vunpack.i.l.bf16 %v16184_v61 }
0x21e2   : > { %14955 = vmatpush1.bf16.xpose.msk.msra.mxu1 %vm16814_vm3, %v14953_v28  ;;  %14970 = vmatprep.subr.bf16.mxu0 %v22737_v23 }
0x21e3   : > { %14956 = vmatprep.subr.bf16.mxu1 %v22737_v23  ;;  %v14974_v55 = vpack.c.bf16 %v16186_v2, %v16185_v7 }
0x21e4   : > { %v16189_v29 = vpop.permute.xlu1 %16188 }
0x21e5   : > { %14972 = vmatpush1.bf16.msra.mxu0 %v14971_v37  ;;  %v16191_v49 = vunpack.i.h.bf16 %v16189_v29  ;;  %v16190_v50 = vunpack.i.l.bf16 %v16189_v29 }
0x21e6   : > { %14973 = vmatprep.subr.bf16.mxu0 %v22737_v23 }
0x21e7   : > { %v14977_v16 = vpack.c.bf16 %v16191_v49, %v16190_v50 }
0x21e8   : > { %v16194_v40 = vpop.permute.xlu1 %16193 }
0x21e9   : > { %14975 = vmatpush1.bf16.msra.mxu0 %v14974_v55  ;;  %v16196_v10 = vunpack.i.h.bf16 %v16194_v40  ;;  %v16195_v38 = vunpack.i.l.bf16 %v16194_v40  ;;  %v16516_v55 = vld [vmem:[%s22766_s14] sm:$0xff] }
0x21ea   : > { %14959 = vmatpush1.bf16.xpose.msk.msra.mxu1 %vm16814_vm3, %v14957_v44  ;;  %14976 = vmatprep.subr.bf16.mxu0 %v22737_v23 }
0x21eb   : > { %14960 = vmatprep.subr.bf16.mxu1 %v22737_v23  ;;  %v14980_v12 = vpack.c.bf16 %v16196_v10, %v16195_v38  ;;  %v16517_v38 = vld [vmem:[%s22766_s14 + $0x18] sm:$0xff] }
0x21ec   : > { %v16199_v43 = vpop.permute.xlu1 %16198 }
0x21ed   : > { %14978 = vmatpush1.bf16.msra.mxu0 %v14977_v16  ;;  %v16201_v60 = vunpack.i.h.bf16 %v16199_v43  ;;  %v16200_v41 = vunpack.i.l.bf16 %v16199_v43  ;;  %v16518_v43 = vld [vmem:[%s22766_s14 + $0x10] sm:$0xff] }
0x21ee   : > { %14979 = vmatprep.subr.bf16.mxu0 %v22737_v23 }
0x21ef   : > { %v14983_v42 = vpack.c.bf16 %v16201_v60, %v16200_v41 }
0x21f0   : > { %v16204_v35 = vpop.permute.xlu1 %16203 }
0x21f1   : > { %14981 = vmatpush1.bf16.msra.mxu0 %v14980_v12  ;;  %v16206_v6 = vunpack.i.h.bf16 %v16204_v35  ;;  %v16205_v1 = vunpack.i.l.bf16 %v16204_v35 }
0x21f2   : > { %14963 = vmatpush1.bf16.xpose.msk.msra.mxu1 %vm16814_vm3, %v14961_v3  ;;  %14982 = vmatprep.subr.bf16.mxu0 %v22737_v23 }
0x21f3   : > { %v14986_v5 = vpack.c.bf16 %v16206_v6, %v16205_v1 }
0x21f4   : > { %v16209_v25 = vpop.permute.xlu1 %16208 }
0x21f5   : > { %14984 = vmatpush1.bf16.msra.mxu0 %v14983_v42  ;;  %v16211_v52 = vunpack.i.h.bf16 %v16209_v25  ;;  %v16210_v9 = vunpack.i.l.bf16 %v16209_v25  ;;  %v16519_v42 = vld [vmem:[%s22766_s14 + $0x28] sm:$0xff] }
0x21f6   : > { %14985 = vmatprep.subr.bf16.mxu0 %v22737_v23 }
0x21f7   : > { %v14989_v57 = vpack.c.bf16 %v16211_v52, %v16210_v9 }
0x21f9   : > { %12051 = vmatmul.mubr.msk.f32.vlgmr.msra.gmra.mrb[182].mxu1 %vm1190_vm2, %v20901_v47  ;;  %14987 = vmatpush1.bf16.msra.mxu0 %v14986_v5  ;;  %v16520_v5 = vld [vmem:[%s22766_s14 + $0x20] sm:$0xff] }
0x21fa   : > { %9150 = vmatprep.mubr.f32.mxu1 %v22738_v14  ;;  %14988 = vmatprep.subr.bf16.mxu0 %v22737_v23 }
0x21fd   : > { %12052 = vmatmul.mubr.msk.f32.gmra.mrb[184].mxu1 %vm1190_vm2, %v20912_v20  ;;  %14990 = vmatpush1.bf16.msra.mxu0 %v14989_v57 }
0x21fe   : > { %9156 = vmatprep.mubr.f32.mxu1 %v22738_v14  ;;  %14991 = vmatprep.subr.bf16.mxu0 %v22737_v23 }
0x2201   : > { %12053 = vmatmul.mubr.msk.f32.gmra.mrb[186].mxu1 %vm1190_vm2, %v20905_v63 }
0x2202   : > { %9854 = vmatprep.mubr.f32.mxu1 %v22738_v14 }
0x227c   : > { %v20952_v47 = vpop.f32.mrb[176].mxu1 }
0x227d   : > { %v8970_v54 = vpop.f32.mrb[177].mxu1 }
0x2280   : > { %v20954_v31 = vpop.f32.mrb[178].mxu1 }
0x2281   : > { %v8975_v28 = vpop.f32.mrb[179].mxu1 }
0x22b1   : > { %v20956_v61 = vpop.f32.mrb[180].mxu1 }
0x22b2   : > { %v8980_v37 = vpop.f32.mrb[181].mxu1 }
0x22cc   : > { %v9146_v20 = vpop.f32.mrb[182].mxu1 }
0x22cd   : > { %v9163_v2 = vmul.f32 0.25, %v9146_v20  ;;  %v9148_v7 = vpop.f32.mrb[183].mxu1 }
0x22ce   : > { %v9164_v22 = vmul.f32 0.25, %v9148_v7 }
0x22cf   : > { %v9169_v49 = vadd.f32 %v16516_v55, %v9163_v2 }
0x22d0   : > { %v9170_v63 = vadd.f32 %v16515_v11, %v9164_v22  ;;  %v9152_v29 = vpop.f32.mrb[184].mxu1 }
0x22d1   : > { %v9165_v50 = vmul.f32 0.25, %v9152_v29  ;;  %v9154_v44 = vpop.f32.mrb[185].mxu1 }
0x22d2   : > { %v9175_v40 = vsel %vm2177_vm5, %v9170_v63, -inf  ;;  %v9166_v16 = vmul.f32 0.25, %v9154_v44 }
0x22d3   : > { %v9176_v10 = vmax.f32 %v9169_v49, %v9175_v40  ;;  %v9171_v12 = vadd.f32 %v16518_v43, %v9165_v50 }
0x22d4   : > { %v9172_v56 = vadd.f32 %v16517_v38, %v9166_v16  ;;  %v9158_v46 = vpop.f32.mrb[186].mxu1 }
0x22d5   : > { %9177 = vmax.xlane.f32.xlu0 %v9176_v10  ;;  %v9160_v60 = vpop.f32.mrb[187].mxu1  ;;  %v9167_v1 = vmul.f32 0.25, %v9158_v46 }
0x22d6   : > { %v9179_v41 = vsel %vm2177_vm5, %v9172_v56, -inf  ;;  %v9168_v35 = vmul.f32 0.25, %v9160_v60 }
0x22d7   : > { %v9180_v3 = vmax.f32 %v9171_v12, %v9179_v41  ;;  %v9173_v52 = vadd.f32 %v16520_v5, %v9167_v1  ;;  %v11946_v1 = vld [vmem:[%s22767_s8 + $0x48] sm:$0xff]  ;;  %v11949_v5 = vld [vmem:[%s22767_s8 + $0x60] sm:$0xff] }
0x22d8   : > { %v9174_v6 = vadd.f32 %v16519_v42, %v9168_v35 }
0x22d9   : > { %9181 = vmax.xlane.f32.xlu1 %v9180_v3 }
0x22da   : > { %v9183_v25 = vsel %vm2177_vm5, %v9174_v6, -inf }
0x22dd   : > { %8439 = vadd.xlane.f32.xlu1 %v20736_v4  ;;  %v9184_v4 = vmax.f32 %v9173_v52, %v9183_v25  ;;  %v11948_v25 = vld [vmem:[%s22767_s8 + $0x58] sm:$0xff] }
0x22e1   : > { %8823 = vadd.xlane.f32.xlu1 %v20874_v18 }
0x22eb   : > { %16213 = vrot.lane.b32.xlu0 %v20296_v48, %s22740_s24 }
0x230a   : > { %9185 = vmax.xlane.f32.xlu0 %v9184_v4 }
0x230e   : > { %8447 = vadd.xlane.f32.xlu0 %v20782_v26 }
0x2362   : > { %v9178_v18 = vpop.xlane.xlu0 %9177 }
0x2363   : > { %v9187_v48 = vsub.f32 %v9169_v49, %v9178_v18  ;;  %v9188_v9 = vsub.f32 %v9170_v63, %v9178_v18  ;;  %v11951_v18 = vld [vmem:[%s22767_s8 + $0x70] sm:$0xff] }
0x2365   : > { %v9193_v57 = vmul.f32 1.442695, %v9187_v48  ;;  %v9195_v54 = vmul.f32 1.442695, %v9188_v9  ;;  %v11952_v48 = vld [vmem:[%s22767_s8 + $0x78] sm:$0xff] }
0x2366   : > { %v16214_v28 = vpop.permute.xlu0 %16213  ;;  %v9182_v37 = vpop.xlane.xlu1 %9181  ;;  %v15004_v9 = vpack.c.bf16 %v11952_v48, %v11951_v18 }
0x2367   : > { %16445 = vpow2.f32 %v9193_v57  ;;  %v16216_v20 = vunpack.i.h.bf16 %v16214_v28  ;;  %v16215_v2 = vunpack.i.l.bf16 %v16214_v28  ;;  %v9189_v7 = vsub.f32 %v9171_v12, %v9182_v37 }
0x2368   : > { %16447 = vpow2.f32 %v9195_v54  ;;  %v9190_v22 = vsub.f32 %v9172_v56, %v9182_v37 }
0x2369   : > { %v14992_v11 = vpack.c.bf16 %v16216_v20, %v16215_v2  ;;  %v9197_v29 = vmul.f32 1.442695, %v9189_v7 }
0x236a   : > { %v9199_v55 = vmul.f32 1.442695, %v9190_v22  ;;  %v8440_v38 = vpop.xlane.xlu1 %8439 }
0x236b   : > { %16449 = vpow2.f32 %v9197_v29  ;;  %14993 = vmatpush1.bf16.msra.mxu0 %v14992_v11 }
0x236c   : > { %16451 = vpow2.f32 %v9199_v55  ;;  %14994 = vmatprep.subr.bf16.mxu0 %v22737_v23 }
0x236d   : > { %16453 = vrcp.f32 %v8440_v38 }
0x2371   : > { %v16446_v26 = vpop.eup %16445 }
0x2372   : > { %v16448_v63 = vpop.eup %16447 }
0x2373   : > { %12054 = vmatprep.mubr.msk.f32.mxu0 %vm2177_vm5, %v16448_v63  ;;  %v9205_v49 = vsel %vm2177_vm5, %v16448_v63, 0.0 }
0x2374   : > { %9351 = vmatmul.mubr.f32.vlgmr.msra.gmra.mrb[176].mxu0 %v16446_v26  ;;  %v9206_v50 = vadd.f32 %v16446_v26, %v9205_v49 }
0x2375   : > { %v16450_v44 = vpop.eup %16449 }
0x2376   : > { %v16452_v40 = vpop.eup %16451  ;;  %9207 = vadd.xlane.f32.xlu1 %v9206_v50 }
0x2377   : > { %12055 = vmatprep.mubr.msk.f32.mxu0 %vm2177_vm5, %v16452_v40  ;;  %v9209_v16 = vsel %vm2177_vm5, %v16452_v40, 0.0  ;;  %v16454_v56 = vpop.eup %16453 }
0x2378   : > { %9356 = vmatmul.mubr.f32.gmra.mrb[178].mxu0 %v16450_v44  ;;  %v9210_v10 = vadd.f32 %v16450_v44, %v9209_v16  ;;  %v8599_v60 = vmul.f32 %v16454_v56, %v20815_v8  ;;  %v8824_v8 = vpop.xlane.xlu1 %8823 }
0x237a   : > { %8443 = vadd.xlane.f32.xlu1 %v20743_v53 }
0x237e   : > { %8827 = vadd.xlane.f32.xlu1 %v20881_v33 }
0x2382   : > { %9211 = vadd.xlane.f32.xlu1 %v9210_v10 }
0x2386   : > { %8831 = vadd.xlane.f32.xlu1 %v20920_v27 }
0x238a   : > { %8055 = vadd.xlane.f32.xlu1 %v20597_v58 }
0x2397   : > { %v9186_v46 = vpop.xlane.xlu0 %9185 }
0x2398   : > { %v9191_v43 = vsub.f32 %v9173_v52, %v9186_v46  ;;  %v9192_v12 = vsub.f32 %v9174_v6, %v9186_v46  ;;  %v11945_v6 = vld [vmem:[%s22767_s8 + $0x40] sm:$0xff]  ;;  %v11950_v52 = vld [vmem:[%s22767_s8 + $0x68] sm:$0xff] }
0x2399   : > { %v15001_v4 = vpack.c.bf16 %v11950_v52, %v11949_v5 }
0x239a   : > { %v9201_v41 = vmul.f32 1.442695, %v9191_v43  ;;  %v9203_v53 = vmul.f32 1.442695, %v9192_v12 }
0x239b   : > { %9375 = vrot.lane.b32.xlu1 %v8599_v60, %s22740_s24  ;;  %v8448_v2 = vpop.xlane.xlu0 %8447 }
0x239c   : > { %16455 = vpow2.f32 %v9201_v41 }
0x239d   : > { %16457 = vpow2.f32 %v9203_v53 }
0x239e   : > { %16459 = vrcp.f32 %v8824_v8 }
0x23a6   : > { %v16456_v33 = vpop.eup %16455 }
0x23a7   : > { %v16458_v3 = vpop.eup %16457 }
0x23a8   : > { %12056 = vmatprep.mubr.msk.f32.mxu0 %vm2177_vm5, %v16458_v3  ;;  %v9213_v27 = vsel %vm2177_vm5, %v16458_v3, 0.0  ;;  %v16460_v35 = vpop.eup %16459 }
0x23a9   : > { %9361 = vmatmul.mubr.f32.gmra.mrb[180].mxu0 %v16456_v33  ;;  %v9214_v58 = vadd.f32 %v16456_v33, %v9213_v27  ;;  %v8983_v42 = vmul.f32 %v16460_v35, %v20952_v47 }
0x23aa   : > { %13836 = vmatprep.mubr.msk.f32.mxu0 %vm16537_vm1, %v22738_v14 }
0x23ab   : > { %9215 = vadd.xlane.f32.xlu0 %v9214_v58 }
0x23af   : > { %8059 = vadd.xlane.f32.xlu0 %v20630_v34  ;;  %v11947_v34 = vld [vmem:[%s22767_s8 + $0x50] sm:$0xff] }
0x23b0   : > { %v14998_v47 = vpack.c.bf16 %v11948_v25, %v11947_v34 }
0x23b3   : > { %8063 = vadd.xlane.f32.xlu0 %v20639_v24  ;;  %v14995_v24 = vpack.c.bf16 %v11946_v1, %v11945_v6 }
0x23b5   : > { %14996 = vmatpush3.bf16.msra.mxu0 %v14995_v24 }
0x23b6   : > { %14997 = vmatprep.subr.bf16.mxu0 %v22737_v23 }
0x23b9   : > { %14999 = vmatpush3.bf16.msra.mxu0 %v14998_v47 }
0x23ba   : > { %15000 = vmatprep.subr.bf16.mxu0 %v22737_v23 }
0x23bd   : > { %15002 = vmatpush3.bf16.msra.mxu0 %v15001_v4 }
0x23be   : > { %15003 = vmatprep.subr.bf16.mxu0 %v22737_v23 }
0x23c1   : > { %15005 = vmatpush3.bf16.msra.mxu0 %v15004_v9 }
0x23c9   : > { %9387 = vrot.lane.b32.xlu0 %v8983_v42, %s22704_s26 }
0x2403   : > { %v9208_v57 = vpop.xlane.xlu1 %9207 }
0x2404   : > { %16461 = vrcp.f32 %v9208_v57 }
0x2407   : > { %v8444_v54 = vpop.xlane.xlu1 %8443 }
0x2408   : > { %16463 = vrcp.f32 %v8444_v54 }
0x240b   : > { %v8828_v28 = vpop.xlane.xlu1 %8827 }
0x240e   : > { %v16462_v7 = vpop.eup %16461 }
0x240f   : > { %v9212_v37 = vpop.xlane.xlu1 %9211 }
0x2410   : > { %16465 = vrcp.f32 %v9212_v37 }
0x2411   : > { %16467 = vrcp.f32 %v8828_v28 }
0x2412   : > { %v16464_v55 = vpop.eup %16463 }
0x2413   : > { %v8832_v20 = vpop.xlane.xlu1 %8831  ;;  %v8601_v40 = vmul.f32 %v16464_v55, %v20817_v0 }
0x2414   : > { %16469 = vrcp.f32 %v8832_v20 }
0x2415   : > { %16471 = vrcp.f32 %v8448_v2 }
0x241a   : > { %v16466_v26 = vpop.eup %16465 }
0x241b   : > { %v16468_v49 = vpop.eup %16467 }
0x241c   : > { %v8985_v10 = vmul.f32 %v16468_v49, %v20954_v31  ;;  %v8056_v31 = vpop.xlane.xlu1 %8055 }
0x241e   : > { %v16470_v16 = vpop.eup %16469 }
0x241f   : > { %v8987_v38 = vmul.f32 %v16470_v16, %v20956_v61  ;;  %v16472_v56 = vpop.eup %16471 }
0x2420   : > { %v8603_v46 = vmul.f32 %v16472_v56, %v20819_v15  ;;  %v9376_v27 = vpop.permute.xlu1 %9375 }
0x2438   : > { %v9216_v43 = vpop.xlane.xlu0 %9215 }
0x2439   : > { %16473 = vrcp.f32 %v9216_v43 }
0x243a   : > { %16475 = vrcp.f32 %v8056_v31 }
0x243c   : > { %v8060_v61 = vpop.xlane.xlu0 %8059 }
0x243d   : > { %16477 = vrcp.f32 %v8060_v61  ;;  %v12080_v61 = vld [vmem:[%s22769_s27 + $0x498] sm:$0xff] }
0x2440   : > { %v8064_v53 = vpop.xlane.xlu0 %8063 }
0x2441   : > { %16479 = vrcp.f32 %v8064_v53  ;;  %v12061_v53 = vld [vmem:[%s22769_s27 + $0x400] sm:$0xff] }
0x2443   : > { %v16474_v0 = vpop.eup %16473 }
0x2444   : > { %v16476_v33 = vpop.eup %16475  ;;  %v9388_v15 = vpop.permute.xlu0 %9387 }
0x2445   : > { %v8215_v3 = vmul.f32 %v16476_v33, %v20663_v36  ;;  %v12077_v33 = vld [vmem:[%s22769_s27 + $0x480] sm:$0xff] }
0x2447   : > { %v9352_v22 = vpop.f32.mrb[176].mxu0  ;;  %v9408_v58 = vsel %vm1190_vm2, %v8215_v3, %v9376_v27  ;;  %v16478_v6 = vpop.eup %16477  ;;  %v15008_v27 = vpack.c.bf16 %v12077_v33, %v12061_v53 }
0x2448   : > { %v9367_v11 = vmul.f32 %v16462_v7, %v9352_v22  ;;  %v9354_v29 = vpop.f32.mrb[177].mxu0  ;;  %v9411_v8 = vsel %vm2177_vm5, %v9408_v58, %v9388_v15  ;;  %v8217_v34 = vmul.f32 %v16478_v6, %v20665_v51  ;;  %v12063_v15 = vld [vmem:[%s22769_s27 + $0x410] sm:$0xff]  ;;  %v12096_v6 = vld [vmem:[%s22769_s27 + $0x518] sm:$0xff] }
0x2449   : > { %v12079_v58 = vld [vmem:[%s22769_s27 + $0x490] sm:$0xff] }
0x244a   : > { %9399 = vrot.lane.b32.xlu1 %v9367_v11, %s22705_s28 }
0x244b   : > { %v9357_v63 = vpop.f32.mrb[178].mxu0  ;;  %v16480_v52 = vpop.eup %16479 }
0x244c   : > { %v9369_v50 = vmul.f32 %v16466_v26, %v9357_v63  ;;  %v9359_v44 = vpop.f32.mrb[179].mxu0  ;;  %v8219_v18 = vmul.f32 %v16480_v52, %v20667_v45  ;;  %v12111_v52 = vld [vmem:[%s22769_s27 + $0x590] sm:$0xff] }
0x244e   : > { %9377 = vrot.lane.b32.xlu1 %v8601_v40, %s22740_s24  ;;  %9401 = vrot.lane.b32.xlu0 %v9369_v50, %s22705_s28 }
0x2452   : > { %9389 = vrot.lane.b32.xlu1 %v8985_v10, %s22704_s26  ;;  %9391 = vrot.lane.b32.xlu0 %v8987_v38, %s22704_s26  ;;  %s739_s26 = scalar_lea.vmem %s22776_s29, %s11630_s30 }
0x2456   : > { %9379 = vrot.lane.b32.xlu1 %v8603_v46, %s22740_s24  ;;  %s22768_s24 = sld [smem:[#allocation34_spill]] }
0x245c   : > { %v12057_v28 = vld [vmem:[%s22768_s24 + $0x1] ss:$0 sm:$0xff] }
0x247c   : > { %v9362_v12 = vpop.f32.mrb[180].mxu0 }
0x247d   : > { %v9371_v60 = vmul.f32 %v16474_v0, %v9362_v12  ;;  %v9364_v41 = vpop.f32.mrb[181].mxu0  ;;  %v12062_v12 = vld [vmem:[%s22769_s27 + $0x408] sm:$0xff] }
0x247e   : > { %v12064_v41 = vld [vmem:[%s22769_s27 + $0x418] sm:$0xff] }
0x247f   : > { %9403 = vrot.lane.b32.xlu1 %v9371_v60, %s22705_s28  ;;  %v12078_v60 = vld [vmem:[%s22769_s27 + $0x488] sm:$0xff]  ;;  %v15022_v3 = vpack.c.bf16 %v12080_v61, %v12064_v41  ;;  %v12068_v41 = vld [vmem:[%s22769_s27 + $0x438] sm:$0xff] }
0x2480   : > { %v15006_v31 = vpack.c.bf16 %v12078_v60, %v12062_v12  ;;  %v12066_v12 = vld [vmem:[%s22769_s27 + $0x428] sm:$0xff] }
0x2481   : > { %15023 = vmatprep.subr.bf16.mxu0 %v15022_v3  ;;  %v12082_v60 = vld [vmem:[%s22769_s27 + $0x4a8] sm:$0xff] }
0x2482   : > { %15007 = vmatprep.subr.bf16.mxu1 %v15006_v31  ;;  %v12084_v31 = vld [vmem:[%s22769_s27 + $0x4b8] sm:$0xff] }
0x2483   : > { %15009 = vmatpush1.bf16.msra.mxu1 %v15008_v27  ;;  %v15054_v61 = vpack.c.bf16 %v12084_v31, %v12068_v41  ;;  %v12161_v41 = vld [vmem:[%s22769_s27 + $0x720] sm:$0xff] }
0x24bc   : > { %v9400_v35 = vpop.permute.xlu1 %9399 }
0x24bd   : > { %v9414_v42 = vsel %vm2181_vm6, %v9411_v8, %v9400_v35  ;;  %v15024_v8 = vpack.c.bf16 %v12079_v58, %v12063_v15  ;;  %v12094_v35 = vld [vmem:[%s22769_s27 + $0x508] sm:$0xff] }
0x24be   : > { %13837 = vmatmul.mubr.msk.f32.vlgmr.msra.gmra.mrb[182].mxu0 %vm1079_vm0, %v9414_v42  ;;  %v12110_v42 = vld [vmem:[%s22769_s27 + $0x588] sm:$0xff] }
0x24bf   : > { %13839 = vmatprep.mubr.msk.f32.mxu0 %vm16537_vm1, %v22738_v14  ;;  %15025 = vmatpush1.bf16.msra.mxu0 %v15024_v8  ;;  %v16521_v8 = vld [vmem:[%s22622_s20 + $0x4] sm:$0x7] }
0x24c0   : > { %v9378_v1 = vpop.permute.xlu1 %9377  ;;  %v9402_v25 = vpop.permute.xlu0 %9401 }
0x24c1   : > { %v9409_v36 = vsel %vm1190_vm2, %v8217_v34, %v9378_v1  ;;  %v15010_v1 = vpack.c.bf16 %v12110_v42, %v12094_v35  ;;  %v12112_v34 = vld [vmem:[%s22769_s27 + $0x598] sm:$0xff]  ;;  %v21201_v35 = vrot.slane %v16521_v8, %v16750_v32 }
0x24c2   : > { %v12088_v8 = vld [vmem:[%s22769_s27 + $0x4d8] sm:$0xff] }
0x24c3   : > { %15011 = vmatprep.subr.bf16.mxu1 %v15010_v1 }
0x24c4   : > { %v9390_v24 = vpop.permute.xlu1 %9389  ;;  %v9392_v48 = vpop.permute.xlu0 %9391 }
0x24c5   : > { %v9412_v47 = vsel %vm2177_vm5, %v9409_v36, %v9390_v24  ;;  %v12093_v36 = vld [vmem:[%s22769_s27 + $0x500] sm:$0xff] }
0x24c6   : > { %v9415_v5 = vsel %vm2181_vm6, %v9412_v47, %v9402_v25  ;;  %v12109_v24 = vld [vmem:[%s22769_s27 + $0x580] sm:$0xff]  ;;  %v15026_v25 = vpack.c.bf16 %v12112_v34, %v12096_v6 }
0x24c7   : > { %13840 = vmatmul.mubr.msk.f32.gmra.mrb[184].mxu0 %vm1079_vm0, %v9415_v5  ;;  %v15012_v47 = vpack.c.bf16 %v12109_v24, %v12093_v36  ;;  %v12095_v5 = vld [vmem:[%s22769_s27 + $0x510] sm:$0xff]  ;;  %v16522_v6 = vld [vmem:[%s22623_s21 + $0x4] sm:$0x7] }
0x24c8   : > { %13842 = vmatprep.mubr.msk.f32.mxu0 %vm16537_vm1, %v22738_v14  ;;  %v9380_v4 = vpop.permute.xlu1 %9379  ;;  %15027 = vmatprep.subr.bf16.mxu0 %v15026_v25  ;;  %v21207_v1 = vrot.slane %v16522_v6, %v16750_v32  ;;  %v12065_v36 = vld [vmem:[%s22769_s27 + $0x420] sm:$0xff]  ;;  %v12067_v25 = vld [vmem:[%s22769_s27 + $0x430] sm:$0xff] }
0x24c9   : > { %v9410_v51 = vsel %vm1190_vm2, %v8219_v18, %v9380_v4  ;;  %v15028_v4 = vpack.c.bf16 %v12111_v52, %v12095_v5  ;;  %15013 = vmatpush1.bf16.msra.mxu1 %v15012_v47  ;;  %v12126_v18 = vld [vmem:[%s22769_s27 + $0x608] sm:$0xff]  ;;  %v12081_v24 = vld [vmem:[%s22769_s27 + $0x4a0] sm:$0xff]  ;;  %v12083_v47 = vld [vmem:[%s22769_s27 + $0x4b0] sm:$0xff] }
0x24ca   : > { %v9413_v57 = vsel %vm2177_vm5, %v9410_v51, %v9392_v48  ;;  %v12142_v51 = vld [vmem:[%s22769_s27 + $0x688] sm:$0xff]  ;;  %v12128_v48 = vld [vmem:[%s22769_s27 + $0x618] sm:$0xff] }
0x24cb   : > { %15029 = vmatpush1.bf16.msra.mxu0 %v15028_v4  ;;  %v12114_v52 = vld [vmem:[%s22769_s27 + $0x5a8] sm:$0xff]  ;;  %v12100_v4 = vld [vmem:[%s22769_s27 + $0x538] sm:$0xff] }
0x24f1   : > { %v9404_v9 = vpop.permute.xlu1 %9403 }
0x24f2   : > { %v9416_v54 = vsel %vm2181_vm6, %v9413_v57, %v9404_v9  ;;  %v15014_v9 = vpack.c.bf16 %v12142_v51, %v12126_v18  ;;  %v12144_v57 = vld [vmem:[%s22769_s27 + $0x698] sm:$0xff] }
0x24f3   : > { %13843 = vmatmul.mubr.msk.f32.gmra.mrb[186].mxu0 %vm1079_vm0, %v9416_v54  ;;  %v12125_v54 = vld [vmem:[%s22769_s27 + $0x600] sm:$0xff]  ;;  %v12116_v18 = vld [vmem:[%s22769_s27 + $0x5b8] sm:$0xff] }
0x24f4   : > { %9937 = vmatprep.mubr.f32.mxu0 %v22738_v14  ;;  %15015 = vmatprep.subr.bf16.mxu1 %v15014_v9  ;;  %v15056_v9 = vpack.c.bf16 %v12083_v47, %v12067_v25 }
0x2591   : > { %v9496_v37 = vpop.f32.mrb[182].mxu0 }
0x2592   : > { %v9497_v20 = vadd.f32 %v12057_v28, %v9496_v37  ;;  %v13838_v2 = vpop.f32.mrb[183].mxu0  ;;  %v15030_v37 = vpack.c.bf16 %v12144_v57, %v12128_v48  ;;  %v15040_v48 = vpack.c.bf16 %v12081_v24, %v12065_v36  ;;  %v12097_v57 = vld [vmem:[%s22769_s27 + $0x520] sm:$0xff] }
0x2593   : > { %v12127_v2 = vld [vmem:[%s22769_s27 + $0x610] sm:$0xff] }
0x2594   : > { %v9510_v45 = vadd.f32 %v9497_v20, %v20388_v19  ;;  %15031 = vmatprep.subr.bf16.mxu0 %v15030_v37  ;;  %v15058_v37 = vpack.c.bf16 %v12116_v18, %v12100_v4  ;;  %v12069_v4 = vld [vmem:[%s22769_s27 + $0x440] sm:$0xff] }
0x2596   : > { %v9513_v7 = vsel %vm1079_vm0, %v9510_v45, 0.0 }
0x2597   : > { %9514 = vadd.xlane.f32.xlu0 %v9513_v7 }
0x259a   : > { %v9501_v22 = vpop.f32.mrb[184].mxu0 }
0x259b   : > { %v9502_v11 = vadd.f32 %v12057_v28, %v9501_v22  ;;  %v13841_v29 = vpop.f32.mrb[185].mxu0  ;;  %v12158_v22 = vld [vmem:[%s22769_s27 + $0x708] sm:$0xff] }
0x259c   : > { %v12160_v29 = vld [vmem:[%s22769_s27 + $0x718] sm:$0xff] }
0x259d   : > { %v9511_v55 = vadd.f32 %v9502_v11, %v20451_v62  ;;  %v12174_v11 = vld [vmem:[%s22769_s27 + $0x788] sm:$0xff] }
0x259f   : > { %v9516_v26 = vsel %vm1079_vm0, %v9511_v55, 0.0 }
0x25a0   : > { %9517 = vadd.xlane.f32.xlu1 %v9516_v26  ;;  %v12176_v26 = vld [vmem:[%s22769_s27 + $0x798] sm:$0xff] }
0x25c6   : > { %v9506_v63 = vpop.f32.mrb[186].mxu0 }
0x25c7   : > { %v9507_v49 = vadd.f32 %v12057_v28, %v9506_v63  ;;  %v13844_v50 = vpop.f32.mrb[187].mxu0  ;;  %v12141_v28 = vld [vmem:[%s22769_s27 + $0x680] sm:$0xff] }
0x25c8   : > { %v15016_v20 = vpack.c.bf16 %v12141_v28, %v12125_v54  ;;  %v12157_v63 = vld [vmem:[%s22769_s27 + $0x700] sm:$0xff]  ;;  %v15034_v50 = vpack.c.bf16 %v12176_v26, %v12160_v29 }
0x25c9   : > { %v21069_v44 = vadd.f32 %v9507_v49, %v20470_v59  ;;  %v12173_v49 = vld [vmem:[%s22769_s27 + $0x780] sm:$0xff] }
0x25ca   : > { %15017 = vmatpush1.bf16.msra.mxu1 %v15016_v20  ;;  %v12113_v54 = vld [vmem:[%s22769_s27 + $0x5a0] sm:$0xff]  ;;  %v12099_v20 = vld [vmem:[%s22769_s27 + $0x530] sm:$0xff] }
0x25cb   : > { %v9519_v19 = vsel %vm1079_vm0, %v21069_v44, 0.0 }
0x25cc   : > { %9520 = vadd.xlane.f32.xlu0 %v9519_v19  ;;  %v15020_v19 = vpack.c.bf16 %v12173_v49, %v12157_v63  ;;  %v12129_v63 = vld [vmem:[%s22769_s27 + $0x620] sm:$0xff] }
0x2624   : > { %v9515_v40 = vpop.xlane.xlu0 %9514 }
0x2625   : > { %v9522_v16 = vmul.f32 0.015625, %v9515_v40  ;;  %v12159_v40 = vld [vmem:[%s22769_s27 + $0x710] sm:$0xff] }
0x2627   : > { %v21073_v10 = vsub.f32 %v9510_v45, %v9522_v16  ;;  %v12143_v45 = vld [vmem:[%s22769_s27 + $0x690] sm:$0xff] }
0x2628   : > { %v15032_v7 = vpack.c.bf16 %v12143_v45, %v12127_v2  ;;  %v12175_v16 = vld [vmem:[%s22769_s27 + $0x790] sm:$0xff]  ;;  %v12130_v45 = vld [vmem:[%s22769_s27 + $0x628] sm:$0xff] }
0x2629   : > { %v9528_v62 = vmul.f32 %v21073_v10, %v21073_v10  ;;  %v12115_v2 = vld [vmem:[%s22769_s27 + $0x5b0] sm:$0xff] }
0x262a   : > { %15033 = vmatpush1.bf16.msra.mxu0 %v15032_v7  ;;  %v12146_v7 = vld [vmem:[%s22769_s27 + $0x6a8] sm:$0xff]  ;;  %v15060_v26 = vpack.c.bf16 %v12115_v2, %v12099_v20  ;;  %v12101_v20 = vld [vmem:[%s22769_s27 + $0x540] sm:$0xff] }
0x262b   : > { %v9531_v38 = vsel %vm1079_vm0, %v9528_v62, 0.0  ;;  %v15036_v62 = vpack.c.bf16 %v12175_v16, %v12159_v40  ;;  %15035 = vmatprep.subr.bf16.mxu0 %v15034_v50  ;;  %v15046_v50 = vpack.c.bf16 %v12146_v7, %v12130_v45  ;;  %v12145_v40 = vld [vmem:[%s22769_s27 + $0x6a0] sm:$0xff]  ;;  %v12131_v16 = vld [vmem:[%s22769_s27 + $0x630] sm:$0xff] }
0x262c   : > { %9532 = vadd.xlane.f32.xlu0 %v9531_v38  ;;  %v12117_v2 = vld [vmem:[%s22769_s27 + $0x5c0] sm:$0xff]  ;;  %v12103_v45 = vld [vmem:[%s22769_s27 + $0x550] sm:$0xff] }
0x262d   : > { %v9518_v56 = vpop.xlane.xlu1 %9517  ;;  %v12119_v7 = vld [vmem:[%s22769_s27 + $0x5d0] sm:$0xff] }
0x262e   : > { %v9523_v46 = vmul.f32 0.015625, %v9518_v56  ;;  %15037 = vmatpush1.bf16.msra.mxu0 %v15036_v62  ;;  %v12147_v62 = vld [vmem:[%s22769_s27 + $0x6b0] sm:$0xff] }
0x262f   : > { %15055 = vmatprep.subr.bf16.mxu0 %v15054_v61  ;;  %v12163_v61 = vld [vmem:[%s22769_s27 + $0x730] sm:$0xff] }
0x2630   : > { %v21078_v43 = vsub.f32 %v9511_v55, %v9523_v46  ;;  %v15018_v55 = vpack.c.bf16 %v12174_v11, %v12158_v22  ;;  %v12132_v22 = vld [vmem:[%s22769_s27 + $0x638] sm:$0xff] }
0x2631   : > { %v12148_v11 = vld [vmem:[%s22769_s27 + $0x6b8] sm:$0xff] }
0x2632   : > { %v9529_v59 = vmul.f32 %v21078_v43, %v21078_v43  ;;  %15019 = vmatprep.subr.bf16.mxu1 %v15018_v55  ;;  %v15044_v55 = vpack.c.bf16 %v12113_v54, %v12097_v57  ;;  %v12104_v57 = vld [vmem:[%s22769_s27 + $0x558] sm:$0xff] }
0x2633   : > { %15021 = vmatpush1.bf16.msra.mxu1 %v15020_v19  ;;  %v15062_v19 = vpack.c.bf16 %v12148_v11, %v12132_v22  ;;  %v12120_v54 = vld [vmem:[%s22769_s27 + $0x5d8] sm:$0xff] }
0x2634   : > { %v9534_v0 = vsel %vm1079_vm0, %v9529_v59, 0.0  ;;  %v15090_v11 = vpack.c.bf16 %v12120_v54, %v12104_v57  ;;  %v12121_v57 = vld [vmem:[%s22769_s27 + $0x5e0] sm:$0xff]  ;;  %v12107_v54 = vld [vmem:[%s22769_s27 + $0x570] sm:$0xff] }
0x2635   : > { %9535 = vadd.xlane.f32.xlu1 %v9534_v0 }
0x2659   : > { %v9521_v38 = vpop.xlane.xlu0 %9520 }
0x265a   : > { %v9524_v56 = vmul.f32 0.015625, %v9521_v38 }
0x265c   : > { %v21180_v46 = vsub.f32 %v21069_v44, %v9524_v56  ;;  %v15038_v44 = vpack.c.bf16 %v12082_v60, %v12066_v12  ;;  %v12178_v56 = vld [vmem:[%s22769_s27 + $0x7a8] sm:$0xff]  ;;  %v15048_v12 = vpack.c.bf16 %v12145_v40, %v12129_v63  ;;  %v15064_v60 = vpack.c.bf16 %v12147_v62, %v12131_v16  ;;  %v12152_v63 = vld [vmem:[%s22769_s27 + $0x6d8] sm:$0xff]  ;;  %v12149_v40 = vld [vmem:[%s22769_s27 + $0x6c0] sm:$0xff] }
0x265d   : > { %v12135_v16 = vld [vmem:[%s22769_s27 + $0x650] sm:$0xff] }
0x265e   : > { %v9530_v59 = vmul.f32 %v21180_v46, %v21180_v46  ;;  %15039 = vmatprep.subr.bf16.mxu1 %v15038_v44  ;;  %v12177_v44 = vld [vmem:[%s22769_s27 + $0x7a0] sm:$0xff]  ;;  %v12151_v62 = vld [vmem:[%s22769_s27 + $0x6d0] sm:$0xff] }
0x2660   : > { %v9537_v0 = vsel %vm1079_vm0, %v9530_v59, 0.0  ;;  %v12164_v59 = vld [vmem:[%s22769_s27 + $0x738] sm:$0xff] }
0x2661   : > { %9538 = vadd.xlane.f32.xlu0 %v9537_v0  ;;  %v12180_v0 = vld [vmem:[%s22769_s27 + $0x7b8] sm:$0xff] }
0x26b9   : > { %v9533_v53 = vpop.xlane.xlu0 %9532 }
0x26ba   : > { %v9540_v33 = vmul.f32 0.015625, %v9533_v53  ;;  %v12179_v53 = vld [vmem:[%s22769_s27 + $0x7b0] sm:$0xff] }
0x26bb   : > { %v15068_v6 = vpack.c.bf16 %v12179_v53, %v12163_v61  ;;  %v12181_v61 = vld [vmem:[%s22769_s27 + $0x7c0] sm:$0xff] }
0x26bc   : > { %v9543_v3 = vadd.f32 1e-05, %v9540_v33  ;;  %v12070_v33 = vld [vmem:[%s22769_s27 + $0x448] sm:$0xff] }
0x26be   : > { %16481 = vrsqrt.f32 %v9543_v3 }
0x26c2   : > { %v9536_v27 = vpop.xlane.xlu1 %9535 }
0x26c3   : > { %v9541_v15 = vmul.f32 0.015625, %v9536_v27  ;;  %v15066_v27 = vpack.c.bf16 %v12180_v0, %v12164_v59  ;;  %v12182_v59 = vld [vmem:[%s22769_s27 + $0x7c8] sm:$0xff]  ;;  %v12168_v0 = vld [vmem:[%s22769_s27 + $0x758] sm:$0xff] }
0x26c5   : > { %v9544_v58 = vadd.f32 1e-05, %v9541_v15  ;;  %v12086_v15 = vld [vmem:[%s22769_s27 + $0x4c8] sm:$0xff] }
0x26c7   : > { %16483 = vrsqrt.f32 %v9544_v58  ;;  %v12072_v58 = vld [vmem:[%s22769_s27 + $0x458] sm:$0xff] }
0x26c8   : > { %v16482_v42 = vpop.eup %16481  ;;  %v15086_v36 = vpack.c.bf16 %v12088_v8, %v12072_v58  ;;  %v12090_v58 = vld [vmem:[%s22769_s27 + $0x4e8] sm:$0xff]  ;;  %v12076_v8 = vld [vmem:[%s22769_s27 + $0x478] sm:$0xff] }
0x26c9   : > { %v9549_v34 = vmul.f32 %v16482_v42, %v21073_v10  ;;  %v12098_v10 = vld [vmem:[%s22769_s27 + $0x528] sm:$0xff]  ;;  %v15052_v42 = vpack.c.bf16 %v12177_v44, %v12161_v41  ;;  %v15096_v41 = vpack.c.bf16 %v12151_v62, %v12135_v16  ;;  %v12165_v44 = vld [vmem:[%s22769_s27 + $0x740] sm:$0xff]  ;;  %v12172_v62 = vld [vmem:[%s22769_s27 + $0x778] sm:$0xff] }
0x26ca   : > { %v15042_v28 = vpack.c.bf16 %v12114_v52, %v12098_v10  ;;  %v12186_v16 = vld [vmem:[%s22769_s27 + $0x7e8] sm:$0xff] }
0x26cb   : > { %v9556_v5 = vmul.f32 %v21201_v35, %v9549_v34  ;;  %v15070_v34 = vpack.c.bf16 %v12086_v15, %v12070_v33  ;;  %v12074_v15 = vld [vmem:[%s22769_s27 + $0x468] sm:$0xff] }
0x26cd   : > { %v21236_v51 = vadd.f32 %v21207_v1, %v9556_v5 }
0x26cf   : > { %12191 = vmatmul.mubr.msk.f32.vlgmr.msra.gmra.mrb[188].mxu1 %vm1079_vm0, %v21236_v51  ;;  %12194 = vmatmul.mubr.msk.f32.vlgmr.msra.gmra.mrb[188].mxu0 %vm1079_vm0, %v21236_v51 }
0x26d0   : > { %9860 = vmatprep.mubr.f32.mxu1 %v22738_v14  ;;  %9943 = vmatprep.mubr.f32.mxu0 %v22738_v14 }
0x26d1   : > { %v16484_v29 = vpop.eup %16483  ;;  %15041 = vmatpush1.bf16.msra.mxu1 %v15040_v48  ;;  %15057 = vmatpush1.bf16.msra.mxu0 %v15056_v9  ;;  %v12085_v48 = vld [vmem:[%s22769_s27 + $0x4c0] sm:$0xff]  ;;  %v12071_v9 = vld [vmem:[%s22769_s27 + $0x450] sm:$0xff] }
0x26d2   : > { %v9550_v49 = vmul.f32 %v16484_v29, %v21078_v43  ;;  %15043 = vmatprep.subr.bf16.mxu1 %v15042_v28  ;;  %15059 = vmatprep.subr.bf16.mxu0 %v15058_v37  ;;  %v12162_v43 = vld [vmem:[%s22769_s27 + $0x728] sm:$0xff]  ;;  %v15072_v28 = vpack.c.bf16 %v12085_v48, %v12069_v4  ;;  %v12108_v48 = vld [vmem:[%s22769_s27 + $0x578] sm:$0xff] }
0x26d3   : > { %v15050_v3 = vpack.c.bf16 %v12178_v56, %v12162_v43  ;;  %v12134_v29 = vld [vmem:[%s22769_s27 + $0x648] sm:$0xff] }
0x26d4   : > { %v9557_v38 = vmul.f32 %v21201_v35, %v9550_v49  ;;  %v15076_v49 = vpack.c.bf16 %v12117_v2, %v12101_v20  ;;  %v12166_v43 = vld [vmem:[%s22769_s27 + $0x748] sm:$0xff] }
0x26d5   : > { %15045 = vmatpush1.bf16.msra.mxu1 %v15044_v55  ;;  %15061 = vmatpush1.bf16.msra.mxu0 %v15060_v26  ;;  %v12150_v55 = vld [vmem:[%s22769_s27 + $0x6c8] sm:$0xff]  ;;  %v12136_v26 = vld [vmem:[%s22769_s27 + $0x658] sm:$0xff]  ;;  %v15082_v53 = vpack.c.bf16 %v12182_v59, %v12166_v43  ;;  %v12169_v59 = vld [vmem:[%s22769_s27 + $0x760] sm:$0xff] }
0x26d6   : > { %v21301_v31 = vadd.f32 %v21207_v1, %v9557_v38  ;;  %15047 = vmatprep.subr.bf16.mxu1 %v15046_v50  ;;  %15063 = vmatprep.subr.bf16.mxu0 %v15062_v19  ;;  %v15092_v50 = vpack.c.bf16 %v12119_v7, %v12103_v45  ;;  %v12133_v19 = vld [vmem:[%s22769_s27 + $0x640] sm:$0xff]  ;;  %v15078_v38 = vpack.c.bf16 %v12150_v55, %v12134_v29  ;;  %v12122_v4 = vld [vmem:[%s22769_s27 + $0x5e8] sm:$0xff]  ;;  %v12140_v7 = vld [vmem:[%s22769_s27 + $0x678] sm:$0xff] }
0x26d7   : > { %v15094_v56 = vpack.c.bf16 %v12152_v63, %v12136_v26  ;;  %v12138_v2 = vld [vmem:[%s22769_s27 + $0x668] sm:$0xff]  ;;  %v12137_v55 = vld [vmem:[%s22769_s27 + $0x660] sm:$0xff]  ;;  %v12139_v63 = vld [vmem:[%s22769_s27 + $0x670] sm:$0xff] }
0x26d8   : > { %12192 = vmatmul.mubr.msk.f32.gmra.mrb[190].mxu1 %vm1079_vm0, %v21301_v31  ;;  %12195 = vmatmul.mubr.msk.f32.gmra.mrb[190].mxu0 %vm1079_vm0, %v21301_v31  ;;  %v12154_v45 = vld [vmem:[%s22769_s27 + $0x6e8] sm:$0xff]  ;;  %v12153_v26 = vld [vmem:[%s22769_s27 + $0x6e0] sm:$0xff]  ;;  %v12188_v43 = vld [vmem:[%s22769_s27 + $0x7f8] sm:$0xff] }
0x26d9   : > { %15049 = vmatpush1.bf16.msra.mxu1 %v15048_v12  ;;  %15065 = vmatpush1.bf16.msra.mxu0 %v15064_v60  ;;  %v12184_v12 = vld [vmem:[%s22769_s27 + $0x7d8] sm:$0xff]  ;;  %v15080_v60 = vpack.c.bf16 %v12149_v40, %v12133_v19  ;;  %v15110_v19 = vpack.c.bf16 %v12154_v45, %v12138_v2  ;;  %v12219_v45 = vld [vmem:[%s22620_s18 + $0x820] sm:$0xff] }
0x26da   : > { %9866 = vmatprep.mubr.f32.mxu1 %v22738_v14  ;;  %9949 = vmatprep.mubr.f32.mxu0 %v22738_v14  ;;  %v15098_v33 = vpack.c.bf16 %v12184_v12, %v12168_v0  ;;  %v12185_v0 = vld [vmem:[%s22769_s27 + $0x7e0] sm:$0xff] }
0x26db   : > { %15051 = vmatprep.subr.bf16.mxu1 %v15050_v3  ;;  %15067 = vmatprep.subr.bf16.mxu0 %v15066_v27  ;;  %v12167_v3 = vld [vmem:[%s22769_s27 + $0x750] sm:$0xff] }
0x26dc   : > { %v12183_v27 = vld [vmem:[%s22769_s27 + $0x7d0] sm:$0xff] }
0x26dd   : > { %15053 = vmatpush1.bf16.msra.mxu1 %v15052_v42  ;;  %15069 = vmatpush1.bf16.msra.mxu0 %v15068_v6  ;;  %v12092_v42 = vld [vmem:[%s22769_s27 + $0x4f8] sm:$0xff]  ;;  %v15084_v6 = vpack.c.bf16 %v12181_v61, %v12165_v44  ;;  %v12187_v44 = vld [vmem:[%s22769_s27 + $0x7f0] sm:$0xff]  ;;  %v12231_v61 = vld [vmem:[%s22620_s18 + $0x880] sm:$0xff] }
0x26de   : > { %15071 = vmatprep.subr.bf16.mxu1 %v15070_v34  ;;  %15087 = vmatprep.subr.bf16.mxu0 %v15086_v36  ;;  %v15100_v34 = vpack.c.bf16 %v12183_v27, %v12167_v3  ;;  %v12073_v36 = vld [vmem:[%s22769_s27 + $0x460] sm:$0xff]  ;;  %v12264_v3 = vld [vmem:[%s22620_s18 + $0x988] sm:$0xff]  ;;  %v15116_v27 = vpack.c.bf16 %v12185_v0, %v12169_v59  ;;  %v12254_v59 = vld [vmem:[%s22620_s18 + $0x938] sm:$0xff] }
0x26df   : > { %v12239_v0 = vld [vmem:[%s22620_s18 + $0x8c0] sm:$0xff] }
0x26ee   : > { %v9539_v24 = vpop.xlane.xlu0 %9538 }
0x26ef   : > { %v9542_v25 = vmul.f32 0.015625, %v9539_v24  ;;  %v15102_v24 = vpack.c.bf16 %v12090_v58, %v12074_v15 }
0x26f1   : > { %v9545_v47 = vadd.f32 1e-05, %v9542_v25  ;;  %v15118_v25 = vpack.c.bf16 %v12092_v42, %v12076_v8  ;;  %v12215_v42 = vld [vmem:[%s22620_s18 + $0x800] sm:$0xff] }
0x26f3   : > { %16485 = vrsqrt.f32 %v9545_v47  ;;  %v12089_v47 = vld [vmem:[%s22769_s27 + $0x4e0] sm:$0xff] }
0x26fd   : > { %v16486_v10 = vpop.eup %16485 }
0x26fe   : > { %v9551_v5 = vmul.f32 %v16486_v10, %v21180_v46  ;;  %v12087_v46 = vld [vmem:[%s22769_s27 + $0x4d0] sm:$0xff] }
0x26ff   : > { %v15088_v37 = vpack.c.bf16 %v12087_v46, %v12071_v9  ;;  %v12075_v10 = vld [vmem:[%s22769_s27 + $0x470] sm:$0xff]  ;;  %v12124_v9 = vld [vmem:[%s22769_s27 + $0x5f8] sm:$0xff]  ;;  %v15104_v46 = vpack.c.bf16 %v12089_v47, %v12073_v36  ;;  %v12248_v36 = vld [vmem:[%s22620_s18 + $0x908] sm:$0xff] }
0x2700   : > { %v9558_v52 = vmul.f32 %v21201_v35, %v9551_v5  ;;  %v12102_v35 = vld [vmem:[%s22769_s27 + $0x548] sm:$0xff]  ;;  %v12091_v5 = vld [vmem:[%s22769_s27 + $0x4f0] sm:$0xff]  ;;  %v15122_v20 = vpack.c.bf16 %v12124_v9, %v12108_v48  ;;  %v12218_v48 = vld [vmem:[%s22620_s18 + $0x818] sm:$0xff] }
0x2701   : > { %v12265_v47 = vld [vmem:[%s22620_s18 + $0x990] sm:$0xff] }
0x2702   : > { %v21333_v18 = vadd.f32 %v21207_v1, %v9558_v52  ;;  %v12118_v1 = vld [vmem:[%s22769_s27 + $0x5c8] sm:$0xff] }
0x2703   : > { %v15074_v22 = vpack.c.bf16 %v12118_v1, %v12102_v35  ;;  %v12106_v52 = vld [vmem:[%s22769_s27 + $0x568] sm:$0xff]  ;;  %v15120_v35 = vpack.c.bf16 %v12091_v5, %v12075_v10  ;;  %v12105_v1 = vld [vmem:[%s22769_s27 + $0x560] sm:$0xff]  ;;  %v12266_v10 = vld [vmem:[%s22620_s18 + $0x998] sm:$0xff] }
0x2704   : > { %12193 = vmatmul.mubr.msk.f32.gmra.mrb[192].mxu1 %vm1079_vm0, %v21333_v18  ;;  %12196 = vmatmul.mubr.msk.f32.gmra.mrb[192].mxu0 %vm1079_vm0, %v21333_v18 }
0x2705   : > { %10020 = vmatprep.mubr.f32.mxu1 %v22738_v14  ;;  %10103 = vmatprep.mubr.f32.mxu0 %v22738_v14 }
0x2708   : > { %12197 = vmatmul.mubr.msk.f32.vlgmr.msra.gmra.mrb[194].mxu1 %vm1079_vm0, %v21236_v51  ;;  %12200 = vmatmul.mubr.msk.f32.vlgmr.msra.gmra.mrb[194].mxu0 %vm1079_vm0, %v21236_v51 }
0x2709   : > { %15073 = vmatpush1.bf16.msra.mxu1 %v15072_v28  ;;  %15089 = vmatpush1.bf16.msra.mxu0 %v15088_v37  ;;  %v12123_v28 = vld [vmem:[%s22769_s27 + $0x5f0] sm:$0xff]  ;;  %v15106_v37 = vpack.c.bf16 %v12122_v4, %v12106_v52 }
0x270a   : > { %10026 = vmatprep.mubr.f32.mxu1 %v22738_v14  ;;  %10109 = vmatprep.mubr.f32.mxu0 %v22738_v14  ;;  %v15124_v29 = vpack.c.bf16 %v12123_v28, %v12107_v54  ;;  %v12217_v4 = vld [vmem:[%s22620_s18 + $0x810] sm:$0xff]  ;;  %v12236_v54 = vld [vmem:[%s22620_s18 + $0x8a8] sm:$0xff]  ;;  %v12267_v28 = vld [vmem:[%s22620_s18 + $0x9a0] sm:$0xff] }
0x270b   : > { %15075 = vmatprep.subr.bf16.mxu1 %v15074_v22  ;;  %15091 = vmatprep.subr.bf16.mxu0 %v15090_v11  ;;  %v12156_v22 = vld [vmem:[%s22769_s27 + $0x6f8] sm:$0xff]  ;;  %v15108_v11 = vpack.c.bf16 %v12121_v57, %v12105_v1  ;;  %v12235_v57 = vld [vmem:[%s22620_s18 + $0x8a0] sm:$0xff] }
0x270c   : > { %12198 = vmatmul.mubr.msk.f32.gmra.mrb[196].mxu1 %vm1079_vm0, %v21301_v31  ;;  %12201 = vmatmul.mubr.msk.f32.gmra.mrb[196].mxu0 %vm1079_vm0, %v21301_v31  ;;  %v15126_v40 = vpack.c.bf16 %v12156_v22, %v12140_v7  ;;  %v12250_v1 = vld [vmem:[%s22620_s18 + $0x918] sm:$0xff]  ;;  %v12220_v7 = vld [vmem:[%s22620_s18 + $0x828] sm:$0xff]  ;;  %v15142_v22 = vpack.c.bf16 %v12236_v54, %v12235_v57  ;;  %v12227_v54 = vld [vmem:[%s22620_s18 + $0x860] sm:$0xff] }
0x270d   : > { %15077 = vmatpush1.bf16.msra.mxu1 %v15076_v49  ;;  %15093 = vmatpush1.bf16.msra.mxu0 %v15092_v50  ;;  %v12155_v49 = vld [vmem:[%s22769_s27 + $0x6f0] sm:$0xff]  ;;  %v12170_v50 = vld [vmem:[%s22769_s27 + $0x768] sm:$0xff] }
0x270e   : > { %10032 = vmatprep.mubr.f32.mxu1 %v22738_v14  ;;  %10115 = vmatprep.mubr.f32.mxu0 %v22738_v14  ;;  %v15114_v12 = vpack.c.bf16 %v12186_v16, %v12170_v50  ;;  %v12270_v50 = vld [vmem:[%s22620_s18 + $0x9b8] sm:$0xff]  ;;  %v12221_v16 = vld [vmem:[%s22620_s18 + $0x830] sm:$0xff] }
0x270f   : > { %15079 = vmatprep.subr.bf16.mxu1 %v15078_v38  ;;  %15095 = vmatprep.subr.bf16.mxu0 %v15094_v56  ;;  %v15112_v38 = vpack.c.bf16 %v12153_v26, %v12137_v55  ;;  %v15128_v56 = vpack.c.bf16 %v12155_v49, %v12139_v63  ;;  %v12252_v55 = vld [vmem:[%s22620_s18 + $0x928] sm:$0xff]  ;;  %v12237_v26 = vld [vmem:[%s22620_s18 + $0x8b0] sm:$0xff]  ;;  %v12238_v63 = vld [vmem:[%s22620_s18 + $0x8b8] sm:$0xff] }
0x2710   : > { %12199 = vmatmul.mubr.msk.f32.gmra.mrb[198].mxu1 %vm1079_vm0, %v21333_v18  ;;  %12202 = vmatmul.mubr.msk.f32.gmra.mrb[198].mxu0 %vm1079_vm0, %v21333_v18  ;;  %v12269_v49 = vld [vmem:[%s22620_s18 + $0x9b0] sm:$0xff] }
0x2711   : > { %15081 = vmatpush1.bf16.msra.mxu1 %v15080_v60  ;;  %15097 = vmatpush1.bf16.msra.mxu0 %v15096_v41  ;;  %v15130_v60 = vpack.c.bf16 %v12188_v43, %v12172_v62  ;;  %v12171_v41 = vld [vmem:[%s22769_s27 + $0x770] sm:$0xff]  ;;  %v12222_v62 = vld [vmem:[%s22620_s18 + $0x838] sm:$0xff]  ;;  %v15146_v43 = vpack.c.bf16 %v12238_v63, %v12237_v26 }
0x2712   : > { %15083 = vmatprep.subr.bf16.mxu1 %v15082_v53  ;;  %15099 = vmatprep.subr.bf16.mxu0 %v15098_v33  ;;  %v12232_v53 = vld [vmem:[%s22620_s18 + $0x888] sm:$0xff]  ;;  %v12263_v33 = vld [vmem:[%s22620_s18 + $0x980] sm:$0xff]  ;;  %v15132_v15 = vpack.c.bf16 %v12187_v44, %v12171_v41  ;;  %v15148_v44 = vpack.c.bf16 %v12222_v62, %v12221_v16  ;;  %v12229_v63 = vld [vmem:[%s22620_s18 + $0x870] sm:$0xff] }
0x2713   : > { %10186 = vmatprep.mubr.f32.mxu1 %v22738_v14  ;;  %10269 = vmatprep.mubr.f32.mxu0 %v22738_v14  ;;  %v15134_v58 = vpack.c.bf16 %v12232_v53, %v12231_v61  ;;  %v15166_v8 = vpack.c.bf16 %v12264_v3, %v12263_v33  ;;  %v12272_v41 = vld [vmem:[%s22620_s18 + $0x9c8] sm:$0xff]  ;;  %v12223_v53 = vld [vmem:[%s22620_s18 + $0x840] sm:$0xff]  ;;  %v12262_v16 = vld [vmem:[%s22620_s18 + $0x978] sm:$0xff] }
0x2714   : > { %v12224_v33 = vld [vmem:[%s22620_s18 + $0x848] sm:$0xff]  ;;  %v12295_v62 = vld [vmem:[%s22620_s18 + $0xa80] sm:$0xff] }
0x2715   : > { %15085 = vmatpush1.bf16.msra.mxu1 %v15084_v6  ;;  %15101 = vmatpush1.bf16.msra.mxu0 %v15100_v34  ;;  %v12216_v6 = vld [vmem:[%s22620_s18 + $0x808] sm:$0xff]  ;;  %v12247_v34 = vld [vmem:[%s22620_s18 + $0x900] sm:$0xff] }
0x2716   : > { %15103 = vmatprep.subr.bf16.mxu1 %v15102_v24  ;;  %15119 = vmatprep.subr.bf16.mxu0 %v15118_v25  ;;  %v12233_v24 = vld [vmem:[%s22620_s18 + $0x890] sm:$0xff]  ;;  %v12234_v25 = vld [vmem:[%s22620_s18 + $0x898] sm:$0xff]  ;;  %v15136_v5 = vpack.c.bf16 %v12216_v6, %v12215_v42  ;;  %v15168_v52 = vpack.c.bf16 %v12248_v36, %v12247_v34  ;;  %v15152_v36 = vpack.c.bf16 %v12224_v33, %v12223_v53 }
0x2717   : > { %v15138_v9 = vpack.c.bf16 %v12234_v25, %v12233_v24  ;;  %v12242_v42 = vld [vmem:[%s22620_s18 + $0x8d8] sm:$0xff]  ;;  %v12273_v6 = vld [vmem:[%s22620_s18 + $0x9d0] sm:$0xff] }
0x2718   : > { %12203 = vmatmul.mubr.msk.f32.vlgmr.msra.gmra.mrb[200].mxu1 %vm1079_vm0, %v21236_v51  ;;  %12206 = vmatmul.mubr.msk.f32.vlgmr.msra.gmra.mrb[200].mxu0 %vm1079_vm0, %v21236_v51  ;;  %v12274_v34 = vld [vmem:[%s22620_s18 + $0x9d8] sm:$0xff]  ;;  %v12225_v25 = vld [vmem:[%s22620_s18 + $0x850] sm:$0xff] }
0x2719   : > { %15105 = vmatpush1.bf16.msra.mxu1 %v15104_v46  ;;  %15121 = vmatpush1.bf16.msra.mxu0 %v15120_v35  ;;  %v15170_v46 = vpack.c.bf16 %v12266_v10, %v12265_v47  ;;  %v12249_v35 = vld [vmem:[%s22620_s18 + $0x910] sm:$0xff]  ;;  %v12226_v47 = vld [vmem:[%s22620_s18 + $0x858] sm:$0xff] }
0x271a   : > { %10192 = vmatprep.mubr.f32.mxu1 %v22738_v14  ;;  %10275 = vmatprep.mubr.f32.mxu0 %v22738_v14  ;;  %v15172_v2 = vpack.c.bf16 %v12250_v1, %v12249_v35  ;;  %v12276_v35 = vld [vmem:[%s22620_s18 + $0x9e8] sm:$0xff]  ;;  %v15156_v1 = vpack.c.bf16 %v12226_v47, %v12225_v25  ;;  %v12297_v25 = vld [vmem:[%s22620_s18 + $0xa90] sm:$0xff] }
0x271b   : > { %15107 = vmatprep.subr.bf16.mxu1 %v15106_v37  ;;  %15123 = vmatprep.subr.bf16.mxu0 %v15122_v20  ;;  %v12268_v37 = vld [vmem:[%s22620_s18 + $0x9a8] sm:$0xff]  ;;  %v15140_v20 = vpack.c.bf16 %v12218_v48, %v12217_v4  ;;  %v12258_v4 = vld [vmem:[%s22620_s18 + $0x958] sm:$0xff]  ;;  %v12243_v48 = vld [vmem:[%s22620_s18 + $0x8e0] sm:$0xff] }
0x271c   : > { %12204 = vmatmul.mubr.msk.f32.gmra.mrb[202].mxu1 %vm1079_vm0, %v21301_v31  ;;  %12207 = vmatmul.mubr.msk.f32.gmra.mrb[202].mxu0 %vm1079_vm0, %v21301_v31 }
0x271d   : > { %15109 = vmatpush1.bf16.msra.mxu1 %v15108_v11  ;;  %15125 = vmatpush1.bf16.msra.mxu0 %v15124_v29  ;;  %v15174_v11 = vpack.c.bf16 %v12268_v37, %v12267_v28  ;;  %v12251_v29 = vld [vmem:[%s22620_s18 + $0x920] sm:$0xff]  ;;  %v12228_v28 = vld [vmem:[%s22620_s18 + $0x868] sm:$0xff] }
0x271e   : > { %10198 = vmatprep.mubr.f32.mxu1 %v22738_v14  ;;  %10281 = vmatprep.mubr.f32.mxu0 %v22738_v14 }
0x271f   : > { %15111 = vmatprep.subr.bf16.mxu1 %v15110_v19  ;;  %15127 = vmatprep.subr.bf16.mxu0 %v15126_v40  ;;  %v15144_v19 = vpack.c.bf16 %v12220_v7, %v12219_v45  ;;  %v15176_v40 = vpack.c.bf16 %v12252_v55, %v12251_v29  ;;  %v12260_v45 = vld [vmem:[%s22620_s18 + $0x968] sm:$0xff]  ;;  %v12245_v7 = vld [vmem:[%s22620_s18 + $0x8f0] sm:$0xff]  ;;  %v12278_v29 = vld [vmem:[%s22620_s18 + $0x9f8] sm:$0xff]  ;;  %v15160_v55 = vpack.c.bf16 %v12228_v28, %v12227_v54 }
0x2720   : > { %12205 = vmatmul.mubr.msk.f32.gmra.mrb[204].mxu1 %vm1079_vm0, %v21333_v18  ;;  %12208 = vmatmul.mubr.msk.f32.gmra.mrb[204].mxu0 %vm1079_vm0, %v21333_v18 }
0x2721   : > { %15113 = vmatpush1.bf16.msra.mxu1 %v15112_v38  ;;  %15129 = vmatpush1.bf16.msra.mxu0 %v15128_v56  ;;  %v15178_v38 = vpack.c.bf16 %v12270_v50, %v12269_v49  ;;  %v12253_v56 = vld [vmem:[%s22620_s18 + $0x930] sm:$0xff]  ;;  %v12230_v49 = vld [vmem:[%s22620_s18 + $0x878] sm:$0xff] }
0x2722   : > { %15115 = vmatprep.subr.bf16.mxu1 %v15114_v12  ;;  %15131 = vmatprep.subr.bf16.mxu0 %v15130_v60  ;;  %v12240_v12 = vld [vmem:[%s22620_s18 + $0x8c8] sm:$0xff]  ;;  %v12271_v60 = vld [vmem:[%s22620_s18 + $0x9c0] sm:$0xff]  ;;  %v15180_v61 = vpack.c.bf16 %v12254_v59, %v12253_v56  ;;  %v15164_v59 = vpack.c.bf16 %v12230_v49, %v12229_v63 }
0x2723   : > { %10352 = vmatprep.mubr.f32.mxu1 %v22738_v14  ;;  %10435 = vmatprep.mubr.f32.mxu0 %v22738_v14  ;;  %v15150_v3 = vpack.c.bf16 %v12240_v12, %v12239_v0  ;;  %v12328_v56 = vld [vmem:[%s22620_s18 + $0xb88] sm:$0xff] }
0x2725   : > { %15117 = vmatpush1.bf16.msra.mxu1 %v15116_v27  ;;  %15133 = vmatpush1.bf16.msra.mxu0 %v15132_v15  ;;  %v15182_v27 = vpack.c.bf16 %v12272_v41, %v12271_v60  ;;  %v12255_v15 = vld [vmem:[%s22620_s18 + $0x940] sm:$0xff] }
0x2726   : > { %15135 = vmatprep.subr.bf16.mxu1 %v15134_v58  ;;  %15167 = vmatprep.subr.bf16.mxu0 %v15166_v8  ;;  %v12256_v58 = vld [vmem:[%s22620_s18 + $0x948] sm:$0xff]  ;;  %v12241_v8 = vld [vmem:[%s22620_s18 + $0x8d0] sm:$0xff] }
0x2727   : > { %v15184_v24 = vpack.c.bf16 %v12256_v58, %v12255_v15  ;;  %v15154_v10 = vpack.c.bf16 %v12242_v42, %v12241_v8  ;;  %v21777_v41 = vld [vmem:[%s22619_s17 + $0x1] ss:$2 sm:$0xff] }
0x2728   : > { %12209 = vmatmul.mubr.msk.f32.vlgmr.msra.gmra.mrb[206].mxu1 %vm1079_vm0, %v21236_v51  ;;  %12212 = vmatmul.mubr.msk.f32.vlgmr.msra.gmra.mrb[206].mxu0 %vm1079_vm0, %v21236_v51  ;;  %v21789_v53 = vrot.slane %v21777_v41, %v16750_v32  ;;  %v21793_v33 = vrot.slane %v21777_v41, %v18943_v17  ;;  %v12279_v15 = vld [vmem:[%s22620_s18 + $0xa00] sm:$0xff]  ;;  %v12280_v58 = vld [vmem:[%s22620_s18 + $0xa08] sm:$0xff] }
0x2729   : > { %10358 = vmatprep.mubr.f32.mxu1 %v22738_v14  ;;  %10441 = vmatprep.mubr.f32.mxu0 %v22738_v14 }
0x272a   : > { %15137 = vmatpush3.bf16.msra.mxu1 %v15136_v5  ;;  %15169 = vmatpush3.bf16.msra.mxu0 %v15168_v52  ;;  %v15186_v5 = vpack.c.bf16 %v12274_v34, %v12273_v6  ;;  %v12257_v52 = vld [vmem:[%s22620_s18 + $0x950] sm:$0xff] }
0x272b   : > { %15139 = vmatprep.subr.bf16.mxu1 %v15138_v9  ;;  %15171 = vmatprep.subr.bf16.mxu0 %v15170_v46  ;;  %v12244_v9 = vld [vmem:[%s22620_s18 + $0x8e8] sm:$0xff]  ;;  %v12275_v46 = vld [vmem:[%s22620_s18 + $0x9e0] sm:$0xff]  ;;  %v15188_v57 = vpack.c.bf16 %v12258_v4, %v12257_v52  ;;  %v12329_v52 = vld [vmem:[%s22620_s18 + $0xb90] sm:$0xff] }
0x272c   : > { %12210 = vmatmul.mubr.msk.f32.gmra.mrb[208].mxu1 %vm1079_vm0, %v21301_v31  ;;  %12213 = vmatmul.mubr.msk.f32.gmra.mrb[208].mxu0 %vm1079_vm0, %v21301_v31  ;;  %v15158_v37 = vpack.c.bf16 %v12244_v9, %v12243_v48  ;;  %v12330_v4 = vld [vmem:[%s22620_s18 + $0xb98] sm:$0xff] }
0x272d   : > { %10364 = vmatprep.mubr.f32.mxu1 %v22738_v14  ;;  %10447 = vmatprep.mubr.f32.mxu0 %v22738_v14 }
0x272e   : > { %15141 = vmatpush3.bf16.msra.mxu1 %v15140_v20  ;;  %15173 = vmatpush3.bf16.msra.mxu0 %v15172_v2  ;;  %v15190_v20 = vpack.c.bf16 %v12276_v35, %v12275_v46  ;;  %v12259_v2 = vld [vmem:[%s22620_s18 + $0x960] sm:$0xff]  ;;  %v15200_v46 = vpack.c.bf16 %v12280_v58, %v12279_v15  ;;  %v12333_v15 = vld [vmem:[%s22620_s18 + $0xbb0] sm:$0xff]  ;;  %v12334_v58 = vld [vmem:[%s22620_s18 + $0xbb8] sm:$0xff] }
0x272f   : > { %15143 = vmatprep.subr.bf16.mxu1 %v15142_v22  ;;  %15175 = vmatprep.subr.bf16.mxu0 %v15174_v11  ;;  %v12246_v22 = vld [vmem:[%s22620_s18 + $0x8f8] sm:$0xff]  ;;  %v12277_v11 = vld [vmem:[%s22620_s18 + $0x9f0] sm:$0xff]  ;;  %v15192_v26 = vpack.c.bf16 %v12260_v45, %v12259_v2 }
0x2730   : > { %12211 = vmatmul.mubr.msk.f32.gmra.mrb[210].mxu1 %vm1079_vm0, %v21333_v18  ;;  %12214 = vmatmul.mubr.msk.f32.gmra.mrb[210].mxu0 %vm1079_vm0, %v21333_v18  ;;  %v15162_v50 = vpack.c.bf16 %v12246_v22, %v12245_v7  ;;  %v12313_v2 = vld [vmem:[%s22620_s18 + $0xb10] sm:$0xff]  ;;  %v12314_v45 = vld [vmem:[%s22620_s18 + $0xb18] sm:$0xff]  ;;  %v12299_v7 = vld [vmem:[%s22620_s18 + $0xaa0] sm:$0xff] }
0x2731   : > { %v12300_v22 = vld [vmem:[%s22620_s18 + $0xaa8] sm:$0xff] }
0x2732   : > { %15145 = vmatpush3.bf16.msra.mxu1 %v15144_v19  ;;  %15177 = vmatpush3.bf16.msra.mxu0 %v15176_v40  ;;  %v15194_v19 = vpack.c.bf16 %v12278_v29, %v12277_v11  ;;  %v12261_v40 = vld [vmem:[%s22620_s18 + $0x970] sm:$0xff]  ;;  %v12331_v11 = vld [vmem:[%s22620_s18 + $0xba0] sm:$0xff]  ;;  %v12332_v29 = vld [vmem:[%s22620_s18 + $0xba8] sm:$0xff] }
0x2733   : > { %15147 = vmatprep.subr.bf16.mxu1 %v15146_v43  ;;  %15179 = vmatprep.subr.bf16.mxu0 %v15178_v38  ;;  %v12296_v43 = vld [vmem:[%s22620_s18 + $0xa88] sm:$0xff]  ;;  %v12327_v38 = vld [vmem:[%s22620_s18 + $0xb80] sm:$0xff]  ;;  %v15196_v0 = vpack.c.bf16 %v12262_v16, %v12261_v40 }
0x2734   : > { %v15198_v12 = vpack.c.bf16 %v12296_v43, %v12295_v62  ;;  %v15230_v60 = vpack.c.bf16 %v12328_v56, %v12327_v38  ;;  %v12283_v40 = vld [vmem:[%s22620_s18 + $0xa20] sm:$0xff]  ;;  %v12284_v16 = vld [vmem:[%s22620_s18 + $0xa28] sm:$0xff] }
0x2736   : > { %15149 = vmatpush3.bf16.msra.mxu1 %v15148_v44  ;;  %15181 = vmatpush3.bf16.msra.mxu0 %v15180_v61  ;;  %v21781_v44 = vrot.slane %v21777_v41, %v16744_v30  ;;  %v21785_v61 = vrot.slane %v21777_v41, %v18935_v21 }
0x2737   : > { %15151 = vmatprep.subr.bf16.mxu1 %v15150_v3  ;;  %15183 = vmatprep.subr.bf16.mxu0 %v15182_v27 }
0x273a   : > { %15153 = vmatpush3.bf16.msra.mxu1 %v15152_v36  ;;  %15185 = vmatpush3.bf16.msra.mxu0 %v15184_v24  ;;  %v12311_v36 = vld [vmem:[%s22620_s18 + $0xb00] sm:$0xff]  ;;  %v12312_v24 = vld [vmem:[%s22620_s18 + $0xb08] sm:$0xff] }
0x273b   : > { %15155 = vmatprep.subr.bf16.mxu1 %v15154_v10  ;;  %15187 = vmatprep.subr.bf16.mxu0 %v15186_v5  ;;  %v12298_v5 = vld [vmem:[%s22620_s18 + $0xa98] sm:$0xff]  ;;  %v15232_v35 = vpack.c.bf16 %v12312_v24, %v12311_v36  ;;  %v12285_v36 = vld [vmem:[%s22620_s18 + $0xa30] sm:$0xff] }
0x273c   : > { %v12286_v24 = vld [vmem:[%s22620_s18 + $0xa38] sm:$0xff] }
0x273e   : > { %15157 = vmatpush3.bf16.msra.mxu1 %v15156_v1  ;;  %15189 = vmatpush3.bf16.msra.mxu0 %v15188_v57  ;;  %v12281_v1 = vld [vmem:[%s22620_s18 + $0xa10] sm:$0xff]  ;;  %v12282_v57 = vld [vmem:[%s22620_s18 + $0xa18] sm:$0xff] }
0x273f   : > { %15159 = vmatprep.subr.bf16.mxu1 %v15158_v37  ;;  %15191 = vmatprep.subr.bf16.mxu0 %v15190_v20  ;;  %v15202_v37 = vpack.c.bf16 %v12298_v5, %v12297_v25  ;;  %v15234_v20 = vpack.c.bf16 %v12330_v4, %v12329_v52  ;;  %v15242_v5 = vpack.c.bf16 %v12334_v58, %v12333_v15  ;;  %v12317_v52 = vld [vmem:[%s22620_s18 + $0xb30] sm:$0xff]  ;;  %v12318_v4 = vld [vmem:[%s22620_s18 + $0xb38] sm:$0xff]  ;;  %v12323_v15 = vld [vmem:[%s22620_s18 + $0xb60] sm:$0xff] }
0x2740   : > { %v12324_v58 = vld [vmem:[%s22620_s18 + $0xb68] sm:$0xff] }
0x2742   : > { %15161 = vmatpush3.bf16.msra.mxu1 %v15160_v55  ;;  %15193 = vmatpush3.bf16.msra.mxu0 %v15192_v26  ;;  %v15204_v55 = vpack.c.bf16 %v12282_v57, %v12281_v1  ;;  %v15236_v26 = vpack.c.bf16 %v12314_v45, %v12313_v2  ;;  %v15212_v1 = vpack.c.bf16 %v12286_v24, %v12285_v36  ;;  %v12319_v2 = vld [vmem:[%s22620_s18 + $0xb40] sm:$0xff]  ;;  %v12320_v45 = vld [vmem:[%s22620_s18 + $0xb48] sm:$0xff] }
0x2743   : > { %15163 = vmatprep.subr.bf16.mxu1 %v15162_v50  ;;  %15195 = vmatprep.subr.bf16.mxu0 %v15194_v19  ;;  %v15206_v50 = vpack.c.bf16 %v12300_v22, %v12299_v7  ;;  %v15238_v19 = vpack.c.bf16 %v12332_v29, %v12331_v11  ;;  %v15244_v57 = vpack.c.bf16 %v12318_v4, %v12317_v52  ;;  %v12305_v7 = vld [vmem:[%s22620_s18 + $0xad0] sm:$0xff]  ;;  %v12306_v22 = vld [vmem:[%s22620_s18 + $0xad8] sm:$0xff] }
0x2744   : > { %v12337_v11 = vld [vmem:[%s22620_s18 + $0xbd0] sm:$0xff]  ;;  %v12338_v29 = vld [vmem:[%s22620_s18 + $0xbd8] sm:$0xff]  ;;  %v15256_v24 = vpack.c.bf16 %v12324_v58, %v12323_v15 }
0x2745   : > { %v12325_v52 = vld [vmem:[%s22620_s18 + $0xb70] sm:$0xff]  ;;  %v12326_v4 = vld [vmem:[%s22620_s18 + $0xb78] sm:$0xff] }
0x2746   : > { %15165 = vmatpush3.bf16.msra.mxu1 %v15164_v59  ;;  %15197 = vmatpush3.bf16.msra.mxu0 %v15196_v0  ;;  %v12315_v59 = vld [vmem:[%s22620_s18 + $0xb20] sm:$0xff]  ;;  %v12316_v0 = vld [vmem:[%s22620_s18 + $0xb28] sm:$0xff]  ;;  %v12394_v15 = vld [vmem:[%s22620_s18 + $0xd98] sm:$0xff] }
0x2747   : > { %15199 = vmatprep.subr.bf16.mxu1 %v15198_v12  ;;  %15231 = vmatprep.subr.bf16.mxu0 %v15230_v60  ;;  %v12301_v12 = vld [vmem:[%s22620_s18 + $0xab0] sm:$0xff] }
0x27a2   : > { %v9856_v3 = vpop.f32.mrb[188].mxu1  ;;  %v9939_v27 = vpop.f32.mrb[188].mxu0 }
0x27a3   : > { %v9857_v8 = vadd.f32 %v9856_v3, %v21781_v44  ;;  %v9940_v42 = vadd.f32 %v9939_v27, %v21785_v61  ;;  %v9858_v6 = vpop.f32.mrb[189].mxu1  ;;  %v9941_v34 = vpop.f32.mrb[189].mxu0  ;;  %v12302_v27 = vld [vmem:[%s22620_s18 + $0xab8] sm:$0xff] }
0x27a4   : > { %v9859_v47 = vadd.f32 %v9858_v6, %v21789_v53  ;;  %v9942_v10 = vadd.f32 %v9941_v34, %v21793_v33  ;;  %v15208_v6 = vpack.c.bf16 %v12284_v16, %v12283_v40  ;;  %v15240_v34 = vpack.c.bf16 %v12316_v0, %v12315_v59  ;;  %v12321_v40 = vld [vmem:[%s22620_s18 + $0xb50] sm:$0xff]  ;;  %v12322_v16 = vld [vmem:[%s22620_s18 + $0xb58] sm:$0xff] }
0x27a5   : > { %v10454_v54 = vmax.f32 %v9857_v8, 0.0  ;;  %v10456_v28 = vmax.f32 %v9940_v42, 0.0  ;;  %v15252_v0 = vpack.c.bf16 %v12322_v16, %v12321_v40 }
0x27a6   : > { %v10455_v48 = vmax.f32 %v9859_v47, 0.0  ;;  %v10457_v9 = vmax.f32 %v9942_v10, 0.0  ;;  %v15210_v10 = vpack.c.bf16 %v12302_v27, %v12301_v12  ;;  %v12291_v12 = vld [vmem:[%s22620_s18 + $0xa60] sm:$0xff] }
0x27a8   : > { %10828 = vmatprep.mubr.f32.mxu1 %v10455_v48  ;;  %10908 = vmatprep.mubr.f32.mxu0 %v10457_v9  ;;  %v12303_v48 = vld [vmem:[%s22620_s18 + $0xac0] sm:$0xff]  ;;  %v12304_v9 = vld [vmem:[%s22620_s18 + $0xac8] sm:$0xff] }
0x27a9   : > { %10829 = vmatmul.mubr.f32.vlgmr.msra.gmra.mrb[212].mxu1 %v10454_v54  ;;  %10909 = vmatmul.mubr.f32.vlgmr.msra.gmra.mrb[212].mxu0 %v10456_v28  ;;  %v12287_v54 = vld [vmem:[%s22620_s18 + $0xa40] sm:$0xff]  ;;  %v12288_v28 = vld [vmem:[%s22620_s18 + $0xa48] sm:$0xff] }
0x27aa   : > { %15201 = vmatpush3.bf16.msra.mxu1 %v15200_v46  ;;  %15233 = vmatpush3.bf16.msra.mxu0 %v15232_v35  ;;  %v12335_v46 = vld [vmem:[%s22620_s18 + $0xbc0] sm:$0xff]  ;;  %v12336_v35 = vld [vmem:[%s22620_s18 + $0xbc8] sm:$0xff] }
0x27ab   : > { %v9862_v63 = vpop.f32.mrb[190].mxu1  ;;  %v9945_v49 = vpop.f32.mrb[190].mxu0  ;;  %15203 = vmatprep.subr.bf16.mxu1 %v15202_v37  ;;  %15235 = vmatprep.subr.bf16.mxu0 %v15234_v20  ;;  %v15214_v37 = vpack.c.bf16 %v12304_v9, %v12303_v48  ;;  %v15246_v20 = vpack.c.bf16 %v12336_v35, %v12335_v46  ;;  %v12359_v48 = vld [vmem:[%s22620_s18 + $0xc80] sm:$0xff]  ;;  %v12360_v9 = vld [vmem:[%s22620_s18 + $0xc88] sm:$0xff] }
0x27ac   : > { %v9863_v62 = vadd.f32 %v9862_v63, %v21781_v44  ;;  %v9946_v43 = vadd.f32 %v9945_v49, %v21785_v61  ;;  %v9864_v38 = vpop.f32.mrb[191].mxu1  ;;  %v9947_v56 = vpop.f32.mrb[191].mxu0  ;;  %v12289_v63 = vld [vmem:[%s22620_s18 + $0xa50] sm:$0xff]  ;;  %v12290_v49 = vld [vmem:[%s22620_s18 + $0xa58] sm:$0xff]  ;;  %v12391_v46 = vld [vmem:[%s22620_s18 + $0xd80] sm:$0xff] }
0x27ad   : > { %v9865_v60 = vadd.f32 %v9864_v38, %v21789_v53  ;;  %v9948_v3 = vadd.f32 %v9947_v56, %v21793_v33  ;;  %v12339_v38 = vld [vmem:[%s22620_s18 + $0xbe0] sm:$0xff]  ;;  %v12340_v56 = vld [vmem:[%s22620_s18 + $0xbe8] sm:$0xff]  ;;  %v15220_v59 = vpack.c.bf16 %v12290_v49, %v12289_v63 }
0x27ae   : > { %15205 = vmatpush3.bf16.msra.mxu1 %v15204_v55  ;;  %15237 = vmatpush3.bf16.msra.mxu0 %v15236_v26  ;;  %v10470_v25 = vmax.f32 %v9863_v62, 0.0  ;;  %v10472_v47 = vmax.f32 %v9946_v43, 0.0  ;;  %v15216_v55 = vpack.c.bf16 %v12288_v28, %v12287_v54  ;;  %v15248_v26 = vpack.c.bf16 %v12320_v45, %v12319_v2  ;;  %v12307_v62 = vld [vmem:[%s22620_s18 + $0xae0] sm:$0xff]  ;;  %v12308_v43 = vld [vmem:[%s22620_s18 + $0xae8] sm:$0xff] }
0x27af   : > { %v10471_v8 = vmax.f32 %v9865_v60, 0.0  ;;  %v10473_v42 = vmax.f32 %v9948_v3, 0.0  ;;  %15207 = vmatprep.subr.bf16.mxu1 %v15206_v50  ;;  %15239 = vmatprep.subr.bf16.mxu0 %v15238_v19  ;;  %v15218_v50 = vpack.c.bf16 %v12306_v22, %v12305_v7  ;;  %v15250_v19 = vpack.c.bf16 %v12338_v29, %v12337_v11  ;;  %v12292_v60 = vld [vmem:[%s22620_s18 + $0xa68] sm:$0xff] }
0x27b0   : > { %v15222_v3 = vpack.c.bf16 %v12308_v43, %v12307_v62  ;;  %v15254_v27 = vpack.c.bf16 %v12340_v56, %v12339_v38  ;;  %v15224_v36 = vpack.c.bf16 %v12292_v60, %v12291_v12  ;;  %v12392_v35 = vld [vmem:[%s22620_s18 + $0xd88] sm:$0xff]  ;;  %v15262_v54 = vpack.c.bf16 %v12360_v9, %v12359_v48  ;;  %v22030_v43 = vld [vmem:[%s22620_s18 + $0xc90] sm:$0xff]  ;;  %v12362_v38 = vld [vmem:[%s22620_s18 + $0xc98] sm:$0xff] }
0x27b1   : > { %10833 = vmatprep.mubr.f32.mxu1 %v10471_v8  ;;  %10913 = vmatprep.mubr.f32.mxu0 %v10473_v42  ;;  %v12309_v8 = vld [vmem:[%s22620_s18 + $0xaf0] sm:$0xff]  ;;  %v12310_v42 = vld [vmem:[%s22620_s18 + $0xaf8] sm:$0xff]  ;;  %v15294_v28 = vpack.c.bf16 %v12392_v35, %v12391_v46  ;;  %v21999_v11 = vrot.slane %v21777_v41, %v19162_v39  ;;  %v22003_v29 = vrot.slane %v21777_v41, %v19165_v13  ;;  %v22770_v63 = vld [vmem:[#allocation20_spill] sm:$0xff] }
0x27b2   : > { %10834 = vmatmul.mubr.f32.gmra.mrb[214].mxu1 %v10470_v25  ;;  %10914 = vmatmul.mubr.f32.gmra.mrb[214].mxu0 %v10472_v47  ;;  %v12293_v25 = vld [vmem:[%s22620_s18 + $0xa70] sm:$0xff]  ;;  %v12294_v47 = vld [vmem:[%s22620_s18 + $0xa78] sm:$0xff]  ;;  %v22009_v49 = vrot.slane %v21777_v41, %v22770_v63  ;;  %v12363_v9 = vld [vmem:[%s22620_s18 + $0xca0] sm:$0xff] }
0x27b3   : > { %15209 = vmatpush3.bf16.msra.mxu1 %v15208_v6  ;;  %15241 = vmatpush3.bf16.msra.mxu0 %v15240_v34  ;;  %v12341_v6 = vld [vmem:[%s22620_s18 + $0xbf0] sm:$0xff]  ;;  %v12342_v34 = vld [vmem:[%s22620_s18 + $0xbf8] sm:$0xff]  ;;  %v12364_v46 = vld [vmem:[%s22620_s18 + $0xca8] sm:$0xff] }
0x27b4   : > { %15211 = vmatprep.subr.bf16.mxu1 %v15210_v10  ;;  %15243 = vmatprep.subr.bf16.mxu0 %v15242_v5  ;;  %v15226_v10 = vpack.c.bf16 %v12310_v42, %v12309_v8  ;;  %v15258_v5 = vpack.c.bf16 %v12342_v34, %v12341_v6  ;;  %v22048_v42 = vld [vmem:[%s22620_s18 + $0xc10] sm:$0xff] }
0x27b7   : > { %15213 = vmatpush3.bf16.msra.mxu1 %v15212_v1  ;;  %15245 = vmatpush3.bf16.msra.mxu0 %v15244_v57  ;;  %v15228_v1 = vpack.c.bf16 %v12294_v47, %v12293_v25  ;;  %v15260_v57 = vpack.c.bf16 %v12326_v4, %v12325_v52  ;;  %v12378_v25 = vld [vmem:[%s22620_s18 + $0xd18] sm:$0xff]  ;;  %v15266_v4 = vpack.c.bf16 %v12362_v38, %v22030_v43 }
0x27b8   : > { %15215 = vmatprep.subr.bf16.mxu1 %v15214_v37  ;;  %15247 = vmatprep.subr.bf16.mxu0 %v15246_v20 }
0x27bb   : > { %15217 = vmatpush3.bf16.msra.mxu1 %v15216_v55  ;;  %15249 = vmatpush3.bf16.msra.mxu0 %v15248_v26 }
0x27bc   : > { %15219 = vmatprep.subr.bf16.mxu1 %v15218_v50  ;;  %15251 = vmatprep.subr.bf16.mxu0 %v15250_v19  ;;  %v12343_v50 = vld [vmem:[%s22620_s18 + $0xc00] sm:$0xff]  ;;  %v12344_v19 = vld [vmem:[%s22620_s18 + $0xc08] sm:$0xff] }
0x27bd   : > { %v15264_v6 = vpack.c.bf16 %v12344_v19, %v12343_v50 }
0x27bf   : > { %15221 = vmatpush3.bf16.msra.mxu1 %v15220_v59  ;;  %15253 = vmatpush3.bf16.msra.mxu0 %v15252_v0 }
0x27c0   : > { %15223 = vmatprep.subr.bf16.mxu1 %v15222_v3  ;;  %15255 = vmatprep.subr.bf16.mxu0 %v15254_v27  ;;  %v12393_v27 = vld [vmem:[%s22620_s18 + $0xd90] sm:$0xff] }
0x27c1   : > { %v15298_v48 = vpack.c.bf16 %v12394_v15, %v12393_v27 }
0x27c3   : > { %15225 = vmatpush3.bf16.msra.mxu1 %v15224_v36  ;;  %15257 = vmatpush3.bf16.msra.mxu0 %v15256_v24  ;;  %v12346_v36 = vld [vmem:[%s22620_s18 + $0xc18] sm:$0xff]  ;;  %v12377_v24 = vld [vmem:[%s22620_s18 + $0xd10] sm:$0xff] }
0x27c4   : > { %15227 = vmatprep.subr.bf16.mxu1 %v15226_v10  ;;  %15259 = vmatprep.subr.bf16.mxu0 %v15258_v5 }
0x27c7   : > { %15229 = vmatpush3.bf16.msra.mxu1 %v15228_v1  ;;  %15261 = vmatpush3.bf16.msra.mxu0 %v15260_v57 }
0x27c8   : > { %15263 = vmatprep.subr.bf16.mxu1 %v15262_v54  ;;  %15295 = vmatprep.subr.bf16.mxu0 %v15294_v28 }
0x27d7   : > { %v9868_v37 = vpop.f32.mrb[192].mxu1  ;;  %v9951_v20 = vpop.f32.mrb[192].mxu0 }
0x27d8   : > { %v9869_v2 = vadd.f32 %v9868_v37, %v21781_v44  ;;  %v9952_v45 = vadd.f32 %v9951_v20, %v21785_v61  ;;  %v9870_v7 = vpop.f32.mrb[193].mxu1  ;;  %v9953_v22 = vpop.f32.mrb[193].mxu0  ;;  %v22771_v44 = vld [vmem:[#allocation21_spill] sm:$0xff]  ;;  %v12395_v20 = vld [vmem:[%s22620_s18 + $0xda0] sm:$0xff] }
0x27d9   : > { %v9871_v55 = vadd.f32 %v9870_v7, %v21789_v53  ;;  %v9954_v26 = vadd.f32 %v9953_v22, %v21793_v33  ;;  %v22013_v61 = vrot.slane %v21777_v41, %v22771_v44  ;;  %v12375_v53 = vld [vmem:[%s22620_s18 + $0xd00] sm:$0xff]  ;;  %v12376_v33 = vld [vmem:[%s22620_s18 + $0xd08] sm:$0xff]  ;;  %v15268_v22 = vpack.c.bf16 %v12346_v36, %v22048_v42  ;;  %v12350_v36 = vld [vmem:[%s22620_s18 + $0xc38] sm:$0xff] }
0x27da   : > { %v10486_v56 = vmax.f32 %v9869_v2, 0.0  ;;  %v10488_v59 = vmax.f32 %v9952_v45, 0.0  ;;  %v15296_v34 = vpack.c.bf16 %v12376_v33, %v12375_v53  ;;  %v12396_v2 = vld [vmem:[%s22620_s18 + $0xda8] sm:$0xff] }
0x27db   : > { %v10487_v40 = vmax.f32 %v9871_v55, 0.0  ;;  %v10489_v16 = vmax.f32 %v9954_v26, 0.0  ;;  %v10022_v41 = vpop.f32.mrb[194].mxu1  ;;  %v10105_v62 = vpop.f32.mrb[194].mxu0  ;;  %v15300_v55 = vpack.c.bf16 %v12378_v25, %v12377_v24  ;;  %v12347_v26 = vld [vmem:[%s22620_s18 + $0xc20] sm:$0xff] }
0x27dc   : > { %v10023_v0 = vadd.f32 %v10022_v41, %v21999_v11  ;;  %v10106_v12 = vadd.f32 %v10105_v62, %v22003_v29  ;;  %v10024_v60 = vpop.f32.mrb[195].mxu1  ;;  %v10107_v3 = vpop.f32.mrb[195].mxu0  ;;  %v12348_v41 = vld [vmem:[%s22620_s18 + $0xc28] sm:$0xff]  ;;  %v12379_v62 = vld [vmem:[%s22620_s18 + $0xd20] sm:$0xff] }
0x27dd   : > { %v10025_v58 = vadd.f32 %v10024_v60, %v22009_v49  ;;  %v10108_v8 = vadd.f32 %v10107_v3, %v22013_v61  ;;  %10838 = vmatprep.mubr.f32.mxu1 %v10487_v40  ;;  %10918 = vmatprep.mubr.f32.mxu0 %v10489_v16  ;;  %v15270_v40 = vpack.c.bf16 %v12364_v46, %v12363_v9  ;;  %v12380_v60 = vld [vmem:[%s22620_s18 + $0xd28] sm:$0xff]  ;;  %v12365_v3 = vld [vmem:[%s22620_s18 + $0xcb0] sm:$0xff] }
0x27de   : > { %10839 = vmatmul.mubr.f32.gmra.mrb[216].mxu1 %v10486_v56  ;;  %10919 = vmatmul.mubr.f32.gmra.mrb[216].mxu0 %v10488_v59  ;;  %v10458_v35 = vmax.f32 %v10023_v0, 0.0  ;;  %v10460_v1 = vmax.f32 %v10106_v12, 0.0  ;;  %v15302_v16 = vpack.c.bf16 %v12396_v2, %v12395_v20  ;;  %v15272_v42 = vpack.c.bf16 %v12348_v41, %v12347_v26  ;;  %v12368_v46 = vld [vmem:[%s22620_s18 + $0xcc8] sm:$0xff]  ;;  %v12369_v26 = vld [vmem:[%s22620_s18 + $0xcd0] sm:$0xff] }
0x27df   : > { %v10459_v47 = vmax.f32 %v10025_v58, 0.0  ;;  %v10461_v10 = vmax.f32 %v10108_v8, 0.0  ;;  %v10028_v5 = vpop.f32.mrb[196].mxu1  ;;  %v10111_v52 = vpop.f32.mrb[196].mxu0  ;;  %v12398_v58 = vld [vmem:[%s22620_s18 + $0xdb8] sm:$0xff] }
0x27e0   : > { %v10029_v57 = vadd.f32 %v10028_v5, %v21999_v11  ;;  %v10112_v54 = vadd.f32 %v10111_v52, %v22003_v29  ;;  %v10030_v28 = vpop.f32.mrb[197].mxu1  ;;  %v10113_v37 = vpop.f32.mrb[197].mxu0  ;;  %v12381_v5 = vld [vmem:[%s22620_s18 + $0xd30] sm:$0xff]  ;;  %v12382_v52 = vld [vmem:[%s22620_s18 + $0xd38] sm:$0xff] }
0x27e1   : > { %v10031_v45 = vadd.f32 %v10030_v28, %v22009_v49  ;;  %v10114_v7 = vadd.f32 %v10113_v37, %v22013_v61  ;;  %10988 = vmatprep.mubr.f32.mxu1 %v10459_v47  ;;  %11068 = vmatprep.mubr.f32.mxu0 %v10461_v10  ;;  %v12351_v28 = vld [vmem:[%s22620_s18 + $0xc40] sm:$0xff]  ;;  %v12352_v37 = vld [vmem:[%s22620_s18 + $0xc48] sm:$0xff] }
0x27e2   : > { %10989 = vmatmul.mubr.f32.vlgmr.msra.gmra.mrb[218].mxu1 %v10458_v35  ;;  %11069 = vmatmul.mubr.f32.vlgmr.msra.gmra.mrb[218].mxu0 %v10460_v1  ;;  %v10474_v43 = vmax.f32 %v10029_v57, 0.0  ;;  %v10476_v38 = vmax.f32 %v10112_v54, 0.0  ;;  %v12399_v35 = vld [vmem:[%s22620_s18 + $0xdc0] sm:$0xff]  ;;  %v12400_v1 = vld [vmem:[%s22620_s18 + $0xdc8] sm:$0xff]  ;;  %v15308_v54 = vpack.c.bf16 %v12382_v52, %v12381_v5 }
0x27e3   : > { %v10475_v50 = vmax.f32 %v10031_v45, 0.0  ;;  %v10477_v19 = vmax.f32 %v10114_v7, 0.0  ;;  %15265 = vmatpush3.bf16.msra.mxu1 %v15264_v6  ;;  %15297 = vmatpush3.bf16.msra.mxu0 %v15296_v34  ;;  %v10034_v53 = vpop.f32.mrb[198].mxu1  ;;  %v10117_v33 = vpop.f32.mrb[198].mxu0  ;;  %v15304_v6 = vpack.c.bf16 %v12380_v60, %v12379_v62  ;;  %v12349_v34 = vld [vmem:[%s22620_s18 + $0xc30] sm:$0xff]  ;;  %v15310_v7 = vpack.c.bf16 %v12400_v1, %v12399_v35  ;;  %v12374_v1 = vld [vmem:[%s22620_s18 + $0xcf8] sm:$0xff] }
0x27e4   : > { %v10035_v56 = vadd.f32 %v10034_v53, %v21999_v11  ;;  %v10118_v59 = vadd.f32 %v10117_v33, %v22003_v29  ;;  %v10036_v0 = vpop.f32.mrb[199].mxu1  ;;  %v10119_v12 = vpop.f32.mrb[199].mxu0  ;;  %15267 = vmatprep.subr.bf16.mxu1 %v15266_v4  ;;  %15299 = vmatprep.subr.bf16.mxu0 %v15298_v48  ;;  %v12366_v11 = vld [vmem:[%s22620_s18 + $0xcb8] sm:$0xff]  ;;  %v12397_v29 = vld [vmem:[%s22620_s18 + $0xdb0] sm:$0xff]  ;;  %v12367_v4 = vld [vmem:[%s22620_s18 + $0xcc0] sm:$0xff] }
0x27e5   : > { %v10037_v27 = vadd.f32 %v10036_v0, %v22009_v49  ;;  %v10120_v15 = vadd.f32 %v10119_v12, %v22013_v61  ;;  %10993 = vmatprep.mubr.f32.mxu1 %v10475_v50  ;;  %11073 = vmatprep.mubr.f32.mxu0 %v10477_v19  ;;  %v22108_v49 = vld [vmem:[%s22619_s17 + $0x11] ss:$2 sm:$0xff]  ;;  %v15274_v47 = vpack.c.bf16 %v12366_v11, %v12365_v3 }
0x27e6   : > { %10994 = vmatmul.mubr.f32.gmra.mrb[220].mxu1 %v10474_v43  ;;  %11074 = vmatmul.mubr.f32.gmra.mrb[220].mxu0 %v10476_v38  ;;  %v10490_v24 = vmax.f32 %v10035_v56, 0.0  ;;  %v10492_v25 = vmax.f32 %v10118_v59, 0.0  ;;  %v15306_v10 = vpack.c.bf16 %v12398_v58, %v12397_v29  ;;  %v22127_v48 = vrot.slane %v22108_v49, %v16750_v32  ;;  %v12370_v53 = vld [vmem:[%s22620_s18 + $0xcd8] sm:$0xff]  ;;  %v12401_v33 = vld [vmem:[%s22620_s18 + $0xdd0] sm:$0xff]  ;;  %v12371_v29 = vld [vmem:[%s22620_s18 + $0xce0] sm:$0xff] }
0x27e7   : > { %v10491_v61 = vmax.f32 %v10037_v27, 0.0  ;;  %v10493_v8 = vmax.f32 %v10120_v15, 0.0  ;;  %15269 = vmatpush3.bf16.msra.mxu1 %v15268_v22  ;;  %15301 = vmatpush3.bf16.msra.mxu0 %v15300_v55  ;;  %v22131_v9 = vrot.slane %v22108_v49, %v18943_v17  ;;  %v15276_v17 = vpack.c.bf16 %v12350_v36, %v12349_v34  ;;  %v12383_v22 = vld [vmem:[%s22620_s18 + $0xd40] sm:$0xff]  ;;  %v12384_v55 = vld [vmem:[%s22620_s18 + $0xd48] sm:$0xff]  ;;  %v12353_v59 = vld [vmem:[%s22620_s18 + $0xc50] sm:$0xff] }
0x27e8   : > { %15271 = vmatprep.subr.bf16.mxu1 %v15270_v40  ;;  %15303 = vmatprep.subr.bf16.mxu0 %v15302_v16  ;;  %v15278_v45 = vpack.c.bf16 %v12368_v46, %v12367_v4  ;;  %v12402_v40 = vld [vmem:[%s22620_s18 + $0xdd8] sm:$0xff]  ;;  %v15280_v38 = vpack.c.bf16 %v12352_v37, %v12351_v28  ;;  %v15312_v56 = vpack.c.bf16 %v12384_v55, %v12383_v22  ;;  %v12385_v15 = vld [vmem:[%s22620_s18 + $0xd50] sm:$0xff]  ;;  %v12372_v58 = vld [vmem:[%s22620_s18 + $0xce8] sm:$0xff] }
0x27e9   : > { %10998 = vmatprep.mubr.f32.mxu1 %v10491_v61  ;;  %11078 = vmatprep.mubr.f32.mxu0 %v10493_v8  ;;  %v12354_v0 = vld [vmem:[%s22620_s18 + $0xc58] sm:$0xff]  ;;  %v15282_v3 = vpack.c.bf16 %v12370_v53, %v12369_v26  ;;  %v15314_v27 = vpack.c.bf16 %v12402_v40, %v12401_v33  ;;  %v12403_v61 = vld [vmem:[%s22620_s18 + $0xde0] sm:$0xff]  ;;  %v12404_v8 = vld [vmem:[%s22620_s18 + $0xde8] sm:$0xff]  ;;  %v15286_v5 = vpack.c.bf16 %v12372_v58, %v12371_v29 }
0x27ea   : > { %10999 = vmatmul.mubr.f32.gmra.mrb[222].mxu1 %v10490_v24  ;;  %11079 = vmatmul.mubr.f32.gmra.mrb[222].mxu0 %v10492_v25  ;;  %v12386_v11 = vld [vmem:[%s22620_s18 + $0xd58] sm:$0xff]  ;;  %v15284_v34 = vpack.c.bf16 %v12354_v0, %v12353_v59  ;;  %v12355_v24 = vld [vmem:[%s22620_s18 + $0xc60] sm:$0xff]  ;;  %v12356_v25 = vld [vmem:[%s22620_s18 + $0xc68] sm:$0xff]  ;;  %v15318_v52 = vpack.c.bf16 %v12404_v8, %v12403_v61  ;;  %v22238_v28 = vrot.slane %v22108_v49, %v16744_v30 }
0x27eb   : > { %v22142_v32 = vpop.f32.mrb[200].mxu1  ;;  %v22144_v57 = vpop.f32.mrb[200].mxu0  ;;  %15273 = vmatpush3.bf16.msra.mxu1 %v15272_v42  ;;  %15305 = vmatpush3.bf16.msra.mxu0 %v15304_v6  ;;  %v15316_v36 = vpack.c.bf16 %v12386_v11, %v12385_v15  ;;  %v12387_v4 = vld [vmem:[%s22620_s18 + $0xd60] sm:$0xff]  ;;  %v12388_v46 = vld [vmem:[%s22620_s18 + $0xd68] sm:$0xff]  ;;  %v12373_v35 = vld [vmem:[%s22620_s18 + $0xcf0] sm:$0xff]  ;;  %v15288_v37 = vpack.c.bf16 %v12356_v25, %v12355_v24  ;;  %v22251_v30 = vrot.slane %v22108_v49, %v18935_v21 }
0x27ec   : > { %v10190_v20 = vpop.f32.mrb[201].mxu1  ;;  %v10273_v2 = vpop.f32.mrb[201].mxu0  ;;  %15275 = vmatprep.subr.bf16.mxu1 %v15274_v47  ;;  %15307 = vmatprep.subr.bf16.mxu0 %v15306_v10  ;;  %v15290_v22 = vpack.c.bf16 %v12374_v1, %v12373_v35  ;;  %v12390_v26 = vld [vmem:[%s22620_s18 + $0xd78] sm:$0xff]  ;;  %v12455_v53 = vld [vmem:[%s22620_s18 + $0xf80] sm:$0xff]  ;;  %v12456_v33 = vld [vmem:[%s22620_s18 + $0xf88] sm:$0xff]  ;;  %v10189_v11 = vadd.f32 %v22142_v32, %v22238_v28  ;;  %v22312_v25 = vrot.slane %v22108_v49, %v22770_v63 }
0x27ed   : > { %v10191_v50 = vadd.f32 %v10190_v20, %v22127_v48  ;;  %v10274_v19 = vadd.f32 %v10273_v2, %v22131_v9  ;;  %v15320_v20 = vpack.c.bf16 %v12388_v46, %v12387_v4  ;;  %v12357_v2 = vld [vmem:[%s22620_s18 + $0xc70] sm:$0xff]  ;;  %v22271_v40 = vld [vmem:[%s22620_s18 + $0xe00] sm:$0xff]  ;;  %v10272_v29 = vadd.f32 %v22144_v57, %v22251_v30  ;;  %v12458_v32 = vld [vmem:[%s22620_s18 + $0xf98] sm:$0xff] }
0x27ee   : > { %v22291_v15 = vld [vmem:[%s22620_s18 + $0xe90] sm:$0xff]  ;;  %v15358_v8 = vpack.c.bf16 %v12456_v33, %v12455_v53 }
0x27ef   : > { %v10463_v16 = vmax.f32 %v10191_v50, 0.0  ;;  %v10465_v41 = vmax.f32 %v10274_v19, 0.0  ;;  %v22172_v62 = vpop.f32.mrb[202].mxu1  ;;  %v22174_v43 = vpop.f32.mrb[202].mxu0  ;;  %15277 = vmatpush3.bf16.msra.mxu1 %v15276_v17  ;;  %15309 = vmatpush3.bf16.msra.mxu0 %v15308_v54  ;;  %v12405_v17 = vld [vmem:[%s22620_s18 + $0xdf0] sm:$0xff]  ;;  %v12406_v54 = vld [vmem:[%s22620_s18 + $0xdf8] sm:$0xff] }
0x27f0   : > { %v22182_v12 = vpop.f32.mrb[203].mxu1  ;;  %v22184_v60 = vpop.f32.mrb[203].mxu0  ;;  %15279 = vmatprep.subr.bf16.mxu1 %v15278_v45  ;;  %15311 = vmatprep.subr.bf16.mxu0 %v15310_v7  ;;  %v12358_v45 = vld [vmem:[%s22620_s18 + $0xc78] sm:$0xff]  ;;  %v12389_v7 = vld [vmem:[%s22620_s18 + $0xd70] sm:$0xff]  ;;  %v15322_v55 = vpack.c.bf16 %v12406_v54, %v12405_v17  ;;  %v12423_v50 = vld [vmem:[%s22620_s18 + $0xe80] sm:$0xff] }
0x27f1   : > { %11148 = vmatprep.mubr.f32.mxu1 %v10463_v16  ;;  %11228 = vmatprep.mubr.f32.mxu0 %v10465_v41  ;;  %v12424_v19 = vld [vmem:[%s22620_s18 + $0xe88] sm:$0xff]  ;;  %v15324_v59 = vpack.c.bf16 %v12390_v26, %v12389_v7  ;;  %v10197_v57 = vadd.f32 %v22182_v12, %v22127_v48  ;;  %v10280_v24 = vadd.f32 %v22184_v60, %v22131_v9  ;;  %v22323_v4 = vld [vmem:[%s22620_s18 + $0xe10] sm:$0xff]  ;;  %v22328_v12 = vld [vmem:[%s22620_s18 + $0xe18] sm:$0xff] }
0x27f2   : > { %v22276_v16 = vld [vmem:[%s22620_s18 + $0xe08] sm:$0xff]  ;;  %v15326_v0 = vpack.c.bf16 %v12424_v19, %v12423_v50  ;;  %v22333_v63 = vld [vmem:[%s22620_s18 + $0xf10] sm:$0xff]  ;;  %v12442_v17 = vld [vmem:[%s22620_s18 + $0xf18] sm:$0xff]  ;;  %v10278_v7 = vadd.f32 %v22174_v43, %v22251_v30  ;;  %v15332_v33 = vpack.c.bf16 %v22328_v12, %v22323_v4 }
0x27f3   : > { %v22204_v42 = vpop.f32.mrb[204].mxu1  ;;  %v22206_v6 = vpop.f32.mrb[204].mxu0  ;;  %15281 = vmatpush3.bf16.msra.mxu1 %v15280_v38  ;;  %15313 = vmatpush3.bf16.msra.mxu0 %v15312_v56  ;;  %v15292_v56 = vpack.c.bf16 %v12358_v45, %v12357_v2  ;;  %v12427_v54 = vld [vmem:[%s22620_s18 + $0xea0] sm:$0xff]  ;;  %v10464_v2 = vmax.f32 %v10272_v29, 0.0  ;;  %v10195_v45 = vadd.f32 %v22172_v62, %v22238_v28  ;;  %v12460_v50 = vld [vmem:[%s22620_s18 + $0xfa8] sm:$0xff]  ;;  %v10479_v19 = vmax.f32 %v10197_v57, 0.0 }
0x27f4   : > { %v22214_v47 = vpop.f32.mrb[205].mxu1  ;;  %v22216_v10 = vpop.f32.mrb[205].mxu0  ;;  %15283 = vmatprep.subr.bf16.mxu1 %v15282_v3  ;;  %15315 = vmatprep.subr.bf16.mxu0 %v15314_v27  ;;  %v12439_v3 = vld [vmem:[%s22620_s18 + $0xf00] sm:$0xff]  ;;  %v12440_v27 = vld [vmem:[%s22620_s18 + $0xf08] sm:$0xff]  ;;  %v10481_v53 = vmax.f32 %v10280_v24, 0.0  ;;  %v12413_v4 = vld [vmem:[%s22620_s18 + $0xe30] sm:$0xff] }
0x27f5   : > { %v15360_v46 = vpack.c.bf16 %v12440_v27, %v12439_v3  ;;  %v12459_v26 = vld [vmem:[%s22620_s18 + $0xfa0] sm:$0xff]  ;;  %v10203_v62 = vadd.f32 %v22214_v47, %v22127_v48  ;;  %v10286_v43 = vadd.f32 %v22216_v10, %v22131_v9  ;;  %v10478_v3 = vmax.f32 %v10195_v45, 0.0  ;;  %v12414_v12 = vld [vmem:[%s22620_s18 + $0xe38] sm:$0xff]  ;;  %v12464_v45 = vld [vmem:[%s22620_s18 + $0xfc8] sm:$0xff] }
0x27f6   : > { %v10480_v48 = vmax.f32 %v10278_v7, 0.0  ;;  %v10201_v9 = vadd.f32 %v22204_v42, %v22238_v28  ;;  %v10284_v47 = vadd.f32 %v22206_v6, %v22251_v30  ;;  %v12443_v28 = vld [vmem:[%s22620_s18 + $0xf20] sm:$0xff]  ;;  %v12444_v30 = vld [vmem:[%s22620_s18 + $0xf28] sm:$0xff]  ;;  %v15340_v7 = vpack.c.bf16 %v12414_v12, %v12413_v4  ;;  %v12437_v12 = vld [vmem:[%s22620_s18 + $0xef0] sm:$0xff] }
0x27f7   : > { %15285 = vmatpush3.bf16.msra.mxu1 %v15284_v34  ;;  %15317 = vmatpush3.bf16.msra.mxu0 %v15316_v36  ;;  %v12426_v34 = vld [vmem:[%s22620_s18 + $0xe98] sm:$0xff]  ;;  %v12457_v36 = vld [vmem:[%s22620_s18 + $0xf90] sm:$0xff]  ;;  %v10495_v29 = vmax.f32 %v10203_v62, 0.0  ;;  %v12452_v4 = vld [vmem:[%s22620_s18 + $0xf68] sm:$0xff] }
0x27f8   : > { %15287 = vmatprep.subr.bf16.mxu1 %v15286_v5  ;;  %15319 = vmatprep.subr.bf16.mxu0 %v15318_v52  ;;  %v22316_v5 = vrot.slane %v22108_v49, %v22771_v44  ;;  %v15328_v52 = vpack.c.bf16 %v22276_v16, %v22271_v40  ;;  %v15330_v35 = vpack.c.bf16 %v12426_v34, %v22291_v15  ;;  %v12411_v15 = vld [vmem:[%s22620_s18 + $0xe20] sm:$0xff]  ;;  %v12429_v34 = vld [vmem:[%s22620_s18 + $0xeb0] sm:$0xff]  ;;  %v10496_v57 = vmax.f32 %v10284_v47, 0.0 }
0x27f9   : > { %v15362_v1 = vpack.c.bf16 %v12458_v32, %v12457_v36  ;;  %v12462_v36 = vld [vmem:[%s22620_s18 + $0xfb8] sm:$0xff]  ;;  %v10494_v32 = vmax.f32 %v10201_v9, 0.0  ;;  %v12417_v47 = vld [vmem:[%s22620_s18 + $0xe50] sm:$0xff] }
0x27fb   : > { %v22278_v41 = vpop.f32.mrb[206].mxu1  ;;  %v22280_v38 = vpop.f32.mrb[206].mxu0  ;;  %15289 = vmatpush3.bf16.msra.mxu1 %v15288_v37  ;;  %15321 = vmatpush3.bf16.msra.mxu0 %v15320_v20  ;;  %v12428_v37 = vld [vmem:[%s22620_s18 + $0xea8] sm:$0xff]  ;;  %v10462_v20 = vmax.f32 %v10189_v11, 0.0 }
0x27fc   : > { %v10356_v58 = vpop.f32.mrb[207].mxu1  ;;  %v10439_v61 = vpop.f32.mrb[207].mxu0  ;;  %15291 = vmatprep.subr.bf16.mxu1 %v15290_v22  ;;  %15323 = vmatprep.subr.bf16.mxu0 %v15322_v55  ;;  %v12412_v11 = vld [vmem:[%s22620_s18 + $0xe28] sm:$0xff] }
0x27fd   : > { %v10357_v42 = vadd.f32 %v10356_v58, %v22312_v25  ;;  %v10440_v6 = vadd.f32 %v10439_v61, %v22316_v5  ;;  %v12430_v58 = vld [vmem:[%s22620_s18 + $0xeb8] sm:$0xff]  ;;  %v12461_v61 = vld [vmem:[%s22620_s18 + $0xfb0] sm:$0xff]  ;;  %v15336_v24 = vpack.c.bf16 %v12412_v11, %v12411_v15 }
0x27fe   : > { %v12418_v15 = vld [vmem:[%s22620_s18 + $0xe58] sm:$0xff] }
0x27ff   : > { %v22335_v44 = vpop.f32.mrb[208].mxu1  ;;  %v22337_v60 = vpop.f32.mrb[208].mxu0  ;;  %15293 = vmatpush3.bf16.msra.mxu1 %v15292_v56  ;;  %15325 = vmatpush3.bf16.msra.mxu0 %v15324_v59  ;;  %v15364_v56 = vpack.c.bf16 %v12442_v17, %v22333_v63  ;;  %v15334_v59 = vpack.c.bf16 %v12428_v37, %v12427_v54  ;;  %v10467_v63 = vmax.f32 %v10357_v42, 0.0  ;;  %v12445_v17 = vld [vmem:[%s22620_s18 + $0xf30] sm:$0xff]  ;;  %v12446_v54 = vld [vmem:[%s22620_s18 + $0xf38] sm:$0xff]  ;;  %v12431_v37 = vld [vmem:[%s22620_s18 + $0xec0] sm:$0xff] }
0x2800   : > { %v22353_v22 = vpop.f32.mrb[209].mxu1  ;;  %v22355_v55 = vpop.f32.mrb[209].mxu0  ;;  %15327 = vmatprep.subr.bf16.mxu1 %v15326_v0  ;;  %15359 = vmatprep.subr.bf16.mxu0 %v15358_v8  ;;  %v15366_v0 = vpack.c.bf16 %v12460_v50, %v12459_v26  ;;  %v10497_v8 = vmax.f32 %v10286_v43, 0.0  ;;  %v15372_v26 = vpack.c.bf16 %v12446_v54, %v12445_v17  ;;  %v12415_v50 = vld [vmem:[%s22620_s18 + $0xe40] sm:$0xff]  ;;  %v12450_v42 = vld [vmem:[%s22620_s18 + $0xf58] sm:$0xff] }
0x2801   : > { %v12447_v43 = vld [vmem:[%s22620_s18 + $0xf40] sm:$0xff] }
0x2802   : > { %11149 = vmatmul.mubr.f32.vlgmr.msra.gmra.mrb[224].mxu1 %v10462_v20  ;;  %11229 = vmatmul.mubr.f32.vlgmr.msra.gmra.mrb[224].mxu0 %v10464_v2  ;;  %v12432_v20 = vld [vmem:[%s22620_s18 + $0xec8] sm:$0xff]  ;;  %v12463_v2 = vld [vmem:[%s22620_s18 + $0xfc0] sm:$0xff] }
0x2803   : > { %v22369_v40 = vpop.f32.mrb[210].mxu1  ;;  %v22371_v16 = vpop.f32.mrb[210].mxu0  ;;  %11153 = vmatprep.mubr.f32.mxu1 %v10479_v19  ;;  %11233 = vmatprep.mubr.f32.mxu0 %v10481_v53  ;;  %v12416_v19 = vld [vmem:[%s22620_s18 + $0xe48] sm:$0xff]  ;;  %v15342_v53 = vpack.c.bf16 %v12432_v20, %v12431_v37  ;;  %v15374_v62 = vpack.c.bf16 %v12464_v45, %v12463_v2  ;;  %v12421_v37 = vld [vmem:[%s22620_s18 + $0xe70] sm:$0xff]  ;;  %v9760_v20 = vrot.slane %v22108_v49, %v19165_v13 }
0x2804   : > { %15329 = vmatpush3.bf16.msra.mxu1 %v15328_v52  ;;  %15361 = vmatpush3.bf16.msra.mxu0 %v15360_v46  ;;  %v22378_v10 = vpop.f32.mrb[211].mxu1  ;;  %v22380_v27 = vpop.f32.mrb[211].mxu0  ;;  %v15368_v52 = vpack.c.bf16 %v12444_v30, %v12443_v28  ;;  %v10469_v46 = vmax.f32 %v10440_v6, 0.0  ;;  %v12435_v6 = vld [vmem:[%s22620_s18 + $0xee0] sm:$0xff]  ;;  %v12436_v28 = vld [vmem:[%s22620_s18 + $0xee8] sm:$0xff] }
0x2805   : > { %15331 = vmatprep.subr.bf16.mxu1 %v15330_v35  ;;  %15363 = vmatprep.subr.bf16.mxu0 %v15362_v1  ;;  %v15338_v35 = vpack.c.bf16 %v12430_v58, %v12429_v34  ;;  %v15370_v1 = vpack.c.bf16 %v12462_v36, %v12461_v61  ;;  %v12467_v30 = vld [vmem:[%s22620_s18 + $0xfe0] sm:$0xff]  ;;  %v12468_v34 = vld [vmem:[%s22620_s18 + $0xfe8] sm:$0xff]  ;;  %v15348_v58 = vpack.c.bf16 %v12418_v15, %v12417_v47 }
0x2806   : > { %11154 = vmatmul.mubr.f32.gmra.mrb[226].mxu1 %v10478_v3  ;;  %11234 = vmatmul.mubr.f32.gmra.mrb[226].mxu0 %v10480_v48  ;;  %v12466_v3 = vld [vmem:[%s22620_s18 + $0xfd8] sm:$0xff]  ;;  %v15344_v48 = vpack.c.bf16 %v12416_v19, %v12415_v50  ;;  %v12419_v36 = vld [vmem:[%s22620_s18 + $0xe60] sm:$0xff]  ;;  %v10438_v19 = vadd.f32 %v22280_v38, %v9760_v20 }
0x2807   : > { %11158 = vmatprep.mubr.f32.mxu1 %v10495_v29  ;;  %11238 = vmatprep.mubr.f32.mxu0 %v10497_v8  ;;  %v12449_v8 = vld [vmem:[%s22620_s18 + $0xf50] sm:$0xff] }
0x2808   : > { %15333 = vmatpush3.bf16.msra.mxu1 %v15332_v33  ;;  %15365 = vmatpush3.bf16.msra.mxu0 %v15364_v56  ;;  %v12448_v33 = vld [vmem:[%s22620_s18 + $0xf48] sm:$0xff]  ;;  %v12433_v56 = vld [vmem:[%s22620_s18 + $0xed0] sm:$0xff]  ;;  %v15380_v61 = vpack.c.bf16 %v12450_v42, %v12449_v8 }
0x2809   : > { %15335 = vmatprep.subr.bf16.mxu1 %v15334_v59  ;;  %15367 = vmatprep.subr.bf16.mxu0 %v15366_v0  ;;  %v12434_v59 = vld [vmem:[%s22620_s18 + $0xed8] sm:$0xff]  ;;  %v12465_v0 = vld [vmem:[%s22620_s18 + $0xfd0] sm:$0xff]  ;;  %v15376_v9 = vpack.c.bf16 %v12448_v33, %v12447_v43  ;;  %v10468_v33 = vmax.f32 %v10438_v19, 0.0 }
0x280a   : > { %11159 = vmatmul.mubr.f32.gmra.mrb[228].mxu1 %v10494_v32  ;;  %11239 = vmatmul.mubr.f32.gmra.mrb[228].mxu0 %v10496_v57  ;;  %v15346_v11 = vpack.c.bf16 %v12434_v59, %v12433_v56  ;;  %v15378_v29 = vpack.c.bf16 %v12466_v3, %v12465_v0  ;;  %v12420_v32 = vld [vmem:[%s22620_s18 + $0xe68] sm:$0xff]  ;;  %v15350_v57 = vpack.c.bf16 %v12436_v28, %v12435_v6 }
0x280b   : > { %11308 = vmatprep.mubr.f32.mxu1 %v10467_v63  ;;  %11388 = vmatprep.mubr.f32.mxu0 %v10469_v46  ;;  %v12438_v63 = vld [vmem:[%s22620_s18 + $0xef8] sm:$0xff]  ;;  %v12469_v46 = vld [vmem:[%s22620_s18 + $0xff0] sm:$0xff]  ;;  %v15352_v17 = vpack.c.bf16 %v12420_v32, %v12419_v36  ;;  %v10444_v59 = vadd.f32 %v22337_v60, %v9760_v20  ;;  %v10369_v0 = vadd.f32 %v22378_v10, %v22312_v25 }
0x280c   : > { %15337 = vmatpush3.bf16.msra.mxu1 %v15336_v24  ;;  %15369 = vmatpush3.bf16.msra.mxu0 %v15368_v52  ;;  %v15382_v24 = vpack.c.bf16 %v12468_v34, %v12467_v30  ;;  %v12451_v52 = vld [vmem:[%s22620_s18 + $0xf60] sm:$0xff]  ;;  %v15354_v2 = vpack.c.bf16 %v12438_v63, %v12437_v12  ;;  %v10450_v60 = vadd.f32 %v22371_v16, %v9760_v20 }
0x280d   : > { %15339 = vmatprep.subr.bf16.mxu1 %v15338_v35  ;;  %15371 = vmatprep.subr.bf16.mxu0 %v15370_v1  ;;  %v12470_v35 = vld [vmem:[%s22620_s18 + $0xff8] sm:$0xff]  ;;  %v9752_v1 = vrot.slane %v22108_v49, %v19162_v39  ;;  %v15384_v54 = vpack.c.bf16 %v12452_v4, %v12451_v52  ;;  %v12453_v39 = vld [vmem:[%s22620_s18 + $0xf70] sm:$0xff]  ;;  %v10484_v3 = vmax.f32 %v10444_v59, 0.0 }
0x280e   : > { %v15386_v45 = vpack.c.bf16 %v12470_v35, %v12469_v46  ;;  %v10500_v10 = vmax.f32 %v10450_v60, 0.0 }
0x280f   : > { %v10355_v49 = vadd.f32 %v22278_v41, %v9752_v1  ;;  %v10361_v56 = vadd.f32 %v22335_v44, %v9752_v1  ;;  %v10367_v44 = vadd.f32 %v22369_v40, %v9752_v1  ;;  %v12471_v40 = vld [vmem:[%s22621_s19 + $0x1] ss:$0 sm:$0xff] }
0x2810   : > { %15341 = vmatpush3.bf16.msra.mxu1 %v15340_v7  ;;  %15373 = vmatpush3.bf16.msra.mxu0 %v15372_v26  ;;  %v12422_v7 = vld [vmem:[%s22620_s18 + $0xe78] sm:$0xff] }
0x2811   : > { %15343 = vmatprep.subr.bf16.mxu1 %v15342_v53  ;;  %15375 = vmatprep.subr.bf16.mxu0 %v15374_v62  ;;  %v12454_v26 = vld [vmem:[%s22620_s18 + $0xf78] sm:$0xff]  ;;  %v15356_v50 = vpack.c.bf16 %v12422_v7, %v12421_v37  ;;  %v10363_v53 = vadd.f32 %v22353_v22, %v22312_v25  ;;  %v10446_v62 = vadd.f32 %v22355_v55, %v22316_v5  ;;  %v10466_v43 = vmax.f32 %v10355_v49, 0.0 }
0x2812   : > { %v15388_v13 = vpack.c.bf16 %v12454_v26, %v12453_v39  ;;  %v10452_v22 = vadd.f32 %v22380_v27, %v22316_v5  ;;  %v10482_v55 = vmax.f32 %v10361_v56, 0.0  ;;  %v10498_v25 = vmax.f32 %v10367_v44, 0.0 }
0x2813   : > { %v10483_v41 = vmax.f32 %v10363_v53, 0.0  ;;  %v10485_v38 = vmax.f32 %v10446_v62, 0.0 }
0x2814   : > { %15345 = vmatpush3.bf16.msra.mxu1 %v15344_v48  ;;  %15377 = vmatpush3.bf16.msra.mxu0 %v15376_v9  ;;  %v10499_v48 = vmax.f32 %v10369_v0, 0.0  ;;  %v10501_v9 = vmax.f32 %v10452_v22, 0.0 }
0x2815   : > { %15347 = vmatprep.subr.bf16.mxu1 %v15346_v11  ;;  %15379 = vmatprep.subr.bf16.mxu0 %v15378_v29 }
0x2818   : > { %15349 = vmatpush3.bf16.msra.mxu1 %v15348_v58  ;;  %15381 = vmatpush3.bf16.msra.mxu0 %v15380_v61 }
0x2819   : > { %15351 = vmatprep.subr.bf16.mxu1 %v15350_v57  ;;  %15383 = vmatprep.subr.bf16.mxu0 %v15382_v24 }
0x281c   : > { %15353 = vmatpush3.bf16.msra.mxu1 %v15352_v17  ;;  %15385 = vmatpush3.bf16.msra.mxu0 %v15384_v54 }
0x281d   : > { %15355 = vmatprep.subr.bf16.mxu1 %v15354_v2  ;;  %15387 = vmatprep.subr.bf16.mxu0 %v15386_v45 }
0x2820   : > { %15357 = vmatpush3.bf16.msra.mxu1 %v15356_v50  ;;  %15389 = vmatpush3.bf16.msra.mxu0 %v15388_v13 }
0x2821   : > { %15390 = vmatprep.subr.bf16.mxu1 %v22737_v23 }
0x2823   : > { %11309 = vmatmul.mubr.f32.vlgmr.msra.gmra.mrb[230].mxu1 %v10466_v43  ;;  %11389 = vmatmul.mubr.f32.vlgmr.msra.gmra.mrb[230].mxu0 %v10468_v33 }
0x2824   : > { %11313 = vmatprep.mubr.f32.mxu1 %v10483_v41  ;;  %11393 = vmatprep.mubr.f32.mxu0 %v10485_v38 }
0x2827   : > { %11314 = vmatmul.mubr.f32.gmra.mrb[232].mxu1 %v10482_v55  ;;  %11394 = vmatmul.mubr.f32.gmra.mrb[232].mxu0 %v10484_v3 }
0x2828   : > { %11318 = vmatprep.mubr.f32.mxu1 %v10499_v48  ;;  %11398 = vmatprep.mubr.f32.mxu0 %v10501_v9 }
0x282b   : > { %11319 = vmatmul.mubr.f32.gmra.mrb[234].mxu1 %v10498_v25  ;;  %11399 = vmatmul.mubr.f32.gmra.mrb[234].mxu0 %v10500_v10 }
0x282c   : > { %13861 = vmatprep.mubr.msk.f32.mxu1 %vm16537_vm1, %v22738_v14 }
0x287c   : > { %v13056_v5 = vpop.f32.mrb[212].mxu1  ;;  %v13097_v27 = vpop.f32.mrb[212].mxu0 }
0x287d   : > { %v13057_v16 = vpop.f32.mrb[213].mxu1  ;;  %v13098_v47 = vpop.f32.mrb[213].mxu0 }
0x287e   : > { %v13058_v15 = vadd.f32 %v13057_v16, %v13056_v5  ;;  %v13099_v11 = vadd.f32 %v13098_v47, %v13097_v27 }
0x2880   : > { %v10831_v29 = vadd.f32 %v13058_v15, %v12471_v40 }
0x2882   : > { %v10911_v8 = vadd.f32 %v13099_v11, %v10831_v29 }
0x2885   : > { %v13059_v42 = vpop.f32.mrb[214].mxu1  ;;  %v13100_v6 = vpop.f32.mrb[214].mxu0 }
0x2886   : > { %v13060_v28 = vpop.f32.mrb[215].mxu1  ;;  %v13101_v30 = vpop.f32.mrb[215].mxu0 }
0x2887   : > { %v13061_v34 = vadd.f32 %v13060_v28, %v13059_v42  ;;  %v13102_v58 = vadd.f32 %v13101_v30, %v13100_v6 }
0x2889   : > { %v10836_v61 = vadd.f32 %v13061_v34, %v12471_v40 }
0x288b   : > { %v10916_v36 = vadd.f32 %v13102_v58, %v10836_v61 }
0x28b1   : > { %v13062_v32 = vpop.f32.mrb[216].mxu1  ;;  %v13103_v57 = vpop.f32.mrb[216].mxu0 }
0x28b2   : > { %v13063_v24 = vpop.f32.mrb[217].mxu1  ;;  %v13104_v52 = vpop.f32.mrb[217].mxu0 }
0x28b3   : > { %v13064_v4 = vadd.f32 %v13063_v24, %v13062_v32  ;;  %v13105_v12 = vadd.f32 %v13104_v52, %v13103_v57 }
0x28b5   : > { %v10841_v63 = vadd.f32 %v13064_v4, %v12471_v40  ;;  %v13138_v46 = vpop.f32.mrb[218].mxu1  ;;  %v13179_v35 = vpop.f32.mrb[218].mxu0 }
0x28b6   : > { %v13139_v1 = vpop.f32.mrb[219].mxu1  ;;  %v13180_v17 = vpop.f32.mrb[219].mxu0 }
0x28b7   : > { %v10921_v54 = vadd.f32 %v13105_v12, %v10841_v63  ;;  %v13140_v37 = vadd.f32 %v13139_v1, %v13138_v46  ;;  %v13181_v20 = vadd.f32 %v13180_v17, %v13179_v35 }
0x28b9   : > { %v10991_v2 = vadd.f32 %v13140_v37, %v10911_v8  ;;  %v13141_v45 = vpop.f32.mrb[220].mxu1  ;;  %v13182_v7 = vpop.f32.mrb[220].mxu0 }
0x28ba   : > { %v13142_v39 = vpop.f32.mrb[221].mxu1  ;;  %v13183_v26 = vpop.f32.mrb[221].mxu0 }
0x28bb   : > { %v11071_v50 = vadd.f32 %v13181_v20, %v10991_v2  ;;  %v13143_v13 = vadd.f32 %v13142_v39, %v13141_v45  ;;  %v13184_v49 = vadd.f32 %v13183_v26, %v13182_v7 }
0x28bd   : > { %v10996_v19 = vadd.f32 %v13143_v13, %v10916_v36  ;;  %v13144_v53 = vpop.f32.mrb[222].mxu1  ;;  %v13185_v62 = vpop.f32.mrb[222].mxu0 }
0x28be   : > { %v13145_v43 = vpop.f32.mrb[223].mxu1  ;;  %v13186_v33 = vpop.f32.mrb[223].mxu0 }
0x28bf   : > { %v11076_v56 = vadd.f32 %v13184_v49, %v10996_v19  ;;  %v13146_v59 = vadd.f32 %v13145_v43, %v13144_v53  ;;  %v13187_v41 = vadd.f32 %v13186_v33, %v13185_v62 }
0x28c1   : > { %v11001_v38 = vadd.f32 %v13146_v59, %v10921_v54 }
0x28c3   : > { %v11081_v0 = vadd.f32 %v13187_v41, %v11001_v38 }
0x28d5   : > { %v13220_v22 = vpop.f32.mrb[224].mxu1  ;;  %v13261_v55 = vpop.f32.mrb[224].mxu0 }
0x28d6   : > { %v13221_v3 = vpop.f32.mrb[225].mxu1  ;;  %v13262_v44 = vpop.f32.mrb[225].mxu0 }
0x28d7   : > { %v13222_v60 = vadd.f32 %v13221_v3, %v13220_v22  ;;  %v13263_v48 = vadd.f32 %v13262_v44, %v13261_v55 }
0x28d9   : > { %v11151_v9 = vadd.f32 %v13222_v60, %v11071_v50  ;;  %v13223_v25 = vpop.f32.mrb[226].mxu1  ;;  %v13264_v10 = vpop.f32.mrb[226].mxu0 }
0x28da   : > { %v13224_v5 = vpop.f32.mrb[227].mxu1  ;;  %v13265_v27 = vpop.f32.mrb[227].mxu0 }
0x28db   : > { %v11231_v40 = vadd.f32 %v13263_v48, %v11151_v9  ;;  %v13225_v16 = vadd.f32 %v13224_v5, %v13223_v25  ;;  %v13266_v47 = vadd.f32 %v13265_v27, %v13264_v10  ;;  %v11460_v10 = vld [vmem:[%s22772_s15] sm:$0xff]  ;;  %v11461_v5 = vld [vmem:[%s22772_s15 + $0x8] sm:$0xff] }
0x28dc   : > { %v15391_v27 = vpack.c.bf16 %v11461_v5, %v11460_v10 }
0x28dd   : > { %v11156_v15 = vadd.f32 %v13225_v16, %v11076_v56  ;;  %v13226_v11 = vpop.f32.mrb[228].mxu1  ;;  %v13267_v29 = vpop.f32.mrb[228].mxu0  ;;  %v11463_v16 = vld [vmem:[%s22772_s15 + $0x18] sm:$0xff] }
0x28de   : > { %v13227_v8 = vpop.f32.mrb[229].mxu1  ;;  %v13268_v42 = vpop.f32.mrb[229].mxu0  ;;  %15392 = vmatpush3.bf16.msra.mxu1 %v15391_v27 }
0x28df   : > { %v11236_v6 = vadd.f32 %v13266_v47, %v11156_v15  ;;  %v13228_v28 = vadd.f32 %v13227_v8, %v13226_v11  ;;  %v13269_v30 = vadd.f32 %v13268_v42, %v13267_v29  ;;  %15393 = vmatprep.subr.bf16.mxu1 %v22737_v23  ;;  %v11464_v15 = vld [vmem:[%s22772_s15 + $0x20] sm:$0xff]  ;;  %v11465_v11 = vld [vmem:[%s22772_s15 + $0x28] sm:$0xff]  ;;  %v11466_v8 = vld [vmem:[%s22772_s15 + $0x30] sm:$0xff] }
0x28e0   : > { %v15397_v29 = vpack.c.bf16 %v11465_v11, %v11464_v15  ;;  %v11467_v42 = vld [vmem:[%s22772_s15 + $0x38] sm:$0xff] }
0x28e1   : > { %v11161_v34 = vadd.f32 %v13228_v28, %v11081_v0 }
0x28e3   : > { %v11241_v58 = vadd.f32 %v13269_v30, %v11161_v34 }
0x28f6   : > { %v13302_v61 = vpop.f32.mrb[230].mxu1  ;;  %v13343_v36 = vpop.f32.mrb[230].mxu0 }
0x28f7   : > { %v13303_v32 = vpop.f32.mrb[231].mxu1  ;;  %v13344_v57 = vpop.f32.mrb[231].mxu0 }
0x28f8   : > { %v13304_v24 = vadd.f32 %v13303_v32, %v13302_v61  ;;  %v13345_v52 = vadd.f32 %v13344_v57, %v13343_v36 }
0x28fa   : > { %v11311_v4 = vadd.f32 %v13304_v24, %v11231_v40  ;;  %v13305_v12 = vpop.f32.mrb[232].mxu1  ;;  %v13346_v63 = vpop.f32.mrb[232].mxu0  ;;  %v11462_v40 = vld [vmem:[%s22772_s15 + $0x10] sm:$0xff]  ;;  %v16523_v24 = vld [vmem:[%s22622_s20 + $0x4] sm:$0x7] }
0x28fb   : > { %v13306_v46 = vpop.f32.mrb[233].mxu1  ;;  %v13347_v35 = vpop.f32.mrb[233].mxu0  ;;  %v15394_v47 = vpack.c.bf16 %v11463_v16, %v11462_v40 }
0x28fc   : > { %v11391_v1 = vadd.f32 %v13345_v52, %v11311_v4  ;;  %v13307_v17 = vadd.f32 %v13306_v46, %v13305_v12  ;;  %v13348_v54 = vadd.f32 %v13347_v35, %v13346_v63  ;;  %v11449_v52 = vrot.slane %v16523_v24, %v18935_v21  ;;  %v16524_v12 = vld [vmem:[%s22623_s21 + $0x4] sm:$0x7] }
0x28fd   : > { %15395 = vmatpush3.bf16.msra.mxu1 %v15394_v47  ;;  %v11456_v63 = vrot.slane %v16524_v12, %v18935_v21 }
0x28fe   : > { %v11316_v37 = vadd.f32 %v13307_v17, %v11236_v6  ;;  %v13308_v20 = vpop.f32.mrb[234].mxu1  ;;  %v13349_v2 = vpop.f32.mrb[234].mxu0  ;;  %v11404_v45 = vadd.f32 %v11391_v1, %v21236_v51  ;;  %15396 = vmatprep.subr.bf16.mxu1 %v22737_v23  ;;  %v15400_v6 = vpack.c.bf16 %v11467_v42, %v11466_v8 }
0x28ff   : > { %v13309_v7 = vpop.f32.mrb[235].mxu1  ;;  %v13350_v39 = vpop.f32.mrb[235].mxu0 }
0x2900   : > { %v11396_v26 = vadd.f32 %v13348_v54, %v11316_v37  ;;  %v13310_v50 = vadd.f32 %v13309_v7, %v13308_v20  ;;  %v13351_v13 = vadd.f32 %v13350_v39, %v13349_v2  ;;  %v11407_v49 = vsel %vm1079_vm0, %v11404_v45, 0.0  ;;  %v12472_v39 = vld [vmem:[%s22775_s4] ss:$0 sm:$0xff] }
0x2901   : > { %11408 = vadd.xlane.f32.xlu1 %v11407_v49  ;;  %15398 = vmatpush3.bf16.msra.mxu1 %v15397_v29 }
0x2902   : > { %v11321_v19 = vadd.f32 %v13310_v50, %v11241_v58  ;;  %v11405_v53 = vadd.f32 %v11396_v26, %v21301_v31  ;;  %15399 = vmatprep.subr.bf16.mxu1 %v22737_v23 }
0x2904   : > { %v11401_v62 = vadd.f32 %v13351_v13, %v11321_v19  ;;  %v11410_v43 = vsel %vm1079_vm0, %v11405_v53, 0.0 }
0x2905   : > { %11411 = vadd.xlane.f32.xlu0 %v11410_v43  ;;  %15401 = vmatpush3.bf16.msra.mxu1 %v15400_v6 }
0x2906   : > { %v11406_v33 = vadd.f32 %v11401_v62, %v21333_v18 }
0x2908   : > { %v11413_v56 = vsel %vm1079_vm0, %v11406_v33, 0.0 }
0x2909   : > { %11414 = vadd.xlane.f32.xlu1 %v11413_v56 }
0x298e   : > { %v11409_v51 = vpop.xlane.xlu1 %11408 }
0x298f   : > { %v11416_v59 = vmul.f32 0.015625, %v11409_v51 }
0x2991   : > { %v11419_v41 = vsub.f32 %v11404_v45, %v11416_v59 }
0x2992   : > { %v11412_v38 = vpop.xlane.xlu0 %11411 }
0x2993   : > { %v11417_v0 = vmul.f32 0.015625, %v11412_v38  ;;  %v11422_v22 = vmul.f32 %v11419_v41, %v11419_v41 }
0x2995   : > { %v11420_v55 = vsub.f32 %v11405_v53, %v11417_v0  ;;  %v11425_v3 = vsel %vm1079_vm0, %v11422_v22, 0.0 }
0x2996   : > { %11426 = vadd.xlane.f32.xlu0 %v11425_v3  ;;  %v11415_v31 = vpop.xlane.xlu1 %11414 }
0x2997   : > { %v11418_v44 = vmul.f32 0.015625, %v11415_v31  ;;  %v11423_v60 = vmul.f32 %v11420_v55, %v11420_v55 }
0x2999   : > { %v11421_v48 = vsub.f32 %v11406_v33, %v11418_v44  ;;  %v11428_v9 = vsel %vm1079_vm0, %v11423_v60, 0.0 }
0x299a   : > { %11429 = vadd.xlane.f32.xlu1 %v11428_v9 }
0x299b   : > { %v11424_v18 = vmul.f32 %v11421_v48, %v11421_v48 }
0x299d   : > { %v11431_v25 = vsel %vm1079_vm0, %v11424_v18, 0.0 }
0x299e   : > { %11432 = vadd.xlane.f32.xlu0 %v11431_v25 }
0x2a23   : > { %v11427_v28 = vpop.xlane.xlu0 %11426 }
0x2a24   : > { %v11434_v30 = vmul.f32 0.015625, %v11427_v28 }
0x2a26   : > { %v11437_v34 = vadd.f32 1e-05, %v11434_v30 }
0x2a27   : > { %v11430_v58 = vpop.xlane.xlu1 %11429 }
0x2a28   : > { %16487 = vrsqrt.f32 %v11437_v34  ;;  %v11435_v61 = vmul.f32 0.015625, %v11430_v58 }
0x2a2a   : > { %v11438_v36 = vadd.f32 1e-05, %v11435_v61 }
0x2a2b   : > { %v11433_v32 = vpop.xlane.xlu0 %11432 }
0x2a2c   : > { %16489 = vrsqrt.f32 %v11438_v36  ;;  %v11436_v23 = vmul.f32 0.015625, %v11433_v32 }
0x2a2e   : > { %v11439_v57 = vadd.f32 1e-05, %v11436_v23 }
0x2a30   : > { %16491 = vrsqrt.f32 %v11439_v57 }
0x2a32   : > { %v16488_v4 = vpop.eup %16487 }
0x2a33   : > { %v11443_v46 = vmul.f32 %v16488_v4, %v11419_v41 }
0x2a35   : > { %v11450_v35 = vmul.f32 %v11449_v52, %v11443_v46 }
0x2a36   : > { %v16490_v1 = vpop.eup %16489 }
0x2a37   : > { %v11457_v17 = vadd.f32 %v11456_v63, %v11450_v35  ;;  %v11444_v54 = vmul.f32 %v16490_v1, %v11420_v55 }
0x2a39   : > { %13862 = vmatmul.mubr.msk.f32.vlgmr.msra.gmra.mrb[236].mxu1 %vm1079_vm0, %v11457_v17  ;;  %v11451_v37 = vmul.f32 %v11449_v52, %v11444_v54 }
0x2a3a   : > { %v16492_v20 = vpop.eup %16491  ;;  %13864 = vmatprep.mubr.msk.f32.mxu1 %vm16537_vm1, %v22738_v14 }
0x2a3b   : > { %v11458_v2 = vadd.f32 %v11456_v63, %v11451_v37  ;;  %v11445_v45 = vmul.f32 %v16492_v20, %v11421_v48 }
0x2a3d   : > { %13865 = vmatmul.mubr.msk.f32.gmra.mrb[238].mxu1 %vm1079_vm0, %v11458_v2  ;;  %v11452_v7 = vmul.f32 %v11449_v52, %v11445_v45 }
0x2a3e   : > { %13867 = vmatprep.mubr.msk.f32.mxu1 %vm16537_vm1, %v22738_v14 }
0x2a3f   : > { %v11459_v21 = vadd.f32 %v11456_v63, %v11452_v7 }
0x2a41   : > { %13868 = vmatmul.mubr.msk.f32.gmra.mrb[240].mxu1 %vm1079_vm0, %v11459_v21 }
0x2b0c   : > { %v11550_v26 = vpop.f32.mrb[236].mxu1 }
0x2b0d   : > { %v11551_v50 = vadd.f32 %v12472_v39, %v11550_v26  ;;  %v13863_v14 = vpop.f32.mrb[237].mxu1 }
0x2b0f   : > { %11565 = vst.msk [vmem:[%s739_s26] sm:$0xff] %vm11564_vm7, %v11551_v50 }
0x2b10   : > { %v11555_v13 = vpop.f32.mrb[238].mxu1 }
0x2b11   : > { %v11556_v49 = vadd.f32 %v12472_v39, %v11555_v13  ;;  %v13866_v19 = vpop.f32.mrb[239].mxu1 }
0x2b13   : > { %11566 = vst.msk [vmem:[%s739_s26 + $0x8] sm:$0xff] %vm11564_vm7, %v11556_v49 }
0x2b14   : > { %v11560_v53 = vpop.f32.mrb[240].mxu1 }
0x2b15   : > { %v11561_v62 = vadd.f32 %v12472_v39, %v11560_v53  ;;  %v13869_v43 = vpop.f32.mrb[241].mxu1 }
0x2b17   : > { %11567 = vst.msk [vmem:[%s739_s26 + $0x10] sm:$0xff] %vm11564_vm7, %v11561_v62 }
0x2b18 PF: > { %s22777_s28 = sld [smem:[#allocation2_spill]] }
0x2b1e   : > { %s34_s5 = sadd.s32 1, %s22777_s28  }
0x2b1f   : > { %p31_p5 = scmp.ge.s32.totalorder %s34_s5, 5  }
0x2b21   :  { %33 = sbr.rel (!%p31_p5) target bundleno = 18 (0x12), region = 159 }

</bundles_post_ra>
